<compile_context>
chip_gen: v7x
topology: tpu7x:2x2x1
jax: 0.10.0
libtpu: 0.0.40
codegen_flags: <defaults>
</compile_context>

<pallas_src>
import functools

import jax
import jax.numpy as jnp
from jax.experimental import pallas as pl
from jax.experimental.pallas import tpu as pltpu

EPS = 1e-5  # nn.BatchNorm2d default eps


def _basic_block_kernel(x_ref, wb1_ref, wb2_ref, a_ref,
                        g1_ref, b1_ref, g2_ref, b2_ref,
                        out_ref, pad_ref, *, N, H, W, C):
    """Whole BasicBlock for the (tiny) batch, resident in VMEM.

    x_ref    : (N, H, W*C)    lane-dense input slab (NHWC with W,C merged on lanes)
    wb*_ref  : (3, W*C, W*C)  per-ky block-banded conv weights (dx taps + x-padding baked in)
    a_ref    : (W*C, W*C)     kron(ones(W,W), I_C): per-channel reduce + broadcast
    g*/b*_ref: (1, W*C)       BN gamma/beta tiled over the W lane-blocks
                              (gamma2/beta2 pre-scaled by 2: relu(y2+y2) == relu(2*y2))
    out_ref  : (N, H, W*C)
    pad_ref  : (N, H+2, W*C)  VMEM scratch: per-image row-padded activations
    """
    WC = W * C
    inv_m = 1.0 / float(N * H * W)
    # NOTE(perf/v6e): HIGHEST keeps the 1e-4 check vs. the f32 reference; at
    # C=8 the multi-pass MXU cost is noise.  Drop to DEFAULT / bf16 inputs
    # (f32 accumulation) when scaling channel counts.
    hi = jax.lax.Precision.HIGHEST
    zrow = jnp.zeros((1, WC), jnp.float32)

    # Zero only the 4 halo rows; they stay zero and are reused for both convs.
    for n in range(N):
        pad_ref[n, 0:1, :] = zrow
        pad_ref[n, H + 1:H + 2, :] = zrow

    def conv(wb_ref):
        # 3x3 conv, stride 1, pad 1, no bias: 3 banded (H,WC)x(WC,WC) matmuls
        # per image; no patch slicing, no lane shifting.
        accs = []
        for n in range(N):
            acc = jnp.zeros((H, WC), jnp.float32)
            for ky in range(3):
                acc = acc + jnp.dot(pad_ref[n, ky:ky + H, :], wb_ref[ky],
                                    preferred_element_type=jnp.float32,
                                    precision=hi)
            accs.append(acc)
        return accs

    def bn(accs, g, b):
        # One-pass training-mode stats (biased variance): per-channel sums of
        # x and x^2, reduced/broadcast across the W lane-blocks by the
        # kron(ones(W,W), I_C) matmul, then a sublane reduction over rows.
        sum_vec = zrow
        sq_vec = zrow
        for acc in accs:
            sum_vec = sum_vec + jnp.sum(
                jnp.dot(acc, a_ref[...], preferred_element_type=jnp.float32,
                        precision=hi), axis=0, keepdims=True)
            sq_vec = sq_vec + jnp.sum(
                jnp.dot(acc * acc, a_ref[...], preferred_element_type=jnp.float32,
                        precision=hi), axis=0, keepdims=True)
        mean = sum_vec * inv_m
        var = sq_vec * inv_m - mean * mean
        scale = g * jax.lax.rsqrt(var + EPS)
        shift = b - mean * scale
        return [acc * scale + shift for acc in accs]

    # ---- conv1 -> bn1 -> relu ----
    for n in range(N):
        pad_ref[n, 1:H + 1, :] = x_ref[n, :, :]
    h1 = [jnp.maximum(y, 0.0)
          for y in bn(conv(wb1_ref), g1_ref[...], b1_ref[...])]

    # ---- conv2 -> bn2 (x2 folded into gamma2/beta2) -> relu ----
    # Reference: residual = downsample(x) where x is the bn2 output and the
    # downsample is the identity, so out = relu(y2 + y2) = relu(2*y2).
    for n in range(N):
        pad_ref[n, 1:H + 1, :] = h1[n]
    y2 = bn(conv(wb2_ref), g2_ref[...], b2_ref[...])
    for n in range(N):
        out_ref[n, :, :] = jnp.maximum(y2[n], 0.0)


def basic_block_forward(x_nchw, params):
    """params = (w1, g1, b1, w2, g2, b2); x_nchw is NCHW like PyTorch.

    Conv weights are HWIO (3, 3, C, C) (== PyTorch OIHW transposed (2,3,1,0));
    gamma/beta are (1, C) (or (C,)).
    """
    w1, g1, b1, w2, g2, b2 = params
    N, C, H, W = x_nchw.shape
    WC = W * C
    # Lane-dense design point: W*C must equal the 128-lane vreg width.
    assert WC == 128, "kernel is specialized to W*C == 128 (lane-dense layout)"

    f32 = jnp.float32
    x = jnp.transpose(x_nchw, (0, 2, 3, 1)).astype(f32).reshape(N, H, WC)

    # Block-banded conv weights: for each ky, sum over kx of
    # kron(eye(W, k=-(kx-1)), w[ky, kx]).  Missing off-band blocks at the
    # borders implement the x-direction zero padding for free.
    def band(w_ky):
        return sum(jnp.kron(jnp.eye(W, k=-(kx - 1), dtype=f32),
                            w_ky[kx].astype(f32)) for kx in range(3))

    wb1 = jnp.stack([band(w1[ky]) for ky in range(3)])               # (3, WC, WC)
    wb2 = jnp.stack([band(w2[ky]) for ky in range(3)])               # (3, WC, WC)
    a_mat = jnp.kron(jnp.ones((W, W), f32), jnp.eye(C, dtype=f32))   # (WC, WC)

    def tile_c(v):  # (C,)-like -> (1, W*C): channel pattern repeated per x-block
        return jnp.tile(v.reshape(-1).astype(f32), W).reshape(1, WC)

    g1v, b1v = tile_c(g1), tile_c(b1)
    g2v, b2v = 2.0 * tile_c(g2), 2.0 * tile_c(b2)   # fold relu(y2+y2) == relu(2*y2)

    kernel = functools.partial(_basic_block_kernel, N=N, H=H, W=W, C=C)
    # grid=(1,): the whole (tiny) problem is VMEM-resident in one step.
    # TODO(synk): for a v7x 2-TensorCore split (or realistic FPN sizes beyond
    #   VMEM), tile over H with a 1-row halo and add a cross-tile reduction
    #   pass for the training-mode BatchNorm statistics.
    out = pl.pallas_call(
        kernel,
        out_shape=jax.ShapeDtypeStruct((N, H, WC), f32),
        grid=(1,),
        in_specs=[
            pl.BlockSpec((N, H, WC), lambda i: (0, 0, 0)),
            pl.BlockSpec((3, WC, WC), lambda i: (0, 0, 0)),
            pl.BlockSpec((3, WC, WC), lambda i: (0, 0, 0)),
            pl.BlockSpec((WC, WC), lambda i: (0, 0)),
            pl.BlockSpec((1, WC), lambda i: (0, 0)),
            pl.BlockSpec((1, WC), lambda i: (0, 0)),
            pl.BlockSpec((1, WC), lambda i: (0, 0)),
            pl.BlockSpec((1, WC), lambda i: (0, 0)),
        ],
        out_specs=pl.BlockSpec((N, H, WC), lambda i: (0, 0, 0)),
        scratch_shapes=[pltpu.VMEM((N, H + 2, WC), f32)],
        compiler_params=pltpu.CompilerParams(
            dimension_semantics=("arbitrary",)),
    )(x, wb1, wb2, a_mat, g1v, b1v, g2v, b2v)

    return jnp.transpose(out.reshape(N, H, W, C), (0, 3, 1, 2))      # -> NCHW


def ref_forward(x_nchw, params):
    """Pure-JAX reference matching the PyTorch forward (training-mode BN)."""
    w1, g1, b1, w2, g2, b2 = params
    hi = jax.lax.Precision.HIGHEST

    def conv(x, w):
        return jax.lax.conv_general_dilated(
            x, w, window_strides=(1, 1), padding=((1, 1), (1, 1)),
            dimension_numbers=("NHWC", "HWIO", "NHWC"), precision=hi)

    def bn(y, g, b):
        mean = jnp.mean(y, axis=(0, 1, 2), keepdims=True)
        var = jnp.mean((y - mean) ** 2, axis=(0, 1, 2), keepdims=True)
        return ((y - mean) * jax.lax.rsqrt(var + EPS)
                * g.reshape(1, 1, 1, -1) + b.reshape(1, 1, 1, -1))

    x = jnp.transpose(x_nchw, (0, 2, 3, 1)).astype(jnp.float32)
    h1 = jnp.maximum(bn(conv(x, w1), g1, b1), 0.0)
    y2 = bn(conv(h1, w2), g2, b2)
    out = jnp.maximum(y2 + y2, 0.0)                                  # identity downsample
    return jnp.transpose(out, (0, 3, 1, 2))


if __name__ == "__main__":
    # Small shapes: batch=2, inplanes=outplanes=8, spatial 16x16, stride=1
    # (W*C = 128 -> lane-dense design point).
    N, C, H, W = 2, 8, 16, 16

    key = jax.random.PRNGKey(0)
    kx, k1, k2, k3, k4, k5, k6 = jax.random.split(key, 7)

    x = jax.random.normal(kx, (N, C, H, W), jnp.float32)             # NCHW input

    # Deterministic synthetic parameters (shapes per nn.Conv2d / nn.BatchNorm2d).
    # Conv weights are stored HWIO (== PyTorch OIHW weight transposed (2,3,1,0)).
    w1 = 0.1 * jax.random.normal(k1, (3, 3, C, C), jnp.float32)
    w2 = 0.1 * jax.random.normal(k2, (3, 3, C, C), jnp.float32)
    g1 = 1.0 + 0.1 * jax.random.normal(k3, (1, C), jnp.float32)
    b1 = 0.1 * jax.random.normal(k4, (1, C), jnp.float32)
    g2 = 1.0 + 0.1 * jax.random.normal(k5, (1, C), jnp.float32)
    b2 = 0.1 * jax.random.normal(k6, (1, C), jnp.float32)
    params = (w1, g1, b1, w2, g2, b2)

    out = basic_block_forward(x, params)
    jax.block_until_ready(out)

    ref = ref_forward(x, params)
    assert out.shape == (N, C, H, W), out.shape
    max_err = float(jnp.max(jnp.abs(out - ref)))
    assert jnp.allclose(out, ref, atol=1e-4, rtol=1e-4), max_err

    print("KERNEL_OK")
</pallas_src>

<mosaic_0001>
module attributes {stable_mosaic.version = 11 : i64} {
  func.func @_basic_block_kernel(%arg0: i32, %arg1: memref<2x16x128xf32, #tpu.memory_space<vmem>>, %arg2: memref<3x128x128xf32, #tpu.memory_space<vmem>>, %arg3: memref<3x128x128xf32, #tpu.memory_space<vmem>>, %arg4: memref<128x128xf32, #tpu.memory_space<vmem>>, %arg5: memref<1x128xf32, #tpu.memory_space<vmem>>, %arg6: memref<1x128xf32, #tpu.memory_space<vmem>>, %arg7: memref<1x128xf32, #tpu.memory_space<vmem>>, %arg8: memref<1x128xf32, #tpu.memory_space<vmem>>, %arg9: memref<2x16x128xf32, #tpu.memory_space<vmem>>, %arg10: memref<2x18x128xf32, #tpu.memory_space<vmem>>) attributes {dimension_semantics = [#tpu.dimension_semantics<arbitrary>], iteration_bounds = array<i64: 1>, scalar_prefetch = 0 : i64, scratch_operands = 1 : i64, tpu.core_type = #tpu.core_type<tc>, window_params = [{pipeline_mode = #tpu.pipeline_mode<synchronous>, transform_indices = @transform_0, window_bounds = array<i64: 2, 16, 128>}, {pipeline_mode = #tpu.pipeline_mode<synchronous>, transform_indices = @transform_1, window_bounds = array<i64: 3, 128, 128>}, {pipeline_mode = #tpu.pipeline_mode<synchronous>, transform_indices = @transform_2, window_bounds = array<i64: 3, 128, 128>}, {pipeline_mode = #tpu.pipeline_mode<synchronous>, transform_indices = @transform_3, window_bounds = array<i64: 128, 128>}, {pipeline_mode = #tpu.pipeline_mode<synchronous>, transform_indices = @transform_4, window_bounds = array<i64: 1, 128>}, {pipeline_mode = #tpu.pipeline_mode<synchronous>, transform_indices = @transform_5, window_bounds = array<i64: 1, 128>}, {pipeline_mode = #tpu.pipeline_mode<synchronous>, transform_indices = @transform_6, window_bounds = array<i64: 1, 128>}, {pipeline_mode = #tpu.pipeline_mode<synchronous>, transform_indices = @transform_7, window_bounds = array<i64: 1, 128>}, {pipeline_mode = #tpu.pipeline_mode<synchronous>, transform_indices = @transform_8, window_bounds = array<i64: 2, 16, 128>}]} {
    %cst = arith.constant 0.000000e+00 : f32
    %0 = vector.broadcast %cst : f32 to vector<1x128xf32>
    %c0 = arith.constant 0 : index
    %c0_0 = arith.constant 0 : index
    %c0_1 = arith.constant 0 : index
    %1 = vector.load %arg10[%c0, %c0_0, %c0_1] : memref<2x18x128xf32, #tpu.memory_space<vmem>>, vector<1x1x128xf32>
    %2 = vector.shape_cast %1 : vector<1x1x128xf32> to vector<1x128xf32>
    %3 = vector.shape_cast %0 : vector<1x128xf32> to vector<1x1x128xf32>
    tpu.vector_store %arg10[%c0, %c0_0, %c0_1], %3 {strides = array<i32>} : memref<2x18x128xf32, #tpu.memory_space<vmem>>, vector<1x1x128xf32>,
    %c0_2 = arith.constant 0 : index
    %c17 = arith.constant 17 : index
    %c0_3 = arith.constant 0 : index
    %4 = vector.load %arg10[%c0_2, %c17, %c0_3] : memref<2x18x128xf32, #tpu.memory_space<vmem>>, vector<1x1x128xf32>
    %5 = vector.shape_cast %4 : vector<1x1x128xf32> to vector<1x128xf32>
    %6 = vector.shape_cast %0 : vector<1x128xf32> to vector<1x1x128xf32>
    tpu.vector_store %arg10[%c0_2, %c17, %c0_3], %6 {strides = array<i32>} : memref<2x18x128xf32, #tpu.memory_space<vmem>>, vector<1x1x128xf32>,
    %c1 = arith.constant 1 : index
    %c0_4 = arith.constant 0 : index
    %c0_5 = arith.constant 0 : index
    %7 = vector.load %arg10[%c1, %c0_4, %c0_5] : memref<2x18x128xf32, #tpu.memory_space<vmem>>, vector<1x1x128xf32>
    %8 = vector.shape_cast %7 : vector<1x1x128xf32> to vector<1x128xf32>
    %9 = vector.shape_cast %0 : vector<1x128xf32> to vector<1x1x128xf32>
    tpu.vector_store %arg10[%c1, %c0_4, %c0_5], %9 {strides = array<i32>} : memref<2x18x128xf32, #tpu.memory_space<vmem>>, vector<1x1x128xf32>,
    %c1_6 = arith.constant 1 : index
    %c17_7 = arith.constant 17 : index
    %c0_8 = arith.constant 0 : index
    %10 = vector.load %arg10[%c1_6, %c17_7, %c0_8] : memref<2x18x128xf32, #tpu.memory_space<vmem>>, vector<1x1x128xf32>
    %11 = vector.shape_cast %10 : vector<1x1x128xf32> to vector<1x128xf32>
    %12 = vector.shape_cast %0 : vector<1x128xf32> to vector<1x1x128xf32>
    tpu.vector_store %arg10[%c1_6, %c17_7, %c0_8], %12 {strides = array<i32>} : memref<2x18x128xf32, #tpu.memory_space<vmem>>, vector<1x1x128xf32>,
    %c0_9 = arith.constant 0 : index
    %c0_10 = arith.constant 0 : index
    %c0_11 = arith.constant 0 : index
    %13 = vector.load %arg1[%c0_9, %c0_10, %c0_11] : memref<2x16x128xf32, #tpu.memory_space<vmem>>, vector<1x16x128xf32>
    %14 = vector.shape_cast %13 : vector<1x16x128xf32> to vector<16x128xf32>
    %c0_12 = arith.constant 0 : index
    %c1_13 = arith.constant 1 : index
    %c0_14 = arith.constant 0 : index
    %15 = vector.load %arg10[%c0_12, %c1_13, %c0_14] : memref<2x18x128xf32, #tpu.memory_space<vmem>>, vector<1x16x128xf32>
    %16 = vector.shape_cast %15 : vector<1x16x128xf32> to vector<16x128xf32>
    %17 = vector.shape_cast %14 : vector<16x128xf32> to vector<1x16x128xf32>
    tpu.vector_store %arg10[%c0_12, %c1_13, %c0_14], %17 {strides = array<i32>} : memref<2x18x128xf32, #tpu.memory_space<vmem>>, vector<1x16x128xf32>,
    %c1_15 = arith.constant 1 : index
    %c0_16 = arith.constant 0 : index
    %c0_17 = arith.constant 0 : index
    %18 = vector.load %arg1[%c1_15, %c0_16, %c0_17] : memref<2x16x128xf32, #tpu.memory_space<vmem>>, vector<1x16x128xf32>
    %19 = vector.shape_cast %18 : vector<1x16x128xf32> to vector<16x128xf32>
    %c1_18 = arith.constant 1 : index
    %c1_19 = arith.constant 1 : index
    %c0_20 = arith.constant 0 : index
    %20 = vector.load %arg10[%c1_18, %c1_19, %c0_20] : memref<2x18x128xf32, #tpu.memory_space<vmem>>, vector<1x16x128xf32>
    %21 = vector.shape_cast %20 : vector<1x16x128xf32> to vector<16x128xf32>
    %22 = vector.shape_cast %19 : vector<16x128xf32> to vector<1x16x128xf32>
    tpu.vector_store %arg10[%c1_18, %c1_19, %c0_20], %22 {strides = array<i32>} : memref<2x18x128xf32, #tpu.memory_space<vmem>>, vector<1x16x128xf32>,
    %cst_21 = arith.constant 0.000000e+00 : f32
    %23 = vector.broadcast %cst_21 : f32 to vector<16x128xf32>
    %c0_22 = arith.constant 0 : index
    %c0_23 = arith.constant 0 : index
    %c0_24 = arith.constant 0 : index
    %24 = vector.load %arg10[%c0_22, %c0_23, %c0_24] : memref<2x18x128xf32, #tpu.memory_space<vmem>>, vector<1x16x128xf32>
    %25 = vector.shape_cast %24 : vector<1x16x128xf32> to vector<16x128xf32>
    %c0_25 = arith.constant 0 : index
    %c0_26 = arith.constant 0 : index
    %c0_27 = arith.constant 0 : index
    %26 = vector.load %arg2[%c0_25, %c0_26, %c0_27] : memref<3x128x128xf32, #tpu.memory_space<vmem>>, vector<1x128x128xf32>
    %27 = vector.shape_cast %26 : vector<1x128x128xf32> to vector<128x128xf32>
    %cst_28 = arith.constant dense<0.000000e+00> : vector<16x128xf32>
    %28 = tpu.matmul %25, %27, %cst_28 {dimension_numbers = #tpu.dot_dimension_numbers<[1], [0], [0], [1], [0, 0, 1, 1], [], []>, precision = #tpu.contract_precision<fp32>} : vector<16x128xf32>, vector<128x128xf32>, vector<16x128xf32> -> vector<16x128xf32>
    %29 = arith.addf %23, %28 : vector<16x128xf32>
    %c0_29 = arith.constant 0 : index
    %c1_30 = arith.constant 1 : index
    %c0_31 = arith.constant 0 : index
    %30 = vector.load %arg10[%c0_29, %c1_30, %c0_31] : memref<2x18x128xf32, #tpu.memory_space<vmem>>, vector<1x16x128xf32>
    %31 = vector.shape_cast %30 : vector<1x16x128xf32> to vector<16x128xf32>
    %c1_32 = arith.constant 1 : index
    %c0_33 = arith.constant 0 : index
    %c0_34 = arith.constant 0 : index
    %32 = vector.load %arg2[%c1_32, %c0_33, %c0_34] : memref<3x128x128xf32, #tpu.memory_space<vmem>>, vector<1x128x128xf32>
    %33 = vector.shape_cast %32 : vector<1x128x128xf32> to vector<128x128xf32>
    %cst_35 = arith.constant dense<0.000000e+00> : vector<16x128xf32>
    %34 = tpu.matmul %31, %33, %cst_35 {dimension_numbers = #tpu.dot_dimension_numbers<[1], [0], [0], [1], [0, 0, 1, 1], [], []>, precision = #tpu.contract_precision<fp32>} : vector<16x128xf32>, vector<128x128xf32>, vector<16x128xf32> -> vector<16x128xf32>
    %35 = arith.addf %29, %34 : vector<16x128xf32>
    %c0_36 = arith.constant 0 : index
    %c2 = arith.constant 2 : index
    %c0_37 = arith.constant 0 : index
    %36 = vector.load %arg10[%c0_36, %c2, %c0_37] : memref<2x18x128xf32, #tpu.memory_space<vmem>>, vector<1x16x128xf32>
    %37 = vector.shape_cast %36 : vector<1x16x128xf32> to vector<16x128xf32>
    %c2_38 = arith.constant 2 : index
    %c0_39 = arith.constant 0 : index
    %c0_40 = arith.constant 0 : index
    %38 = vector.load %arg2[%c2_38, %c0_39, %c0_40] : memref<3x128x128xf32, #tpu.memory_space<vmem>>, vector<1x128x128xf32>
    %39 = vector.shape_cast %38 : vector<1x128x128xf32> to vector<128x128xf32>
    %cst_41 = arith.constant dense<0.000000e+00> : vector<16x128xf32>
    %40 = tpu.matmul %37, %39, %cst_41 {dimension_numbers = #tpu.dot_dimension_numbers<[1], [0], [0], [1], [0, 0, 1, 1], [], []>, precision = #tpu.contract_precision<fp32>} : vector<16x128xf32>, vector<128x128xf32>, vector<16x128xf32> -> vector<16x128xf32>
    %41 = arith.addf %35, %40 : vector<16x128xf32>
    %cst_42 = arith.constant 0.000000e+00 : f32
    %42 = vector.broadcast %cst_42 : f32 to vector<16x128xf32>
    %c1_43 = arith.constant 1 : index
    %c0_44 = arith.constant 0 : index
    %c0_45 = arith.constant 0 : index
    %43 = vector.load %arg10[%c1_43, %c0_44, %c0_45] : memref<2x18x128xf32, #tpu.memory_space<vmem>>, vector<1x16x128xf32>
    %44 = vector.shape_cast %43 : vector<1x16x128xf32> to vector<16x128xf32>
    %c0_46 = arith.constant 0 : index
    %c0_47 = arith.constant 0 : index
    %c0_48 = arith.constant 0 : index
    %45 = vector.load %arg2[%c0_46, %c0_47, %c0_48] : memref<3x128x128xf32, #tpu.memory_space<vmem>>, vector<1x128x128xf32>
    %46 = vector.shape_cast %45 : vector<1x128x128xf32> to vector<128x128xf32>
    %cst_49 = arith.constant dense<0.000000e+00> : vector<16x128xf32>
    %47 = tpu.matmul %44, %46, %cst_49 {dimension_numbers = #tpu.dot_dimension_numbers<[1], [0], [0], [1], [0, 0, 1, 1], [], []>, precision = #tpu.contract_precision<fp32>} : vector<16x128xf32>, vector<128x128xf32>, vector<16x128xf32> -> vector<16x128xf32>
    %48 = arith.addf %42, %47 : vector<16x128xf32>
    %c1_50 = arith.constant 1 : index
    %c1_51 = arith.constant 1 : index
    %c0_52 = arith.constant 0 : index
    %49 = vector.load %arg10[%c1_50, %c1_51, %c0_52] : memref<2x18x128xf32, #tpu.memory_space<vmem>>, vector<1x16x128xf32>
    %50 = vector.shape_cast %49 : vector<1x16x128xf32> to vector<16x128xf32>
    %c1_53 = arith.constant 1 : index
    %c0_54 = arith.constant 0 : index
    %c0_55 = arith.constant 0 : index
    %51 = vector.load %arg2[%c1_53, %c0_54, %c0_55] : memref<3x128x128xf32, #tpu.memory_space<vmem>>, vector<1x128x128xf32>
    %52 = vector.shape_cast %51 : vector<1x128x128xf32> to vector<128x128xf32>
    %cst_56 = arith.constant dense<0.000000e+00> : vector<16x128xf32>
    %53 = tpu.matmul %50, %52, %cst_56 {dimension_numbers = #tpu.dot_dimension_numbers<[1], [0], [0], [1], [0, 0, 1, 1], [], []>, precision = #tpu.contract_precision<fp32>} : vector<16x128xf32>, vector<128x128xf32>, vector<16x128xf32> -> vector<16x128xf32>
    %54 = arith.addf %48, %53 : vector<16x128xf32>
    %c1_57 = arith.constant 1 : index
    %c2_58 = arith.constant 2 : index
    %c0_59 = arith.constant 0 : index
    %55 = vector.load %arg10[%c1_57, %c2_58, %c0_59] : memref<2x18x128xf32, #tpu.memory_space<vmem>>, vector<1x16x128xf32>
    %56 = vector.shape_cast %55 : vector<1x16x128xf32> to vector<16x128xf32>
    %c2_60 = arith.constant 2 : index
    %c0_61 = arith.constant 0 : index
    %c0_62 = arith.constant 0 : index
    %57 = vector.load %arg2[%c2_60, %c0_61, %c0_62] : memref<3x128x128xf32, #tpu.memory_space<vmem>>, vector<1x128x128xf32>
    %58 = vector.shape_cast %57 : vector<1x128x128xf32> to vector<128x128xf32>
    %cst_63 = arith.constant dense<0.000000e+00> : vector<16x128xf32>
    %59 = tpu.matmul %56, %58, %cst_63 {dimension_numbers = #tpu.dot_dimension_numbers<[1], [0], [0], [1], [0, 0, 1, 1], [], []>, precision = #tpu.contract_precision<fp32>} : vector<16x128xf32>, vector<128x128xf32>, vector<16x128xf32> -> vector<16x128xf32>
    %60 = arith.addf %54, %59 : vector<16x128xf32>
    %c0_64 = arith.constant 0 : index
    %c0_65 = arith.constant 0 : index
    %61 = vector.load %arg5[%c0_64, %c0_65] : memref<1x128xf32, #tpu.memory_space<vmem>>, vector<1x128xf32>
    %c0_66 = arith.constant 0 : index
    %c0_67 = arith.constant 0 : index
    %62 = vector.load %arg6[%c0_66, %c0_67] : memref<1x128xf32, #tpu.memory_space<vmem>>, vector<1x128xf32>
    %c0_68 = arith.constant 0 : index
    %c0_69 = arith.constant 0 : index
    %63 = vector.load %arg4[%c0_68, %c0_69] : memref<128x128xf32, #tpu.memory_space<vmem>>, vector<128x128xf32>
    %cst_70 = arith.constant dense<0.000000e+00> : vector<16x128xf32>
    %64 = tpu.matmul %41, %63, %cst_70 {dimension_numbers = #tpu.dot_dimension_numbers<[1], [0], [0], [1], [0, 0, 1, 1], [], []>, precision = #tpu.contract_precision<fp32>} : vector<16x128xf32>, vector<128x128xf32>, vector<16x128xf32> -> vector<16x128xf32>
    %cst_71 = arith.constant dense<0.000000e+00> : vector<128xf32>
    %65 = vector.multi_reduction <add>, %64, %cst_71 [0] : vector<16x128xf32> to vector<128xf32>
    %66 = vector.shape_cast %65 : vector<128xf32> to vector<1x128xf32>
    %67 = arith.addf %0, %66 : vector<1x128xf32>
    %68 = arith.mulf %41, %41 : vector<16x128xf32>
    %c0_72 = arith.constant 0 : index
    %c0_73 = arith.constant 0 : index
    %69 = vector.load %arg4[%c0_72, %c0_73] : memref<128x128xf32, #tpu.memory_space<vmem>>, vector<128x128xf32>
    %cst_74 = arith.constant dense<0.000000e+00> : vector<16x128xf32>
    %70 = tpu.matmul %68, %69, %cst_74 {dimension_numbers = #tpu.dot_dimension_numbers<[1], [0], [0], [1], [0, 0, 1, 1], [], []>, precision = #tpu.contract_precision<fp32>} : vector<16x128xf32>, vector<128x128xf32>, vector<16x128xf32> -> vector<16x128xf32>
    %cst_75 = arith.constant dense<0.000000e+00> : vector<128xf32>
    %71 = vector.multi_reduction <add>, %70, %cst_75 [0] : vector<16x128xf32> to vector<128xf32>
    %72 = vector.shape_cast %71 : vector<128xf32> to vector<1x128xf32>
    %73 = arith.addf %0, %72 : vector<1x128xf32>
    %c0_76 = arith.constant 0 : index
    %c0_77 = arith.constant 0 : index
    %74 = vector.load %arg4[%c0_76, %c0_77] : memref<128x128xf32, #tpu.memory_space<vmem>>, vector<128x128xf32>
    %cst_78 = arith.constant dense<0.000000e+00> : vector<16x128xf32>
    %75 = tpu.matmul %60, %74, %cst_78 {dimension_numbers = #tpu.dot_dimension_numbers<[1], [0], [0], [1], [0, 0, 1, 1], [], []>, precision = #tpu.contract_precision<fp32>} : vector<16x128xf32>, vector<128x128xf32>, vector<16x128xf32> -> vector<16x128xf32>
    %cst_79 = arith.constant dense<0.000000e+00> : vector<128xf32>
    %76 = vector.multi_reduction <add>, %75, %cst_79 [0] : vector<16x128xf32> to vector<128xf32>
    %77 = vector.shape_cast %76 : vector<128xf32> to vector<1x128xf32>
    %78 = arith.addf %67, %77 : vector<1x128xf32>
    %79 = arith.mulf %60, %60 : vector<16x128xf32>
    %c0_80 = arith.constant 0 : index
    %c0_81 = arith.constant 0 : index
    %80 = vector.load %arg4[%c0_80, %c0_81] : memref<128x128xf32, #tpu.memory_space<vmem>>, vector<128x128xf32>
    %cst_82 = arith.constant dense<0.000000e+00> : vector<16x128xf32>
    %81 = tpu.matmul %79, %80, %cst_82 {dimension_numbers = #tpu.dot_dimension_numbers<[1], [0], [0], [1], [0, 0, 1, 1], [], []>, precision = #tpu.contract_precision<fp32>} : vector<16x128xf32>, vector<128x128xf32>, vector<16x128xf32> -> vector<16x128xf32>
    %cst_83 = arith.constant dense<0.000000e+00> : vector<128xf32>
    %82 = vector.multi_reduction <add>, %81, %cst_83 [0] : vector<16x128xf32> to vector<128xf32>
    %83 = vector.shape_cast %82 : vector<128xf32> to vector<1x128xf32>
    %84 = arith.addf %73, %83 : vector<1x128xf32>
    %cst_84 = arith.constant 0.001953125 : f32
    %85 = vector.broadcast %cst_84 : f32 to vector<1x128xf32>
    %86 = arith.mulf %78, %85 : vector<1x128xf32>
    %cst_85 = arith.constant 0.001953125 : f32
    %87 = vector.broadcast %cst_85 : f32 to vector<1x128xf32>
    %88 = arith.mulf %84, %87 : vector<1x128xf32>
    %89 = arith.mulf %86, %86 : vector<1x128xf32>
    %90 = arith.subf %88, %89 : vector<1x128xf32>
    %cst_86 = arith.constant 9.99999974E-6 : f32
    %91 = vector.broadcast %cst_86 : f32 to vector<1x128xf32>
    %92 = arith.addf %90, %91 : vector<1x128xf32>
    %93 = math.rsqrt %92 : vector<1x128xf32>
    %94 = arith.mulf %61, %93 : vector<1x128xf32>
    %95 = arith.mulf %86, %94 : vector<1x128xf32>
    %96 = arith.subf %62, %95 : vector<1x128xf32>
    %97 = vector.broadcast %94 : vector<1x128xf32> to vector<16x128xf32>
    %98 = arith.mulf %41, %97 : vector<16x128xf32>
    %99 = vector.broadcast %96 : vector<1x128xf32> to vector<16x128xf32>
    %100 = arith.addf %98, %99 : vector<16x128xf32>
    %101 = vector.broadcast %94 : vector<1x128xf32> to vector<16x128xf32>
    %102 = arith.mulf %60, %101 : vector<16x128xf32>
    %103 = vector.broadcast %96 : vector<1x128xf32> to vector<16x128xf32>
    %104 = arith.addf %102, %103 : vector<16x128xf32>
    %cst_87 = arith.constant 0.000000e+00 : f32
    %105 = vector.broadcast %cst_87 : f32 to vector<16x128xf32>
    %106 = arith.maximumf %100, %105 : vector<16x128xf32>
    %cst_88 = arith.constant 0.000000e+00 : f32
    %107 = vector.broadcast %cst_88 : f32 to vector<16x128xf32>
    %108 = arith.maximumf %104, %107 : vector<16x128xf32>
    %c0_89 = arith.constant 0 : index
    %c1_90 = arith.constant 1 : index
    %c0_91 = arith.constant 0 : index
    %109 = vector.load %arg10[%c0_89, %c1_90, %c0_91] : memref<2x18x128xf32, #tpu.memory_space<vmem>>, vector<1x16x128xf32>
    %110 = vector.shape_cast %109 : vector<1x16x128xf32> to vector<16x128xf32>
    %111 = vector.shape_cast %106 : vector<16x128xf32> to vector<1x16x128xf32>
    tpu.vector_store %arg10[%c0_89, %c1_90, %c0_91], %111 {strides = array<i32>} : memref<2x18x128xf32, #tpu.memory_space<vmem>>, vector<1x16x128xf32>,
    %c1_92 = arith.constant 1 : index
    %c1_93 = arith.constant 1 : index
    %c0_94 = arith.constant 0 : index
    %112 = vector.load %arg10[%c1_92, %c1_93, %c0_94] : memref<2x18x128xf32, #tpu.memory_space<vmem>>, vector<1x16x128xf32>
    %113 = vector.shape_cast %112 : vector<1x16x128xf32> to vector<16x128xf32>
    %114 = vector.shape_cast %108 : vector<16x128xf32> to vector<1x16x128xf32>
    tpu.vector_store %arg10[%c1_92, %c1_93, %c0_94], %114 {strides = array<i32>} : memref<2x18x128xf32, #tpu.memory_space<vmem>>, vector<1x16x128xf32>,
    %cst_95 = arith.constant 0.000000e+00 : f32
    %115 = vector.broadcast %cst_95 : f32 to vector<16x128xf32>
    %c0_96 = arith.constant 0 : index
    %c0_97 = arith.constant 0 : index
    %c0_98 = arith.constant 0 : index
    %116 = vector.load %arg10[%c0_96, %c0_97, %c0_98] : memref<2x18x128xf32, #tpu.memory_space<vmem>>, vector<1x16x128xf32>
    %117 = vector.shape_cast %116 : vector<1x16x128xf32> to vector<16x128xf32>
    %c0_99 = arith.constant 0 : index
    %c0_100 = arith.constant 0 : index
    %c0_101 = arith.constant 0 : index
    %118 = vector.load %arg3[%c0_99, %c0_100, %c0_101] : memref<3x128x128xf32, #tpu.memory_space<vmem>>, vector<1x128x128xf32>
    %119 = vector.shape_cast %118 : vector<1x128x128xf32> to vector<128x128xf32>
    %cst_102 = arith.constant dense<0.000000e+00> : vector<16x128xf32>
    %120 = tpu.matmul %117, %119, %cst_102 {dimension_numbers = #tpu.dot_dimension_numbers<[1], [0], [0], [1], [0, 0, 1, 1], [], []>, precision = #tpu.contract_precision<fp32>} : vector<16x128xf32>, vector<128x128xf32>, vector<16x128xf32> -> vector<16x128xf32>
    %121 = arith.addf %115, %120 : vector<16x128xf32>
    %c0_103 = arith.constant 0 : index
    %c1_104 = arith.constant 1 : index
    %c0_105 = arith.constant 0 : index
    %122 = vector.load %arg10[%c0_103, %c1_104, %c0_105] : memref<2x18x128xf32, #tpu.memory_space<vmem>>, vector<1x16x128xf32>
    %123 = vector.shape_cast %122 : vector<1x16x128xf32> to vector<16x128xf32>
    %c1_106 = arith.constant 1 : index
    %c0_107 = arith.constant 0 : index
    %c0_108 = arith.constant 0 : index
    %124 = vector.load %arg3[%c1_106, %c0_107, %c0_108] : memref<3x128x128xf32, #tpu.memory_space<vmem>>, vector<1x128x128xf32>
    %125 = vector.shape_cast %124 : vector<1x128x128xf32> to vector<128x128xf32>
    %cst_109 = arith.constant dense<0.000000e+00> : vector<16x128xf32>
    %126 = tpu.matmul %123, %125, %cst_109 {dimension_numbers = #tpu.dot_dimension_numbers<[1], [0], [0], [1], [0, 0, 1, 1], [], []>, precision = #tpu.contract_precision<fp32>} : vector<16x128xf32>, vector<128x128xf32>, vector<16x128xf32> -> vector<16x128xf32>
    %127 = arith.addf %121, %126 : vector<16x128xf32>
    %c0_110 = arith.constant 0 : index
    %c2_111 = arith.constant 2 : index
    %c0_112 = arith.constant 0 : index
    %128 = vector.load %arg10[%c0_110, %c2_111, %c0_112] : memref<2x18x128xf32, #tpu.memory_space<vmem>>, vector<1x16x128xf32>
    %129 = vector.shape_cast %128 : vector<1x16x128xf32> to vector<16x128xf32>
    %c2_113 = arith.constant 2 : index
    %c0_114 = arith.constant 0 : index
    %c0_115 = arith.constant 0 : index
    %130 = vector.load %arg3[%c2_113, %c0_114, %c0_115] : memref<3x128x128xf32, #tpu.memory_space<vmem>>, vector<1x128x128xf32>
    %131 = vector.shape_cast %130 : vector<1x128x128xf32> to vector<128x128xf32>
    %cst_116 = arith.constant dense<0.000000e+00> : vector<16x128xf32>
    %132 = tpu.matmul %129, %131, %cst_116 {dimension_numbers = #tpu.dot_dimension_numbers<[1], [0], [0], [1], [0, 0, 1, 1], [], []>, precision = #tpu.contract_precision<fp32>} : vector<16x128xf32>, vector<128x128xf32>, vector<16x128xf32> -> vector<16x128xf32>
    %133 = arith.addf %127, %132 : vector<16x128xf32>
    %cst_117 = arith.constant 0.000000e+00 : f32
    %134 = vector.broadcast %cst_117 : f32 to vector<16x128xf32>
    %c1_118 = arith.constant 1 : index
    %c0_119 = arith.constant 0 : index
    %c0_120 = arith.constant 0 : index
    %135 = vector.load %arg10[%c1_118, %c0_119, %c0_120] : memref<2x18x128xf32, #tpu.memory_space<vmem>>, vector<1x16x128xf32>
    %136 = vector.shape_cast %135 : vector<1x16x128xf32> to vector<16x128xf32>
    %c0_121 = arith.constant 0 : index
    %c0_122 = arith.constant 0 : index
    %c0_123 = arith.constant 0 : index
    %137 = vector.load %arg3[%c0_121, %c0_122, %c0_123] : memref<3x128x128xf32, #tpu.memory_space<vmem>>, vector<1x128x128xf32>
    %138 = vector.shape_cast %137 : vector<1x128x128xf32> to vector<128x128xf32>
    %cst_124 = arith.constant dense<0.000000e+00> : vector<16x128xf32>
    %139 = tpu.matmul %136, %138, %cst_124 {dimension_numbers = #tpu.dot_dimension_numbers<[1], [0], [0], [1], [0, 0, 1, 1], [], []>, precision = #tpu.contract_precision<fp32>} : vector<16x128xf32>, vector<128x128xf32>, vector<16x128xf32> -> vector<16x128xf32>
    %140 = arith.addf %134, %139 : vector<16x128xf32>
    %c1_125 = arith.constant 1 : index
    %c1_126 = arith.constant 1 : index
    %c0_127 = arith.constant 0 : index
    %141 = vector.load %arg10[%c1_125, %c1_126, %c0_127] : memref<2x18x128xf32, #tpu.memory_space<vmem>>, vector<1x16x128xf32>
    %142 = vector.shape_cast %141 : vector<1x16x128xf32> to vector<16x128xf32>
    %c1_128 = arith.constant 1 : index
    %c0_129 = arith.constant 0 : index
    %c0_130 = arith.constant 0 : index
    %143 = vector.load %arg3[%c1_128, %c0_129, %c0_130] : memref<3x128x128xf32, #tpu.memory_space<vmem>>, vector<1x128x128xf32>
    %144 = vector.shape_cast %143 : vector<1x128x128xf32> to vector<128x128xf32>
    %cst_131 = arith.constant dense<0.000000e+00> : vector<16x128xf32>
    %145 = tpu.matmul %142, %144, %cst_131 {dimension_numbers = #tpu.dot_dimension_numbers<[1], [0], [0], [1], [0, 0, 1, 1], [], []>, precision = #tpu.contract_precision<fp32>} : vector<16x128xf32>, vector<128x128xf32>, vector<16x128xf32> -> vector<16x128xf32>
    %146 = arith.addf %140, %145 : vector<16x128xf32>
    %c1_132 = arith.constant 1 : index
    %c2_133 = arith.constant 2 : index
    %c0_134 = arith.constant 0 : index
    %147 = vector.load %arg10[%c1_132, %c2_133, %c0_134] : memref<2x18x128xf32, #tpu.memory_space<vmem>>, vector<1x16x128xf32>
    %148 = vector.shape_cast %147 : vector<1x16x128xf32> to vector<16x128xf32>
    %c2_135 = arith.constant 2 : index
    %c0_136 = arith.constant 0 : index
    %c0_137 = arith.constant 0 : index
    %149 = vector.load %arg3[%c2_135, %c0_136, %c0_137] : memref<3x128x128xf32, #tpu.memory_space<vmem>>, vector<1x128x128xf32>
    %150 = vector.shape_cast %149 : vector<1x128x128xf32> to vector<128x128xf32>
    %cst_138 = arith.constant dense<0.000000e+00> : vector<16x128xf32>
    %151 = tpu.matmul %148, %150, %cst_138 {dimension_numbers = #tpu.dot_dimension_numbers<[1], [0], [0], [1], [0, 0, 1, 1], [], []>, precision = #tpu.contract_precision<fp32>} : vector<16x128xf32>, vector<128x128xf32>, vector<16x128xf32> -> vector<16x128xf32>
    %152 = arith.addf %146, %151 : vector<16x128xf32>
    %c0_139 = arith.constant 0 : index
    %c0_140 = arith.constant 0 : index
    %153 = vector.load %arg7[%c0_139, %c0_140] : memref<1x128xf32, #tpu.memory_space<vmem>>, vector<1x128xf32>
    %c0_141 = arith.constant 0 : index
    %c0_142 = arith.constant 0 : index
    %154 = vector.load %arg8[%c0_141, %c0_142] : memref<1x128xf32, #tpu.memory_space<vmem>>, vector<1x128xf32>
    %c0_143 = arith.constant 0 : index
    %c0_144 = arith.constant 0 : index
    %155 = vector.load %arg4[%c0_143, %c0_144] : memref<128x128xf32, #tpu.memory_space<vmem>>, vector<128x128xf32>
    %cst_145 = arith.constant dense<0.000000e+00> : vector<16x128xf32>
    %156 = tpu.matmul %133, %155, %cst_145 {dimension_numbers = #tpu.dot_dimension_numbers<[1], [0], [0], [1], [0, 0, 1, 1], [], []>, precision = #tpu.contract_precision<fp32>} : vector<16x128xf32>, vector<128x128xf32>, vector<16x128xf32> -> vector<16x128xf32>
    %cst_146 = arith.constant dense<0.000000e+00> : vector<128xf32>
    %157 = vector.multi_reduction <add>, %156, %cst_146 [0] : vector<16x128xf32> to vector<128xf32>
    %158 = vector.shape_cast %157 : vector<128xf32> to vector<1x128xf32>
    %159 = arith.addf %0, %158 : vector<1x128xf32>
    %160 = arith.mulf %133, %133 : vector<16x128xf32>
    %c0_147 = arith.constant 0 : index
    %c0_148 = arith.constant 0 : index
    %161 = vector.load %arg4[%c0_147, %c0_148] : memref<128x128xf32, #tpu.memory_space<vmem>>, vector<128x128xf32>
    %cst_149 = arith.constant dense<0.000000e+00> : vector<16x128xf32>
    %162 = tpu.matmul %160, %161, %cst_149 {dimension_numbers = #tpu.dot_dimension_numbers<[1], [0], [0], [1], [0, 0, 1, 1], [], []>, precision = #tpu.contract_precision<fp32>} : vector<16x128xf32>, vector<128x128xf32>, vector<16x128xf32> -> vector<16x128xf32>
    %cst_150 = arith.constant dense<0.000000e+00> : vector<128xf32>
    %163 = vector.multi_reduction <add>, %162, %cst_150 [0] : vector<16x128xf32> to vector<128xf32>
    %164 = vector.shape_cast %163 : vector<128xf32> to vector<1x128xf32>
    %165 = arith.addf %0, %164 : vector<1x128xf32>
    %c0_151 = arith.constant 0 : index
    %c0_152 = arith.constant 0 : index
    %166 = vector.load %arg4[%c0_151, %c0_152] : memref<128x128xf32, #tpu.memory_space<vmem>>, vector<128x128xf32>
    %cst_153 = arith.constant dense<0.000000e+00> : vector<16x128xf32>
    %167 = tpu.matmul %152, %166, %cst_153 {dimension_numbers = #tpu.dot_dimension_numbers<[1], [0], [0], [1], [0, 0, 1, 1], [], []>, precision = #tpu.contract_precision<fp32>} : vector<16x128xf32>, vector<128x128xf32>, vector<16x128xf32> -> vector<16x128xf32>
    %cst_154 = arith.constant dense<0.000000e+00> : vector<128xf32>
    %168 = vector.multi_reduction <add>, %167, %cst_154 [0] : vector<16x128xf32> to vector<128xf32>
    %169 = vector.shape_cast %168 : vector<128xf32> to vector<1x128xf32>
    %170 = arith.addf %159, %169 : vector<1x128xf32>
    %171 = arith.mulf %152, %152 : vector<16x128xf32>
    %c0_155 = arith.constant 0 : index
    %c0_156 = arith.constant 0 : index
    %172 = vector.load %arg4[%c0_155, %c0_156] : memref<128x128xf32, #tpu.memory_space<vmem>>, vector<128x128xf32>
    %cst_157 = arith.constant dense<0.000000e+00> : vector<16x128xf32>
    %173 = tpu.matmul %171, %172, %cst_157 {dimension_numbers = #tpu.dot_dimension_numbers<[1], [0], [0], [1], [0, 0, 1, 1], [], []>, precision = #tpu.contract_precision<fp32>} : vector<16x128xf32>, vector<128x128xf32>, vector<16x128xf32> -> vector<16x128xf32>
    %cst_158 = arith.constant dense<0.000000e+00> : vector<128xf32>
    %174 = vector.multi_reduction <add>, %173, %cst_158 [0] : vector<16x128xf32> to vector<128xf32>
    %175 = vector.shape_cast %174 : vector<128xf32> to vector<1x128xf32>
    %176 = arith.addf %165, %175 : vector<1x128xf32>
    %cst_159 = arith.constant 0.001953125 : f32
    %177 = vector.broadcast %cst_159 : f32 to vector<1x128xf32>
    %178 = arith.mulf %170, %177 : vector<1x128xf32>
    %cst_160 = arith.constant 0.001953125 : f32
    %179 = vector.broadcast %cst_160 : f32 to vector<1x128xf32>
    %180 = arith.mulf %176, %179 : vector<1x128xf32>
    %181 = arith.mulf %178, %178 : vector<1x128xf32>
    %182 = arith.subf %180, %181 : vector<1x128xf32>
    %cst_161 = arith.constant 9.99999974E-6 : f32
    %183 = vector.broadcast %cst_161 : f32 to vector<1x128xf32>
    %184 = arith.addf %182, %183 : vector<1x128xf32>
    %185 = math.rsqrt %184 : vector<1x128xf32>
    %186 = arith.mulf %153, %185 : vector<1x128xf32>
    %187 = arith.mulf %178, %186 : vector<1x128xf32>
    %188 = arith.subf %154, %187 : vector<1x128xf32>
    %189 = vector.broadcast %186 : vector<1x128xf32> to vector<16x128xf32>
    %190 = arith.mulf %133, %189 : vector<16x128xf32>
    %191 = vector.broadcast %188 : vector<1x128xf32> to vector<16x128xf32>
    %192 = arith.addf %190, %191 : vector<16x128xf32>
    %193 = vector.broadcast %186 : vector<1x128xf32> to vector<16x128xf32>
    %194 = arith.mulf %152, %193 : vector<16x128xf32>
    %195 = vector.broadcast %188 : vector<1x128xf32> to vector<16x128xf32>
    %196 = arith.addf %194, %195 : vector<16x128xf32>
    %cst_162 = arith.constant 0.000000e+00 : f32
    %197 = vector.broadcast %cst_162 : f32 to vector<16x128xf32>
    %198 = arith.maximumf %192, %197 : vector<16x128xf32>
    %c0_163 = arith.constant 0 : index
    %c0_164 = arith.constant 0 : index
    %c0_165 = arith.constant 0 : index
    %199 = vector.load %arg9[%c0_163, %c0_164, %c0_165] : memref<2x16x128xf32, #tpu.memory_space<vmem>>, vector<1x16x128xf32>
    %200 = vector.shape_cast %199 : vector<1x16x128xf32> to vector<16x128xf32>
    %201 = vector.shape_cast %198 : vector<16x128xf32> to vector<1x16x128xf32>
    tpu.vector_store %arg9[%c0_163, %c0_164, %c0_165], %201 {strides = array<i32>} : memref<2x16x128xf32, #tpu.memory_space<vmem>>, vector<1x16x128xf32>,
    %cst_166 = arith.constant 0.000000e+00 : f32
    %202 = vector.broadcast %cst_166 : f32 to vector<16x128xf32>
    %203 = arith.maximumf %196, %202 : vector<16x128xf32>
    %c1_167 = arith.constant 1 : index
    %c0_168 = arith.constant 0 : index
    %c0_169 = arith.constant 0 : index
    %204 = vector.load %arg9[%c1_167, %c0_168, %c0_169] : memref<2x16x128xf32, #tpu.memory_space<vmem>>, vector<1x16x128xf32>
    %205 = vector.shape_cast %204 : vector<1x16x128xf32> to vector<16x128xf32>
    %206 = vector.shape_cast %203 : vector<16x128xf32> to vector<1x16x128xf32>
    tpu.vector_store %arg9[%c1_167, %c0_168, %c0_169], %206 {strides = array<i32>} : memref<2x16x128xf32, #tpu.memory_space<vmem>>, vector<1x16x128xf32>,
    return
  }
  func.func @transform_0(%arg0: i32) -> (i32, i32, i32) {
    %c0_i32 = arith.constant 0 : i32
    %c0_i32_0 = arith.constant 0 : i32
    %c0_i32_1 = arith.constant 0 : i32
    %c0_i32_2 = arith.constant 0 : i32
    return %c0_i32, %c0_i32_0, %c0_i32_1 : i32, i32, i32
  }
  func.func @transform_1(%arg0: i32) -> (i32, i32, i32) {
    %c0_i32 = arith.constant 0 : i32
    %c0_i32_0 = arith.constant 0 : i32
    %c0_i32_1 = arith.constant 0 : i32
    %c0_i32_2 = arith.constant 0 : i32
    return %c0_i32, %c0_i32_0, %c0_i32_1 : i32, i32, i32
  }
  func.func @transform_2(%arg0: i32) -> (i32, i32, i32) {
    %c0_i32 = arith.constant 0 : i32
    %c0_i32_0 = arith.constant 0 : i32
    %c0_i32_1 = arith.constant 0 : i32
    %c0_i32_2 = arith.constant 0 : i32
    return %c0_i32, %c0_i32_0, %c0_i32_1 : i32, i32, i32
  }
  func.func @transform_3(%arg0: i32) -> (i32, i32) {
    %c0_i32 = arith.constant 0 : i32
    %c0_i32_0 = arith.constant 0 : i32
    %c0_i32_1 = arith.constant 0 : i32
    return %c0_i32, %c0_i32_0 : i32, i32
  }
  func.func @transform_4(%arg0: i32) -> (i32, i32) {
    %c0_i32 = arith.constant 0 : i32
    %c0_i32_0 = arith.constant 0 : i32
    %c0_i32_1 = arith.constant 0 : i32
    return %c0_i32, %c0_i32_0 : i32, i32
  }
  func.func @transform_5(%arg0: i32) -> (i32, i32) {
    %c0_i32 = arith.constant 0 : i32
    %c0_i32_0 = arith.constant 0 : i32
    %c0_i32_1 = arith.constant 0 : i32
    return %c0_i32, %c0_i32_0 : i32, i32
  }
  func.func @transform_6(%arg0: i32) -> (i32, i32) {
    %c0_i32 = arith.constant 0 : i32
    %c0_i32_0 = arith.constant 0 : i32
    %c0_i32_1 = arith.constant 0 : i32
    return %c0_i32, %c0_i32_0 : i32, i32
  }
  func.func @transform_7(%arg0: i32) -> (i32, i32) {
    %c0_i32 = arith.constant 0 : i32
    %c0_i32_0 = arith.constant 0 : i32
    %c0_i32_1 = arith.constant 0 : i32
    return %c0_i32, %c0_i32_0 : i32, i32
  }
  func.func @transform_8(%arg0: i32) -> (i32, i32, i32) {
    %c0_i32 = arith.constant 0 : i32
    %c0_i32_0 = arith.constant 0 : i32
    %c0_i32_1 = arith.constant 0 : i32
    %c0_i32_2 = arith.constant 0 : i32
    return %c0_i32, %c0_i32_0, %c0_i32_1 : i32, i32, i32
  }
}

</mosaic_0001>

<bundles_post_ra>
// kernel: tpu_custom_call.1
= control target key start
LH: loop header
LB: loop body
LE: loop exit
PB: predicated region body
PF: predicated region fallthrough
CT: control target
= control target key end

     0   :  { %13 = vsyncpa [#allocation4], 0  ;;  %s29063_s0 = inlined_call_operand.hbm [shape: f32[2,16,128], index: 0, kind: input, shape index: {}]   ;;  %s29064_s1 = inlined_call_operand.hbm [shape: f32[3,128,128], index: 1, kind: input, shape index: {}]   ;;  %s29065_s2 = inlined_call_operand.hbm [shape: f32[3,128,128], index: 2, kind: input, shape index: {}]   ;;  %s29066_s3 = inlined_call_operand.hbm [shape: f32[128,128], index: 3, kind: input, shape index: {}]   ;;  %s29067_s4 = inlined_call_operand.vmem [shape: f32[1,128], index: 4, kind: input, shape index: {}]   ;;  %s29068_s5 = inlined_call_operand.vmem [shape: f32[1,128], index: 5, kind: input, shape index: {}]   ;;  %s29069_s6 = inlined_call_operand.vmem [shape: f32[1,128], index: 6, kind: input, shape index: {}]   ;;  %s29070_s7 = inlined_call_operand.vmem [shape: f32[1,128], index: 7, kind: input, shape index: {}]   ;;  %s29071_s8 = inlined_call_operand.hbm [shape: f32[2,16,128], index: 8, kind: output, shape index: {}]  }
   0x1   :  { %14 = vsyncpa [#allocation7], 0 }
   0x2   :  { %15 = vsyncpa [#allocation10], 0 }
   0x3   :  { %16 = vsyncpa [#allocation5], 0  ;;  %s24659_s27 = smov [#allocation6]   ;;  %s24660_s29 = smov [#allocation3]  }
   0x4   :  { %s34_s28 = sshll.u32 %s24659_s27, 4  ;;  %s22_s30 = sshll.u32 %s24660_s29, 4  ;;  %s35_s28 = int_to_ptr.vmem [resolvable:$true] %s34_s28  ;;  %s24712_s30 = int_to_ptr.vmem [resolvable:$true] %s22_s30 }
   0x5   :  { %s24541_s11 = scalar_lea.hbm %s29064_s1, 6144 }
   0x6   :  { %p24542_p0 = scmp.ne.s32.totalorder %s29064_s1, %s24541_s11  ;;  %p24545_p1 = scmp.lt.u32.totalorder %s24541_s11, %s29064_s1 }
   0x8   :  { %p24547_p2 = pnand %p24545_p1, %p24542_p0 }
   0xa   :  { %24550 = shalt.err (!%p24547_p2)
}
   0xb   :  { %s24551_s16 = scalar_lea.vmem %s35_s28, 6144  ;;  %p24556_p4 = scmp.lt.s32.totalorder %s35_s28, %s35_s28 }
   0xc   :  { %p24552_p3 = scmp.ne.s32.totalorder %s35_s28, %s24551_s16  ;;  %p24557_p5 = scmp.lt.s32.totalorder %s24551_s16, %s24551_s16 }
   0xe   :  { %p24558_p6 = por %p24557_p5, %p24556_p4 }
  0x10   :  { %p24559_p7 = pnand %p24558_p6, %p24552_p3 }
  0x12   :  { %24562 = shalt.err (!%p24559_p7)
}
  0x13   :  { %s24661_s17 = smov 128   ;;  %s24662_s18 = smov 8  }
  0x14   :  { %40 = dma.hbm_to_vmem [thread:$0]  %s29064_s1, 6144, %s35_s28, [#allocation7], %s24661_s17, %s24661_s17, %s24662_s18  }
  0x15   :  { %s24563_s23 = scalar_lea.hbm %s29063_s0, 512 }
  0x16   :  { %p24564_p8 = scmp.ne.s32.totalorder %s29063_s0, %s24563_s23  ;;  %p24567_p9 = scmp.lt.u32.totalorder %s24563_s23, %s29063_s0 }
  0x18   :  { %p24569_p10 = pnand %p24567_p9, %p24564_p8 }
  0x1a   :  { %24572 = shalt.err (!%p24569_p10)
}
  0x1b   :  { %s24573_s29 = scalar_lea.vmem %s24712_s30, 512  ;;  %p24578_p12 = scmp.lt.s32.totalorder %s24712_s30, %s24712_s30 }
  0x1c   :  { %p24574_p11 = scmp.ne.s32.totalorder %s24712_s30, %s24573_s29  ;;  %p24579_p13 = scmp.lt.s32.totalorder %s24573_s29, %s24573_s29 }
  0x1e   :  { %p24580_p0 = por %p24579_p13, %p24578_p12 }
  0x20   :  { %p24581_p1 = pnand %p24580_p0, %p24574_p11 }
  0x22   :  { %24584 = shalt.err (!%p24581_p1)
}
  0x23   :  { %28 = dma.hbm_to_vmem [thread:$0]  %s29063_s0, 512, %s24712_s30, [#allocation4], %s24661_s17, %s24661_s17, %s24662_s18  }
  0x24   :  { %s24663_s9 = smov [#allocation8]   ;;  %s24664_s11 = smov [#allocation9]  }
  0x25   :  { %s46_s10 = sshll.u32 %s24663_s9, 4  ;;  %s58_s12 = sshll.u32 %s24664_s11, 4  ;;  %s47_s10 = int_to_ptr.vmem [resolvable:$true] %s46_s10  ;;  %s24749_s12 = int_to_ptr.vmem [resolvable:$true] %s58_s12 }
  0x26   :  { %s24585_s15 = scalar_lea.hbm %s29065_s2, 6144 }
  0x27   :  { %p24586_p2 = scmp.ne.s32.totalorder %s29065_s2, %s24585_s15  ;;  %p24589_p3 = scmp.lt.u32.totalorder %s24585_s15, %s29065_s2 }
  0x29   :  { %p24591_p4 = pnand %p24589_p3, %p24586_p2 }
  0x2b   :  { %24594 = shalt.err (!%p24591_p4)
}
  0x2c   :  { %s24595_s0 = scalar_lea.vmem %s47_s10, 6144  ;;  %p24600_p6 = scmp.lt.s32.totalorder %s47_s10, %s47_s10 }
  0x2d   :  { %p24596_p5 = scmp.ne.s32.totalorder %s47_s10, %s24595_s0  ;;  %p24601_p7 = scmp.lt.s32.totalorder %s24595_s0, %s24595_s0 }
  0x2f   :  { %p24602_p8 = por %p24601_p7, %p24600_p6 }
  0x31   :  { %p24603_p9 = pnand %p24602_p8, %p24596_p5 }
  0x33   :  { %24606 = shalt.err (!%p24603_p9)
}
  0x34   :  { %52 = dma.hbm_to_vmem [thread:$0]  %s29065_s2, 6144, %s47_s10, [#allocation7], %s24661_s17, %s24661_s17, %s24662_s18  }
  0x35   :  { %s24607_s25 = scalar_lea.hbm %s29066_s3, 2048 }
  0x36   :  { %p24608_p10 = scmp.ne.s32.totalorder %s29066_s3, %s24607_s25  ;;  %p24611_p11 = scmp.lt.u32.totalorder %s24607_s25, %s29066_s3 }
  0x38   :  { %p24613_p12 = pnand %p24611_p11, %p24608_p10 }
  0x3a   :  { %24616 = shalt.err (!%p24613_p12)
}
  0x3b   :  { %s24617_s28 = scalar_lea.vmem %s24749_s12, 2048  ;;  %p24622_p0 = scmp.lt.s32.totalorder %s24749_s12, %s24749_s12 }
  0x3c   :  { %p24618_p13 = scmp.ne.s32.totalorder %s24749_s12, %s24617_s28  ;;  %p24623_p1 = scmp.lt.s32.totalorder %s24617_s28, %s24617_s28 }
  0x3e   :  { %p24624_p2 = por %p24623_p1, %p24622_p0 }
  0x40   :  { %p24625_p3 = pnand %p24624_p2, %p24618_p13 }
  0x42   :  { %24628 = shalt.err (!%p24625_p3)
}
  0x43   :  { %64 = dma.hbm_to_vmem [thread:$0]  %s29066_s3, 2048, %s24749_s12, [#allocation10], %s24661_s17, %s24661_s17, %s24662_s18  }
  0x44   :  { %24651 = dma.done.wait [#allocation4], 512  }
  0x45   :  { %24652 = vsyncadd [#allocation4], 4294966784 }
  0x46   :  { %24653 = dma.done.wait [#allocation7], 12288  }
  0x47   :  { %24654 = vsyncadd [#allocation7], 4294955008 }
  0x48   :  { %24655 = dma.done.wait [#allocation10], 2048  }
  0x49   :  { %24656 = vsyncadd [#allocation10], 4294965248  ;;  %v120_v0 = vld [vmem:[#allocation6 + $0x80] sm:$0xff]  ;;  %v121_v1 = vld [vmem:[#allocation6 + $0x88] sm:$0xff] }
  0x4a   :  { %v24786_v2 = vld [vmem:[#allocation6 + $0x90] sm:$0xff]  ;;  %v137_v3 = vand.u32 4294901760, %v120_v0  ;;  %v140_v4 = vand.u32 4294901760, %v121_v1  ;;  %v24788_v5 = vld [vmem:[#allocation6 + $0x98] sm:$0xff]  ;;  %v24791_v7 = vld [vmem:[#allocation6 + $0xa0] sm:$0xff] }
  0x4b   :  { %v143_v6 = vand.u32 4294901760, %v24786_v2  ;;  %v24793_v8 = vld [vmem:[#allocation6 + $0xa8] sm:$0xff]  ;;  %v146_v9 = vand.u32 4294901760, %v24788_v5  ;;  %v149_v11 = vand.u32 4294901760, %v24791_v7  ;;  %v24804_v14 = vld [vmem:[#allocation6 + $0xb0] sm:$0xff]  ;;  %v24806_v15 = vld [vmem:[#allocation6 + $0xb8] sm:$0xff] }
  0x4c   :  { %v24796_v10 = vpack.c.bf16 %v140_v4, %v137_v3  ;;  %v152_v12 = vand.u32 4294901760, %v24793_v8  ;;  %v90_v16 = vld [vmem:[#allocation3] sm:$0xff]  ;;  %v95_v17 = vld [vmem:[#allocation3 + $0x10] sm:$0xff]  ;;  %v91_v19 = vld [vmem:[#allocation3 + $0x8] sm:$0xff]  ;;  %v155_v22 = vand.u32 4294901760, %v24804_v14  ;;  %v158_v23 = vand.u32 4294901760, %v24806_v15 }
  0x4d   :  { %v24802_v13 = vpack.c.bf16 %v146_v9, %v143_v6  ;;  %92 = vst [vmem:[#allocation2 + $0x1] sm:$0xff] %v90_v16  ;;  %v24812_v18 = vand.u32 4294901760, %v90_v16  ;;  %97 = vst [vmem:[#allocation2 + $0x19] sm:$0xff] %v95_v17  ;;  %v96_v20 = vld [vmem:[#allocation3 + $0x18] sm:$0xff]  ;;  %v24824_v24 = vand.u32 4294901760, %v95_v17  ;;  %v24826_v25 = vld [vmem:[#allocation6 + $0xc0] sm:$0xff]  ;;  %v24857_v37 = vsub.f32 %v120_v0, %v137_v3 }
  0x4e   :  { %20474 = vmatprep.subr.bf16.mxu0 %v24796_v10  ;;  %21050 = vmatprep.subr.bf16.mxu1 %v24796_v10  ;;  %v24820_v21 = vpack.c.bf16 %v152_v12, %v149_v11  ;;  %93 = vst [vmem:[#allocation2 + $0x9] sm:$0xff] %v91_v19  ;;  %98 = vst [vmem:[#allocation2 + $0x21] sm:$0xff] %v96_v20  ;;  %v24828_v26 = vld [vmem:[#allocation6 + $0xc8] sm:$0xff]  ;;  %v24845_v30 = vpack.c.bf16 %v158_v23, %v155_v22  ;;  %v161_v31 = vand.u32 4294901760, %v24826_v25  ;;  %v24849_v33 = vld [vmem:[#allocation6 + $0xd0] sm:$0xff] }
  0x4f   :  { %20476 = vmatpush3.bf16.msra.mxu0 %v24796_v10  ;;  %21052 = vmatpush3.bf16.msra.mxu1 %v24796_v10  ;;  %v24831_v27 = vsub.f32 %v90_v16, %v24812_v18  ;;  %v24834_v28 = vsub.f32 %v95_v17, %v24824_v24  ;;  %v164_v32 = vand.u32 4294901760, %v24828_v26  ;;  %v24852_v35 = vld [vmem:[#allocation6 + $0xd8] sm:$0xff]  ;;  %v24859_v38 = vsub.f32 %v121_v1, %v140_v4  ;;  %v132_v46 = vld [vmem:[#allocation6 + $0xe0] sm:$0xff]  ;;  %v133_v47 = vld [vmem:[#allocation6 + $0xe8] sm:$0xff] }
  0x50   :  { %20478 = vmatprep.subr.bf16.mxu0 %v24802_v13  ;;  %21054 = vmatprep.subr.bf16.mxu1 %v24802_v13  ;;  %v24861_v39 = vand.u32 4294901760, %v91_v19  ;;  %v24866_v41 = vand.u32 4294901760, %v96_v20  ;;  %v167_v42 = vand.u32 4294901760, %v24849_v33  ;;  %v170_v45 = vand.u32 4294901760, %v24852_v35  ;;  %v134_v50 = vld [vmem:[#allocation6 + $0xf0] sm:$0xff]  ;;  %v135_v51 = vld [vmem:[#allocation6 + $0xf8] sm:$0xff] }
  0x51   :  { %v29075_v29 = vand.u32 4294901760, %v24831_v27  ;;  %v29074_v34 = vand.u32 4294901760, %v24834_v28  ;;  %v24877_v44 = vpack.c.bf16 %v164_v32, %v161_v31  ;;  %v24881_v49 = vsub.f32 %v24786_v2, %v143_v6 }
  0x52   :  { %v240_v52 = vand.u32 4294901760, %v24857_v37  ;;  %v247_v53 = vand.u32 4294901760, %v24859_v38  ;;  %v24886_v54 = vsub.f32 %v91_v19, %v24861_v39  ;;  %v24891_v55 = vsub.f32 %v24788_v5, %v146_v9 }
  0x53   :  { %20480 = vmatpush3.bf16.msra.mxu0 %v24802_v13  ;;  %21056 = vmatpush3.bf16.msra.mxu1 %v24802_v13  ;;  %v220_v36 = vsub.f32 %v24831_v27, %v29075_v29  ;;  %v2297_v40 = vsub.f32 %v24834_v28, %v29074_v34  ;;  %v24894_v56 = vsub.f32 %v96_v20, %v24866_v41  ;;  %v173_v57 = vand.u32 4294901760, %v132_v46 }
  0x54   :  { %20482 = vmatprep.subr.bf16.mxu0 %v24820_v21  ;;  %21058 = vmatprep.subr.bf16.mxu1 %v24820_v21  ;;  %v176_v58 = vand.u32 4294901760, %v133_v47  ;;  %v24900_v59 = vpack.c.bf16 %v170_v45, %v167_v42  ;;  %v179_v60 = vand.u32 4294901760, %v134_v50  ;;  %v182_v61 = vand.u32 4294901760, %v135_v51 }
  0x55   :  { %v221_v43 = vand.u32 4294901760, %v220_v36  ;;  %v2298_v48 = vand.u32 4294901760, %v2297_v40  ;;  %v254_v62 = vand.u32 4294901760, %v24881_v49  ;;  %v241_v63 = vsub.f32 %v24857_v37, %v240_v52 }
  0x56   :  { %v248_v0 = vsub.f32 %v24859_v38, %v247_v53  ;;  %v29073_v1 = vand.u32 4294901760, %v24886_v54  ;;  %v261_v2 = vand.u32 4294901760, %v24891_v55  ;;  %v29072_v3 = vand.u32 4294901760, %v24894_v56 }
  0x57   :  { %20484 = vmatpush3.bf16.msra.mxu0 %v24820_v21  ;;  %21060 = vmatpush3.bf16.msra.mxu1 %v24820_v21  ;;  %v24915_v4 = vsub.f32 %v24791_v7, %v149_v11  ;;  %v24922_v5 = vsub.f32 %v24793_v8, %v152_v12  ;;  %v24926_v6 = vpack.c.bf16 %v176_v58, %v173_v57  ;;  %v242_v11 = vand.u32 4294901760, %v241_v63 }
  0x58   :  { %20486 = vmatprep.subr.bf16.mxu0 %v24845_v30  ;;  %21062 = vmatprep.subr.bf16.mxu1 %v24845_v30  ;;  %v24928_v9 = vpack.c.bf16 %v182_v61, %v179_v60  ;;  %v255_v7 = vsub.f32 %v24881_v49, %v254_v62  ;;  %v249_v16 = vand.u32 4294901760, %v248_v0  ;;  %v230_v17 = vsub.f32 %v24886_v54, %v29073_v1 }
  0x59   :  { %16305 = vmatprep.mubr.f32.mxu0 %v221_v43  ;;  %16935 = vmatprep.mubr.f32.mxu1 %v2298_v48  ;;  %v262_v19 = vsub.f32 %v24891_v55, %v261_v2  ;;  %v2307_v8 = vsub.f32 %v24894_v56, %v29072_v3  ;;  %v268_v12 = vand.u32 4294901760, %v24915_v4  ;;  %v24942_v20 = vsub.f32 %v24804_v14, %v155_v22 }
  0x5a   :  { %v24947_v36 = vsub.f32 %v24806_v15, %v158_v23  ;;  %v275_v40 = vand.u32 4294901760, %v24922_v5  ;;  %v24955_v43 = vsub.f32 %v24826_v25, %v161_v31  ;;  %v24960_v14 = vsub.f32 %v24828_v26, %v164_v32 }
  0x5b   :  { %20488 = vmatpush3.bf16.msra.mxu0 %v24845_v30  ;;  %21064 = vmatpush3.bf16.msra.mxu1 %v24845_v30  ;;  %v24963_v22 = vsub.f32 %v24849_v33, %v167_v42  ;;  %v256_v15 = vand.u32 4294901760, %v255_v7  ;;  %v24968_v23 = vsub.f32 %v24852_v35, %v170_v45  ;;  %v24970_v48 = vsub.f32 %v132_v46, %v173_v57 }
  0x5c   :  { %20490 = vmatprep.subr.bf16.mxu0 %v24877_v44  ;;  %21066 = vmatprep.subr.bf16.mxu1 %v24877_v44  ;;  %v24972_v25 = vsub.f32 %v133_v47, %v176_v58  ;;  %v20505_v31 = vpack.c.bf16 %v249_v16, %v242_v11  ;;  %v231_v63 = vand.u32 4294901760, %v230_v17  ;;  %v24974_v0 = vsub.f32 %v134_v50, %v179_v60 }
  0x5d   :  { %v24976_v26 = vsub.f32 %v135_v51, %v182_v61  ;;  %v263_v32 = vand.u32 4294901760, %v262_v19  ;;  %v269_v33 = vsub.f32 %v24915_v4, %v268_v12  ;;  %v282_v42 = vand.u32 4294901760, %v24942_v20 }
  0x5e   :  { %v289_v7 = vand.u32 4294901760, %v24947_v36  ;;  %v276_v35 = vsub.f32 %v24922_v5, %v275_v40  ;;  %v296_v45 = vand.u32 4294901760, %v24955_v43  ;;  %v303_v46 = vand.u32 4294901760, %v24960_v14 }
  0x5f   :  { %20492 = vmatpush3.bf16.msra.mxu0 %v24877_v44  ;;  %21068 = vmatpush3.bf16.msra.mxu1 %v24877_v44  ;;  %v310_v47 = vand.u32 4294901760, %v24963_v22  ;;  %v317_v50 = vand.u32 4294901760, %v24968_v23  ;;  %v324_v51 = vand.u32 4294901760, %v24970_v48  ;;  %v331_v57 = vand.u32 4294901760, %v24972_v25 }
  0x60   :  { %20494 = vmatprep.subr.bf16.mxu0 %v24900_v59  ;;  %21070 = vmatprep.subr.bf16.mxu1 %v24900_v59  ;;  %v24996_v58 = vpack.c.bf16 %v247_v53, %v240_v52  ;;  %v338_v60 = vand.u32 4294901760, %v24974_v0  ;;  %v345_v61 = vand.u32 4294901760, %v24976_v26  ;;  %v25000_v11 = vpack.c.bf16 %v261_v2, %v254_v62 }
  0x61   :  { %v25002_v16 = vpack.c.bf16 %v275_v40, %v268_v12  ;;  %v2308_v17 = vand.u32 4294901760, %v2307_v8  ;;  %v25004_v19 = vpack.c.bf16 %v289_v7, %v282_v42  ;;  %v25006_v3 = vpack.c.bf16 %v303_v46, %v296_v45 }
  0x62   :  { %v25008_v1 = vpack.c.bf16 %v317_v50, %v310_v47  ;;  %v20509_v52 = vpack.c.bf16 %v263_v32, %v256_v15  ;;  %v25012_v53 = vpack.c.bf16 %v331_v57, %v324_v51  ;;  %v25014_v34 = vpack.c.bf16 %v345_v61, %v338_v60 }
  0x63   :  { %20496 = vmatpush3.bf16.msra.mxu0 %v24900_v59  ;;  %21072 = vmatpush3.bf16.msra.mxu1 %v24900_v59  ;;  %v270_v62 = vand.u32 4294901760, %v269_v33  ;;  %v277_v2 = vand.u32 4294901760, %v276_v35  ;;  %v283_v8 = vsub.f32 %v24942_v20, %v282_v42  ;;  %v290_v12 = vsub.f32 %v24947_v36, %v289_v7 }
  0x64   :  { %20498 = vmatprep.subr.bf16.mxu0 %v24926_v6  ;;  %21074 = vmatprep.subr.bf16.mxu1 %v24926_v6  ;;  %29154 = vst [vmem:[#allocation16_spill] sm:$0xff] %v25014_v34  ;;  %v297_v40 = vsub.f32 %v24955_v43, %v296_v45  ;;  %v304_v34 = vsub.f32 %v24960_v14, %v303_v46 }
  0x65   :  { %v20513_v15 = vpack.c.bf16 %v277_v2, %v270_v62  ;;  %v284_v32 = vand.u32 4294901760, %v283_v8  ;;  %v291_v29 = vand.u32 4294901760, %v290_v12  ;;  %v318_v33 = vsub.f32 %v24968_v23, %v317_v50 }
  0x66   :  { %v298_v42 = vand.u32 4294901760, %v297_v40  ;;  %v305_v7 = vand.u32 4294901760, %v304_v34  ;;  %v339_v34 = vsub.f32 %v24974_v0, %v338_v60  ;;  %v346_v62 = vsub.f32 %v24976_v26, %v345_v61  ;;  %v25202_v40 = vld [vmem:[#allocation6 + $0x38] sm:$0xff] }
  0x67   :  { %20500 = vmatpush3.bf16.msra.mxu0 %v24926_v6  ;;  %21076 = vmatpush3.bf16.msra.mxu1 %v24926_v6  ;;  %v319_v45 = vand.u32 4294901760, %v318_v33  ;;  %v20537_v60 = vpack.c.bf16 %v24859_v38, %v24857_v37  ;;  %v20541_v61 = vpack.c.bf16 %v24891_v55, %v24881_v49  ;;  %v20545_v12 = vpack.c.bf16 %v24922_v5, %v24915_v4  ;;  %v25218_v33 = vld [vmem:[#allocation6 + $0x40] sm:$0xff] }
  0x68   :  { %20502 = vmatprep.subr.bf16.mxu0 %v24928_v9  ;;  %21078 = vmatprep.subr.bf16.mxu1 %v24928_v9  ;;  %v20521_v46 = vpack.c.bf16 %v305_v7, %v298_v42  ;;  %v340_v8 = vand.u32 4294901760, %v339_v34  ;;  %v20549_v37 = vpack.c.bf16 %v24947_v36, %v24942_v20  ;;  %v20553_v38 = vpack.c.bf16 %v24960_v14, %v24955_v43  ;;  %v25164_v43 = vld [vmem:[#allocation6 + $0x10] sm:$0xff]  ;;  %v25166_v14 = vld [vmem:[#allocation6 + $0x18] sm:$0xff] }
  0x69   :  { %v20557_v49 = vpack.c.bf16 %v24968_v23, %v24963_v22  ;;  %v24665_v55 = vmov 0.0   ;;  %v20561_v4 = vpack.c.bf16 %v24972_v25, %v24970_v48  ;;  %v20565_v5 = vpack.c.bf16 %v24976_v26, %v24974_v0  ;;  %v25178_v0 = vld [vmem:[#allocation6 + $0x20] sm:$0xff]  ;;  %v25180_v26 = vld [vmem:[#allocation6 + $0x28] sm:$0xff] }
  0x6a   :  { %85 = vst [vmem:[#allocation2] sm:$0x1] %v24665_v55  ;;  %86 = vst [vmem:[#allocation2 + $0x11] sm:$0x1] %v24665_v55  ;;  %v29155_v20 = vand.u32 4294901760, %v24831_v27  ;;  %v29156_v36 = vand.u32 4294901760, %v24834_v28 }
  0x6b   :  { %20504 = vmatpush3.bf16.msra.mxu0 %v24928_v9  ;;  %21080 = vmatpush3.bf16.msra.mxu1 %v24928_v9  ;;  %88 = vst [vmem:[#allocation2 + $0x18] sm:$0x1] %v24665_v55  ;;  %89 = vst [vmem:[#allocation2 + $0x29] sm:$0x1] %v24665_v55  ;;  %v845_v42 = vand.u32 4294901760, %v25218_v33 }
  0x6c   :  { %20506 = vmatprep.subr.bf16.mxu0 %v20505_v31  ;;  %21082 = vmatprep.subr.bf16.mxu1 %v20505_v31 }
  0x6e   :  { %16306 = vmatmul.mubr.f32.vlgmr.msra.gmra.mrb[0].mxu0 %v231_v63  ;;  %16936 = vmatmul.mubr.f32.vlgmr.msra.gmra.mrb[0].mxu1 %v2308_v17  ;;  %v311_v63 = vsub.f32 %v24963_v22, %v310_v47  ;;  %v325_v17 = vsub.f32 %v24970_v48, %v324_v51  ;;  %v347_v51 = vand.u32 4294901760, %v346_v62  ;;  %v827_v48 = vand.u32 4294901760, %v25164_v43 }
  0x6f   :  { %20508 = vmatpush3.bf16.msra.mxu0 %v20505_v31  ;;  %21084 = vmatpush3.bf16.msra.mxu1 %v20505_v31  ;;  %v20517_v31 = vpack.c.bf16 %v291_v29, %v284_v32 }
  0x70   :  { %20510 = vmatprep.subr.bf16.mxu0 %v20509_v52  ;;  %21086 = vmatprep.subr.bf16.mxu1 %v20509_v52  ;;  %v312_v35 = vand.u32 4294901760, %v311_v63  ;;  %v326_v50 = vand.u32 4294901760, %v325_v17  ;;  %v25238_v17 = vld [vmem:[#allocation6 + $0x68] sm:$0xff]  ;;  %v25279_v55 = vsub.f32 %v25164_v43, %v827_v48 }
  0x71   :  { %16340 = vmatprep.mubr.f32.mxu0 %v24812_v18  ;;  %16970 = vmatprep.mubr.f32.mxu1 %v24824_v24 }
  0x72   :  { %v20525_v47 = vpack.c.bf16 %v319_v45, %v312_v35  ;;  %v25230_v35 = vld [vmem:[#allocation6 + $0x50] sm:$0xff]  ;;  %v25232_v45 = vld [vmem:[#allocation6 + $0x58] sm:$0xff] }
  0x73   :  { %20512 = vmatpush3.bf16.msra.mxu0 %v20509_v52  ;;  %21088 = vmatpush3.bf16.msra.mxu1 %v20509_v52  ;;  %v332_v52 = vsub.f32 %v24972_v25, %v331_v57  ;;  %v20533_v57 = vpack.c.bf16 %v347_v51, %v340_v8  ;;  %v830_v25 = vand.u32 4294901760, %v25166_v14  ;;  %v851_v62 = vand.u32 4294901760, %v25230_v35 }
  0x74   :  { %20514 = vmatprep.subr.bf16.mxu0 %v20513_v15  ;;  %21090 = vmatprep.subr.bf16.mxu1 %v20513_v15  ;;  %v860_v51 = vand.u32 4294901760, %v25238_v17 }
  0x75   :  { %v333_v29 = vand.u32 4294901760, %v332_v52 }
  0x77   :  { %20516 = vmatpush3.bf16.msra.mxu0 %v20513_v15  ;;  %21092 = vmatpush3.bf16.msra.mxu1 %v20513_v15  ;;  %v20529_v2 = vpack.c.bf16 %v333_v29, %v326_v50  ;;  %v100_v50 = vld [vmem:[#allocation2 + $0x8] sm:$0xff]  ;;  %v2210_v29 = vld [vmem:[#allocation2 + $0x20] sm:$0xff] }
  0x78   :  { %20518 = vmatprep.subr.bf16.mxu0 %v20517_v31  ;;  %21094 = vmatprep.subr.bf16.mxu1 %v20517_v31 }
  0x7b   :  { %20520 = vmatpush3.bf16.msra.mxu0 %v20517_v31  ;;  %21096 = vmatpush3.bf16.msra.mxu1 %v20517_v31 }
  0x7c   :  { %20522 = vmatprep.subr.bf16.mxu0 %v20521_v46  ;;  %21098 = vmatprep.subr.bf16.mxu1 %v20521_v46 }
  0x7f   :  { %20524 = vmatpush3.bf16.msra.mxu0 %v20521_v46  ;;  %21100 = vmatpush3.bf16.msra.mxu1 %v20521_v46  ;;  %v25234_v46 = vld [vmem:[#allocation6 + $0x60] sm:$0xff] }
  0x80   :  { %20526 = vmatprep.subr.bf16.mxu0 %v20525_v47  ;;  %21102 = vmatprep.subr.bf16.mxu1 %v20525_v47  ;;  %v857_v8 = vand.u32 4294901760, %v25234_v46 }
  0x83   :  { %20528 = vmatpush3.bf16.msra.mxu0 %v20525_v47  ;;  %21104 = vmatpush3.bf16.msra.mxu1 %v20525_v47 }
  0x84   :  { %20530 = vmatprep.subr.bf16.mxu0 %v20529_v2  ;;  %21106 = vmatprep.subr.bf16.mxu1 %v20529_v2 }
  0x87   :  { %20532 = vmatpush3.bf16.msra.mxu0 %v20529_v2  ;;  %21108 = vmatpush3.bf16.msra.mxu1 %v20529_v2  ;;  %v854_v2 = vand.u32 4294901760, %v25232_v45 }
  0x88   :  { %20534 = vmatprep.subr.bf16.mxu0 %v20533_v57  ;;  %21110 = vmatprep.subr.bf16.mxu1 %v20533_v57 }
  0x8b   :  { %20536 = vmatpush3.bf16.msra.mxu0 %v20533_v57  ;;  %21112 = vmatpush3.bf16.msra.mxu1 %v20533_v57  ;;  %v25256_v57 = vand.u32 4294901760, %v100_v50 }
  0x8c   :  { %20538 = vmatprep.subr.bf16.mxu0 %v20537_v60  ;;  %21114 = vmatprep.subr.bf16.mxu1 %v20537_v60 }
  0x8e   :  { %16341 = vmatmul.mubr.f32.vlgmr.msra.gmra.mrb[0].mxu0 %v24861_v39  ;;  %16971 = vmatmul.mubr.f32.vlgmr.msra.gmra.mrb[0].mxu1 %v24866_v41 }
  0x8f   :  { %20540 = vmatpush3.bf16.msra.mxu0 %v20537_v60  ;;  %21116 = vmatpush3.bf16.msra.mxu1 %v20537_v60  ;;  %v25258_v60 = vand.u32 4294901760, %v2210_v29 }
  0x90   :  { %20542 = vmatprep.subr.bf16.mxu0 %v20541_v61  ;;  %21118 = vmatprep.subr.bf16.mxu1 %v20541_v61 }
  0x91   :  { %16375 = vmatprep.mubr.f32.mxu0 %v24831_v27  ;;  %17005 = vmatprep.mubr.f32.mxu1 %v24834_v28  ;;  %v29157_v27 = vand.u32 4294901760, %v24886_v54  ;;  %v29158_v28 = vand.u32 4294901760, %v24894_v56 }
  0x93   :  { %20544 = vmatpush3.bf16.msra.mxu0 %v20541_v61  ;;  %21120 = vmatpush3.bf16.msra.mxu1 %v20541_v61 }
  0x94   :  { %20546 = vmatprep.subr.bf16.mxu0 %v20545_v12  ;;  %21122 = vmatprep.subr.bf16.mxu1 %v20545_v12 }
  0x97   :  { %20548 = vmatpush3.bf16.msra.mxu0 %v20545_v12  ;;  %21124 = vmatpush3.bf16.msra.mxu1 %v20545_v12 }
  0x98   :  { %20550 = vmatprep.subr.bf16.mxu0 %v20549_v37  ;;  %21126 = vmatprep.subr.bf16.mxu1 %v20549_v37 }
  0x9b   :  { %20552 = vmatpush3.bf16.msra.mxu0 %v20549_v37  ;;  %21128 = vmatpush3.bf16.msra.mxu1 %v20549_v37  ;;  %v25270_v37 = vpack.c.bf16 %v854_v2, %v851_v62 }
  0x9c   :  { %20554 = vmatprep.subr.bf16.mxu0 %v20553_v38  ;;  %21130 = vmatprep.subr.bf16.mxu1 %v20553_v38 }
  0x9f   :  { %20556 = vmatpush3.bf16.msra.mxu0 %v20553_v38  ;;  %21132 = vmatpush3.bf16.msra.mxu1 %v20553_v38  ;;  %v25272_v38 = vld [vmem:[#allocation6 + $0x70] sm:$0xff] }
  0xa0   :  { %20558 = vmatprep.subr.bf16.mxu0 %v20557_v49  ;;  %21134 = vmatprep.subr.bf16.mxu1 %v20557_v49 }
  0xa3   :  { %20560 = vmatpush3.bf16.msra.mxu0 %v20557_v49  ;;  %21136 = vmatpush3.bf16.msra.mxu1 %v20557_v49  ;;  %v25274_v49 = vld [vmem:[#allocation6 + $0x78] sm:$0xff] }
  0xa4   :  { %20562 = vmatprep.subr.bf16.mxu0 %v20561_v4  ;;  %21138 = vmatprep.subr.bf16.mxu1 %v20561_v4 }
  0xa7   :  { %20564 = vmatpush3.bf16.msra.mxu0 %v20561_v4  ;;  %21140 = vmatpush3.bf16.msra.mxu1 %v20561_v4  ;;  %v25284_v4 = vsub.f32 %v25166_v14, %v830_v25 }
  0xa8   :  { %20566 = vmatprep.subr.bf16.mxu0 %v20565_v5  ;;  %21142 = vmatprep.subr.bf16.mxu1 %v20565_v5 }
  0xab   :  { %20568 = vmatpush3.bf16.msra.mxu0 %v20565_v5  ;;  %21144 = vmatpush3.bf16.msra.mxu1 %v20565_v5  ;;  %v25290_v5 = vpack.c.bf16 %v860_v51, %v857_v8 }
  0xac   :  { %20570 = vmatprep.subr.bf16.mxu0 %v24796_v10  ;;  %21146 = vmatprep.subr.bf16.mxu1 %v24796_v10 }
  0xae   :  { %16376 = vmatmul.mubr.f32.vlgmr.msra.gmra.mrb[0].mxu0 %v24886_v54  ;;  %17006 = vmatmul.mubr.f32.vlgmr.msra.gmra.mrb[0].mxu1 %v24894_v56  ;;  %v29159_v54 = vld [vmem:[#allocation16_spill] sm:$0xff]  ;;  %v102_v56 = vld [vmem:[#allocation6 + $0x8] sm:$0xff] }
  0xaf   :  { %20572 = vmatpush3.bf16.msra.mxu0 %v24796_v10  ;;  %21148 = vmatpush3.bf16.msra.mxu1 %v24796_v10 }
  0xb0   :  { %20574 = vmatprep.subr.bf16.mxu0 %v24802_v13  ;;  %21150 = vmatprep.subr.bf16.mxu1 %v24802_v13 }
  0xb1   :  { %16410 = vmatprep.mubr.f32.mxu0 %v29155_v20  ;;  %17040 = vmatprep.mubr.f32.mxu1 %v29156_v36  ;;  %v25293_v20 = vsub.f32 %v100_v50, %v25256_v57  ;;  %v25296_v36 = vsub.f32 %v2210_v29, %v25258_v60 }
  0xb3   :  { %20576 = vmatpush3.bf16.msra.mxu0 %v24802_v13  ;;  %21152 = vmatpush3.bf16.msra.mxu1 %v24802_v13  ;;  %v2990_v43 = vand.u32 4294901760, %v25296_v36 }
  0xb4   :  { %20578 = vmatprep.subr.bf16.mxu0 %v24820_v21  ;;  %21154 = vmatprep.subr.bf16.mxu1 %v24820_v21 }
  0xb7   :  { %20580 = vmatpush3.bf16.msra.mxu0 %v24820_v21  ;;  %21156 = vmatpush3.bf16.msra.mxu1 %v24820_v21 }
  0xb8   :  { %20582 = vmatprep.subr.bf16.mxu0 %v24845_v30  ;;  %21158 = vmatprep.subr.bf16.mxu1 %v24845_v30 }
  0xbb   :  { %20584 = vmatpush3.bf16.msra.mxu0 %v24845_v30  ;;  %21160 = vmatpush3.bf16.msra.mxu1 %v24845_v30 }
  0xbc   :  { %20586 = vmatprep.subr.bf16.mxu0 %v24877_v44  ;;  %21162 = vmatprep.subr.bf16.mxu1 %v24877_v44 }
  0xbf   :  { %20588 = vmatpush3.bf16.msra.mxu0 %v24877_v44  ;;  %21164 = vmatpush3.bf16.msra.mxu1 %v24877_v44 }
  0xc0   :  { %20590 = vmatprep.subr.bf16.mxu0 %v24900_v59  ;;  %21166 = vmatprep.subr.bf16.mxu1 %v24900_v59 }
  0xc3   :  { %20592 = vmatpush3.bf16.msra.mxu0 %v24900_v59  ;;  %21168 = vmatpush3.bf16.msra.mxu1 %v24900_v59 }
  0xc4   :  { %20594 = vmatprep.subr.bf16.mxu0 %v24926_v6  ;;  %21170 = vmatprep.subr.bf16.mxu1 %v24926_v6 }
  0xc7   :  { %20596 = vmatpush3.bf16.msra.mxu0 %v24926_v6  ;;  %21172 = vmatpush3.bf16.msra.mxu1 %v24926_v6 }
  0xc8   :  { %20598 = vmatprep.subr.bf16.mxu0 %v24928_v9  ;;  %21174 = vmatprep.subr.bf16.mxu1 %v24928_v9 }
  0xcb   :  { %20600 = vmatpush3.bf16.msra.mxu0 %v24928_v9  ;;  %21176 = vmatpush3.bf16.msra.mxu1 %v24928_v9 }
  0xcc   :  { %20602 = vmatprep.subr.bf16.mxu0 %v24996_v58  ;;  %21178 = vmatprep.subr.bf16.mxu1 %v24996_v58 }
  0xce   :  { %16411 = vmatmul.mubr.f32.vlgmr.msra.gmra.mrb[0].mxu0 %v29157_v27  ;;  %17041 = vmatmul.mubr.f32.vlgmr.msra.gmra.mrb[0].mxu1 %v29158_v28  ;;  %v863_v27 = vand.u32 4294901760, %v25272_v38  ;;  %v866_v28 = vand.u32 4294901760, %v25274_v49 }
  0xcf   :  { %20604 = vmatpush3.bf16.msra.mxu0 %v24996_v58  ;;  %21180 = vmatpush3.bf16.msra.mxu1 %v24996_v58 }
  0xd0   :  { %20606 = vmatprep.subr.bf16.mxu0 %v25000_v11  ;;  %21182 = vmatprep.subr.bf16.mxu1 %v25000_v11 }
  0xd1   :  { %16445 = vmatprep.mubr.f32.mxu0 %v24812_v18  ;;  %17075 = vmatprep.mubr.f32.mxu1 %v24824_v24 }
  0xd3   :  { %20608 = vmatpush3.bf16.msra.mxu0 %v25000_v11  ;;  %21184 = vmatpush3.bf16.msra.mxu1 %v25000_v11  ;;  %v25196_v11 = vpack.c.bf16 %v830_v25, %v827_v48  ;;  %v25336_v25 = vpack.c.bf16 %v866_v28, %v863_v27 }
  0xd4   :  { %20610 = vmatprep.subr.bf16.mxu0 %v25002_v16  ;;  %21186 = vmatprep.subr.bf16.mxu1 %v25002_v16 }
  0xd7   :  { %20612 = vmatpush3.bf16.msra.mxu0 %v25002_v16  ;;  %21188 = vmatpush3.bf16.msra.mxu1 %v25002_v16  ;;  %v833_v16 = vand.u32 4294901760, %v25178_v0 }
  0xd8   :  { %20614 = vmatprep.subr.bf16.mxu0 %v25004_v19  ;;  %21190 = vmatprep.subr.bf16.mxu1 %v25004_v19 }
  0xdb   :  { %20616 = vmatpush3.bf16.msra.mxu0 %v25004_v19  ;;  %21192 = vmatpush3.bf16.msra.mxu1 %v25004_v19  ;;  %v836_v19 = vand.u32 4294901760, %v25180_v26 }
  0xdc   :  { %20618 = vmatprep.subr.bf16.mxu0 %v25006_v3  ;;  %21194 = vmatprep.subr.bf16.mxu1 %v25006_v3 }
  0xdd   :  { %v25214_v32 = vpack.c.bf16 %v836_v19, %v833_v16 }
  0xdf   :  { %20620 = vmatpush3.bf16.msra.mxu0 %v25006_v3  ;;  %21196 = vmatpush3.bf16.msra.mxu1 %v25006_v3  ;;  %v824_v3 = vand.u32 4294901760, %v102_v56 }
  0xe0   :  { %20622 = vmatprep.subr.bf16.mxu0 %v25008_v1  ;;  %21198 = vmatprep.subr.bf16.mxu1 %v25008_v1 }
  0xe1   :  { %v25242_v47 = vsub.f32 %v102_v56, %v824_v3  ;;  %v25315_v56 = vsub.f32 %v25178_v0, %v833_v16 }
  0xe3   :  { %20624 = vmatpush3.bf16.msra.mxu0 %v25008_v1  ;;  %21200 = vmatpush3.bf16.msra.mxu1 %v25008_v1  ;;  %v931_v12 = vand.u32 4294901760, %v25242_v47  ;;  %v29080_v16 = vand.u32 4294901760, %v25315_v56 }
  0xe4   :  { %20626 = vmatprep.subr.bf16.mxu0 %v25012_v53  ;;  %21202 = vmatprep.subr.bf16.mxu1 %v25012_v53 }
  0xe7   :  { %20628 = vmatpush3.bf16.msra.mxu0 %v25012_v53  ;;  %21204 = vmatpush3.bf16.msra.mxu1 %v25012_v53  ;;  %v25200_v53 = vld [vmem:[#allocation6 + $0x30] sm:$0xff] }
  0xe8   :  { %20630 = vmatprep.subr.bf16.mxu0 %v29159_v54  ;;  %21206 = vmatprep.subr.bf16.mxu1 %v29159_v54  ;;  %v839_v63 = vand.u32 4294901760, %v25200_v53 }
  0xea   :  { %v25325_v14 = vsub.f32 %v25200_v53, %v839_v63 }
  0xeb   :  { %20632 = vmatpush3.bf16.msra.mxu0 %v29159_v54  ;;  %21208 = vmatpush3.bf16.msra.mxu1 %v29159_v54 }
  0xec   :  { %20634 = vmatprep.subr.bf16.mxu0 %v24796_v10  ;;  %21210 = vmatprep.subr.bf16.mxu1 %v24796_v10 }
  0xee   :  { %16446 = vmatmul.mubr.f32.vlgmr.msra.gmra.mrb[0].mxu0 %v24861_v39  ;;  %17076 = vmatmul.mubr.f32.vlgmr.msra.gmra.mrb[0].mxu1 %v24866_v41 }
  0xef   :  { %20636 = vmatpush3.bf16.msra.mxu0 %v24796_v10  ;;  %21212 = vmatpush3.bf16.msra.mxu1 %v24796_v10  ;;  %v99_v10 = vld [vmem:[#allocation2] sm:$0xff] }
  0xf0   :  { %20638 = vmatprep.subr.bf16.mxu0 %v24802_v13  ;;  %21214 = vmatprep.subr.bf16.mxu1 %v24802_v13 }
  0xf1   :  { %16480 = vmatprep.mubr.f32.mxu0 %v24812_v18  ;;  %17110 = vmatprep.mubr.f32.mxu1 %v24824_v24  ;;  %v2209_v18 = vld [vmem:[#allocation2 + $0x18] sm:$0xff] }
  0xf2   :  { %v25148_v24 = vand.u32 4294901760, %v2209_v18 }
  0xf3   :  { %20640 = vmatpush3.bf16.msra.mxu0 %v24802_v13  ;;  %21216 = vmatpush3.bf16.msra.mxu1 %v24802_v13  ;;  %v25146_v13 = vand.u32 4294901760, %v99_v10 }
  0xf4   :  { %20642 = vmatprep.subr.bf16.mxu0 %v24820_v21  ;;  %21218 = vmatprep.subr.bf16.mxu1 %v24820_v21  ;;  %v25158_v1 = vsub.f32 %v2209_v18, %v25148_v24  ;;  %v938_v18 = vand.u32 4294901760, %v25279_v55 }
  0xf6   :  { %v2980_v23 = vand.u32 4294901760, %v25158_v1 }
  0xf7   :  { %20644 = vmatpush3.bf16.msra.mxu0 %v24820_v21  ;;  %21220 = vmatpush3.bf16.msra.mxu1 %v24820_v21  ;;  %v101_v21 = vld [vmem:[#allocation6] sm:$0xff] }
  0xf8   :  { %20646 = vmatprep.subr.bf16.mxu0 %v24845_v30  ;;  %21222 = vmatprep.subr.bf16.mxu1 %v24845_v30 }
  0xfb   :  { %20648 = vmatpush3.bf16.msra.mxu0 %v24845_v30  ;;  %21224 = vmatpush3.bf16.msra.mxu1 %v24845_v30  ;;  %v25155_v30 = vsub.f32 %v99_v10, %v25146_v13  ;;  %v932_v10 = vsub.f32 %v25242_v47, %v931_v12 }
  0xfc   :  { %20650 = vmatprep.subr.bf16.mxu0 %v24877_v44  ;;  %21226 = vmatprep.subr.bf16.mxu1 %v24877_v44 }
  0xfd   :  { %v903_v22 = vand.u32 4294901760, %v25155_v30 }
  0xff   :  { %20652 = vmatpush3.bf16.msra.mxu0 %v24877_v44  ;;  %21228 = vmatpush3.bf16.msra.mxu1 %v24877_v44  ;;  %v821_v44 = vand.u32 4294901760, %v101_v21  ;;  %v904_v58 = vsub.f32 %v25155_v30, %v903_v22 }
 0x100   :  { %20654 = vmatprep.subr.bf16.mxu0 %v24900_v59  ;;  %21230 = vmatprep.subr.bf16.mxu1 %v24900_v59 }
 0x101   :  { %v905_v15 = vand.u32 4294901760, %v904_v58  ;;  %v25240_v52 = vsub.f32 %v101_v21, %v821_v44  ;;  %v945_v21 = vand.u32 4294901760, %v25284_v4  ;;  %v939_v58 = vsub.f32 %v25279_v55, %v938_v18 }
 0x103   :  { %20656 = vmatpush3.bf16.msra.mxu0 %v24900_v59  ;;  %21232 = vmatpush3.bf16.msra.mxu1 %v24900_v59  ;;  %v25174_v59 = vpack.c.bf16 %v824_v3, %v821_v44  ;;  %v924_v61 = vand.u32 4294901760, %v25240_v52  ;;  %v25320_v44 = vsub.f32 %v25180_v26, %v836_v19  ;;  %v913_v3 = vand.u32 4294901760, %v25293_v20 }
 0x104   :  { %20658 = vmatprep.subr.bf16.mxu0 %v24926_v6  ;;  %21234 = vmatprep.subr.bf16.mxu1 %v24926_v6  ;;  %v933_v26 = vand.u32 4294901760, %v932_v10  ;;  %v940_v29 = vand.u32 4294901760, %v939_v58  ;;  %v953_v10 = vsub.f32 %v25315_v56, %v29080_v16 }
 0x105   :  { %v925_v54 = vsub.f32 %v25240_v52, %v924_v61  ;;  %v29079_v19 = vand.u32 4294901760, %v25320_v44  ;;  %v914_v53 = vsub.f32 %v25293_v20, %v913_v3 }
 0x107   :  { %20660 = vmatpush3.bf16.msra.mxu0 %v24926_v6  ;;  %21236 = vmatpush3.bf16.msra.mxu1 %v24926_v6  ;;  %v2981_v6 = vsub.f32 %v25158_v1, %v2980_v23  ;;  %v926_v0 = vand.u32 4294901760, %v925_v54 }
 0x108   :  { %20662 = vmatprep.subr.bf16.mxu0 %v24928_v9  ;;  %21238 = vmatprep.subr.bf16.mxu1 %v24928_v9 }
 0x10b   :  { %20664 = vmatpush3.bf16.msra.mxu0 %v24928_v9  ;;  %21240 = vmatpush3.bf16.msra.mxu1 %v24928_v9  ;;  %v2982_v9 = vand.u32 4294901760, %v2981_v6  ;;  %v946_v6 = vsub.f32 %v25284_v4, %v945_v21 }
 0x10c   :  { %20666 = vmatprep.subr.bf16.mxu0 %v25174_v59  ;;  %21242 = vmatprep.subr.bf16.mxu1 %v25174_v59 }
 0x10d   :  { %v947_v54 = vand.u32 4294901760, %v946_v6  ;;  %v25389_v6 = vsub.f32 %v25230_v35, %v851_v62 }
 0x10e   :  { %16481 = vmatmul.mubr.f32.vlgmr.msra.gmra.mrb[0].mxu0 %v24861_v39  ;;  %17111 = vmatmul.mubr.f32.vlgmr.msra.gmra.mrb[0].mxu1 %v24866_v41  ;;  %v842_v39 = vand.u32 4294901760, %v25202_v40  ;;  %v25220_v41 = vld [vmem:[#allocation6 + $0x48] sm:$0xff] }
 0x10f   :  { %20668 = vmatpush3.bf16.msra.mxu0 %v25174_v59  ;;  %21244 = vmatpush3.bf16.msra.mxu1 %v25174_v59  ;;  %v848_v7 = vand.u32 4294901760, %v25220_v41  ;;  %v994_v62 = vand.u32 4294901760, %v25389_v6 }
 0x110   :  { %20670 = vmatprep.subr.bf16.mxu0 %v25196_v11  ;;  %21246 = vmatprep.subr.bf16.mxu1 %v25196_v11  ;;  %v25226_v31 = vpack.c.bf16 %v842_v39, %v839_v63  ;;  %v25328_v48 = vsub.f32 %v25202_v40, %v842_v39  ;;  %v2991_v40 = vsub.f32 %v25296_v36, %v2990_v43 }
 0x111   :  { %16515 = vmatprep.mubr.f32.mxu0 %v905_v15  ;;  %17145 = vmatprep.mubr.f32.mxu1 %v2982_v9  ;;  %v25250_v34 = vpack.c.bf16 %v848_v7, %v845_v42  ;;  %v29078_v15 = vand.u32 4294901760, %v25325_v14  ;;  %v20697_v63 = vpack.c.bf16 %v933_v26, %v926_v0  ;;  %v25361_v39 = vsub.f32 %v25218_v33, %v845_v42 }
 0x112   :  { %v29077_v9 = vand.u32 4294901760, %v25328_v48  ;;  %v25366_v50 = vsub.f32 %v25220_v41, %v848_v7  ;;  %v960_v33 = vsub.f32 %v25320_v44, %v29079_v19  ;;  %v915_v42 = vand.u32 4294901760, %v914_v53 }
 0x113   :  { %20672 = vmatpush3.bf16.msra.mxu0 %v25196_v11  ;;  %21248 = vmatpush3.bf16.msra.mxu1 %v25196_v11  ;;  %v2992_v0 = vand.u32 4294901760, %v2991_v40  ;;  %v967_v41 = vsub.f32 %v25325_v14, %v29078_v15  ;;  %v980_v26 = vand.u32 4294901760, %v25361_v39  ;;  %v25394_v53 = vsub.f32 %v25232_v45, %v854_v2 }
 0x114   :  { %20674 = vmatprep.subr.bf16.mxu0 %v25214_v32  ;;  %21250 = vmatprep.subr.bf16.mxu1 %v25214_v32  ;;  %v974_v7 = vsub.f32 %v25328_v48, %v29077_v9  ;;  %v987_v58 = vand.u32 4294901760, %v25366_v50  ;;  %v20701_v40 = vpack.c.bf16 %v947_v54, %v940_v29  ;;  %v954_v9 = vand.u32 4294901760, %v953_v10 }
 0x115   :  { %v961_v15 = vand.u32 4294901760, %v960_v33  ;;  %v968_v19 = vand.u32 4294901760, %v967_v41  ;;  %v981_v35 = vsub.f32 %v25361_v39, %v980_v26  ;;  %v1001_v2 = vand.u32 4294901760, %v25394_v53 }
 0x116   :  { %v975_v16 = vand.u32 4294901760, %v974_v7  ;;  %v988_v45 = vsub.f32 %v25366_v50, %v987_v58  ;;  %v25407_v54 = vsub.f32 %v25234_v46, %v857_v8 }
 0x117   :  { %20676 = vmatpush3.bf16.msra.mxu0 %v25214_v32  ;;  %21252 = vmatpush3.bf16.msra.mxu1 %v25214_v32  ;;  %v20705_v29 = vpack.c.bf16 %v961_v15, %v954_v9  ;;  %v982_v33 = vand.u32 4294901760, %v981_v35  ;;  %v995_v15 = vsub.f32 %v25389_v6, %v994_v62  ;;  %v1002_v46 = vsub.f32 %v25394_v53, %v1001_v2 }
 0x118   :  { %20678 = vmatprep.subr.bf16.mxu0 %v25226_v31  ;;  %21254 = vmatprep.subr.bf16.mxu1 %v25226_v31  ;;  %v20709_v10 = vpack.c.bf16 %v975_v16, %v968_v19  ;;  %v25432_v16 = vsub.f32 %v25274_v49, %v866_v28 }
 0x119   :  { %v996_v9 = vand.u32 4294901760, %v995_v15  ;;  %v20729_v15 = vpack.c.bf16 %v25242_v47, %v25240_v52  ;;  %v29162_v47 = vand.u32 4294901760, %v25325_v14 }
 0x11a   :  { %v1029_v49 = vand.u32 4294901760, %v25432_v16 }
 0x11b   :  { %20680 = vmatpush3.bf16.msra.mxu0 %v25226_v31  ;;  %21256 = vmatpush3.bf16.msra.mxu1 %v25226_v31 }
 0x11c   :  { %20682 = vmatprep.subr.bf16.mxu0 %v25250_v34  ;;  %21258 = vmatprep.subr.bf16.mxu1 %v25250_v34 }
 0x11f   :  { %20684 = vmatpush3.bf16.msra.mxu0 %v25250_v34  ;;  %21260 = vmatpush3.bf16.msra.mxu1 %v25250_v34 }
 0x120   :  { %20686 = vmatprep.subr.bf16.mxu0 %v25270_v37  ;;  %21262 = vmatprep.subr.bf16.mxu1 %v25270_v37 }
 0x123   :  { %20688 = vmatpush3.bf16.msra.mxu0 %v25270_v37  ;;  %21264 = vmatpush3.bf16.msra.mxu1 %v25270_v37 }
 0x124   :  { %20690 = vmatprep.subr.bf16.mxu0 %v25290_v5  ;;  %21266 = vmatprep.subr.bf16.mxu1 %v25290_v5 }
 0x127   :  { %20692 = vmatpush3.bf16.msra.mxu0 %v25290_v5  ;;  %21268 = vmatpush3.bf16.msra.mxu1 %v25290_v5 }
 0x128   :  { %20694 = vmatprep.subr.bf16.mxu0 %v25336_v25  ;;  %21270 = vmatprep.subr.bf16.mxu1 %v25336_v25 }
 0x12b   :  { %20696 = vmatpush3.bf16.msra.mxu0 %v25336_v25  ;;  %21272 = vmatpush3.bf16.msra.mxu1 %v25336_v25 }
 0x12c   :  { %20698 = vmatprep.subr.bf16.mxu0 %v20697_v63  ;;  %21274 = vmatprep.subr.bf16.mxu1 %v20697_v63 }
 0x12e   :  { %16516 = vmatmul.mubr.f32.vlgmr.msra.gmra.mrb[0].mxu0 %v915_v42  ;;  %17146 = vmatmul.mubr.f32.vlgmr.msra.gmra.mrb[0].mxu1 %v2992_v0  ;;  %v989_v42 = vand.u32 4294901760, %v988_v45  ;;  %v1003_v0 = vand.u32 4294901760, %v1002_v46  ;;  %v1030_v45 = vsub.f32 %v25432_v16, %v1029_v49  ;;  %v20733_v46 = vpack.c.bf16 %v25284_v4, %v25279_v55 }
 0x12f   :  { %20700 = vmatpush3.bf16.msra.mxu0 %v20697_v63  ;;  %21276 = vmatpush3.bf16.msra.mxu1 %v20697_v63  ;;  %v25412_v63 = vsub.f32 %v25238_v17, %v860_v51  ;;  %v1008_v17 = vand.u32 4294901760, %v25407_v54  ;;  %v25427_v51 = vsub.f32 %v25272_v38, %v863_v27  ;;  %v20809_v55 = vpack.c.bf16 %v987_v58, %v980_v26  ;;  %v25600_v26 = vld [vmem:[#allocation6 + $0x128] sm:$0xff] }
 0x130   :  { %20702 = vmatprep.subr.bf16.mxu0 %v20701_v40  ;;  %21278 = vmatprep.subr.bf16.mxu1 %v20701_v40  ;;  %v20713_v19 = vpack.c.bf16 %v989_v42, %v982_v33  ;;  %v20717_v28 = vpack.c.bf16 %v1003_v0, %v996_v9  ;;  %v20741_v9 = vpack.c.bf16 %v25328_v48, %v25325_v14 }
 0x131   :  { %16550 = vmatprep.mubr.f32.mxu0 %v25146_v13  ;;  %17180 = vmatprep.mubr.f32.mxu1 %v25148_v24  ;;  %v1015_v8 = vand.u32 4294901760, %v25412_v63  ;;  %v1009_v41 = vsub.f32 %v25407_v54, %v1008_v17  ;;  %v1022_v27 = vand.u32 4294901760, %v25427_v51  ;;  %v20745_v0 = vpack.c.bf16 %v25366_v50, %v25361_v39  ;;  %v25598_v50 = vld [vmem:[#allocation6 + $0x120] sm:$0xff] }
 0x132   :  { %v20813_v4 = vpack.c.bf16 %v1001_v2, %v994_v62  ;;  %v1539_v62 = vand.u32 4294901760, %v25600_v26  ;;  %v25620_v2 = vld [vmem:[#allocation6 + $0x130] sm:$0xff] }
 0x133   :  { %20704 = vmatpush3.bf16.msra.mxu0 %v20701_v40  ;;  %21280 = vmatpush3.bf16.msra.mxu1 %v20701_v40  ;;  %v1016_v38 = vsub.f32 %v25412_v63, %v1015_v8  ;;  %v1010_v7 = vand.u32 4294901760, %v1009_v41  ;;  %v1023_v35 = vsub.f32 %v25427_v51, %v1022_v27  ;;  %v20749_v41 = vpack.c.bf16 %v25394_v53, %v25389_v6 }
 0x134   :  { %20706 = vmatprep.subr.bf16.mxu0 %v20705_v29  ;;  %21282 = vmatprep.subr.bf16.mxu1 %v20705_v29  ;;  %v1536_v53 = vand.u32 4294901760, %v25598_v50 }
 0x135   :  { %v1017_v40 = vand.u32 4294901760, %v1016_v38  ;;  %v1024_v33 = vand.u32 4294901760, %v1023_v35  ;;  %v20753_v38 = vpack.c.bf16 %v25412_v63, %v25407_v54  ;;  %v25622_v54 = vld [vmem:[#allocation6 + $0x138] sm:$0xff]  ;;  %v25654_v35 = vld [vmem:[#allocation6 + $0x160] sm:$0xff] }
 0x137   :  { %20708 = vmatpush3.bf16.msra.mxu0 %v20705_v29  ;;  %21284 = vmatpush3.bf16.msra.mxu1 %v20705_v29  ;;  %v20721_v29 = vpack.c.bf16 %v1017_v40, %v1010_v7  ;;  %v25650_v7 = vld [vmem:[#allocation6 + $0x150] sm:$0xff]  ;;  %v25652_v40 = vld [vmem:[#allocation6 + $0x158] sm:$0xff] }
 0x138   :  { %20710 = vmatprep.subr.bf16.mxu0 %v20709_v10  ;;  %21286 = vmatprep.subr.bf16.mxu1 %v20709_v10 }
 0x13b   :  { %20712 = vmatpush3.bf16.msra.mxu0 %v20709_v10  ;;  %21288 = vmatpush3.bf16.msra.mxu1 %v20709_v10  ;;  %v1031_v10 = vand.u32 4294901760, %v1030_v45  ;;  %v25658_v45 = vld [vmem:[#allocation6 + $0x168] sm:$0xff] }
 0x13c   :  { %20714 = vmatprep.subr.bf16.mxu0 %v20713_v19  ;;  %21290 = vmatprep.subr.bf16.mxu1 %v20713_v19 }
 0x13d   :  { %v20725_v42 = vpack.c.bf16 %v1031_v10, %v1024_v33  ;;  %v1505_v10 = vld [vmem:[#allocation2 + $0xa] sm:$0xff] }
 0x13f   :  { %20716 = vmatpush3.bf16.msra.mxu0 %v20713_v19  ;;  %21292 = vmatpush3.bf16.msra.mxu1 %v20713_v19  ;;  %v20737_v19 = vpack.c.bf16 %v25320_v44, %v25315_v56 }
 0x140   :  { %20718 = vmatprep.subr.bf16.mxu0 %v20717_v28  ;;  %21294 = vmatprep.subr.bf16.mxu1 %v20717_v28 }
 0x143   :  { %20720 = vmatpush3.bf16.msra.mxu0 %v20717_v28  ;;  %21296 = vmatpush3.bf16.msra.mxu1 %v20717_v28  ;;  %v20757_v28 = vpack.c.bf16 %v25432_v16, %v25427_v51  ;;  %v25638_v51 = vld [vmem:[#allocation6 + $0x140] sm:$0xff] }
 0x144   :  { %20722 = vmatprep.subr.bf16.mxu0 %v20721_v29  ;;  %21298 = vmatprep.subr.bf16.mxu1 %v20721_v29 }
 0x147   :  { %20724 = vmatpush3.bf16.msra.mxu0 %v20721_v29  ;;  %21300 = vmatpush3.bf16.msra.mxu1 %v20721_v29 }
 0x148   :  { %20726 = vmatprep.subr.bf16.mxu0 %v20725_v42  ;;  %21302 = vmatprep.subr.bf16.mxu1 %v20725_v42 }
 0x14b   :  { %20728 = vmatpush3.bf16.msra.mxu0 %v20725_v42  ;;  %21304 = vmatpush3.bf16.msra.mxu1 %v20725_v42  ;;  %v3582_v42 = vld [vmem:[#allocation2 + $0x22] sm:$0xff] }
 0x14c   :  { %20730 = vmatprep.subr.bf16.mxu0 %v20729_v15  ;;  %21306 = vmatprep.subr.bf16.mxu1 %v20729_v15 }
 0x14e   :  { %16551 = vmatmul.mubr.f32.vlgmr.msra.gmra.mrb[0].mxu0 %v25256_v57  ;;  %17181 = vmatmul.mubr.f32.vlgmr.msra.gmra.mrb[0].mxu1 %v25258_v60 }
 0x14f   :  { %20732 = vmatpush3.bf16.msra.mxu0 %v20729_v15  ;;  %21308 = vmatpush3.bf16.msra.mxu1 %v20729_v15 }
 0x150   :  { %20734 = vmatprep.subr.bf16.mxu0 %v20733_v46  ;;  %21310 = vmatprep.subr.bf16.mxu1 %v20733_v46 }
 0x151   :  { %16585 = vmatprep.mubr.f32.mxu0 %v25155_v30  ;;  %17215 = vmatprep.mubr.f32.mxu1 %v25158_v1  ;;  %v20793_v30 = vpack.c.bf16 %v931_v12, %v924_v61  ;;  %v20797_v1 = vpack.c.bf16 %v945_v21, %v938_v18  ;;  %v29163_v61 = vand.u32 4294901760, %v25328_v48  ;;  %v1508_v18 = vld [vmem:[#allocation6 + $0x108] sm:$0xff] }
 0x153   :  { %20736 = vmatpush3.bf16.msra.mxu0 %v20733_v46  ;;  %21312 = vmatpush3.bf16.msra.mxu1 %v20733_v46  ;;  %v20805_v12 = vpack.c.bf16 %v29163_v61, %v29162_v47  ;;  %v1554_v46 = vand.u32 4294901760, %v25650_v7 }
 0x154   :  { %20738 = vmatprep.subr.bf16.mxu0 %v20737_v19  ;;  %21314 = vmatprep.subr.bf16.mxu1 %v20737_v19 }
 0x157   :  { %20740 = vmatpush3.bf16.msra.mxu0 %v20737_v19  ;;  %21316 = vmatpush3.bf16.msra.mxu1 %v20737_v19  ;;  %v1557_v19 = vand.u32 4294901760, %v25652_v40 }
 0x158   :  { %20742 = vmatprep.subr.bf16.mxu0 %v20741_v9  ;;  %21318 = vmatprep.subr.bf16.mxu1 %v20741_v9 }
 0x15b   :  { %20744 = vmatpush3.bf16.msra.mxu0 %v20741_v9  ;;  %21320 = vmatpush3.bf16.msra.mxu1 %v20741_v9  ;;  %v1560_v9 = vand.u32 4294901760, %v25654_v35 }
 0x15c   :  { %20746 = vmatprep.subr.bf16.mxu0 %v20745_v0  ;;  %21322 = vmatprep.subr.bf16.mxu1 %v20745_v0 }
 0x15f   :  { %20748 = vmatpush3.bf16.msra.mxu0 %v20745_v0  ;;  %21324 = vmatpush3.bf16.msra.mxu1 %v20745_v0  ;;  %v1563_v0 = vand.u32 4294901760, %v25658_v45 }
 0x160   :  { %20750 = vmatprep.subr.bf16.mxu0 %v20749_v41  ;;  %21326 = vmatprep.subr.bf16.mxu1 %v20749_v41 }
 0x161   :  { %v25710_v61 = vpack.c.bf16 %v1563_v0, %v1560_v9 }
 0x163   :  { %20752 = vmatpush3.bf16.msra.mxu0 %v20749_v41  ;;  %21328 = vmatpush3.bf16.msra.mxu1 %v20749_v41  ;;  %v25676_v41 = vand.u32 4294901760, %v1505_v10 }
 0x164   :  { %20754 = vmatprep.subr.bf16.mxu0 %v20753_v38  ;;  %21330 = vmatprep.subr.bf16.mxu1 %v20753_v38 }
 0x167   :  { %20756 = vmatpush3.bf16.msra.mxu0 %v20753_v38  ;;  %21332 = vmatpush3.bf16.msra.mxu1 %v20753_v38  ;;  %v25678_v38 = vand.u32 4294901760, %v3582_v42 }
 0x168   :  { %20758 = vmatprep.subr.bf16.mxu0 %v20757_v28  ;;  %21334 = vmatprep.subr.bf16.mxu1 %v20757_v28 }
 0x16b   :  { %20760 = vmatpush3.bf16.msra.mxu0 %v20757_v28  ;;  %21336 = vmatpush3.bf16.msra.mxu1 %v20757_v28 }
 0x16c   :  { %20762 = vmatprep.subr.bf16.mxu0 %v25174_v59  ;;  %21338 = vmatprep.subr.bf16.mxu1 %v25174_v59 }
 0x16e   :  { %16586 = vmatmul.mubr.f32.vlgmr.msra.gmra.mrb[0].mxu0 %v25293_v20  ;;  %17216 = vmatmul.mubr.f32.vlgmr.msra.gmra.mrb[0].mxu1 %v25296_v36  ;;  %v20817_v20 = vpack.c.bf16 %v1015_v8, %v1008_v17  ;;  %v20821_v36 = vpack.c.bf16 %v1029_v49, %v1022_v27  ;;  %v25634_v17 = vpack.c.bf16 %v1539_v62, %v1536_v53  ;;  %v1542_v8 = vand.u32 4294901760, %v25620_v2 }
 0x16f   :  { %20764 = vmatpush3.bf16.msra.mxu0 %v25174_v59  ;;  %21340 = vmatpush3.bf16.msra.mxu1 %v25174_v59  ;;  %v1548_v27 = vand.u32 4294901760, %v25638_v51 }
 0x170   :  { %20766 = vmatprep.subr.bf16.mxu0 %v25196_v11  ;;  %21342 = vmatprep.subr.bf16.mxu1 %v25196_v11 }
 0x171   :  { %16620 = vmatprep.mubr.f32.mxu0 %v903_v22  ;;  %17250 = vmatprep.mubr.f32.mxu1 %v2980_v23  ;;  %v29160_v22 = vand.u32 4294901760, %v25315_v56  ;;  %v29161_v23 = vand.u32 4294901760, %v25320_v44  ;;  %v1527_v56 = vand.u32 4294901760, %v1508_v18  ;;  %v25584_v44 = vld [vmem:[#allocation6 + $0x110] sm:$0xff] }
 0x172   :  { %v1530_v48 = vand.u32 4294901760, %v25584_v44 }
 0x173   :  { %20768 = vmatpush3.bf16.msra.mxu0 %v25196_v11  ;;  %21344 = vmatpush3.bf16.msra.mxu1 %v25196_v11  ;;  %v20801_v52 = vpack.c.bf16 %v29161_v23, %v29160_v22  ;;  %v25662_v33 = vsub.f32 %v1508_v18, %v1527_v56  ;;  %v25692_v22 = vld [vmem:[#allocation6 + $0x170] sm:$0xff]  ;;  %v25694_v23 = vld [vmem:[#allocation6 + $0x178] sm:$0xff]  ;;  %v25735_v18 = vsub.f32 %v25598_v50, %v1536_v53 }
 0x174   :  { %20770 = vmatprep.subr.bf16.mxu0 %v25214_v32  ;;  %21346 = vmatprep.subr.bf16.mxu1 %v25214_v32 }
 0x175   :  { %v29084_v53 = vand.u32 4294901760, %v25735_v18 }
 0x177   :  { %20772 = vmatpush3.bf16.msra.mxu0 %v25214_v32  ;;  %21348 = vmatpush3.bf16.msra.mxu1 %v25214_v32 }
 0x178   :  { %20774 = vmatprep.subr.bf16.mxu0 %v25226_v31  ;;  %21350 = vmatprep.subr.bf16.mxu1 %v25226_v31 }
 0x17b   :  { %20776 = vmatpush3.bf16.msra.mxu0 %v25226_v31  ;;  %21352 = vmatpush3.bf16.msra.mxu1 %v25226_v31 }
 0x17c   :  { %20778 = vmatprep.subr.bf16.mxu0 %v25250_v34  ;;  %21354 = vmatprep.subr.bf16.mxu1 %v25250_v34 }
 0x17f   :  { %20780 = vmatpush3.bf16.msra.mxu0 %v25250_v34  ;;  %21356 = vmatpush3.bf16.msra.mxu1 %v25250_v34 }
 0x180   :  { %20782 = vmatprep.subr.bf16.mxu0 %v25270_v37  ;;  %21358 = vmatprep.subr.bf16.mxu1 %v25270_v37 }
 0x183   :  { %20784 = vmatpush3.bf16.msra.mxu0 %v25270_v37  ;;  %21360 = vmatpush3.bf16.msra.mxu1 %v25270_v37 }
 0x184   :  { %20786 = vmatprep.subr.bf16.mxu0 %v25290_v5  ;;  %21362 = vmatprep.subr.bf16.mxu1 %v25290_v5 }
 0x187   :  { %20788 = vmatpush3.bf16.msra.mxu0 %v25290_v5  ;;  %21364 = vmatpush3.bf16.msra.mxu1 %v25290_v5 }
 0x188   :  { %20790 = vmatprep.subr.bf16.mxu0 %v25336_v25  ;;  %21366 = vmatprep.subr.bf16.mxu1 %v25336_v25 }
 0x18b   :  { %20792 = vmatpush3.bf16.msra.mxu0 %v25336_v25  ;;  %21368 = vmatpush3.bf16.msra.mxu1 %v25336_v25 }
 0x18c   :  { %20794 = vmatprep.subr.bf16.mxu0 %v20793_v30  ;;  %21370 = vmatprep.subr.bf16.mxu1 %v20793_v30 }
 0x18e   :  { %16621 = vmatmul.mubr.f32.vlgmr.msra.gmra.mrb[0].mxu0 %v913_v3  ;;  %17251 = vmatmul.mubr.f32.vlgmr.msra.gmra.mrb[0].mxu1 %v2990_v43  ;;  %v25586_v3 = vld [vmem:[#allocation6 + $0x118] sm:$0xff] }
 0x18f   :  { %20796 = vmatpush3.bf16.msra.mxu0 %v20793_v30  ;;  %21372 = vmatpush3.bf16.msra.mxu1 %v20793_v30  ;;  %v1533_v39 = vand.u32 4294901760, %v25586_v3  ;;  %v1634_v30 = vand.u32 4294901760, %v25662_v33 }
 0x190   :  { %20798 = vmatprep.subr.bf16.mxu0 %v20797_v1  ;;  %21374 = vmatprep.subr.bf16.mxu1 %v20797_v1 }
 0x191   :  { %16655 = vmatprep.mubr.f32.mxu0 %v25146_v13  ;;  %17285 = vmatprep.mubr.f32.mxu1 %v25148_v24  ;;  %v25616_v6 = vpack.c.bf16 %v1533_v39, %v1530_v48  ;;  %v25704_v47 = vsub.f32 %v25586_v3, %v1533_v39  ;;  %v25745_v3 = vsub.f32 %v25620_v2, %v1542_v8 }
 0x193   :  { %20800 = vmatpush3.bf16.msra.mxu0 %v20797_v1  ;;  %21376 = vmatpush3.bf16.msra.mxu1 %v20797_v1  ;;  %v25690_v1 = vpack.c.bf16 %v1557_v19, %v1554_v46 }
 0x194   :  { %20802 = vmatprep.subr.bf16.mxu0 %v20801_v52  ;;  %21378 = vmatprep.subr.bf16.mxu1 %v20801_v52 }
 0x197   :  { %20804 = vmatpush3.bf16.msra.mxu0 %v20801_v52  ;;  %21380 = vmatpush3.bf16.msra.mxu1 %v20801_v52  ;;  %v25699_v52 = vsub.f32 %v25584_v44, %v1530_v48 }
 0x198   :  { %20806 = vmatprep.subr.bf16.mxu0 %v20805_v12  ;;  %21382 = vmatprep.subr.bf16.mxu1 %v20805_v12 }
 0x19b   :  { %20808 = vmatpush3.bf16.msra.mxu0 %v20805_v12  ;;  %21384 = vmatpush3.bf16.msra.mxu1 %v20805_v12  ;;  %v25713_v12 = vsub.f32 %v1505_v10, %v25676_v41 }
 0x19c   :  { %20810 = vmatprep.subr.bf16.mxu0 %v20809_v55  ;;  %21386 = vmatprep.subr.bf16.mxu1 %v20809_v55 }
 0x19f   :  { %20812 = vmatpush3.bf16.msra.mxu0 %v20809_v55  ;;  %21388 = vmatpush3.bf16.msra.mxu1 %v20809_v55  ;;  %v25716_v55 = vsub.f32 %v3582_v42, %v25678_v38 }
 0x1a0   :  { %20814 = vmatprep.subr.bf16.mxu0 %v20813_v4  ;;  %21390 = vmatprep.subr.bf16.mxu1 %v20813_v4 }
 0x1a1   :  { %v3676_v44 = vand.u32 4294901760, %v25716_v55 }
 0x1a3   :  { %20816 = vmatpush3.bf16.msra.mxu0 %v20813_v4  ;;  %21392 = vmatpush3.bf16.msra.mxu1 %v20813_v4  ;;  %v1566_v4 = vand.u32 4294901760, %v25692_v22 }
 0x1a4   :  { %20818 = vmatprep.subr.bf16.mxu0 %v20817_v20  ;;  %21394 = vmatprep.subr.bf16.mxu1 %v20817_v20 }
 0x1a7   :  { %20820 = vmatpush3.bf16.msra.mxu0 %v20817_v20  ;;  %21396 = vmatpush3.bf16.msra.mxu1 %v20817_v20  ;;  %v1569_v20 = vand.u32 4294901760, %v25694_v23 }
 0x1a8   :  { %20822 = vmatprep.subr.bf16.mxu0 %v20821_v36  ;;  %21398 = vmatprep.subr.bf16.mxu1 %v20821_v36 }
 0x1a9   :  { %v25756_v39 = vpack.c.bf16 %v1569_v20, %v1566_v4 }
 0x1ab   :  { %20824 = vmatpush3.bf16.msra.mxu0 %v20821_v36  ;;  %21400 = vmatpush3.bf16.msra.mxu1 %v20821_v36 }
 0x1ac   :  { %20826 = vmatprep.subr.bf16.mxu0 %v25174_v59  ;;  %21402 = vmatprep.subr.bf16.mxu1 %v25174_v59 }
 0x1ae   :  { %16656 = vmatmul.mubr.f32.vlgmr.msra.gmra.mrb[0].mxu0 %v25256_v57  ;;  %17286 = vmatmul.mubr.f32.vlgmr.msra.gmra.mrb[0].mxu1 %v25258_v60 }
 0x1af   :  { %20828 = vmatpush3.bf16.msra.mxu0 %v25174_v59  ;;  %21404 = vmatpush3.bf16.msra.mxu1 %v25174_v59  ;;  %v1504_v59 = vld [vmem:[#allocation2 + $0x2] sm:$0xff] }
 0x1b0   :  { %20830 = vmatprep.subr.bf16.mxu0 %v25196_v11  ;;  %21406 = vmatprep.subr.bf16.mxu1 %v25196_v11 }
 0x1b1   :  { %16690 = vmatprep.mubr.f32.mxu0 %v25146_v13  ;;  %17320 = vmatprep.mubr.f32.mxu1 %v25148_v24  ;;  %v3581_v13 = vld [vmem:[#allocation2 + $0x1a] sm:$0xff]  ;;  %v25566_v24 = vand.u32 4294901760, %v1504_v59 }
 0x1b3   :  { %20832 = vmatpush3.bf16.msra.mxu0 %v25196_v11  ;;  %21408 = vmatpush3.bf16.msra.mxu1 %v25196_v11  ;;  %v25568_v11 = vand.u32 4294901760, %v3581_v13 }
 0x1b4   :  { %20834 = vmatprep.subr.bf16.mxu0 %v25214_v32  ;;  %21410 = vmatprep.subr.bf16.mxu1 %v25214_v32 }
 0x1b5   :  { %v25578_v21 = vsub.f32 %v3581_v13, %v25568_v11  ;;  %v1641_v13 = vand.u32 4294901760, %v25699_v52 }
 0x1b7   :  { %20836 = vmatpush3.bf16.msra.mxu0 %v25214_v32  ;;  %21412 = vmatpush3.bf16.msra.mxu1 %v25214_v32  ;;  %v1507_v32 = vld [vmem:[#allocation6 + $0x100] sm:$0xff]  ;;  %v3666_v14 = vand.u32 4294901760, %v25578_v21 }
 0x1b8   :  { %20838 = vmatprep.subr.bf16.mxu0 %v25226_v31  ;;  %21414 = vmatprep.subr.bf16.mxu1 %v25226_v31 }
 0x1bb   :  { %20840 = vmatpush3.bf16.msra.mxu0 %v25226_v31  ;;  %21416 = vmatpush3.bf16.msra.mxu1 %v25226_v31  ;;  %v25575_v31 = vsub.f32 %v1504_v59, %v25566_v24  ;;  %v1635_v59 = vsub.f32 %v25662_v33, %v1634_v30 }
 0x1bc   :  { %20842 = vmatprep.subr.bf16.mxu0 %v25250_v34  ;;  %21418 = vmatprep.subr.bf16.mxu1 %v25250_v34 }
 0x1bd   :  { %v1606_v43 = vand.u32 4294901760, %v25575_v31 }
 0x1bf   :  { %20844 = vmatpush3.bf16.msra.mxu0 %v25250_v34  ;;  %21420 = vmatpush3.bf16.msra.mxu1 %v25250_v34  ;;  %v1524_v34 = vand.u32 4294901760, %v1507_v32  ;;  %v1607_v58 = vsub.f32 %v25575_v31, %v1606_v43 }
 0x1c0   :  { %20846 = vmatprep.subr.bf16.mxu0 %v25270_v37  ;;  %21422 = vmatprep.subr.bf16.mxu1 %v25270_v37 }
 0x1c1   :  { %v1608_v63 = vand.u32 4294901760, %v1607_v58  ;;  %v25660_v29 = vsub.f32 %v1507_v32, %v1524_v34  ;;  %v1648_v32 = vand.u32 4294901760, %v25704_v47  ;;  %v1642_v58 = vsub.f32 %v25699_v52, %v1641_v13 }
 0x1c3   :  { %20848 = vmatpush3.bf16.msra.mxu0 %v25270_v37  ;;  %21424 = vmatpush3.bf16.msra.mxu1 %v25270_v37  ;;  %v25594_v37 = vpack.c.bf16 %v1527_v56, %v1524_v34  ;;  %v1627_v28 = vand.u32 4294901760, %v25660_v29  ;;  %v25740_v34 = vsub.f32 %v25600_v26, %v1539_v62  ;;  %v1616_v56 = vand.u32 4294901760, %v25713_v12 }
 0x1c4   :  { %20850 = vmatprep.subr.bf16.mxu0 %v25290_v5  ;;  %21426 = vmatprep.subr.bf16.mxu1 %v25290_v5  ;;  %v1636_v26 = vand.u32 4294901760, %v1635_v59  ;;  %v1643_v42 = vand.u32 4294901760, %v1642_v58  ;;  %v1656_v59 = vsub.f32 %v25735_v18, %v29084_v53 }
 0x1c5   :  { %v1628_v36 = vsub.f32 %v25660_v29, %v1627_v28  ;;  %v29083_v62 = vand.u32 4294901760, %v25740_v34  ;;  %v1617_v2 = vsub.f32 %v25713_v12, %v1616_v56 }
 0x1c7   :  { %20852 = vmatpush3.bf16.msra.mxu0 %v25290_v5  ;;  %21428 = vmatpush3.bf16.msra.mxu1 %v25290_v5  ;;  %v3667_v5 = vsub.f32 %v25578_v21, %v3666_v14  ;;  %v1629_v50 = vand.u32 4294901760, %v1628_v36 }
 0x1c8   :  { %20854 = vmatprep.subr.bf16.mxu0 %v25336_v25  ;;  %21430 = vmatprep.subr.bf16.mxu1 %v25336_v25 }
 0x1cb   :  { %20856 = vmatpush3.bf16.msra.mxu0 %v25336_v25  ;;  %21432 = vmatpush3.bf16.msra.mxu1 %v25336_v25  ;;  %v3668_v25 = vand.u32 4294901760, %v3667_v5  ;;  %v1649_v5 = vsub.f32 %v25704_v47, %v1648_v32 }
 0x1cc   :  { %20858 = vmatprep.subr.bf16.mxu0 %v25594_v37  ;;  %21434 = vmatprep.subr.bf16.mxu1 %v25594_v37 }
 0x1cd   :  { %v1650_v36 = vand.u32 4294901760, %v1649_v5  ;;  %v25809_v5 = vsub.f32 %v25650_v7, %v1554_v46 }
 0x1ce   :  { %16691 = vmatmul.mubr.f32.vlgmr.msra.gmra.mrb[0].mxu0 %v25256_v57  ;;  %17321 = vmatmul.mubr.f32.vlgmr.msra.gmra.mrb[0].mxu1 %v25258_v60  ;;  %v1545_v57 = vand.u32 4294901760, %v25622_v54  ;;  %v25640_v60 = vld [vmem:[#allocation6 + $0x148] sm:$0xff] }
 0x1cf   :  { %20860 = vmatpush3.bf16.msra.mxu0 %v25594_v37  ;;  %21436 = vmatpush3.bf16.msra.mxu1 %v25594_v37  ;;  %v1551_v49 = vand.u32 4294901760, %v25640_v60  ;;  %v1697_v46 = vand.u32 4294901760, %v25809_v5 }
 0x1d0   :  { %20862 = vmatprep.subr.bf16.mxu0 %v25616_v6  ;;  %21438 = vmatprep.subr.bf16.mxu1 %v25616_v6  ;;  %v25646_v16 = vpack.c.bf16 %v1545_v57, %v1542_v8  ;;  %v25748_v48 = vsub.f32 %v25622_v54, %v1545_v57  ;;  %v3677_v54 = vsub.f32 %v25716_v55, %v3676_v44 }
 0x1d1   :  { %16725 = vmatprep.mubr.f32.mxu0 %v1608_v63  ;;  %17355 = vmatprep.mubr.f32.mxu1 %v3668_v25  ;;  %v25670_v15 = vpack.c.bf16 %v1551_v49, %v1548_v27  ;;  %v29082_v63 = vand.u32 4294901760, %v25745_v3  ;;  %v20889_v8 = vpack.c.bf16 %v1636_v26, %v1629_v50  ;;  %v25781_v57 = vsub.f32 %v25638_v51, %v1548_v27 }
 0x1d2   :  { %v29081_v25 = vand.u32 4294901760, %v25748_v48  ;;  %v25786_v10 = vsub.f32 %v25640_v60, %v1551_v49  ;;  %v1663_v51 = vsub.f32 %v25740_v34, %v29083_v62  ;;  %v1618_v27 = vand.u32 4294901760, %v1617_v2 }
 0x1d3   :  { %20864 = vmatpush3.bf16.msra.mxu0 %v25616_v6  ;;  %21440 = vmatpush3.bf16.msra.mxu1 %v25616_v6  ;;  %v3678_v50 = vand.u32 4294901760, %v3677_v54  ;;  %v1670_v60 = vsub.f32 %v25745_v3, %v29082_v63  ;;  %v1683_v26 = vand.u32 4294901760, %v25781_v57  ;;  %v25814_v2 = vsub.f32 %v25652_v40, %v1557_v19 }
 0x1d4   :  { %20866 = vmatprep.subr.bf16.mxu0 %v25634_v17  ;;  %21442 = vmatprep.subr.bf16.mxu1 %v25634_v17  ;;  %v1677_v49 = vsub.f32 %v25748_v48, %v29081_v25  ;;  %v1690_v58 = vand.u32 4294901760, %v25786_v10  ;;  %v20893_v54 = vpack.c.bf16 %v1650_v36, %v1643_v42  ;;  %v1657_v25 = vand.u32 4294901760, %v1656_v59 }
 0x1d5   :  { %v1664_v63 = vand.u32 4294901760, %v1663_v51  ;;  %v1671_v62 = vand.u32 4294901760, %v1670_v60  ;;  %v1684_v7 = vsub.f32 %v25781_v57, %v1683_v26  ;;  %v1704_v19 = vand.u32 4294901760, %v25814_v2 }
 0x1d6   :  { %v1678_v53 = vand.u32 4294901760, %v1677_v49  ;;  %v1691_v40 = vsub.f32 %v25786_v10, %v1690_v58  ;;  %v25827_v36 = vsub.f32 %v25654_v35, %v1560_v9 }
 0x1d7   :  { %20868 = vmatpush3.bf16.msra.mxu0 %v25634_v17  ;;  %21444 = vmatpush3.bf16.msra.mxu1 %v25634_v17  ;;  %v20897_v42 = vpack.c.bf16 %v1664_v63, %v1657_v25  ;;  %v1685_v51 = vand.u32 4294901760, %v1684_v7  ;;  %v1698_v63 = vsub.f32 %v25809_v5, %v1697_v46  ;;  %v1705_v35 = vsub.f32 %v25814_v2, %v1704_v19 }
 0x1d8   :  { %20870 = vmatprep.subr.bf16.mxu0 %v25646_v16  ;;  %21446 = vmatprep.subr.bf16.mxu1 %v25646_v16  ;;  %v20901_v59 = vpack.c.bf16 %v1678_v53, %v1671_v62  ;;  %v25852_v53 = vsub.f32 %v25694_v23, %v1569_v20 }
 0x1d9   :  { %v1699_v25 = vand.u32 4294901760, %v1698_v63  ;;  %v20921_v63 = vpack.c.bf16 %v25662_v33, %v25660_v29  ;;  %v29166_v33 = vand.u32 4294901760, %v25745_v3 }
 0x1da   :  { %v1732_v23 = vand.u32 4294901760, %v25852_v53 }
 0x1db   :  { %20872 = vmatpush3.bf16.msra.mxu0 %v25646_v16  ;;  %21448 = vmatpush3.bf16.msra.mxu1 %v25646_v16 }
 0x1dc   :  { %20874 = vmatprep.subr.bf16.mxu0 %v25670_v15  ;;  %21450 = vmatprep.subr.bf16.mxu1 %v25670_v15 }
 0x1df   :  { %20876 = vmatpush3.bf16.msra.mxu0 %v25670_v15  ;;  %21452 = vmatpush3.bf16.msra.mxu1 %v25670_v15 }
 0x1e0   :  { %20878 = vmatprep.subr.bf16.mxu0 %v25690_v1  ;;  %21454 = vmatprep.subr.bf16.mxu1 %v25690_v1 }
 0x1e3   :  { %20880 = vmatpush3.bf16.msra.mxu0 %v25690_v1  ;;  %21456 = vmatpush3.bf16.msra.mxu1 %v25690_v1 }
 0x1e4   :  { %20882 = vmatprep.subr.bf16.mxu0 %v25710_v61  ;;  %21458 = vmatprep.subr.bf16.mxu1 %v25710_v61 }
 0x1e7   :  { %20884 = vmatpush3.bf16.msra.mxu0 %v25710_v61  ;;  %21460 = vmatpush3.bf16.msra.mxu1 %v25710_v61 }
 0x1e8   :  { %20886 = vmatprep.subr.bf16.mxu0 %v25756_v39  ;;  %21462 = vmatprep.subr.bf16.mxu1 %v25756_v39 }
 0x1eb   :  { %20888 = vmatpush3.bf16.msra.mxu0 %v25756_v39  ;;  %21464 = vmatpush3.bf16.msra.mxu1 %v25756_v39 }
 0x1ec   :  { %20890 = vmatprep.subr.bf16.mxu0 %v20889_v8  ;;  %21466 = vmatprep.subr.bf16.mxu1 %v20889_v8 }
 0x1ee   :  { %16726 = vmatmul.mubr.f32.vlgmr.msra.gmra.mrb[0].mxu0 %v1618_v27  ;;  %17356 = vmatmul.mubr.f32.vlgmr.msra.gmra.mrb[0].mxu1 %v3678_v50  ;;  %v1692_v27 = vand.u32 4294901760, %v1691_v40  ;;  %v1706_v50 = vand.u32 4294901760, %v1705_v35  ;;  %v1733_v40 = vsub.f32 %v25852_v53, %v1732_v23  ;;  %v20925_v35 = vpack.c.bf16 %v25704_v47, %v25699_v52 }
 0x1ef   :  { %20892 = vmatpush3.bf16.msra.mxu0 %v20889_v8  ;;  %21468 = vmatpush3.bf16.msra.mxu1 %v20889_v8  ;;  %v25832_v8 = vsub.f32 %v25658_v45, %v1563_v0  ;;  %v1711_v45 = vand.u32 4294901760, %v25827_v36  ;;  %v25847_v0 = vsub.f32 %v25692_v22, %v1566_v4  ;;  %v21001_v52 = vpack.c.bf16 %v1690_v58, %v1683_v26 }
 0x1f0   :  { %20894 = vmatprep.subr.bf16.mxu0 %v20893_v54  ;;  %21470 = vmatprep.subr.bf16.mxu1 %v20893_v54  ;;  %v20905_v62 = vpack.c.bf16 %v1692_v27, %v1685_v51  ;;  %v20909_v20 = vpack.c.bf16 %v1706_v50, %v1699_v25  ;;  %v20933_v25 = vpack.c.bf16 %v25748_v48, %v25745_v3  ;;  %v26034_v3 = vld [vmem:[#allocation9 + $0x38] sm:$0xff] }
 0x1f1   :  { %16760 = vmatprep.mubr.f32.mxu0 %v25566_v24  ;;  %17390 = vmatprep.mubr.f32.mxu1 %v25568_v11  ;;  %v1718_v9 = vand.u32 4294901760, %v25832_v8  ;;  %v1712_v60 = vsub.f32 %v25827_v36, %v1711_v45  ;;  %v1725_v4 = vand.u32 4294901760, %v25847_v0  ;;  %v20937_v50 = vpack.c.bf16 %v25786_v10, %v25781_v57  ;;  %v26050_v57 = vld [vmem:[#allocation9 + $0x40] sm:$0xff] }
 0x1f2   :  { %v21005_v47 = vpack.c.bf16 %v1704_v19, %v1697_v46  ;;  %v4312_v26 = vand.u32 4294901760, %v26050_v57  ;;  %v4282_v46 = vld [vmem:[#allocation9 + $0x58] sm:$0xff] }
 0x1f3   :  { %20896 = vmatpush3.bf16.msra.mxu0 %v20893_v54  ;;  %21472 = vmatpush3.bf16.msra.mxu1 %v20893_v54  ;;  %v1719_v22 = vsub.f32 %v25832_v8, %v1718_v9  ;;  %v1713_v49 = vand.u32 4294901760, %v1712_v60  ;;  %v1726_v7 = vsub.f32 %v25847_v0, %v1725_v4  ;;  %v20941_v60 = vpack.c.bf16 %v25814_v2, %v25809_v5  ;;  %v4281_v2 = vld [vmem:[#allocation9 + $0x50] sm:$0xff] }
 0x1f4   :  { %20898 = vmatprep.subr.bf16.mxu0 %v20897_v42  ;;  %21474 = vmatprep.subr.bf16.mxu1 %v20897_v42  ;;  %v4318_v19 = vand.u32 4294901760, %v4281_v2 }
 0x1f5   :  { %v1720_v54 = vand.u32 4294901760, %v1719_v22  ;;  %v1727_v51 = vand.u32 4294901760, %v1726_v7  ;;  %v20945_v22 = vpack.c.bf16 %v25832_v8, %v25827_v36  ;;  %v4321_v36 = vand.u32 4294901760, %v4282_v46  ;;  %v4286_v7 = vld [vmem:[#allocation9 + $0x78] sm:$0xff] }
 0x1f7   :  { %20900 = vmatpush3.bf16.msra.mxu0 %v20897_v42  ;;  %21476 = vmatpush3.bf16.msra.mxu1 %v20897_v42  ;;  %v20913_v42 = vpack.c.bf16 %v1720_v54, %v1713_v49  ;;  %v26082_v8 = vpack.c.bf16 %v4321_v36, %v4318_v19  ;;  %v4285_v54 = vld [vmem:[#allocation9 + $0x70] sm:$0xff] }
 0x1f8   :  { %20902 = vmatprep.subr.bf16.mxu0 %v20901_v59  ;;  %21478 = vmatprep.subr.bf16.mxu1 %v20901_v59 }
 0x1fb   :  { %20904 = vmatpush3.bf16.msra.mxu0 %v20901_v59  ;;  %21480 = vmatpush3.bf16.msra.mxu1 %v20901_v59  ;;  %v1734_v59 = vand.u32 4294901760, %v1733_v40  ;;  %v4330_v40 = vand.u32 4294901760, %v4285_v54 }
 0x1fc   :  { %20906 = vmatprep.subr.bf16.mxu0 %v20905_v62  ;;  %21482 = vmatprep.subr.bf16.mxu1 %v20905_v62 }
 0x1fd   :  { %v20917_v27 = vpack.c.bf16 %v1734_v59, %v1727_v51 }
 0x1ff   :  { %20908 = vmatpush3.bf16.msra.mxu0 %v20905_v62  ;;  %21484 = vmatpush3.bf16.msra.mxu1 %v20905_v62  ;;  %v20929_v62 = vpack.c.bf16 %v25740_v34, %v25735_v18 }
 0x200   :  { %20910 = vmatprep.subr.bf16.mxu0 %v20909_v20  ;;  %21486 = vmatprep.subr.bf16.mxu1 %v20909_v20 }
 0x203   :  { %20912 = vmatpush3.bf16.msra.mxu0 %v20909_v20  ;;  %21488 = vmatpush3.bf16.msra.mxu1 %v20909_v20  ;;  %v20949_v20 = vpack.c.bf16 %v25852_v53, %v25847_v0 }
 0x204   :  { %20914 = vmatprep.subr.bf16.mxu0 %v20913_v42  ;;  %21490 = vmatprep.subr.bf16.mxu1 %v20913_v42 }
 0x207   :  { %20916 = vmatpush3.bf16.msra.mxu0 %v20913_v42  ;;  %21492 = vmatpush3.bf16.msra.mxu1 %v20913_v42  ;;  %v4333_v42 = vand.u32 4294901760, %v4286_v7 }
 0x208   :  { %20918 = vmatprep.subr.bf16.mxu0 %v20917_v27  ;;  %21494 = vmatprep.subr.bf16.mxu1 %v20917_v27 }
 0x20b   :  { %20920 = vmatpush3.bf16.msra.mxu0 %v20917_v27  ;;  %21496 = vmatpush3.bf16.msra.mxu1 %v20917_v27  ;;  %v26106_v27 = vpack.c.bf16 %v4333_v42, %v4330_v40 }
 0x20c   :  { %20922 = vmatprep.subr.bf16.mxu0 %v20921_v63  ;;  %21498 = vmatprep.subr.bf16.mxu1 %v20921_v63 }
 0x20e   :  { %16761 = vmatmul.mubr.f32.vlgmr.msra.gmra.mrb[0].mxu0 %v25676_v41  ;;  %17391 = vmatmul.mubr.f32.vlgmr.msra.gmra.mrb[0].mxu1 %v25678_v38 }
 0x20f   :  { %20924 = vmatpush3.bf16.msra.mxu0 %v20921_v63  ;;  %21500 = vmatpush3.bf16.msra.mxu1 %v20921_v63 }
 0x210   :  { %20926 = vmatprep.subr.bf16.mxu0 %v20925_v35  ;;  %21502 = vmatprep.subr.bf16.mxu1 %v20925_v35 }
 0x211   :  { %16795 = vmatprep.mubr.f32.mxu0 %v25575_v31  ;;  %17425 = vmatprep.mubr.f32.mxu1 %v25578_v21  ;;  %v20985_v31 = vpack.c.bf16 %v1634_v30, %v1627_v28  ;;  %v20989_v21 = vpack.c.bf16 %v1648_v32, %v1641_v13  ;;  %v29167_v28 = vand.u32 4294901760, %v25748_v48  ;;  %v26016_v32 = vld [vmem:[#allocation9 + $0x20] sm:$0xff] }
 0x213   :  { %20928 = vmatpush3.bf16.msra.mxu0 %v20925_v35  ;;  %21504 = vmatpush3.bf16.msra.mxu1 %v20925_v35  ;;  %v20997_v30 = vpack.c.bf16 %v29167_v28, %v29166_v33 }
 0x214   :  { %20930 = vmatprep.subr.bf16.mxu0 %v20929_v62  ;;  %21506 = vmatprep.subr.bf16.mxu1 %v20929_v62 }
 0x217   :  { %20932 = vmatpush3.bf16.msra.mxu0 %v20929_v62  ;;  %21508 = vmatpush3.bf16.msra.mxu1 %v20929_v62 }
 0x218   :  { %20934 = vmatprep.subr.bf16.mxu0 %v20933_v25  ;;  %21510 = vmatprep.subr.bf16.mxu1 %v20933_v25 }
 0x21b   :  { %20936 = vmatpush3.bf16.msra.mxu0 %v20933_v25  ;;  %21512 = vmatpush3.bf16.msra.mxu1 %v20933_v25 }
 0x21c   :  { %20938 = vmatprep.subr.bf16.mxu0 %v20937_v50  ;;  %21514 = vmatprep.subr.bf16.mxu1 %v20937_v50 }
 0x21f   :  { %20940 = vmatpush3.bf16.msra.mxu0 %v20937_v50  ;;  %21516 = vmatpush3.bf16.msra.mxu1 %v20937_v50 }
 0x220   :  { %20942 = vmatprep.subr.bf16.mxu0 %v20941_v60  ;;  %21518 = vmatprep.subr.bf16.mxu1 %v20941_v60 }
 0x223   :  { %20944 = vmatpush3.bf16.msra.mxu0 %v20941_v60  ;;  %21520 = vmatpush3.bf16.msra.mxu1 %v20941_v60  ;;  %v26122_v60 = vsub.f32 %v4281_v2, %v4318_v19 }
 0x224   :  { %20946 = vmatprep.subr.bf16.mxu0 %v20945_v22  ;;  %21522 = vmatprep.subr.bf16.mxu1 %v20945_v22 }
 0x227   :  { %20948 = vmatpush3.bf16.msra.mxu0 %v20945_v22  ;;  %21524 = vmatpush3.bf16.msra.mxu1 %v20945_v22  ;;  %v26124_v22 = vsub.f32 %v4282_v46, %v4321_v36 }
 0x228   :  { %20950 = vmatprep.subr.bf16.mxu0 %v20949_v20  ;;  %21526 = vmatprep.subr.bf16.mxu1 %v20949_v20 }
 0x22b   :  { %20952 = vmatpush3.bf16.msra.mxu0 %v20949_v20  ;;  %21528 = vmatpush3.bf16.msra.mxu1 %v20949_v20  ;;  %v29090_v20 = vand.u32 4294901760, %v26122_v60 }
 0x22c   :  { %20954 = vmatprep.subr.bf16.mxu0 %v25594_v37  ;;  %21530 = vmatprep.subr.bf16.mxu1 %v25594_v37 }
 0x22e   :  { %16796 = vmatmul.mubr.f32.vlgmr.msra.gmra.mrb[0].mxu0 %v25713_v12  ;;  %17426 = vmatmul.mubr.f32.vlgmr.msra.gmra.mrb[0].mxu1 %v25716_v55  ;;  %v21009_v12 = vpack.c.bf16 %v1718_v9, %v1711_v45  ;;  %v21013_v55 = vpack.c.bf16 %v1732_v23, %v1725_v4  ;;  %v4283_v45 = vld [vmem:[#allocation9 + $0x60] sm:$0xff]  ;;  %v4284_v9 = vld [vmem:[#allocation9 + $0x68] sm:$0xff] }
 0x22f   :  { %20956 = vmatpush3.bf16.msra.mxu0 %v25594_v37  ;;  %21532 = vmatpush3.bf16.msra.mxu1 %v25594_v37  ;;  %v4324_v0 = vand.u32 4294901760, %v4283_v45  ;;  %v4327_v53 = vand.u32 4294901760, %v4284_v9 }
 0x230   :  { %20958 = vmatprep.subr.bf16.mxu0 %v25616_v6  ;;  %21534 = vmatprep.subr.bf16.mxu1 %v25616_v6 }
 0x231   :  { %16830 = vmatprep.mubr.f32.mxu0 %v1606_v43  ;;  %17460 = vmatprep.mubr.f32.mxu1 %v3666_v14  ;;  %v29164_v43 = vand.u32 4294901760, %v25735_v18  ;;  %v29165_v14 = vand.u32 4294901760, %v25740_v34  ;;  %v26018_v18 = vld [vmem:[#allocation9 + $0x28] sm:$0xff]  ;;  %v4300_v34 = vand.u32 4294901760, %v26016_v32  ;;  %v26088_v4 = vpack.c.bf16 %v4327_v53, %v4324_v0 }
 0x233   :  { %20960 = vmatpush3.bf16.msra.mxu0 %v25616_v6  ;;  %21536 = vmatpush3.bf16.msra.mxu1 %v25616_v6  ;;  %v20993_v29 = vpack.c.bf16 %v29165_v14, %v29164_v43  ;;  %v26131_v43 = vsub.f32 %v4283_v45, %v4324_v0  ;;  %v26133_v14 = vsub.f32 %v4284_v9, %v4327_v53 }
 0x234   :  { %20962 = vmatprep.subr.bf16.mxu0 %v25634_v17  ;;  %21538 = vmatprep.subr.bf16.mxu1 %v25634_v17 }
 0x235   :  { %v29088_v28 = vand.u32 4294901760, %v26131_v43 }
 0x237   :  { %20964 = vmatpush3.bf16.msra.mxu0 %v25634_v17  ;;  %21540 = vmatpush3.bf16.msra.mxu1 %v25634_v17 }
 0x238   :  { %20966 = vmatprep.subr.bf16.mxu0 %v25646_v16  ;;  %21542 = vmatprep.subr.bf16.mxu1 %v25646_v16 }
 0x23b   :  { %20968 = vmatpush3.bf16.msra.mxu0 %v25646_v16  ;;  %21544 = vmatpush3.bf16.msra.mxu1 %v25646_v16 }
 0x23c   :  { %20970 = vmatprep.subr.bf16.mxu0 %v25670_v15  ;;  %21546 = vmatprep.subr.bf16.mxu1 %v25670_v15 }
 0x23f   :  { %20972 = vmatpush3.bf16.msra.mxu0 %v25670_v15  ;;  %21548 = vmatpush3.bf16.msra.mxu1 %v25670_v15 }
 0x240   :  { %20974 = vmatprep.subr.bf16.mxu0 %v25690_v1  ;;  %21550 = vmatprep.subr.bf16.mxu1 %v25690_v1 }
 0x243   :  { %20976 = vmatpush3.bf16.msra.mxu0 %v25690_v1  ;;  %21552 = vmatpush3.bf16.msra.mxu1 %v25690_v1 }
 0x244   :  { %20978 = vmatprep.subr.bf16.mxu0 %v25710_v61  ;;  %21554 = vmatprep.subr.bf16.mxu1 %v25710_v61 }
 0x247   :  { %20980 = vmatpush3.bf16.msra.mxu0 %v25710_v61  ;;  %21556 = vmatpush3.bf16.msra.mxu1 %v25710_v61 }
 0x248   :  { %20982 = vmatprep.subr.bf16.mxu0 %v25756_v39  ;;  %21558 = vmatprep.subr.bf16.mxu1 %v25756_v39 }
 0x24b   :  { %20984 = vmatpush3.bf16.msra.mxu0 %v25756_v39  ;;  %21560 = vmatpush3.bf16.msra.mxu1 %v25756_v39 }
 0x24c   :  { %20986 = vmatprep.subr.bf16.mxu0 %v20985_v31  ;;  %21562 = vmatprep.subr.bf16.mxu1 %v20985_v31 }
 0x24e   :  { %16831 = vmatmul.mubr.f32.vlgmr.msra.gmra.mrb[0].mxu0 %v1616_v56  ;;  %17461 = vmatmul.mubr.f32.vlgmr.msra.gmra.mrb[0].mxu1 %v3676_v44  ;;  %v4303_v56 = vand.u32 4294901760, %v26018_v18  ;;  %v26032_v44 = vld [vmem:[#allocation9 + $0x30] sm:$0xff] }
 0x24f   :  { %20988 = vmatpush3.bf16.msra.mxu0 %v20985_v31  ;;  %21564 = vmatpush3.bf16.msra.mxu1 %v20985_v31  ;;  %v29089_v31 = vand.u32 4294901760, %v26124_v22 }
 0x250   :  { %20990 = vmatprep.subr.bf16.mxu0 %v20989_v21  ;;  %21566 = vmatprep.subr.bf16.mxu1 %v20989_v21  ;;  %v26046_v48 = vpack.c.bf16 %v4303_v56, %v4300_v34 }
 0x251   :  { %16865 = vmatprep.mubr.f32.mxu0 %v25566_v24  ;;  %17495 = vmatprep.mubr.f32.mxu1 %v25568_v11 }
 0x253   :  { %20992 = vmatpush3.bf16.msra.mxu0 %v20989_v21  ;;  %21568 = vmatpush3.bf16.msra.mxu1 %v20989_v21  ;;  %v4462_v21 = vsub.f32 %v26122_v60, %v29090_v20  ;;  %v26273_v20 = vsub.f32 %v26050_v57, %v4312_v26 }
 0x254   :  { %20994 = vmatprep.subr.bf16.mxu0 %v20993_v29  ;;  %21570 = vmatprep.subr.bf16.mxu1 %v20993_v29 }
 0x255   :  { %v4463_v33 = vand.u32 4294901760, %v4462_v21  ;;  %v26195_v21 = vsub.f32 %v26016_v32, %v4300_v34 }
 0x257   :  { %20996 = vmatpush3.bf16.msra.mxu0 %v20993_v29  ;;  %21572 = vmatpush3.bf16.msra.mxu1 %v20993_v29  ;;  %v4469_v29 = vsub.f32 %v26124_v22, %v29089_v31 }
 0x258   :  { %20998 = vmatprep.subr.bf16.mxu0 %v20997_v30  ;;  %21574 = vmatprep.subr.bf16.mxu1 %v20997_v30 }
 0x25b   :  { %21000 = vmatpush3.bf16.msra.mxu0 %v20997_v30  ;;  %21576 = vmatpush3.bf16.msra.mxu1 %v20997_v30  ;;  %v29087_v30 = vand.u32 4294901760, %v26133_v14 }
 0x25c   :  { %21002 = vmatprep.subr.bf16.mxu0 %v21001_v52  ;;  %21578 = vmatprep.subr.bf16.mxu1 %v21001_v52 }
 0x25f   :  { %21004 = vmatpush3.bf16.msra.mxu0 %v21001_v52  ;;  %21580 = vmatpush3.bf16.msra.mxu1 %v21001_v52  ;;  %v4470_v52 = vand.u32 4294901760, %v4469_v29  ;;  %v26200_v29 = vsub.f32 %v26018_v18, %v4303_v56 }
 0x260   :  { %21006 = vmatprep.subr.bf16.mxu0 %v21005_v47  ;;  %21582 = vmatprep.subr.bf16.mxu1 %v21005_v47 }
 0x263   :  { %21008 = vmatpush3.bf16.msra.mxu0 %v21005_v47  ;;  %21584 = vmatpush3.bf16.msra.mxu1 %v21005_v47  ;;  %v4476_v47 = vsub.f32 %v26131_v43, %v29088_v28 }
 0x264   :  { %21010 = vmatprep.subr.bf16.mxu0 %v21009_v12  ;;  %21586 = vmatprep.subr.bf16.mxu1 %v21009_v12 }
 0x267   :  { %21012 = vmatpush3.bf16.msra.mxu0 %v21009_v12  ;;  %21588 = vmatpush3.bf16.msra.mxu1 %v21009_v12  ;;  %v4483_v12 = vsub.f32 %v26133_v14, %v29087_v30 }
 0x268   :  { %21014 = vmatprep.subr.bf16.mxu0 %v21013_v55  ;;  %21590 = vmatprep.subr.bf16.mxu1 %v21013_v55 }
 0x26b   :  { %21016 = vmatpush3.bf16.msra.mxu0 %v21013_v55  ;;  %21592 = vmatpush3.bf16.msra.mxu1 %v21013_v55  ;;  %v26146_v55 = vsub.f32 %v4285_v54, %v4330_v40  ;;  %v26174_v40 = vpack.c.bf16 %v26133_v14, %v26131_v43 }
 0x26c   :  { %21018 = vmatprep.subr.bf16.mxu0 %v25594_v37  ;;  %21594 = vmatprep.subr.bf16.mxu1 %v25594_v37 }
 0x26d   :  { %v29086_v2 = vand.u32 4294901760, %v26146_v55 }
 0x26e   :  { %16866 = vmatmul.mubr.f32.vlgmr.msra.gmra.mrb[0].mxu0 %v25676_v41  ;;  %17496 = vmatmul.mubr.f32.vlgmr.msra.gmra.mrb[0].mxu1 %v25678_v38 }
 0x26f   :  { %21020 = vmatpush3.bf16.msra.mxu0 %v25594_v37  ;;  %21596 = vmatpush3.bf16.msra.mxu1 %v25594_v37  ;;  %v4490_v36 = vsub.f32 %v26146_v55, %v29086_v2 }
 0x270   :  { %21022 = vmatprep.subr.bf16.mxu0 %v25616_v6  ;;  %21598 = vmatprep.subr.bf16.mxu1 %v25616_v6 }
 0x271   :  { %16900 = vmatprep.mubr.f32.mxu0 %v25566_v24  ;;  %17530 = vmatprep.mubr.f32.mxu1 %v25568_v11  ;;  %v25990_v24 = vld [vmem:[#allocation9] sm:$0xff]  ;;  %v25992_v11 = vld [vmem:[#allocation9 + $0x8] sm:$0xff]  ;;  %v4491_v9 = vand.u32 4294901760, %v4490_v36 }
 0x272   :  { %v4288_v37 = vand.u32 4294901760, %v25990_v24 }
 0x273   :  { %21024 = vmatpush3.bf16.msra.mxu0 %v25616_v6  ;;  %21600 = vmatpush3.bf16.msra.mxu1 %v25616_v6  ;;  %v4291_v6 = vand.u32 4294901760, %v25992_v11 }
 0x274   :  { %21026 = vmatprep.subr.bf16.mxu0 %v25634_v17  ;;  %21602 = vmatprep.subr.bf16.mxu1 %v25634_v17  ;;  %v26093_v23 = vsub.f32 %v25990_v24, %v4288_v37  ;;  %v26148_v24 = vsub.f32 %v4286_v7, %v4333_v42  ;;  %v26170_v7 = vpack.c.bf16 %v26124_v22, %v26122_v60 }
 0x275   :  { %v26098_v49 = vsub.f32 %v25992_v11, %v4291_v6  ;;  %v26150_v11 = vpack.c.bf16 %v4470_v52, %v4463_v33  ;;  %v29092_v33 = vand.u32 4294901760, %v26195_v21  ;;  %v29091_v52 = vand.u32 4294901760, %v26200_v29 }
 0x276   :  { %v4391_v51 = vand.u32 4294901760, %v26093_v23  ;;  %v29085_v46 = vand.u32 4294901760, %v26148_v24  ;;  %v26178_v42 = vpack.c.bf16 %v26148_v24, %v26146_v55 }
 0x277   :  { %21028 = vmatpush3.bf16.msra.mxu0 %v25634_v17  ;;  %21604 = vmatpush3.bf16.msra.mxu1 %v25634_v17  ;;  %v26000_v17 = vld [vmem:[#allocation9 + $0x10] sm:$0xff]  ;;  %v29096_v59 = vand.u32 4294901760, %v26098_v49  ;;  %v26166_v54 = vpack.c.bf16 %v26098_v49, %v26093_v23  ;;  %v4427_v2 = vsub.f32 %v26200_v29, %v29091_v52 }
 0x278   :  { %21030 = vmatprep.subr.bf16.mxu0 %v25646_v16  ;;  %21606 = vmatprep.subr.bf16.mxu1 %v25646_v16  ;;  %v4392_v63 = vsub.f32 %v26093_v23, %v4391_v51  ;;  %v4497_v45 = vsub.f32 %v26148_v24, %v29085_v46 }
 0x279   :  { %v4399_v35 = vsub.f32 %v26098_v49, %v29096_v59 }
 0x27a   :  { %v4393_v62 = vand.u32 4294901760, %v4392_v63  ;;  %v4498_v0 = vand.u32 4294901760, %v4497_v45 }
 0x27b   :  { %21032 = vmatpush3.bf16.msra.mxu0 %v25646_v16  ;;  %21608 = vmatpush3.bf16.msra.mxu1 %v25646_v16  ;;  %v26002_v16 = vld [vmem:[#allocation9 + $0x18] sm:$0xff]  ;;  %v4400_v25 = vand.u32 4294901760, %v4399_v35 }
 0x27c   :  { %21034 = vmatprep.subr.bf16.mxu0 %v25670_v15  ;;  %21610 = vmatprep.subr.bf16.mxu1 %v25670_v15  ;;  %v4297_v13 = vand.u32 4294901760, %v26002_v16  ;;  %v26162_v53 = vpack.c.bf16 %v4498_v0, %v4491_v9 }
 0x27d   :  { %v26118_v50 = vpack.c.bf16 %v4400_v25, %v4393_v62 }
 0x27e   :  { %v26188_v35 = vsub.f32 %v26002_v16, %v4297_v13 }
 0x27f   :  { %21036 = vmatpush3.bf16.msra.mxu0 %v25670_v15  ;;  %21612 = vmatpush3.bf16.msra.mxu1 %v25670_v15  ;;  %v26012_v15 = vpack.c.bf16 %v4291_v6, %v4288_v37  ;;  %v4477_v37 = vand.u32 4294901760, %v4476_v47  ;;  %v4484_v6 = vand.u32 4294901760, %v4483_v12 }
 0x280   :  { %21038 = vmatprep.subr.bf16.mxu0 %v25690_v1  ;;  %21614 = vmatprep.subr.bf16.mxu1 %v25690_v1  ;;  %v29093_v25 = vand.u32 4294901760, %v26188_v35 }
 0x281   :  { %v26154_v19 = vpack.c.bf16 %v4484_v6, %v4477_v37 }
 0x283   :  { %21040 = vmatpush3.bf16.msra.mxu0 %v25690_v1  ;;  %21616 = vmatpush3.bf16.msra.mxu1 %v25690_v1  ;;  %v4294_v1 = vand.u32 4294901760, %v26000_v17 }
 0x284   :  { %21042 = vmatprep.subr.bf16.mxu0 %v25710_v61  ;;  %21618 = vmatprep.subr.bf16.mxu1 %v25710_v61 }
 0x285   :  { %v26183_v63 = vsub.f32 %v26000_v17, %v4294_v1 }
 0x287   :  { %21044 = vmatpush3.bf16.msra.mxu0 %v25710_v61  ;;  %21620 = vmatpush3.bf16.msra.mxu1 %v25710_v61  ;;  %v26028_v61 = vpack.c.bf16 %v4297_v13, %v4294_v1  ;;  %v29095_v62 = vand.u32 4294901760, %v26183_v63  ;;  %v4413_v13 = vsub.f32 %v26188_v35, %v29093_v25 }
 0x288   :  { %21046 = vmatprep.subr.bf16.mxu0 %v25756_v39  ;;  %21622 = vmatprep.subr.bf16.mxu1 %v25756_v39 }
 0x289   :  { %v4406_v16 = vsub.f32 %v26183_v63, %v29095_v62  ;;  %v4428_v62 = vand.u32 4294901760, %v4427_v2  ;;  %v4447_v2 = vand.u32 4294901760, %v26273_v20 }
 0x28b   :  { %21048 = vmatpush3.bf16.msra.mxu0 %v25756_v39  ;;  %21624 = vmatpush3.bf16.msra.mxu1 %v25756_v39  ;;  %v4306_v39 = vand.u32 4294901760, %v26032_v44  ;;  %v4407_v46 = vand.u32 4294901760, %v4406_v16 }
 0x28c   :  { %21626 = vmatprep.subr.bf16.mxu0 %v26012_v15  ;;  %21818 = vmatprep.subr.bf16.mxu1 %v26012_v15 }
 0x28d   :  { %v26231_v37 = vsub.f32 %v26032_v44, %v4306_v39  ;;  %v4414_v44 = vand.u32 4294901760, %v4413_v13 }
 0x28e   :  { %16901 = vmatmul.mubr.f32.vlgmr.msra.gmra.mrb[0].mxu0 %v25676_v41  ;;  %17531 = vmatmul.mubr.f32.vlgmr.msra.gmra.mrb[0].mxu1 %v25678_v38  ;;  %v4309_v41 = vand.u32 4294901760, %v26034_v3  ;;  %v26052_v38 = vld [vmem:[#allocation9 + $0x48] sm:$0xff] }
 0x28f   :  { %21628 = vmatpush3.bf16.msra.mxu0 %v26012_v15  ;;  %21820 = vmatpush3.bf16.msra.mxu1 %v26012_v15  ;;  %v4315_v58 = vand.u32 4294901760, %v26052_v38  ;;  %v29098_v16 = vand.u32 4294901760, %v26231_v37  ;;  %v26284_v25 = vpack.c.bf16 %v4414_v44, %v4407_v46 }
 0x290   :  { %21630 = vmatprep.subr.bf16.mxu0 %v26028_v61  ;;  %21822 = vmatprep.subr.bf16.mxu1 %v26028_v61  ;;  %v26062_v10 = vpack.c.bf16 %v4309_v41, %v4306_v39  ;;  %v26236_v6 = vsub.f32 %v26034_v3, %v4309_v41  ;;  %v4420_v41 = vsub.f32 %v26195_v21, %v29092_v33 }
 0x291   :  { %v26074_v5 = vpack.c.bf16 %v4315_v58, %v4312_v26  ;;  %v4434_v26 = vsub.f32 %v26231_v37, %v29098_v16 }
 0x292   :  { %v29099_v13 = vand.u32 4294901760, %v26236_v6 }
 0x293   :  { %21632 = vmatpush3.bf16.msra.mxu0 %v26028_v61  ;;  %21824 = vmatpush3.bf16.msra.mxu1 %v26028_v61 }
 0x294   :  { %21634 = vmatprep.subr.bf16.mxu0 %v26046_v48  ;;  %21826 = vmatprep.subr.bf16.mxu1 %v26046_v48  ;;  %v4441_v46 = vsub.f32 %v26236_v6, %v29099_v13  ;;  %v4448_v13 = vsub.f32 %v26273_v20, %v4447_v2 }
 0x296   :  { %v4442_v16 = vand.u32 4294901760, %v4441_v46 }
 0x297   :  { %21636 = vmatpush3.bf16.msra.mxu0 %v26046_v48  ;;  %21828 = vmatpush3.bf16.msra.mxu1 %v26046_v48 }
 0x298   :  { %21638 = vmatprep.subr.bf16.mxu0 %v26062_v10  ;;  %21830 = vmatprep.subr.bf16.mxu1 %v26062_v10 }
 0x29b   :  { %21640 = vmatpush3.bf16.msra.mxu0 %v26062_v10  ;;  %21832 = vmatpush3.bf16.msra.mxu1 %v26062_v10 }
 0x29c   :  { %21642 = vmatprep.subr.bf16.mxu0 %v26074_v5  ;;  %21834 = vmatprep.subr.bf16.mxu1 %v26074_v5 }
 0x29f   :  { %21644 = vmatpush3.bf16.msra.mxu0 %v26074_v5  ;;  %21836 = vmatpush3.bf16.msra.mxu1 %v26074_v5 }
 0x2a0   :  { %21646 = vmatprep.subr.bf16.mxu0 %v26082_v8  ;;  %21838 = vmatprep.subr.bf16.mxu1 %v26082_v8 }
 0x2a3   :  { %21648 = vmatpush3.bf16.msra.mxu0 %v26082_v8  ;;  %21840 = vmatpush3.bf16.msra.mxu1 %v26082_v8 }
 0x2a4   :  { %21650 = vmatprep.subr.bf16.mxu0 %v26088_v4  ;;  %21842 = vmatprep.subr.bf16.mxu1 %v26088_v4 }
 0x2a7   :  { %21652 = vmatpush3.bf16.msra.mxu0 %v26088_v4  ;;  %21844 = vmatpush3.bf16.msra.mxu1 %v26088_v4 }
 0x2a8   :  { %21654 = vmatprep.subr.bf16.mxu0 %v26106_v27  ;;  %21846 = vmatprep.subr.bf16.mxu1 %v26106_v27 }
 0x2ab   :  { %21656 = vmatpush3.bf16.msra.mxu0 %v26106_v27  ;;  %21848 = vmatpush3.bf16.msra.mxu1 %v26106_v27 }
 0x2ac   :  { %21658 = vmatprep.subr.bf16.mxu0 %v26118_v50  ;;  %21850 = vmatprep.subr.bf16.mxu1 %v26118_v50 }
 0x361   :  { %v26202_v17 = vpop.f32.mrb[0].mxu0  ;;  %v26204_v1 = vpop.f32.mrb[0].mxu1 }
 0x362   :  { %v26213_v32 = vand.u32 4294901760, %v26202_v17  ;;  %v4980_v34 = vmul.f32 %v26202_v17, %v26202_v17  ;;  %v26217_v18 = vpop.f32.mrb[1].mxu0  ;;  %v26219_v56 = vpop.f32.mrb[1].mxu1 }
 0x363   :  { %v26224_v47 = vand.u32 4294901760, %v26217_v18  ;;  %v4979_v12 = vmul.f32 %v26217_v18, %v26217_v18 }
 0x364   :  { %v26240_v36 = vsub.f32 %v26202_v17, %v26213_v32  ;;  %v26242_v45 = vand.u32 4294901760, %v4980_v34 }
 0x365   :  { %v26246_v9 = vsub.f32 %v26217_v18, %v26224_v47  ;;  %v26248_v0 = vand.u32 4294901760, %v4979_v12 }
 0x366   :  { %v26251_v39 = vsub.f32 %v4980_v34, %v26242_v45  ;;  %v29094_v3 = vand.u32 4294901760, %v26240_v36  ;;  %v29171_v23 = vand.u32 4294901760, %v26240_v36 }
 0x367   :  { %v26261_v30 = vsub.f32 %v4979_v12, %v26248_v0  ;;  %v4370_v28 = vand.u32 4294901760, %v26246_v9  ;;  %v26278_v12 = vsub.f32 %v26052_v38, %v4315_v58 }
 0x368   :  { %v4381_v34 = vsub.f32 %v26240_v36, %v29094_v3  ;;  %v29097_v31 = vand.u32 4294901760, %v26251_v39  ;;  %v4421_v3 = vand.u32 4294901760, %v4420_v41 }
 0x369   :  { %v4371_v52 = vsub.f32 %v26246_v9, %v4370_v28  ;;  %v5064_v33 = vand.u32 4294901760, %v26261_v30 }
 0x36a   :  { %v5075_v38 = vsub.f32 %v26251_v39, %v29097_v31  ;;  %v4382_v58 = vand.u32 4294901760, %v4381_v34  ;;  %v26302_v31 = vpack.c.bf16 %v4428_v62, %v4421_v3  ;;  %v4435_v34 = vand.u32 4294901760, %v4434_v26 }
 0x36b   :  { %v4372_v59 = vand.u32 4294901760, %v4371_v52  ;;  %v5065_v57 = vsub.f32 %v26261_v30, %v5064_v33  ;;  %v4454_v52 = vand.u32 4294901760, %v26278_v12  ;;  %v4449_v3 = vand.u32 4294901760, %v4448_v13 }
 0x36c   :  { %v5076_v41 = vand.u32 4294901760, %v5075_v38  ;;  %v26316_v62 = vpack.c.bf16 %v4442_v16, %v4435_v34  ;;  %v26346_v16 = vpack.c.bf16 %v26188_v35, %v26183_v63  ;;  %v26356_v13 = vpack.c.bf16 %v26200_v29, %v26195_v21 }
 0x36d   :  { %17565 = vmatprep.mubr.f32.mxu0 %v4372_v59  ;;  %v5066_v44 = vand.u32 4294901760, %v5065_v57  ;;  %v4455_v59 = vsub.f32 %v26278_v12, %v4454_v52  ;;  %v26366_v26 = vpack.c.bf16 %v26236_v6, %v26231_v37 }
 0x36e   :  { %17566 = vmatmul.mubr.f32.vlgmr.msra.gmra.mrb[2].mxu0 %v4382_v58  ;;  %v26374_v58 = vpack.c.bf16 %v26278_v12, %v26273_v20  ;;  %v29179_v20 = vand.u32 4294901760, %v26131_v43  ;;  %v29180_v12 = vand.u32 4294901760, %v26133_v14  ;;  %v6365_v43 = vmul.f32 %v26219_v56, %v26219_v56 }
 0x36f   :  { %21660 = vmatpush3.bf16.msra.mxu0 %v26118_v50  ;;  %17600 = vmatprep.mubr.f32.mxu0 %v26224_v47  ;;  %v4456_v57 = vand.u32 4294901760, %v4455_v59  ;;  %v26543_v14 = vand.u32 4294901760, %v26219_v56 }
 0x370   :  { %17775 = vmatprep.mubr.f32.mxu1 %v5066_v44  ;;  %21662 = vmatprep.subr.bf16.mxu0 %v26284_v25 }
 0x371   :  { %17776 = vmatmul.mubr.f32.vlgmr.msra.gmra.mrb[2].mxu1 %v5076_v41  ;;  %v26322_v38 = vpack.c.bf16 %v4456_v57, %v4449_v3 }
 0x372   :  { %21852 = vmatpush3.bf16.msra.mxu1 %v26118_v50  ;;  %17810 = vmatprep.mubr.f32.mxu1 %v26248_v0 }
 0x373   :  { %21664 = vmatpush3.bf16.msra.mxu0 %v26284_v25  ;;  %21854 = vmatprep.subr.bf16.mxu1 %v26284_v25 }
 0x374   :  { %21666 = vmatprep.subr.bf16.mxu0 %v26302_v31 }
 0x376   :  { %21856 = vmatpush3.bf16.msra.mxu1 %v26284_v25 }
 0x377   :  { %21668 = vmatpush3.bf16.msra.mxu0 %v26302_v31  ;;  %21858 = vmatprep.subr.bf16.mxu1 %v26302_v31 }
 0x378   :  { %21670 = vmatprep.subr.bf16.mxu0 %v26316_v62 }
 0x37a   :  { %21860 = vmatpush3.bf16.msra.mxu1 %v26302_v31 }
 0x37b   :  { %21672 = vmatpush3.bf16.msra.mxu0 %v26316_v62  ;;  %21862 = vmatprep.subr.bf16.mxu1 %v26316_v62 }
 0x37c   :  { %21674 = vmatprep.subr.bf16.mxu0 %v26322_v38 }
 0x37e   :  { %21864 = vmatpush3.bf16.msra.mxu1 %v26316_v62 }
 0x37f   :  { %21676 = vmatpush3.bf16.msra.mxu0 %v26322_v38  ;;  %21866 = vmatprep.subr.bf16.mxu1 %v26322_v38 }
 0x380   :  { %21678 = vmatprep.subr.bf16.mxu0 %v26150_v11 }
 0x382   :  { %21868 = vmatpush3.bf16.msra.mxu1 %v26322_v38 }
 0x383   :  { %21680 = vmatpush3.bf16.msra.mxu0 %v26150_v11  ;;  %21870 = vmatprep.subr.bf16.mxu1 %v26150_v11 }
 0x384   :  { %21682 = vmatprep.subr.bf16.mxu0 %v26154_v19 }
 0x386   :  { %21872 = vmatpush3.bf16.msra.mxu1 %v26150_v11 }
 0x387   :  { %21684 = vmatpush3.bf16.msra.mxu0 %v26154_v19  ;;  %21874 = vmatprep.subr.bf16.mxu1 %v26154_v19 }
 0x388   :  { %21686 = vmatprep.subr.bf16.mxu0 %v26162_v53 }
 0x38a   :  { %21876 = vmatpush3.bf16.msra.mxu1 %v26154_v19 }
 0x38b   :  { %21688 = vmatpush3.bf16.msra.mxu0 %v26162_v53  ;;  %21878 = vmatprep.subr.bf16.mxu1 %v26162_v53 }
 0x38c   :  { %21690 = vmatprep.subr.bf16.mxu0 %v26166_v54 }
 0x38e   :  { %21880 = vmatpush3.bf16.msra.mxu1 %v26162_v53  ;;  %17601 = vmatmul.mubr.f32.vlgmr.msra.gmra.mrb[2].mxu0 %v26213_v32 }
 0x38f   :  { %21692 = vmatpush3.bf16.msra.mxu0 %v26166_v54  ;;  %17635 = vmatprep.mubr.f32.mxu0 %v26246_v9  ;;  %v29170_v9 = vand.u32 4294901760, %v26188_v35  ;;  %v29174_v35 = vand.u32 4294901760, %v26251_v39 }
 0x390   :  { %21882 = vmatprep.subr.bf16.mxu1 %v26166_v54  ;;  %21694 = vmatprep.subr.bf16.mxu0 %v26346_v16 }
 0x391   :  { %17811 = vmatmul.mubr.f32.vlgmr.msra.gmra.mrb[2].mxu1 %v26242_v45 }
 0x392   :  { %21884 = vmatpush3.bf16.msra.mxu1 %v26166_v54  ;;  %17845 = vmatprep.mubr.f32.mxu1 %v26261_v30 }
 0x393   :  { %21696 = vmatpush3.bf16.msra.mxu0 %v26346_v16  ;;  %21886 = vmatprep.subr.bf16.mxu1 %v26346_v16 }
 0x394   :  { %21698 = vmatprep.subr.bf16.mxu0 %v26356_v13 }
 0x396   :  { %21888 = vmatpush3.bf16.msra.mxu1 %v26346_v16 }
 0x397   :  { %21700 = vmatpush3.bf16.msra.mxu0 %v26356_v13  ;;  %21890 = vmatprep.subr.bf16.mxu1 %v26356_v13 }
 0x398   :  { %21702 = vmatprep.subr.bf16.mxu0 %v26366_v26 }
 0x39a   :  { %21892 = vmatpush3.bf16.msra.mxu1 %v26356_v13 }
 0x39b   :  { %21704 = vmatpush3.bf16.msra.mxu0 %v26366_v26  ;;  %21894 = vmatprep.subr.bf16.mxu1 %v26366_v26 }
 0x39c   :  { %21706 = vmatprep.subr.bf16.mxu0 %v26374_v58 }
 0x39e   :  { %21896 = vmatpush3.bf16.msra.mxu1 %v26366_v26 }
 0x39f   :  { %21708 = vmatpush3.bf16.msra.mxu0 %v26374_v58  ;;  %21898 = vmatprep.subr.bf16.mxu1 %v26374_v58 }
 0x3a0   :  { %21710 = vmatprep.subr.bf16.mxu0 %v26170_v7 }
 0x3a2   :  { %21900 = vmatpush3.bf16.msra.mxu1 %v26374_v58 }
 0x3a3   :  { %21712 = vmatpush3.bf16.msra.mxu0 %v26170_v7  ;;  %21902 = vmatprep.subr.bf16.mxu1 %v26170_v7 }
 0x3a4   :  { %21714 = vmatprep.subr.bf16.mxu0 %v26174_v40 }
 0x3a6   :  { %21904 = vmatpush3.bf16.msra.mxu1 %v26170_v7 }
 0x3a7   :  { %21716 = vmatpush3.bf16.msra.mxu0 %v26174_v40  ;;  %21906 = vmatprep.subr.bf16.mxu1 %v26174_v40 }
 0x3a8   :  { %21718 = vmatprep.subr.bf16.mxu0 %v26178_v42 }
 0x3aa   :  { %21908 = vmatpush3.bf16.msra.mxu1 %v26174_v40 }
 0x3ab   :  { %21720 = vmatpush3.bf16.msra.mxu0 %v26178_v42  ;;  %21910 = vmatprep.subr.bf16.mxu1 %v26178_v42 }
 0x3ac   :  { %21722 = vmatprep.subr.bf16.mxu0 %v26012_v15 }
 0x3ae   :  { %21912 = vmatpush3.bf16.msra.mxu1 %v26178_v42  ;;  %17636 = vmatmul.mubr.f32.vlgmr.msra.gmra.mrb[2].mxu0 %v26240_v36  ;;  %v29175_v36 = vand.u32 4294901760, %v26231_v37  ;;  %v29177_v37 = vand.u32 4294901760, %v26122_v60  ;;  %v29181_v60 = vand.u32 4294901760, %v26146_v55  ;;  %v26548_v55 = vand.u32 4294901760, %v6365_v43 }
 0x3af   :  { %21724 = vmatpush3.bf16.msra.mxu0 %v26012_v15  ;;  %17670 = vmatprep.mubr.f32.mxu0 %v4370_v28  ;;  %v29168_v28 = vand.u32 4294901760, %v26098_v49  ;;  %v29172_v49 = vand.u32 4294901760, %v26195_v21  ;;  %v29176_v21 = vand.u32 4294901760, %v26236_v6  ;;  %v29178_v6 = vand.u32 4294901760, %v26124_v22 }
 0x3b0   :  { %21914 = vmatprep.subr.bf16.mxu1 %v26012_v15  ;;  %21726 = vmatprep.subr.bf16.mxu0 %v26028_v61  ;;  %v29182_v22 = vand.u32 4294901760, %v26148_v24  ;;  %v26553_v24 = vsub.f32 %v26219_v56, %v26543_v14 }
 0x3b1   :  { %17846 = vmatmul.mubr.f32.vlgmr.msra.gmra.mrb[2].mxu1 %v26251_v39  ;;  %v26434_v30 = vpack.c.bf16 %v29168_v28, %v4391_v51  ;;  %v29173_v51 = vand.u32 4294901760, %v26200_v29  ;;  %v26470_v29 = vpack.c.bf16 %v29176_v21, %v29175_v36  ;;  %v26480_v39 = vpack.c.bf16 %v4454_v52, %v4447_v2 }
 0x3b2   :  { %21916 = vmatpush3.bf16.msra.mxu1 %v26012_v15  ;;  %17880 = vmatprep.mubr.f32.mxu1 %v5064_v33  ;;  %v29169_v33 = vand.u32 4294901760, %v26183_v63  ;;  %v26490_v44 = vpack.c.bf16 %v29178_v6, %v29177_v37  ;;  %v26500_v2 = vpack.c.bf16 %v29180_v12, %v29179_v20  ;;  %v26510_v52 = vpack.c.bf16 %v29182_v22, %v29181_v60  ;;  %v26896_v20 = vld [vmem:[#allocation8 + $0xd8] sm:$0xff]  ;;  %v26910_v22 = vld [vmem:[#allocation8 + $0xe0] sm:$0xff] }
 0x3b3   :  { %21728 = vmatpush3.bf16.msra.mxu0 %v26028_v61  ;;  %21918 = vmatprep.subr.bf16.mxu1 %v26028_v61  ;;  %v26457_v63 = vpack.c.bf16 %v29173_v51, %v29172_v49 }
 0x3b4   :  { %21730 = vmatprep.subr.bf16.mxu0 %v26046_v48  ;;  %v26444_v46 = vpack.c.bf16 %v29170_v9, %v29169_v33 }
 0x3b6   :  { %21920 = vmatpush3.bf16.msra.mxu1 %v26028_v61 }
 0x3b7   :  { %21732 = vmatpush3.bf16.msra.mxu0 %v26046_v48  ;;  %21922 = vmatprep.subr.bf16.mxu1 %v26046_v48 }
 0x3b8   :  { %21734 = vmatprep.subr.bf16.mxu0 %v26062_v10 }
 0x3ba   :  { %21924 = vmatpush3.bf16.msra.mxu1 %v26046_v48 }
 0x3bb   :  { %21736 = vmatpush3.bf16.msra.mxu0 %v26062_v10  ;;  %21926 = vmatprep.subr.bf16.mxu1 %v26062_v10 }
 0x3bc   :  { %21738 = vmatprep.subr.bf16.mxu0 %v26074_v5 }
 0x3be   :  { %21928 = vmatpush3.bf16.msra.mxu1 %v26062_v10 }
 0x3bf   :  { %21740 = vmatpush3.bf16.msra.mxu0 %v26074_v5  ;;  %21930 = vmatprep.subr.bf16.mxu1 %v26074_v5 }
 0x3c0   :  { %21742 = vmatprep.subr.bf16.mxu0 %v26082_v8 }
 0x3c2   :  { %21932 = vmatpush3.bf16.msra.mxu1 %v26074_v5 }
 0x3c3   :  { %21744 = vmatpush3.bf16.msra.mxu0 %v26082_v8  ;;  %21934 = vmatprep.subr.bf16.mxu1 %v26082_v8 }
 0x3c4   :  { %21746 = vmatprep.subr.bf16.mxu0 %v26088_v4 }
 0x3c6   :  { %21936 = vmatpush3.bf16.msra.mxu1 %v26082_v8 }
 0x3c7   :  { %21748 = vmatpush3.bf16.msra.mxu0 %v26088_v4  ;;  %21938 = vmatprep.subr.bf16.mxu1 %v26088_v4 }
 0x3c8   :  { %21750 = vmatprep.subr.bf16.mxu0 %v26106_v27 }
 0x3ca   :  { %21940 = vmatpush3.bf16.msra.mxu1 %v26088_v4 }
 0x3cb   :  { %21752 = vmatpush3.bf16.msra.mxu0 %v26106_v27  ;;  %21942 = vmatprep.subr.bf16.mxu1 %v26106_v27 }
 0x3cc   :  { %21754 = vmatprep.subr.bf16.mxu0 %v26434_v30 }
 0x3ce   :  { %21944 = vmatpush3.bf16.msra.mxu1 %v26106_v27  ;;  %17671 = vmatmul.mubr.f32.vlgmr.msra.gmra.mrb[2].mxu0 %v29171_v23 }
 0x3cf   :  { %21756 = vmatpush3.bf16.msra.mxu0 %v26434_v30  ;;  %17705 = vmatprep.mubr.f32.mxu0 %v26224_v47 }
 0x3d0   :  { %21946 = vmatprep.subr.bf16.mxu1 %v26434_v30  ;;  %21758 = vmatprep.subr.bf16.mxu0 %v26444_v46 }
 0x3d1   :  { %17881 = vmatmul.mubr.f32.vlgmr.msra.gmra.mrb[2].mxu1 %v29174_v35 }
 0x3d2   :  { %21948 = vmatpush3.bf16.msra.mxu1 %v26434_v30  ;;  %17915 = vmatprep.mubr.f32.mxu1 %v26248_v0 }
 0x3d3   :  { %21760 = vmatpush3.bf16.msra.mxu0 %v26444_v46  ;;  %21950 = vmatprep.subr.bf16.mxu1 %v26444_v46 }
 0x3d4   :  { %21762 = vmatprep.subr.bf16.mxu0 %v26457_v63 }
 0x3d6   :  { %21952 = vmatpush3.bf16.msra.mxu1 %v26444_v46 }
 0x3d7   :  { %21764 = vmatpush3.bf16.msra.mxu0 %v26457_v63  ;;  %21954 = vmatprep.subr.bf16.mxu1 %v26457_v63 }
 0x3d8   :  { %21766 = vmatprep.subr.bf16.mxu0 %v26470_v29 }
 0x3da   :  { %21956 = vmatpush3.bf16.msra.mxu1 %v26457_v63 }
 0x3db   :  { %21768 = vmatpush3.bf16.msra.mxu0 %v26470_v29  ;;  %21958 = vmatprep.subr.bf16.mxu1 %v26470_v29 }
 0x3dc   :  { %21770 = vmatprep.subr.bf16.mxu0 %v26480_v39 }
 0x3de   :  { %21960 = vmatpush3.bf16.msra.mxu1 %v26470_v29 }
 0x3df   :  { %21772 = vmatpush3.bf16.msra.mxu0 %v26480_v39  ;;  %21962 = vmatprep.subr.bf16.mxu1 %v26480_v39 }
 0x3e0   :  { %21774 = vmatprep.subr.bf16.mxu0 %v26490_v44 }
 0x3e2   :  { %21964 = vmatpush3.bf16.msra.mxu1 %v26480_v39 }
 0x3e3   :  { %21776 = vmatpush3.bf16.msra.mxu0 %v26490_v44  ;;  %21966 = vmatprep.subr.bf16.mxu1 %v26490_v44 }
 0x3e4   :  { %21778 = vmatprep.subr.bf16.mxu0 %v26500_v2 }
 0x3e6   :  { %21968 = vmatpush3.bf16.msra.mxu1 %v26490_v44 }
 0x3e7   :  { %21780 = vmatpush3.bf16.msra.mxu0 %v26500_v2  ;;  %21970 = vmatprep.subr.bf16.mxu1 %v26500_v2 }
 0x3e8   :  { %21782 = vmatprep.subr.bf16.mxu0 %v26510_v52 }
 0x3ea   :  { %21972 = vmatpush3.bf16.msra.mxu1 %v26500_v2 }
 0x3eb   :  { %21784 = vmatpush3.bf16.msra.mxu0 %v26510_v52  ;;  %21974 = vmatprep.subr.bf16.mxu1 %v26510_v52 }
 0x3ec   :  { %21786 = vmatprep.subr.bf16.mxu0 %v26012_v15 }
 0x3ee   :  { %21976 = vmatpush3.bf16.msra.mxu1 %v26510_v52  ;;  %17706 = vmatmul.mubr.f32.vlgmr.msra.gmra.mrb[2].mxu0 %v26213_v32 }
 0x3ef   :  { %21788 = vmatpush3.bf16.msra.mxu0 %v26012_v15  ;;  %17740 = vmatprep.mubr.f32.mxu0 %v26224_v47  ;;  %v26559_v47 = vsub.f32 %v6365_v43, %v26548_v55  ;;  %v7170_v43 = vand.u32 4294901760, %v26910_v22 }
 0x3f0   :  { %21978 = vmatprep.subr.bf16.mxu1 %v26012_v15  ;;  %21790 = vmatprep.subr.bf16.mxu0 %v26028_v61 }
 0x3f1   :  { %17916 = vmatmul.mubr.f32.vlgmr.msra.gmra.mrb[2].mxu1 %v26242_v45  ;;  %v6450_v41 = vand.u32 4294901760, %v26559_v47 }
 0x3f2   :  { %21980 = vmatpush3.bf16.msra.mxu1 %v26012_v15  ;;  %17950 = vmatprep.mubr.f32.mxu1 %v26248_v0  ;;  %v5756_v0 = vand.u32 4294901760, %v26553_v24 }
 0x3f3   :  { %21792 = vmatpush3.bf16.msra.mxu0 %v26028_v61  ;;  %21982 = vmatprep.subr.bf16.mxu1 %v26028_v61  ;;  %v6451_v59 = vsub.f32 %v26559_v47, %v6450_v41 }
 0x3f4   :  { %21794 = vmatprep.subr.bf16.mxu0 %v26046_v48  ;;  %v5757_v34 = vsub.f32 %v26553_v24, %v5756_v0 }
 0x3f5   :  { %v6452_v57 = vand.u32 4294901760, %v6451_v59 }
 0x3f6   :  { %21984 = vmatpush3.bf16.msra.mxu1 %v26028_v61  ;;  %v5758_v3 = vand.u32 4294901760, %v5757_v34 }
 0x3f7   :  { %21796 = vmatpush3.bf16.msra.mxu0 %v26046_v48  ;;  %21986 = vmatprep.subr.bf16.mxu1 %v26046_v48 }
 0x3f8   :  { %21798 = vmatprep.subr.bf16.mxu0 %v26062_v10 }
 0x3fa   :  { %21988 = vmatpush3.bf16.msra.mxu1 %v26046_v48 }
 0x3fb   :  { %21800 = vmatpush3.bf16.msra.mxu0 %v26062_v10  ;;  %21990 = vmatprep.subr.bf16.mxu1 %v26062_v10 }
 0x3fc   :  { %21802 = vmatprep.subr.bf16.mxu0 %v26074_v5 }
 0x3fe   :  { %21992 = vmatpush3.bf16.msra.mxu1 %v26062_v10 }
 0x3ff   :  { %21804 = vmatpush3.bf16.msra.mxu0 %v26074_v5  ;;  %21994 = vmatprep.subr.bf16.mxu1 %v26074_v5 }
 0x400   :  { %21806 = vmatprep.subr.bf16.mxu0 %v26082_v8 }
 0x402   :  { %21996 = vmatpush3.bf16.msra.mxu1 %v26074_v5 }
 0x403   :  { %21808 = vmatpush3.bf16.msra.mxu0 %v26082_v8  ;;  %21998 = vmatprep.subr.bf16.mxu1 %v26082_v8 }
 0x404   :  { %21810 = vmatprep.subr.bf16.mxu0 %v26088_v4 }
 0x406   :  { %22000 = vmatpush3.bf16.msra.mxu1 %v26082_v8 }
 0x407   :  { %21812 = vmatpush3.bf16.msra.mxu0 %v26088_v4  ;;  %22002 = vmatprep.subr.bf16.mxu1 %v26088_v4 }
 0x408   :  { %21814 = vmatprep.subr.bf16.mxu0 %v26106_v27 }
 0x40a   :  { %22004 = vmatpush3.bf16.msra.mxu1 %v26088_v4 }
 0x40b   :  { %21816 = vmatpush3.bf16.msra.mxu0 %v26106_v27  ;;  %22006 = vmatprep.subr.bf16.mxu1 %v26106_v27 }
 0x40c   :  { %22010 = vmatprep.subr.bf16.mxu0 %v26012_v15 }
 0x40e   :  { %22008 = vmatpush3.bf16.msra.mxu1 %v26106_v27  ;;  %17741 = vmatmul.mubr.f32.vlgmr.msra.gmra.mrb[2].mxu0 %v26213_v32  ;;  %v6366_v32 = vmul.f32 %v26204_v1, %v26204_v1 }
 0x40f   :  { %22012 = vmatpush3.bf16.msra.mxu0 %v26012_v15  ;;  %17985 = vmatprep.mubr.f32.mxu0 %v5758_v3 }
 0x410   :  { %22202 = vmatprep.subr.bf16.mxu1 %v26012_v15  ;;  %22014 = vmatprep.subr.bf16.mxu0 %v26028_v61  ;;  %v26602_v28 = vand.u32 4294901760, %v6366_v32 }
 0x411   :  { %17951 = vmatmul.mubr.f32.vlgmr.msra.gmra.mrb[2].mxu1 %v26242_v45  ;;  %v26598_v45 = vand.u32 4294901760, %v26204_v1 }
 0x412   :  { %22204 = vmatpush3.bf16.msra.mxu1 %v26012_v15  ;;  %18195 = vmatprep.mubr.f32.mxu1 %v6452_v57  ;;  %v26613_v9 = vsub.f32 %v6366_v32, %v26602_v28 }
 0x413   :  { %22016 = vmatpush3.bf16.msra.mxu0 %v26028_v61  ;;  %22206 = vmatprep.subr.bf16.mxu1 %v26028_v61  ;;  %v26608_v33 = vsub.f32 %v26204_v1, %v26598_v45 }
 0x414   :  { %22018 = vmatprep.subr.bf16.mxu0 %v26046_v48  ;;  %v6460_v49 = vand.u32 4294901760, %v26613_v9 }
 0x415   :  { %v5766_v23 = vand.u32 4294901760, %v26608_v33 }
 0x416   :  { %22208 = vmatpush3.bf16.msra.mxu1 %v26028_v61  ;;  %v6461_v35 = vsub.f32 %v26613_v9, %v6460_v49 }
 0x417   :  { %22020 = vmatpush3.bf16.msra.mxu0 %v26046_v48  ;;  %22210 = vmatprep.subr.bf16.mxu1 %v26046_v48  ;;  %v5767_v51 = vsub.f32 %v26608_v33, %v5766_v23 }
 0x418   :  { %22022 = vmatprep.subr.bf16.mxu0 %v26062_v10  ;;  %v6462_v21 = vand.u32 4294901760, %v6461_v35 }
 0x419   :  { %v5768_v36 = vand.u32 4294901760, %v5767_v51 }
 0x41a   :  { %22212 = vmatpush3.bf16.msra.mxu1 %v26046_v48 }
 0x41b   :  { %22024 = vmatpush3.bf16.msra.mxu0 %v26062_v10  ;;  %22214 = vmatprep.subr.bf16.mxu1 %v26062_v10 }
 0x41c   :  { %22026 = vmatprep.subr.bf16.mxu0 %v26074_v5 }
 0x41e   :  { %22216 = vmatpush3.bf16.msra.mxu1 %v26062_v10 }
 0x41f   :  { %22028 = vmatpush3.bf16.msra.mxu0 %v26074_v5  ;;  %22218 = vmatprep.subr.bf16.mxu1 %v26074_v5 }
 0x420   :  { %22030 = vmatprep.subr.bf16.mxu0 %v26082_v8 }
 0x422   :  { %22220 = vmatpush3.bf16.msra.mxu1 %v26074_v5 }
 0x423   :  { %22032 = vmatpush3.bf16.msra.mxu0 %v26082_v8  ;;  %22222 = vmatprep.subr.bf16.mxu1 %v26082_v8 }
 0x424   :  { %22034 = vmatprep.subr.bf16.mxu0 %v26088_v4 }
 0x426   :  { %22224 = vmatpush3.bf16.msra.mxu1 %v26082_v8 }
 0x427   :  { %22036 = vmatpush3.bf16.msra.mxu0 %v26088_v4  ;;  %22226 = vmatprep.subr.bf16.mxu1 %v26088_v4 }
 0x428   :  { %22038 = vmatprep.subr.bf16.mxu0 %v26106_v27 }
 0x42a   :  { %22228 = vmatpush3.bf16.msra.mxu1 %v26088_v4 }
 0x42b   :  { %22040 = vmatpush3.bf16.msra.mxu0 %v26106_v27  ;;  %22230 = vmatprep.subr.bf16.mxu1 %v26106_v27 }
 0x42c   :  { %22042 = vmatprep.subr.bf16.mxu0 %v26118_v50 }
 0x42e   :  { %22232 = vmatpush3.bf16.msra.mxu1 %v26106_v27  ;;  %17986 = vmatmul.mubr.f32.vlgmr.msra.gmra.mrb[4].mxu0 %v5768_v36 }
 0x42f   :  { %22044 = vmatpush3.bf16.msra.mxu0 %v26118_v50  ;;  %18020 = vmatprep.mubr.f32.mxu0 %v26543_v14 }
 0x430   :  { %22234 = vmatprep.subr.bf16.mxu1 %v26118_v50  ;;  %22046 = vmatprep.subr.bf16.mxu0 %v26284_v25 }
 0x431   :  { %18196 = vmatmul.mubr.f32.vlgmr.msra.gmra.mrb[4].mxu1 %v6462_v21 }
 0x432   :  { %22236 = vmatpush3.bf16.msra.mxu1 %v26118_v50  ;;  %18230 = vmatprep.mubr.f32.mxu1 %v26548_v55  ;;  %v26822_v50 = vld [vmem:[#allocation8 + $0x80] sm:$0xff] }
 0x433   :  { %22048 = vmatpush3.bf16.msra.mxu0 %v26284_v25  ;;  %22238 = vmatprep.subr.bf16.mxu1 %v26284_v25 }
 0x434   :  { %22050 = vmatprep.subr.bf16.mxu0 %v26302_v31 }
 0x436   :  { %22240 = vmatpush3.bf16.msra.mxu1 %v26284_v25  ;;  %v26848_v25 = vld [vmem:[#allocation8 + $0xa8] sm:$0xff] }
 0x437   :  { %22052 = vmatpush3.bf16.msra.mxu0 %v26302_v31  ;;  %22242 = vmatprep.subr.bf16.mxu1 %v26302_v31 }
 0x438   :  { %22054 = vmatprep.subr.bf16.mxu0 %v26316_v62 }
 0x43a   :  { %22244 = vmatpush3.bf16.msra.mxu1 %v26302_v31  ;;  %v7134_v31 = vand.u32 4294901760, %v26822_v50 }
 0x43b   :  { %22056 = vmatpush3.bf16.msra.mxu0 %v26316_v62  ;;  %22246 = vmatprep.subr.bf16.mxu1 %v26316_v62 }
 0x43c   :  { %22058 = vmatprep.subr.bf16.mxu0 %v26322_v38  ;;  %v26933_v34 = vsub.f32 %v26822_v50, %v7134_v31 }
 0x43e   :  { %22248 = vmatpush3.bf16.msra.mxu1 %v26316_v62  ;;  %v29115_v57 = vand.u32 4294901760, %v26933_v34 }
 0x43f   :  { %22060 = vmatpush3.bf16.msra.mxu0 %v26322_v38  ;;  %22250 = vmatprep.subr.bf16.mxu1 %v26322_v38 }
 0x440   :  { %22062 = vmatprep.subr.bf16.mxu0 %v26150_v11 }
 0x442   :  { %22252 = vmatpush3.bf16.msra.mxu1 %v26322_v38  ;;  %v7149_v38 = vand.u32 4294901760, %v26848_v25 }
 0x443   :  { %22064 = vmatpush3.bf16.msra.mxu0 %v26150_v11  ;;  %22254 = vmatprep.subr.bf16.mxu1 %v26150_v11 }
 0x444   :  { %22066 = vmatprep.subr.bf16.mxu0 %v26154_v19 }
 0x446   :  { %22256 = vmatpush3.bf16.msra.mxu1 %v26150_v11 }
 0x447   :  { %22068 = vmatpush3.bf16.msra.mxu0 %v26154_v19  ;;  %22258 = vmatprep.subr.bf16.mxu1 %v26154_v19 }
 0x448   :  { %22070 = vmatprep.subr.bf16.mxu0 %v26162_v53 }
 0x44a   :  { %22260 = vmatpush3.bf16.msra.mxu1 %v26154_v19  ;;  %v26830_v19 = vld [vmem:[#allocation8 + $0x90] sm:$0xff] }
 0x44b   :  { %22072 = vmatpush3.bf16.msra.mxu0 %v26162_v53  ;;  %22262 = vmatprep.subr.bf16.mxu1 %v26162_v53 }
 0x44c   :  { %22074 = vmatprep.subr.bf16.mxu0 %v26166_v54 }
 0x44e   :  { %22264 = vmatpush3.bf16.msra.mxu1 %v26162_v53  ;;  %18021 = vmatmul.mubr.f32.vlgmr.msra.gmra.mrb[4].mxu0 %v26598_v45  ;;  %v26832_v53 = vld [vmem:[#allocation8 + $0x98] sm:$0xff] }
 0x44f   :  { %22076 = vmatpush3.bf16.msra.mxu0 %v26166_v54  ;;  %18055 = vmatprep.mubr.f32.mxu0 %v26553_v24  ;;  %v26922_v24 = vld [vmem:[#allocation8 + $0xf8] sm:$0xff] }
 0x450   :  { %22266 = vmatprep.subr.bf16.mxu1 %v26166_v54  ;;  %22078 = vmatprep.subr.bf16.mxu0 %v26346_v16 }
 0x451   :  { %18231 = vmatmul.mubr.f32.vlgmr.msra.gmra.mrb[4].mxu1 %v26602_v28 }
 0x452   :  { %22268 = vmatpush3.bf16.msra.mxu1 %v26166_v54  ;;  %18265 = vmatprep.mubr.f32.mxu1 %v26559_v47  ;;  %v7140_v54 = vand.u32 4294901760, %v26830_v19 }
 0x453   :  { %22080 = vmatpush3.bf16.msra.mxu0 %v26346_v16  ;;  %22270 = vmatprep.subr.bf16.mxu1 %v26346_v16 }
 0x454   :  { %22082 = vmatprep.subr.bf16.mxu0 %v26356_v13 }
 0x456   :  { %22272 = vmatpush3.bf16.msra.mxu1 %v26346_v16 }
 0x457   :  { %22084 = vmatpush3.bf16.msra.mxu0 %v26356_v13  ;;  %22274 = vmatprep.subr.bf16.mxu1 %v26356_v13 }
 0x458   :  { %22086 = vmatprep.subr.bf16.mxu0 %v26366_v26 }
 0x45a   :  { %22276 = vmatpush3.bf16.msra.mxu1 %v26356_v13  ;;  %v26862_v13 = vld [vmem:[#allocation8 + $0xb0] sm:$0xff] }
 0x45b   :  { %22088 = vmatpush3.bf16.msra.mxu0 %v26366_v26  ;;  %22278 = vmatprep.subr.bf16.mxu1 %v26366_v26 }
 0x45c   :  { %22090 = vmatprep.subr.bf16.mxu0 %v26374_v58 }
 0x45e   :  { %22280 = vmatpush3.bf16.msra.mxu1 %v26366_v26  ;;  %v26864_v26 = vld [vmem:[#allocation8 + $0xb8] sm:$0xff] }
 0x45f   :  { %22092 = vmatpush3.bf16.msra.mxu0 %v26374_v58  ;;  %22282 = vmatprep.subr.bf16.mxu1 %v26374_v58 }
 0x460   :  { %22094 = vmatprep.subr.bf16.mxu0 %v26170_v7 }
 0x462   :  { %22284 = vmatpush3.bf16.msra.mxu1 %v26374_v58  ;;  %v7152_v58 = vand.u32 4294901760, %v26862_v13 }
 0x463   :  { %22096 = vmatpush3.bf16.msra.mxu0 %v26170_v7  ;;  %22286 = vmatprep.subr.bf16.mxu1 %v26170_v7 }
 0x464   :  { %22098 = vmatprep.subr.bf16.mxu0 %v26174_v40 }
 0x466   :  { %22288 = vmatpush3.bf16.msra.mxu1 %v26170_v7  ;;  %v7143_v7 = vand.u32 4294901760, %v26832_v53 }
 0x467   :  { %22100 = vmatpush3.bf16.msra.mxu0 %v26174_v40  ;;  %22290 = vmatprep.subr.bf16.mxu1 %v26174_v40 }
 0x468   :  { %22102 = vmatprep.subr.bf16.mxu0 %v26178_v42 }
 0x46a   :  { %22292 = vmatpush3.bf16.msra.mxu1 %v26174_v40  ;;  %v26844_v40 = vpack.c.bf16 %v7143_v7, %v7140_v54 }
 0x46b   :  { %22104 = vmatpush3.bf16.msra.mxu0 %v26178_v42  ;;  %22294 = vmatprep.subr.bf16.mxu1 %v26178_v42 }
 0x46c   :  { %22106 = vmatprep.subr.bf16.mxu0 %v26012_v15 }
 0x46e   :  { %22296 = vmatpush3.bf16.msra.mxu1 %v26178_v42  ;;  %18056 = vmatmul.mubr.f32.vlgmr.msra.gmra.mrb[4].mxu0 %v26608_v33  ;;  %v26846_v42 = vld [vmem:[#allocation8 + $0xa0] sm:$0xff]  ;;  %v26963_v33 = vsub.f32 %v26832_v53, %v7143_v7 }
 0x46f   :  { %22108 = vmatpush3.bf16.msra.mxu0 %v26012_v15  ;;  %18090 = vmatprep.mubr.f32.mxu0 %v5756_v0  ;;  %v7146_v62 = vand.u32 4294901760, %v26846_v42 }
 0x470   :  { %22298 = vmatprep.subr.bf16.mxu1 %v26012_v15  ;;  %22110 = vmatprep.subr.bf16.mxu0 %v26028_v61  ;;  %v29112_v51 = vand.u32 4294901760, %v26963_v33 }
 0x471   :  { %18266 = vmatmul.mubr.f32.vlgmr.msra.gmra.mrb[4].mxu1 %v26613_v9  ;;  %v26860_v16 = vpack.c.bf16 %v7149_v38, %v7146_v62 }
 0x472   :  { %22300 = vmatpush3.bf16.msra.mxu1 %v26012_v15  ;;  %18300 = vmatprep.mubr.f32.mxu1 %v6450_v41  ;;  %v7179_v41 = vand.u32 4294901760, %v26922_v24  ;;  %v7259_v21 = vsub.f32 %v26963_v33, %v29112_v51 }
 0x473   :  { %22112 = vmatpush3.bf16.msra.mxu0 %v26028_v61  ;;  %22302 = vmatprep.subr.bf16.mxu1 %v26028_v61 }
 0x474   :  { %22114 = vmatprep.subr.bf16.mxu0 %v26046_v48  ;;  %v7260_v50 = vand.u32 4294901760, %v7259_v21 }
 0x476   :  { %22304 = vmatpush3.bf16.msra.mxu1 %v26028_v61 }
 0x477   :  { %22116 = vmatpush3.bf16.msra.mxu0 %v26046_v48  ;;  %22306 = vmatprep.subr.bf16.mxu1 %v26046_v48 }
 0x478   :  { %22118 = vmatprep.subr.bf16.mxu0 %v26062_v10 }
 0x47a   :  { %22308 = vmatpush3.bf16.msra.mxu1 %v26046_v48 }
 0x47b   :  { %22120 = vmatpush3.bf16.msra.mxu0 %v26062_v10  ;;  %22310 = vmatprep.subr.bf16.mxu1 %v26062_v10 }
 0x47c   :  { %22122 = vmatprep.subr.bf16.mxu0 %v26074_v5 }
 0x47e   :  { %22312 = vmatpush3.bf16.msra.mxu1 %v26062_v10 }
 0x47f   :  { %22124 = vmatpush3.bf16.msra.mxu0 %v26074_v5  ;;  %22314 = vmatprep.subr.bf16.mxu1 %v26074_v5 }
 0x480   :  { %22126 = vmatprep.subr.bf16.mxu0 %v26082_v8 }
 0x482   :  { %22316 = vmatpush3.bf16.msra.mxu1 %v26074_v5 }
 0x483   :  { %22128 = vmatpush3.bf16.msra.mxu0 %v26082_v8  ;;  %22318 = vmatprep.subr.bf16.mxu1 %v26082_v8 }
 0x484   :  { %22130 = vmatprep.subr.bf16.mxu0 %v26088_v4 }
 0x486   :  { %22320 = vmatpush3.bf16.msra.mxu1 %v26082_v8 }
 0x487   :  { %22132 = vmatpush3.bf16.msra.mxu0 %v26088_v4  ;;  %22322 = vmatprep.subr.bf16.mxu1 %v26088_v4 }
 0x488   :  { %22134 = vmatprep.subr.bf16.mxu0 %v26106_v27 }
 0x48a   :  { %22324 = vmatpush3.bf16.msra.mxu1 %v26088_v4 }
 0x48b   :  { %22136 = vmatpush3.bf16.msra.mxu0 %v26106_v27  ;;  %22326 = vmatprep.subr.bf16.mxu1 %v26106_v27 }
 0x48c   :  { %22138 = vmatprep.subr.bf16.mxu0 %v26434_v30 }
 0x48e   :  { %22328 = vmatpush3.bf16.msra.mxu1 %v26106_v27  ;;  %18091 = vmatmul.mubr.f32.vlgmr.msra.gmra.mrb[4].mxu0 %v5766_v23 }
 0x48f   :  { %22140 = vmatpush3.bf16.msra.mxu0 %v26434_v30  ;;  %18125 = vmatprep.mubr.f32.mxu0 %v26543_v14 }
 0x490   :  { %22330 = vmatprep.subr.bf16.mxu1 %v26434_v30  ;;  %22142 = vmatprep.subr.bf16.mxu0 %v26444_v46 }
 0x491   :  { %18301 = vmatmul.mubr.f32.vlgmr.msra.gmra.mrb[4].mxu1 %v6460_v49 }
 0x492   :  { %22332 = vmatpush3.bf16.msra.mxu1 %v26434_v30  ;;  %18335 = vmatprep.mubr.f32.mxu1 %v26548_v55  ;;  %v7155_v30 = vand.u32 4294901760, %v26864_v26 }
 0x493   :  { %22144 = vmatpush3.bf16.msra.mxu0 %v26444_v46  ;;  %22334 = vmatprep.subr.bf16.mxu1 %v26444_v46 }
 0x494   :  { %22146 = vmatprep.subr.bf16.mxu0 %v26457_v63  ;;  %v27010_v7 = vsub.f32 %v26864_v26, %v7155_v30 }
 0x496   :  { %22336 = vmatpush3.bf16.msra.mxu1 %v26444_v46  ;;  %v26876_v46 = vpack.c.bf16 %v7155_v30, %v7152_v58 }
 0x497   :  { %22148 = vmatpush3.bf16.msra.mxu0 %v26457_v63  ;;  %22338 = vmatprep.subr.bf16.mxu1 %v26457_v63 }
 0x498   :  { %22150 = vmatprep.subr.bf16.mxu0 %v26470_v29 }
 0x49a   :  { %22340 = vmatpush3.bf16.msra.mxu1 %v26457_v63  ;;  %v26878_v63 = vld [vmem:[#allocation8 + $0xc0] sm:$0xff] }
 0x49b   :  { %22152 = vmatpush3.bf16.msra.mxu0 %v26470_v29  ;;  %22342 = vmatprep.subr.bf16.mxu1 %v26470_v29 }
 0x49c   :  { %22154 = vmatprep.subr.bf16.mxu0 %v26480_v39 }
 0x49e   :  { %22344 = vmatpush3.bf16.msra.mxu1 %v26470_v29  ;;  %v26880_v29 = vld [vmem:[#allocation8 + $0xc8] sm:$0xff] }
 0x49f   :  { %22156 = vmatpush3.bf16.msra.mxu0 %v26480_v39  ;;  %22346 = vmatprep.subr.bf16.mxu1 %v26480_v39  ;;  %v7161_v37 = vand.u32 4294901760, %v26880_v29 }
 0x4a0   :  { %22158 = vmatprep.subr.bf16.mxu0 %v26490_v44 }
 0x4a1   :  { %v27027_v26 = vsub.f32 %v26880_v29, %v7161_v37 }
 0x4a2   :  { %22348 = vmatpush3.bf16.msra.mxu1 %v26480_v39  ;;  %v7158_v39 = vand.u32 4294901760, %v26878_v63 }
 0x4a3   :  { %22160 = vmatpush3.bf16.msra.mxu0 %v26490_v44  ;;  %22350 = vmatprep.subr.bf16.mxu1 %v26490_v44  ;;  %29184 = vst [vmem:[#allocation17_spill] sm:$0xff] %v27027_v26 }
 0x4a4   :  { %22162 = vmatprep.subr.bf16.mxu0 %v26500_v2  ;;  %v26892_v6 = vpack.c.bf16 %v7161_v37, %v7158_v39 }
 0x4a6   :  { %22352 = vmatpush3.bf16.msra.mxu1 %v26490_v44  ;;  %v26894_v44 = vld [vmem:[#allocation8 + $0xd0] sm:$0xff] }
 0x4a7   :  { %22164 = vmatpush3.bf16.msra.mxu0 %v26500_v2  ;;  %22354 = vmatprep.subr.bf16.mxu1 %v26500_v2  ;;  %v7164_v12 = vand.u32 4294901760, %v26894_v44 }
 0x4a8   :  { %22166 = vmatprep.subr.bf16.mxu0 %v26510_v52 }
 0x4a9   :  { %v27043_v29 = vsub.f32 %v26894_v44, %v7164_v12 }
 0x4aa   :  { %22356 = vmatpush3.bf16.msra.mxu1 %v26500_v2  ;;  %v7167_v2 = vand.u32 4294901760, %v26896_v20 }
 0x4ab   :  { %22168 = vmatpush3.bf16.msra.mxu0 %v26510_v52  ;;  %22358 = vmatprep.subr.bf16.mxu1 %v26510_v52  ;;  %29185 = vst [vmem:[#allocation18_spill] sm:$0xff] %v27043_v29 }
 0x4ac   :  { %22170 = vmatprep.subr.bf16.mxu0 %v26012_v15  ;;  %v26908_v60 = vpack.c.bf16 %v7167_v2, %v7164_v12  ;;  %v27048_v37 = vsub.f32 %v26896_v20, %v7167_v2  ;;  %v27065_v20 = vsub.f32 %v26910_v22, %v7170_v43 }
 0x4ae   :  { %22360 = vmatpush3.bf16.msra.mxu1 %v26510_v52  ;;  %18126 = vmatmul.mubr.f32.vlgmr.msra.gmra.mrb[4].mxu0 %v26598_v45  ;;  %v26912_v52 = vld [vmem:[#allocation8 + $0xe8] sm:$0xff]  ;;  %29186 = vst [vmem:[#allocation19_spill] sm:$0xff] %v27048_v37  ;;  %29187 = vst [vmem:[#allocation20_spill] sm:$0xff] %v27065_v20 }
 0x4af   :  { %22172 = vmatpush3.bf16.msra.mxu0 %v26012_v15  ;;  %18160 = vmatprep.mubr.f32.mxu0 %v26543_v14  ;;  %v7173_v14 = vand.u32 4294901760, %v26912_v52 }
 0x4b0   :  { %22362 = vmatprep.subr.bf16.mxu1 %v26012_v15  ;;  %22174 = vmatprep.subr.bf16.mxu0 %v26028_v61 }
 0x4b1   :  { %18336 = vmatmul.mubr.f32.vlgmr.msra.gmra.mrb[4].mxu1 %v26602_v28  ;;  %v26928_v47 = vpack.c.bf16 %v7173_v14, %v7170_v43  ;;  %v27070_v2 = vsub.f32 %v26912_v52, %v7173_v14  ;;  %v27087_v52 = vsub.f32 %v26922_v24, %v7179_v41 }
 0x4b2   :  { %22364 = vmatpush3.bf16.msra.mxu1 %v26012_v15  ;;  %18370 = vmatprep.mubr.f32.mxu1 %v26548_v55  ;;  %v26920_v55 = vld [vmem:[#allocation8 + $0xf0] sm:$0xff] }
 0x4b3   :  { %22176 = vmatpush3.bf16.msra.mxu0 %v26028_v61  ;;  %22366 = vmatprep.subr.bf16.mxu1 %v26028_v61  ;;  %v7176_v0 = vand.u32 4294901760, %v26920_v55  ;;  %29188 = vst [vmem:[#allocation21_spill] sm:$0xff] %v27070_v2  ;;  %29190 = vst [vmem:[#allocation23_spill] sm:$0xff] %v27087_v52 }
 0x4b4   :  { %22178 = vmatprep.subr.bf16.mxu0 %v26046_v48 }
 0x4b5   :  { %v26944_v3 = vpack.c.bf16 %v7179_v41, %v7176_v0  ;;  %v27082_v22 = vsub.f32 %v26920_v55, %v7176_v0 }
 0x4b6   :  { %22368 = vmatpush3.bf16.msra.mxu1 %v26028_v61 }
 0x4b7   :  { %22180 = vmatpush3.bf16.msra.mxu0 %v26046_v48  ;;  %22370 = vmatprep.subr.bf16.mxu1 %v26046_v48  ;;  %29189 = vst [vmem:[#allocation22_spill] sm:$0xff] %v27082_v22 }
 0x4b8   :  { %22182 = vmatprep.subr.bf16.mxu0 %v26062_v10 }
 0x4ba   :  { %22372 = vmatpush3.bf16.msra.mxu1 %v26046_v48 }
 0x4bb   :  { %22184 = vmatpush3.bf16.msra.mxu0 %v26062_v10  ;;  %22374 = vmatprep.subr.bf16.mxu1 %v26062_v10 }
 0x4bc   :  { %22186 = vmatprep.subr.bf16.mxu0 %v26074_v5 }
 0x4be   :  { %22376 = vmatpush3.bf16.msra.mxu1 %v26062_v10 }
 0x4bf   :  { %22188 = vmatpush3.bf16.msra.mxu0 %v26074_v5  ;;  %22378 = vmatprep.subr.bf16.mxu1 %v26074_v5 }
 0x4c0   :  { %22190 = vmatprep.subr.bf16.mxu0 %v26082_v8 }
 0x4c2   :  { %22380 = vmatpush3.bf16.msra.mxu1 %v26074_v5 }
 0x4c3   :  { %22192 = vmatpush3.bf16.msra.mxu0 %v26082_v8  ;;  %22382 = vmatprep.subr.bf16.mxu1 %v26082_v8 }
 0x4c4   :  { %22194 = vmatprep.subr.bf16.mxu0 %v26088_v4 }
 0x4c6   :  { %22384 = vmatpush3.bf16.msra.mxu1 %v26082_v8 }
 0x4c7   :  { %22196 = vmatpush3.bf16.msra.mxu0 %v26088_v4  ;;  %22386 = vmatprep.subr.bf16.mxu1 %v26088_v4 }
 0x4c8   :  { %22198 = vmatprep.subr.bf16.mxu0 %v26106_v27 }
 0x4ca   :  { %22388 = vmatpush3.bf16.msra.mxu1 %v26088_v4  ;;  %v26824_v4 = vld [vmem:[#allocation8 + $0x88] sm:$0xff] }
 0x4cb   :  { %22200 = vmatpush3.bf16.msra.mxu0 %v26106_v27  ;;  %22390 = vmatprep.subr.bf16.mxu1 %v26106_v27 }
 0x4ce   :  { %22392 = vmatpush3.bf16.msra.mxu1 %v26106_v27  ;;  %18161 = vmatmul.mubr.f32.vlgmr.msra.gmra.mrb[4].mxu0 %v26598_v45  ;;  %v7137_v27 = vand.u32 4294901760, %v26824_v4  ;;  %v7238_v45 = vsub.f32 %v26933_v34, %v29115_v57 }
 0x4d0   :  { %v26828_v11 = vpack.c.bf16 %v7137_v27, %v7134_v31  ;;  %v26936_v59 = vsub.f32 %v26824_v4, %v7137_v27  ;;  %v7239_v23 = vand.u32 4294901760, %v7238_v45 }
 0x4d1   :  { %18371 = vmatmul.mubr.f32.vlgmr.msra.gmra.mrb[4].mxu1 %v26602_v28  ;;  %v26958_v28 = vsub.f32 %v26830_v19, %v7140_v54  ;;  %v27005_v54 = vsub.f32 %v26862_v13, %v7152_v58  ;;  %v27022_v13 = vsub.f32 %v26878_v63, %v7158_v39 }
 0x4d2   :  { %22394 = vmatprep.subr.bf16.mxu0 %v26828_v11  ;;  %22970 = vmatprep.subr.bf16.mxu1 %v26828_v11  ;;  %v29114_v32 = vand.u32 4294901760, %v26936_v59 }
 0x4d3   :  { %22396 = vmatpush3.bf16.msra.mxu0 %v26828_v11  ;;  %22972 = vmatpush3.bf16.msra.mxu1 %v26828_v11  ;;  %v29113_v49 = vand.u32 4294901760, %v26958_v28  ;;  %29183 = vst [vmem:[#allocation16_spill] sm:$0xff] %v27022_v13 }
 0x4d4   :  { %22398 = vmatprep.subr.bf16.mxu0 %v26844_v40  ;;  %22974 = vmatprep.subr.bf16.mxu1 %v26844_v40  ;;  %v7245_v9 = vsub.f32 %v26936_v59, %v29114_v32 }
 0x4d5   :  { %v7252_v36 = vsub.f32 %v26958_v28, %v29113_v49 }
 0x4d6   :  { %v7246_v35 = vand.u32 4294901760, %v7245_v9 }
 0x4d7   :  { %22400 = vmatpush3.bf16.msra.mxu0 %v26844_v40  ;;  %22976 = vmatpush3.bf16.msra.mxu1 %v26844_v40 }
 0x4d8   :  { %22402 = vmatprep.subr.bf16.mxu0 %v26860_v16  ;;  %22978 = vmatprep.subr.bf16.mxu1 %v26860_v16 }
 0x4db   :  { %22404 = vmatpush3.bf16.msra.mxu0 %v26860_v16  ;;  %22980 = vmatpush3.bf16.msra.mxu1 %v26860_v16 }
 0x4dc   :  { %22406 = vmatprep.subr.bf16.mxu0 %v26876_v46  ;;  %22982 = vmatprep.subr.bf16.mxu1 %v26876_v46 }
 0x4df   :  { %22408 = vmatpush3.bf16.msra.mxu0 %v26876_v46  ;;  %22984 = vmatpush3.bf16.msra.mxu1 %v26876_v46 }
 0x4e0   :  { %22410 = vmatprep.subr.bf16.mxu0 %v26892_v6  ;;  %22986 = vmatprep.subr.bf16.mxu1 %v26892_v6 }
 0x4e1   :  { %v17742_v15 = vpop.f32.mrb[2].mxu0 }
 0x4e2   :  { %v4961_v61 = vpop.f32.mrb[3].mxu0 }
 0x4e3   :  { %v26818_v48 = vadd.f32 %v17742_v15, %v4961_v61  ;;  %22412 = vmatpush3.bf16.msra.mxu0 %v26892_v6  ;;  %22988 = vmatpush3.bf16.msra.mxu1 %v26892_v6  ;;  %v26981_v15 = vsub.f32 %v26846_v42, %v7146_v62  ;;  %v26986_v61 = vsub.f32 %v26848_v25, %v7149_v38  ;;  %v29109_v62 = vand.u32 4294901760, %v27005_v54 }
 0x4e4   :  { %v17952_v10 = vpop.f32.mrb[2].mxu1  ;;  %22414 = vmatprep.subr.bf16.mxu0 %v26908_v60  ;;  %22990 = vmatprep.subr.bf16.mxu1 %v26908_v60  ;;  %v29108_v38 = vand.u32 4294901760, %v27010_v7 }
 0x4e5   :  { %v5655_v5 = vpop.f32.mrb[3].mxu1  ;;  %v29111_v4 = vand.u32 4294901760, %v26981_v15  ;;  %v29110_v31 = vand.u32 4294901760, %v26986_v61  ;;  %v7280_v9 = vsub.f32 %v27005_v54, %v29109_v62 }
 0x4e6   :  { %v26820_v8 = vadd.f32 %v17952_v10, %v5655_v5  ;;  %v26988_v10 = vpack.c.bf16 %v7246_v35, %v7239_v23  ;;  %v7253_v5 = vand.u32 4294901760, %v7252_v36  ;;  %v7287_v58 = vsub.f32 %v27010_v7, %v29108_v38 }
 0x4e7   :  { %22416 = vmatpush3.bf16.msra.mxu0 %v26908_v60  ;;  %22992 = vmatpush3.bf16.msra.mxu1 %v26908_v60  ;;  %v7266_v19 = vsub.f32 %v26981_v15, %v29111_v4  ;;  %v7273_v53 = vsub.f32 %v26986_v61, %v29110_v31  ;;  %v7281_v30 = vand.u32 4294901760, %v7280_v9  ;;  %v29107_v23 = vand.u32 4294901760, %v27022_v13 }
 0x4e8   :  { %22418 = vmatprep.subr.bf16.mxu0 %v26928_v47  ;;  %22994 = vmatprep.subr.bf16.mxu1 %v26928_v47  ;;  %v26994_v27 = vpack.c.bf16 %v7260_v50, %v7253_v5  ;;  %v29106_v35 = vand.u32 4294901760, %v27027_v26  ;;  %v7288_v36 = vand.u32 4294901760, %v7287_v58  ;;  %v29103_v58 = vand.u32 4294901760, %v27065_v20 }
 0x4e9   :  { %v7267_v42 = vand.u32 4294901760, %v7266_v19  ;;  %v7274_v25 = vand.u32 4294901760, %v7273_v53  ;;  %v7294_v63 = vsub.f32 %v27022_v13, %v29107_v23  ;;  %v29105_v19 = vand.u32 4294901760, %v27043_v29 }
 0x4ea   :  { %v7301_v39 = vsub.f32 %v27027_v26, %v29106_v35  ;;  %v27050_v21 = vpack.c.bf16 %v7288_v36, %v7281_v30  ;;  %v29104_v53 = vand.u32 4294901760, %v27048_v37  ;;  %v29102_v30 = vand.u32 4294901760, %v27070_v2 }
 0x4eb   :  { %22420 = vmatpush3.bf16.msra.mxu0 %v26928_v47  ;;  %22996 = vmatpush3.bf16.msra.mxu1 %v26928_v47  ;;  %v27014_v45 = vpack.c.bf16 %v7274_v25, %v7267_v42  ;;  %v7295_v5 = vand.u32 4294901760, %v7294_v63  ;;  %v7308_v44 = vsub.f32 %v27043_v29, %v29105_v19  ;;  %v7322_v63 = vsub.f32 %v27065_v20, %v29103_v58 }
 0x4ec   :  { %22422 = vmatprep.subr.bf16.mxu0 %v26944_v3  ;;  %22998 = vmatprep.subr.bf16.mxu1 %v26944_v3  ;;  %v7302_v50 = vand.u32 4294901760, %v7301_v39  ;;  %v7315_v12 = vsub.f32 %v27048_v37, %v29104_v53  ;;  %v7329_v43 = vsub.f32 %v27070_v2, %v29102_v30  ;;  %v29101_v39 = vand.u32 4294901760, %v27082_v22 }
 0x4ed   :  { %v7309_v25 = vand.u32 4294901760, %v7308_v44  ;;  %v7323_v14 = vand.u32 4294901760, %v7322_v63  ;;  %v27114_v63 = vpack.c.bf16 %v26986_v61, %v26981_v15 }
 0x4ee   :  { %v27054_v42 = vpack.c.bf16 %v7302_v50, %v7295_v5  ;;  %v7316_v9 = vand.u32 4294901760, %v7315_v12  ;;  %v29100_v5 = vand.u32 4294901760, %v27087_v52  ;;  %v7330_v50 = vand.u32 4294901760, %v7329_v43 }
 0x4ef   :  { %22424 = vmatpush3.bf16.msra.mxu0 %v26944_v3  ;;  %23000 = vmatpush3.bf16.msra.mxu1 %v26944_v3  ;;  %v7336_v55 = vsub.f32 %v27082_v22, %v29101_v39  ;;  %v27118_v43 = vpack.c.bf16 %v27010_v7, %v27005_v54 }
 0x4f0   :  { %22426 = vmatprep.subr.bf16.mxu0 %v26988_v10  ;;  %23002 = vmatprep.subr.bf16.mxu1 %v26988_v10  ;;  %v27074_v36 = vpack.c.bf16 %v7316_v9, %v7309_v25  ;;  %v7343_v0 = vsub.f32 %v27087_v52, %v29100_v5  ;;  %v27100_v24 = vpack.c.bf16 %v7330_v50, %v7323_v14 }
 0x4f1   :  { %v7337_v41 = vand.u32 4294901760, %v7336_v55  ;;  %v27106_v25 = vpack.c.bf16 %v26936_v59, %v26933_v34  ;;  %v27110_v9 = vpack.c.bf16 %v26963_v33, %v26958_v28  ;;  %v27122_v14 = vpack.c.bf16 %v27027_v26, %v27022_v13 }
 0x4f2   :  { %v7344_v44 = vand.u32 4294901760, %v7343_v0  ;;  %v27126_v50 = vpack.c.bf16 %v27048_v37, %v27043_v29  ;;  %v27130_v55 = vpack.c.bf16 %v27070_v2, %v27065_v20  ;;  %v27134_v0 = vpack.c.bf16 %v27087_v52, %v27082_v22 }
 0x4f4   :  { %v27102_v12 = vpack.c.bf16 %v7344_v44, %v7337_v41  ;;  %v4972_v41 = vrot.slane %v26818_v48, 4  ;;  %v5666_v44 = vrot.slane %v26820_v8, 4 }
 0x4f6   :  { %v4973_v5 = vadd.f32 %v4972_v41, %v26818_v48  ;;  %v5667_v30 = vadd.f32 %v5666_v44, %v26820_v8 }
 0x4f8   :  { %v4974_v53 = vrot.slane %v4973_v5, 2  ;;  %v5668_v62 = vrot.slane %v5667_v30, 2 }
 0x4fa   :  { %v4975_v4 = vadd.f32 %v4974_v53, %v4973_v5  ;;  %v5669_v57 = vadd.f32 %v5668_v62, %v5667_v30 }
 0x4fc   :  { %v4976_v22 = vrot.slane %v4975_v4, 1  ;;  %v5670_v20 = vrot.slane %v5669_v57, 1 }
 0x4fe   :  { %v4977_v44 = vadd.f32 %v4976_v22, %v4975_v4  ;;  %v5671_v29 = vadd.f32 %v5670_v20, %v5669_v57  ;;  %v4270_v57 = vld [vmem:[%s29068_s5] sm:$0x1] }
 0x5a1   :  { %v18162_v39 = vpop.f32.mrb[4].mxu0 }
 0x5a2   :  { %v6347_v58 = vpop.f32.mrb[5].mxu0 }
 0x5a3   :  { %v6357_v19 = vadd.f32 %v18162_v39, %v6347_v58 }
 0x5a4   :  { %v18372_v35 = vpop.f32.mrb[4].mxu1 }
 0x5a5   :  { %v6358_v23 = vrot.slane %v6357_v19, 4  ;;  %v7041_v38 = vpop.f32.mrb[5].mxu1 }
 0x5a6   :  { %v7051_v31 = vadd.f32 %v18372_v35, %v7041_v38 }
 0x5a7   :  { %v6359_v51 = vadd.f32 %v6358_v23, %v6357_v19 }
 0x5a8   :  { %v7052_v49 = vrot.slane %v7051_v31, 4 }
 0x5a9   :  { %v6360_v32 = vrot.slane %v6359_v51, 2 }
 0x5aa   :  { %v7053_v52 = vadd.f32 %v7052_v49, %v7051_v31  ;;  %v7069_v49 = vlaneseq }
 0x5ab   :  { %v6361_v2 = vadd.f32 %v6360_v32, %v6359_v51  ;;  %v4269_v32 = vld [vmem:[%s29067_s4] sm:$0x1] }
 0x5ac   :  { %v7054_v48 = vrot.slane %v7053_v52, 2  ;;  %v7070_v31 = vshrl.u32 %v7069_v49, 7 }
 0x5ad   :  { %v6362_v41 = vrot.slane %v6361_v2, 1 }
 0x5ae   :  { %v7055_v8 = vadd.f32 %v7054_v48, %v7053_v52  ;;  %v27143_v51 = vsub.s32 0, %v7070_v31 }
 0x5af   :  { %v6363_v37 = vadd.f32 %v6362_v41, %v6361_v2 }
 0x5b0   :  { %v7056_v58 = vrot.slane %v7055_v8, 1 }
 0x5b1   :  { %v6364_v39 = vadd.f32 %v6363_v37, %v4977_v44 }
 0x5b2   :  { %v7057_v26 = vadd.f32 %v7056_v58, %v7055_v8 }
 0x5b3   :  { %v7059_v13 = vmul.f32 0.001953125, %v6364_v39 }
 0x5b4   :  { %v7058_v38 = vadd.f32 %v7057_v26, %v5671_v29 }
 0x5b5   :  { %v7061_v35 = vmul.f32 %v7059_v13, %v7059_v13 }
 0x5b6   :  { %v7060_v23 = vmul.f32 0.001953125, %v7058_v38 }
 0x5b8   :  { %v7062_v19 = vsub.f32 %v7060_v23, %v7061_v35 }
 0x5ba   :  { %v7063_v53 = vadd.f32 1e-05, %v7062_v19 }
 0x5bc   :  { %24537 = vrsqrt.f32 %v7063_v53 }
 0x5c6   :  { %v24538_v4 = vpop.eup %24537 }
 0x5c7   :  { %v7065_v62 = vmul.f32 %v24538_v4, %v4269_v32 }
 0x5c9   :  { %v7066_v26 = vmul.f32 %v7065_v62, %v7059_v13  ;;  %v7072_v29 = vrot.slane %v7065_v62, %v27143_v51 }
 0x5cb   :  { %v7067_v37 = vsub.f32 %v4270_v57, %v7066_v26  ;;  %v7074_v20 = vmul.f32 %v7072_v29, %v26217_v18  ;;  %v7075_v2 = vmul.f32 %v26202_v17, %v7072_v29  ;;  %v7084_v30 = vmul.f32 %v7072_v29, %v26219_v56 }
 0x5cc   :  { %v7085_v22 = vmul.f32 %v26204_v1, %v7072_v29 }
 0x5cd   :  { %v7080_v52 = vrot.slane %v7067_v37, %v27143_v51 }
 0x5cf   :  { %v7082_v5 = vadd.f32 %v7080_v52, %v7074_v20  ;;  %v7083_v48 = vadd.f32 %v7080_v52, %v7075_v2  ;;  %v7086_v41 = vadd.f32 %v7084_v30, %v7080_v52  ;;  %v7087_v8 = vadd.f32 %v7085_v22, %v7080_v52  ;;  %v29209_v30 = vld [vmem:[#allocation21_spill] sm:$0xff] }
 0x5d0   :  { %v29210_v22 = vand.u32 4294901760, %v29209_v30 }
 0x5d1   :  { %v7088_v44 = vmax.f32 %v7082_v5, 0.0  ;;  %v7089_v58 = vmax.f32 %v7083_v48, 0.0  ;;  %v7090_v13 = vmax.f32 %v7086_v41, 0.0  ;;  %v7091_v39 = vmax.f32 %v7087_v8, 0.0  ;;  %v29211_v5 = vld [vmem:[#allocation22_spill] sm:$0xff]  ;;  %v29213_v41 = vld [vmem:[#allocation23_spill] sm:$0xff] }
 0x5d2   :  { %v29212_v48 = vand.u32 4294901760, %v29211_v5  ;;  %v29214_v8 = vand.u32 4294901760, %v29213_v41 }
 0x5d3   :  { %7092 = vst [vmem:[#allocation2 + $0x1] sm:$0xff] %v7088_v44  ;;  %7093 = vst [vmem:[#allocation2 + $0x9] sm:$0xff] %v7089_v58  ;;  %v27154_v18 = vand.u32 4294901760, %v7088_v44  ;;  %v27156_v17 = vand.u32 4294901760, %v7090_v13  ;;  %v27158_v56 = vand.u32 4294901760, %v7089_v58  ;;  %v27160_v1 = vand.u32 4294901760, %v7091_v39 }
 0x5d4   :  { %7094 = vst [vmem:[#allocation2 + $0x19] sm:$0xff] %v7090_v13  ;;  %7095 = vst [vmem:[#allocation2 + $0x21] sm:$0xff] %v7091_v39 }
 0x5d5   :  { %v27163_v38 = vsub.f32 %v7088_v44, %v27154_v18  ;;  %v27166_v35 = vsub.f32 %v7090_v13, %v27156_v17  ;;  %v27169_v23 = vsub.f32 %v7089_v58, %v27158_v56  ;;  %v27172_v19 = vsub.f32 %v7091_v39, %v27160_v1  ;;  %v27364_v39 = vld [vmem:[#allocation8 + $0x8] sm:$0xff] }
 0x5d6   :  { %v22549_v44 = vpack.c.bf16 %v29214_v8, %v29212_v48 }
 0x5d7   :  { %v7216_v53 = vand.u32 4294901760, %v27163_v38  ;;  %v9293_v49 = vand.u32 4294901760, %v27166_v35  ;;  %v7226_v31 = vand.u32 4294901760, %v27169_v23  ;;  %v9303_v32 = vand.u32 4294901760, %v27172_v19 }
 0x5d9   :  { %v7217_v4 = vsub.f32 %v27163_v38, %v7216_v53  ;;  %v9294_v62 = vsub.f32 %v27166_v35, %v9293_v49  ;;  %v7227_v57 = vsub.f32 %v27169_v23, %v7226_v31  ;;  %v9304_v26 = vsub.f32 %v27172_v19, %v9303_v32 }
 0x5db   :  { %v7218_v29 = vand.u32 4294901760, %v7217_v4  ;;  %v9295_v37 = vand.u32 4294901760, %v9294_v62  ;;  %v7228_v20 = vand.u32 4294901760, %v7227_v57  ;;  %v9305_v2 = vand.u32 4294901760, %v9304_v26 }
 0x5dd   :  { %18405 = vmatprep.mubr.f32.mxu0 %v7218_v29  ;;  %19035 = vmatprep.mubr.f32.mxu1 %v9295_v37  ;;  %v27413_v29 = vld [vmem:[#allocation8 + $0x30] sm:$0xff]  ;;  %v27415_v37 = vld [vmem:[#allocation8 + $0x38] sm:$0xff] }
 0x5de   :  { %18406 = vmatmul.mubr.f32.vlgmr.msra.gmra.mrb[6].mxu0 %v7228_v20  ;;  %19036 = vmatmul.mubr.f32.vlgmr.msra.gmra.mrb[6].mxu1 %v9305_v2 }
 0x5df   :  { %22428 = vmatpush3.bf16.msra.mxu0 %v26988_v10  ;;  %23004 = vmatpush3.bf16.msra.mxu1 %v26988_v10  ;;  %v29191_v10 = vand.u32 4294901760, %v26933_v34  ;;  %v29195_v34 = vand.u32 4294901760, %v26981_v15  ;;  %v29199_v15 = vld [vmem:[#allocation16_spill] sm:$0xff] }
 0x5e0   :  { %18440 = vmatprep.mubr.f32.mxu0 %v27154_v18  ;;  %19070 = vmatprep.mubr.f32.mxu1 %v27156_v17 }
 0x5e1   :  { %22430 = vmatprep.subr.bf16.mxu0 %v26994_v27  ;;  %23006 = vmatprep.subr.bf16.mxu1 %v26994_v27 }
 0x5e3   :  { %22432 = vmatpush3.bf16.msra.mxu0 %v26994_v27  ;;  %23008 = vmatpush3.bf16.msra.mxu1 %v26994_v27  ;;  %v29192_v27 = vand.u32 4294901760, %v26936_v59  ;;  %v29196_v59 = vand.u32 4294901760, %v26986_v61  ;;  %v29201_v61 = vld [vmem:[#allocation17_spill] sm:$0xff] }
 0x5e4   :  { %22434 = vmatprep.subr.bf16.mxu0 %v27014_v45  ;;  %23010 = vmatprep.subr.bf16.mxu1 %v27014_v45 }
 0x5e7   :  { %22436 = vmatpush3.bf16.msra.mxu0 %v27014_v45  ;;  %23012 = vmatpush3.bf16.msra.mxu1 %v27014_v45  ;;  %v22521_v45 = vpack.c.bf16 %v29192_v27, %v29191_v10  ;;  %v7836_v10 = vand.u32 4294901760, %v27413_v29  ;;  %v7839_v27 = vand.u32 4294901760, %v27415_v37 }
 0x5e8   :  { %22438 = vmatprep.subr.bf16.mxu0 %v27050_v21  ;;  %23014 = vmatprep.subr.bf16.mxu1 %v27050_v21 }
 0x5eb   :  { %22440 = vmatpush3.bf16.msra.mxu0 %v27050_v21  ;;  %23016 = vmatpush3.bf16.msra.mxu1 %v27050_v21  ;;  %v29193_v21 = vand.u32 4294901760, %v26958_v28  ;;  %v29197_v28 = vand.u32 4294901760, %v27005_v54 }
 0x5ec   :  { %22442 = vmatprep.subr.bf16.mxu0 %v27054_v42  ;;  %23018 = vmatprep.subr.bf16.mxu1 %v27054_v42 }
 0x5ef   :  { %22444 = vmatpush3.bf16.msra.mxu0 %v27054_v42  ;;  %23020 = vmatpush3.bf16.msra.mxu1 %v27054_v42  ;;  %v29194_v42 = vand.u32 4294901760, %v26963_v33  ;;  %v29198_v33 = vand.u32 4294901760, %v27010_v7  ;;  %v29207_v7 = vld [vmem:[#allocation20_spill] sm:$0xff] }
 0x5f0   :  { %22446 = vmatprep.subr.bf16.mxu0 %v27074_v36  ;;  %23022 = vmatprep.subr.bf16.mxu1 %v27074_v36 }
 0x5f3   :  { %22448 = vmatpush3.bf16.msra.mxu0 %v27074_v36  ;;  %23024 = vmatpush3.bf16.msra.mxu1 %v27074_v36  ;;  %v22525_v36 = vpack.c.bf16 %v29194_v42, %v29193_v21 }
 0x5f4   :  { %22450 = vmatprep.subr.bf16.mxu0 %v27100_v24  ;;  %23026 = vmatprep.subr.bf16.mxu1 %v27100_v24 }
 0x5f7   :  { %22452 = vmatpush3.bf16.msra.mxu0 %v27100_v24  ;;  %23028 = vmatpush3.bf16.msra.mxu1 %v27100_v24  ;;  %v22529_v24 = vpack.c.bf16 %v29196_v59, %v29195_v34  ;;  %v27445_v34 = vld [vmem:[#allocation8 + $0x58] sm:$0xff] }
 0x5f8   :  { %22454 = vmatprep.subr.bf16.mxu0 %v27102_v12  ;;  %23030 = vmatprep.subr.bf16.mxu1 %v27102_v12  ;;  %v7097_v59 = vld [vmem:[#allocation2 + $0x8] sm:$0xff] }
 0x5fb   :  { %22456 = vmatpush3.bf16.msra.mxu0 %v27102_v12  ;;  %23032 = vmatpush3.bf16.msra.mxu1 %v27102_v12  ;;  %v22533_v12 = vpack.c.bf16 %v29198_v33, %v29197_v28 }
 0x5fc   :  { %22458 = vmatprep.subr.bf16.mxu0 %v27106_v25  ;;  %23034 = vmatprep.subr.bf16.mxu1 %v27106_v25 }
 0x5fe   :  { %18441 = vmatmul.mubr.f32.vlgmr.msra.gmra.mrb[6].mxu0 %v27158_v56  ;;  %19071 = vmatmul.mubr.f32.vlgmr.msra.gmra.mrb[6].mxu1 %v27160_v1 }
 0x5ff   :  { %22460 = vmatpush3.bf16.msra.mxu0 %v27106_v25  ;;  %18475 = vmatprep.mubr.f32.mxu0 %v27163_v38 }
 0x600   :  { %23036 = vmatpush3.bf16.msra.mxu1 %v27106_v25  ;;  %19105 = vmatprep.mubr.f32.mxu1 %v27166_v35  ;;  %v29200_v25 = vand.u32 4294901760, %v29199_v15  ;;  %v27378_v35 = vld [vmem:[#allocation8 + $0x10] sm:$0xff]  ;;  %v27460_v15 = vld [vmem:[#allocation8 + $0x60] sm:$0xff] }
 0x601   :  { %22462 = vmatprep.subr.bf16.mxu0 %v27110_v9  ;;  %23038 = vmatprep.subr.bf16.mxu1 %v27110_v9 }
 0x603   :  { %22464 = vmatpush3.bf16.msra.mxu0 %v27110_v9 }
 0x604   :  { %23040 = vmatpush3.bf16.msra.mxu1 %v27110_v9  ;;  %22466 = vmatprep.subr.bf16.mxu0 %v27114_v63  ;;  %v29202_v9 = vand.u32 4294901760, %v29201_v61 }
 0x605   :  { %23042 = vmatprep.subr.bf16.mxu1 %v27114_v63 }
 0x607   :  { %22468 = vmatpush3.bf16.msra.mxu0 %v27114_v63 }
 0x608   :  { %23044 = vmatpush3.bf16.msra.mxu1 %v27114_v63  ;;  %22470 = vmatprep.subr.bf16.mxu0 %v27118_v43  ;;  %v22537_v63 = vpack.c.bf16 %v29202_v9, %v29200_v25  ;;  %v27462_v25 = vld [vmem:[#allocation8 + $0x68] sm:$0xff]  ;;  %v27468_v9 = vand.u32 4294901760, %v7097_v59 }
 0x609   :  { %23046 = vmatprep.subr.bf16.mxu1 %v27118_v43 }
 0x60a   :  { %v27501_v5 = vsub.f32 %v7097_v59, %v27468_v9 }
 0x60b   :  { %22472 = vmatpush3.bf16.msra.mxu0 %v27118_v43 }
 0x60c   :  { %23048 = vmatpush3.bf16.msra.mxu1 %v27118_v43  ;;  %22474 = vmatprep.subr.bf16.mxu0 %v27122_v14  ;;  %v29203_v43 = vld [vmem:[#allocation18_spill] sm:$0xff] }
 0x60d   :  { %23050 = vmatprep.subr.bf16.mxu1 %v27122_v14 }
 0x60f   :  { %22476 = vmatpush3.bf16.msra.mxu0 %v27122_v14 }
 0x610   :  { %23052 = vmatpush3.bf16.msra.mxu1 %v27122_v14  ;;  %22478 = vmatprep.subr.bf16.mxu0 %v27126_v50  ;;  %v29204_v14 = vand.u32 4294901760, %v29203_v43  ;;  %v7854_v43 = vand.u32 4294901760, %v27460_v15 }
 0x611   :  { %23054 = vmatprep.subr.bf16.mxu1 %v27126_v50 }
 0x613   :  { %22480 = vmatpush3.bf16.msra.mxu0 %v27126_v50 }
 0x614   :  { %23056 = vmatpush3.bf16.msra.mxu1 %v27126_v50  ;;  %22482 = vmatprep.subr.bf16.mxu0 %v27130_v55  ;;  %v29205_v50 = vld [vmem:[#allocation19_spill] sm:$0xff] }
 0x615   :  { %23058 = vmatprep.subr.bf16.mxu1 %v27130_v55  ;;  %v29206_v54 = vand.u32 4294901760, %v29205_v50 }
 0x617   :  { %22484 = vmatpush3.bf16.msra.mxu0 %v27130_v55 }
 0x618   :  { %23060 = vmatpush3.bf16.msra.mxu1 %v27130_v55  ;;  %22486 = vmatprep.subr.bf16.mxu0 %v27134_v0  ;;  %v22541_v55 = vpack.c.bf16 %v29206_v54, %v29204_v14  ;;  %v7857_v14 = vand.u32 4294901760, %v27462_v25 }
 0x619   :  { %23062 = vmatprep.subr.bf16.mxu1 %v27134_v0 }
 0x61a   :  { %v27508_v48 = vpack.c.bf16 %v7857_v14, %v7854_v43 }
 0x61b   :  { %22488 = vmatpush3.bf16.msra.mxu0 %v27134_v0 }
 0x61c   :  { %23064 = vmatpush3.bf16.msra.mxu1 %v27134_v0  ;;  %22490 = vmatprep.subr.bf16.mxu0 %v26828_v11  ;;  %v29208_v0 = vand.u32 4294901760, %v29207_v7  ;;  %v27484_v7 = vld [vmem:[#allocation8 + $0x78] sm:$0xff] }
 0x61d   :  { %23066 = vmatprep.subr.bf16.mxu1 %v26828_v11  ;;  %v7863_v8 = vand.u32 4294901760, %v27484_v7 }
 0x61e   :  { %18476 = vmatmul.mubr.f32.vlgmr.msra.gmra.mrb[6].mxu0 %v27169_v23  ;;  %v22545_v52 = vpack.c.bf16 %v29210_v22, %v29208_v0  ;;  %v27380_v23 = vld [vmem:[#allocation8 + $0x18] sm:$0xff] }
 0x61f   :  { %19106 = vmatmul.mubr.f32.vlgmr.msra.gmra.mrb[6].mxu1 %v27172_v19  ;;  %22492 = vmatpush3.bf16.msra.mxu0 %v26828_v11 }
 0x620   :  { %18510 = vmatprep.mubr.f32.mxu0 %v7216_v53  ;;  %23068 = vmatpush3.bf16.msra.mxu1 %v26828_v11  ;;  %v7824_v53 = vand.u32 4294901760, %v27378_v35 }
 0x621   :  { %19140 = vmatprep.mubr.f32.mxu1 %v9293_v49  ;;  %22494 = vmatprep.subr.bf16.mxu0 %v26844_v40  ;;  %v7827_v49 = vand.u32 4294901760, %v27380_v23 }
 0x622   :  { %23070 = vmatprep.subr.bf16.mxu1 %v26844_v40  ;;  %v27493_v22 = vsub.f32 %v27378_v35, %v7824_v53  ;;  %v27537_v35 = vsub.f32 %v27413_v29, %v7836_v10 }
 0x623   :  { %22496 = vmatpush3.bf16.msra.mxu0 %v26844_v40  ;;  %v27411_v26 = vpack.c.bf16 %v7827_v49, %v7824_v53 }
 0x624   :  { %23072 = vmatpush3.bf16.msra.mxu1 %v26844_v40  ;;  %22498 = vmatprep.subr.bf16.mxu0 %v26860_v16 }
 0x625   :  { %23074 = vmatprep.subr.bf16.mxu1 %v26860_v16 }
 0x627   :  { %22500 = vmatpush3.bf16.msra.mxu0 %v26860_v16 }
 0x628   :  { %23076 = vmatpush3.bf16.msra.mxu1 %v26860_v16  ;;  %22502 = vmatprep.subr.bf16.mxu0 %v26876_v46 }
 0x629   :  { %23078 = vmatprep.subr.bf16.mxu1 %v26876_v46 }
 0x62b   :  { %22504 = vmatpush3.bf16.msra.mxu0 %v26876_v46 }
 0x62c   :  { %23080 = vmatpush3.bf16.msra.mxu1 %v26876_v46  ;;  %22506 = vmatprep.subr.bf16.mxu0 %v26892_v6 }
 0x62d   :  { %23082 = vmatprep.subr.bf16.mxu1 %v26892_v6 }
 0x62f   :  { %22508 = vmatpush3.bf16.msra.mxu0 %v26892_v6 }
 0x630   :  { %23084 = vmatpush3.bf16.msra.mxu1 %v26892_v6  ;;  %22510 = vmatprep.subr.bf16.mxu0 %v26908_v60 }
 0x631   :  { %23086 = vmatprep.subr.bf16.mxu1 %v26908_v60 }
 0x633   :  { %22512 = vmatpush3.bf16.msra.mxu0 %v26908_v60 }
 0x634   :  { %23088 = vmatpush3.bf16.msra.mxu1 %v26908_v60  ;;  %22514 = vmatprep.subr.bf16.mxu0 %v26928_v47 }
 0x635   :  { %23090 = vmatprep.subr.bf16.mxu1 %v26928_v47 }
 0x637   :  { %22516 = vmatpush3.bf16.msra.mxu0 %v26928_v47 }
 0x638   :  { %23092 = vmatpush3.bf16.msra.mxu1 %v26928_v47  ;;  %22518 = vmatprep.subr.bf16.mxu0 %v26944_v3 }
 0x639   :  { %23094 = vmatprep.subr.bf16.mxu1 %v26944_v3 }
 0x63b   :  { %22520 = vmatpush3.bf16.msra.mxu0 %v26944_v3 }
 0x63c   :  { %23096 = vmatpush3.bf16.msra.mxu1 %v26944_v3  ;;  %22522 = vmatprep.subr.bf16.mxu0 %v22521_v45 }
 0x63d   :  { %23098 = vmatprep.subr.bf16.mxu1 %v22521_v45 }
 0x63e   :  { %18511 = vmatmul.mubr.f32.vlgmr.msra.gmra.mrb[6].mxu0 %v7226_v31  ;;  %v27391_v31 = vld [vmem:[#allocation8 + $0x20] sm:$0xff] }
 0x63f   :  { %19141 = vmatmul.mubr.f32.vlgmr.msra.gmra.mrb[6].mxu1 %v9303_v32  ;;  %22524 = vmatpush3.bf16.msra.mxu0 %v22521_v45  ;;  %v27393_v32 = vld [vmem:[#allocation8 + $0x28] sm:$0xff]  ;;  %v7830_v62 = vand.u32 4294901760, %v27391_v31 }
 0x640   :  { %18545 = vmatprep.mubr.f32.mxu0 %v27154_v18  ;;  %23100 = vmatpush3.bf16.msra.mxu1 %v22521_v45  ;;  %v7833_v57 = vand.u32 4294901760, %v27393_v32  ;;  %v27438_v45 = vpack.c.bf16 %v7839_v27, %v7836_v10 }
 0x641   :  { %19175 = vmatprep.mubr.f32.mxu1 %v27156_v17  ;;  %22526 = vmatprep.subr.bf16.mxu0 %v22525_v36 }
 0x642   :  { %23102 = vmatprep.subr.bf16.mxu1 %v22525_v36  ;;  %v27425_v2 = vpack.c.bf16 %v7833_v57, %v7830_v62 }
 0x643   :  { %22528 = vmatpush3.bf16.msra.mxu0 %v22525_v36 }
 0x644   :  { %23104 = vmatpush3.bf16.msra.mxu1 %v22525_v36  ;;  %22530 = vmatprep.subr.bf16.mxu0 %v22529_v24  ;;  %v27443_v36 = vld [vmem:[#allocation8 + $0x50] sm:$0xff] }
 0x645   :  { %23106 = vmatprep.subr.bf16.mxu1 %v22529_v24  ;;  %v7848_v33 = vand.u32 4294901760, %v27443_v36 }
 0x647   :  { %22532 = vmatpush3.bf16.msra.mxu0 %v22529_v24 }
 0x648   :  { %23108 = vmatpush3.bf16.msra.mxu1 %v22529_v24  ;;  %22534 = vmatprep.subr.bf16.mxu0 %v22533_v12 }
 0x649   :  { %23110 = vmatprep.subr.bf16.mxu1 %v22533_v12 }
 0x64b   :  { %22536 = vmatpush3.bf16.msra.mxu0 %v22533_v12 }
 0x64c   :  { %23112 = vmatpush3.bf16.msra.mxu1 %v22533_v12  ;;  %22538 = vmatprep.subr.bf16.mxu0 %v22537_v63  ;;  %v7851_v12 = vand.u32 4294901760, %v27445_v34 }
 0x64d   :  { %23114 = vmatprep.subr.bf16.mxu1 %v22537_v63 }
 0x64e   :  { %v27480_v54 = vpack.c.bf16 %v7851_v12, %v7848_v33 }
 0x64f   :  { %22540 = vmatpush3.bf16.msra.mxu0 %v22537_v63 }
 0x650   :  { %23116 = vmatpush3.bf16.msra.mxu1 %v22537_v63  ;;  %22542 = vmatprep.subr.bf16.mxu0 %v22541_v55  ;;  %v9207_v63 = vld [vmem:[#allocation2 + $0x20] sm:$0xff] }
 0x651   :  { %23118 = vmatprep.subr.bf16.mxu1 %v22541_v55  ;;  %v27488_v30 = vand.u32 4294901760, %v9207_v63 }
 0x653   :  { %22544 = vmatpush3.bf16.msra.mxu0 %v22541_v55 }
 0x654   :  { %23120 = vmatpush3.bf16.msra.mxu1 %v22541_v55  ;;  %22546 = vmatprep.subr.bf16.mxu0 %v22545_v52  ;;  %v27482_v55 = vld [vmem:[#allocation8 + $0x70] sm:$0xff] }
 0x655   :  { %23122 = vmatprep.subr.bf16.mxu1 %v22545_v52  ;;  %v7860_v41 = vand.u32 4294901760, %v27482_v55 }
 0x657   :  { %22548 = vmatpush3.bf16.msra.mxu0 %v22545_v52  ;;  %v27547_v53 = vpack.c.bf16 %v7863_v8, %v7860_v41 }
 0x658   :  { %23124 = vmatpush3.bf16.msra.mxu1 %v22545_v52  ;;  %22550 = vmatprep.subr.bf16.mxu0 %v22549_v44  ;;  %v27498_v52 = vsub.f32 %v27380_v23, %v7827_v49  ;;  %v27540_v23 = vsub.f32 %v27415_v37, %v7839_v27  ;;  %v29129_v49 = vand.u32 4294901760, %v27501_v5  ;;  %v29126_v37 = vand.u32 4294901760, %v27537_v35 }
 0x659   :  { %23126 = vmatprep.subr.bf16.mxu1 %v22549_v44 }
 0x65b   :  { %22552 = vmatpush3.bf16.msra.mxu0 %v22549_v44 }
 0x65c   :  { %23128 = vmatpush3.bf16.msra.mxu1 %v22549_v44  ;;  %22554 = vmatprep.subr.bf16.mxu0 %v26828_v11 }
 0x65d   :  { %23130 = vmatprep.subr.bf16.mxu1 %v26828_v11 }
 0x65e   :  { %18546 = vmatmul.mubr.f32.vlgmr.msra.gmra.mrb[6].mxu0 %v27158_v56 }
 0x65f   :  { %19176 = vmatmul.mubr.f32.vlgmr.msra.gmra.mrb[6].mxu1 %v27160_v1  ;;  %22556 = vmatpush3.bf16.msra.mxu0 %v26828_v11 }
 0x660   :  { %18580 = vmatprep.mubr.f32.mxu0 %v27154_v18  ;;  %23132 = vmatpush3.bf16.msra.mxu1 %v26828_v11  ;;  %v7096_v11 = vld [vmem:[#allocation2] sm:$0xff] }
 0x661   :  { %19210 = vmatprep.mubr.f32.mxu1 %v27156_v17  ;;  %22558 = vmatprep.subr.bf16.mxu0 %v26844_v40  ;;  %v27356_v58 = vand.u32 4294901760, %v7096_v11  ;;  %v7821_v17 = vand.u32 4294901760, %v27364_v39 }
 0x662   :  { %23134 = vmatprep.subr.bf16.mxu1 %v26844_v40 }
 0x663   :  { %22560 = vmatpush3.bf16.msra.mxu0 %v26844_v40  ;;  %v27465_v61 = vsub.f32 %v27364_v39, %v7821_v17  ;;  %v27532_v39 = vsub.f32 %v9207_v63, %v27488_v30 }
 0x664   :  { %23136 = vmatpush3.bf16.msra.mxu1 %v26844_v40  ;;  %22562 = vmatprep.subr.bf16.mxu0 %v26860_v16  ;;  %v9206_v40 = vld [vmem:[#allocation2 + $0x18] sm:$0xff] }
 0x665   :  { %23138 = vmatprep.subr.bf16.mxu1 %v26860_v16  ;;  %v27359_v13 = vand.u32 4294901760, %v9206_v40  ;;  %v7928_v0 = vand.u32 4294901760, %v27465_v61 }
 0x667   :  { %22564 = vmatpush3.bf16.msra.mxu0 %v26860_v16  ;;  %v27371_v18 = vsub.f32 %v9206_v40, %v27359_v13  ;;  %v27523_v40 = vsub.f32 %v27391_v31, %v7830_v62  ;;  %v29128_v62 = vand.u32 4294901760, %v27532_v39 }
 0x668   :  { %23140 = vmatpush3.bf16.msra.mxu1 %v26860_v16  ;;  %22566 = vmatprep.subr.bf16.mxu0 %v26876_v46  ;;  %v7098_v16 = vld [vmem:[#allocation8] sm:$0xff] }
 0x669   :  { %23142 = vmatprep.subr.bf16.mxu1 %v26876_v46  ;;  %v9977_v19 = vand.u32 4294901760, %v27371_v18 }
 0x66b   :  { %22568 = vmatpush3.bf16.msra.mxu0 %v26876_v46 }
 0x66c   :  { %23144 = vmatpush3.bf16.msra.mxu1 %v26876_v46  ;;  %22570 = vmatprep.subr.bf16.mxu0 %v26892_v6  ;;  %v27367_v46 = vsub.f32 %v7096_v11, %v27356_v58  ;;  %v7929_v11 = vsub.f32 %v27465_v61, %v7928_v0 }
 0x66d   :  { %23146 = vmatprep.subr.bf16.mxu1 %v26892_v6 }
 0x66e   :  { %v7900_v38 = vand.u32 4294901760, %v27367_v46 }
 0x66f   :  { %22572 = vmatpush3.bf16.msra.mxu0 %v26892_v6 }
 0x670   :  { %23148 = vmatpush3.bf16.msra.mxu1 %v26892_v6  ;;  %22574 = vmatprep.subr.bf16.mxu0 %v26908_v60  ;;  %v7818_v6 = vand.u32 4294901760, %v7098_v16  ;;  %v7901_v4 = vsub.f32 %v27367_v46, %v7900_v38 }
 0x671   :  { %23150 = vmatprep.subr.bf16.mxu1 %v26908_v60 }
 0x672   :  { %v27448_v24 = vsub.f32 %v7098_v16, %v7818_v6  ;;  %v27528_v16 = vsub.f32 %v27393_v32, %v7833_v57  ;;  %v7930_v32 = vand.u32 4294901760, %v7929_v11 }
 0x673   :  { %22576 = vmatpush3.bf16.msra.mxu0 %v26908_v60 }
 0x674   :  { %23152 = vmatpush3.bf16.msra.mxu1 %v26908_v60  ;;  %22578 = vmatprep.subr.bf16.mxu0 %v26928_v47  ;;  %v27386_v60 = vpack.c.bf16 %v7821_v17, %v7818_v6  ;;  %v7921_v50 = vand.u32 4294901760, %v27448_v24  ;;  %v7935_v6 = vand.u32 4294901760, %v27493_v22  ;;  %v29130_v17 = vand.u32 4294901760, %v27498_v52 }
 0x675   :  { %23154 = vmatprep.subr.bf16.mxu1 %v26928_v47 }
 0x676   :  { %v7922_v44 = vsub.f32 %v27448_v24, %v7921_v50  ;;  %v7936_v57 = vsub.f32 %v27493_v22, %v7935_v6  ;;  %v7943_v29 = vsub.f32 %v27498_v52, %v29130_v17 }
 0x677   :  { %22580 = vmatpush3.bf16.msra.mxu0 %v26928_v47 }
 0x678   :  { %23156 = vmatpush3.bf16.msra.mxu1 %v26928_v47  ;;  %22582 = vmatprep.subr.bf16.mxu0 %v26944_v3  ;;  %v9978_v47 = vsub.f32 %v27371_v18, %v9977_v19  ;;  %v7923_v31 = vand.u32 4294901760, %v7922_v44 }
 0x679   :  { %23158 = vmatprep.subr.bf16.mxu1 %v26944_v3 }
 0x67a   :  { %v9979_v20 = vand.u32 4294901760, %v9978_v47  ;;  %v29124_v47 = vand.u32 4294901760, %v27528_v16  ;;  %v22617_v59 = vpack.c.bf16 %v7930_v32, %v7923_v31 }
 0x67b   :  { %22584 = vmatpush3.bf16.msra.mxu0 %v26944_v3 }
 0x67c   :  { %23160 = vmatpush3.bf16.msra.mxu1 %v26944_v3  ;;  %22586 = vmatprep.subr.bf16.mxu0 %v27386_v60  ;;  %v7902_v3 = vand.u32 4294901760, %v7901_v4  ;;  %v29127_v4 = vand.u32 4294901760, %v27523_v40  ;;  %v7957_v44 = vsub.f32 %v27528_v16, %v29124_v47  ;;  %v27602_v47 = vsub.f32 %v27443_v36, %v7848_v33 }
 0x67d   :  { %23162 = vmatprep.subr.bf16.mxu1 %v27386_v60 }
 0x67e   :  { %18581 = vmatmul.mubr.f32.vlgmr.msra.gmra.mrb[6].mxu0 %v27158_v56  ;;  %v27430_v56 = vld [vmem:[#allocation8 + $0x40] sm:$0xff]  ;;  %v7950_v63 = vsub.f32 %v27523_v40, %v29127_v4  ;;  %v7991_v33 = vand.u32 4294901760, %v27602_v47 }
 0x67f   :  { %19211 = vmatmul.mubr.f32.vlgmr.msra.gmra.mrb[6].mxu1 %v27160_v1  ;;  %22588 = vmatpush3.bf16.msra.mxu0 %v27386_v60  ;;  %v27432_v1 = vld [vmem:[#allocation8 + $0x48] sm:$0xff]  ;;  %v7842_v21 = vand.u32 4294901760, %v27430_v56 }
 0x680   :  { %18615 = vmatprep.mubr.f32.mxu0 %v7902_v3  ;;  %23164 = vmatpush3.bf16.msra.mxu1 %v27386_v60  ;;  %v7845_v42 = vand.u32 4294901760, %v27432_v1  ;;  %v29125_v3 = vand.u32 4294901760, %v27540_v23 }
 0x681   :  { %19245 = vmatprep.mubr.f32.mxu1 %v9979_v20  ;;  %22590 = vmatprep.subr.bf16.mxu0 %v27411_v26  ;;  %v7911_v20 = vsub.f32 %v27501_v5, %v29129_v49  ;;  %v27571_v10 = vsub.f32 %v27430_v56, %v7842_v21  ;;  %v9988_v56 = vsub.f32 %v27532_v39, %v29128_v62 }
 0x682   :  { %23166 = vmatprep.subr.bf16.mxu1 %v27411_v26  ;;  %v27456_v28 = vpack.c.bf16 %v7845_v42, %v7842_v21  ;;  %v27576_v27 = vsub.f32 %v27432_v1, %v7845_v42  ;;  %v7937_v1 = vand.u32 4294901760, %v7936_v57  ;;  %v7944_v21 = vand.u32 4294901760, %v7943_v29 }
 0x683   :  { %22592 = vmatpush3.bf16.msra.mxu0 %v27411_v26  ;;  %v7964_v42 = vsub.f32 %v27537_v35, %v29126_v37  ;;  %v7971_v11 = vsub.f32 %v27540_v23, %v29125_v3  ;;  %v7977_v31 = vand.u32 4294901760, %v27571_v10  ;;  %v27607_v57 = vsub.f32 %v27445_v34, %v7851_v12 }
 0x684   :  { %23168 = vmatpush3.bf16.msra.mxu1 %v27411_v26  ;;  %22594 = vmatprep.subr.bf16.mxu0 %v27425_v2  ;;  %v7984_v32 = vand.u32 4294901760, %v27576_v27  ;;  %v7912_v29 = vand.u32 4294901760, %v7911_v20  ;;  %v7951_v3 = vand.u32 4294901760, %v7950_v63  ;;  %v7958_v37 = vand.u32 4294901760, %v7957_v44 }
 0x685   :  { %23170 = vmatprep.subr.bf16.mxu1 %v27425_v2  ;;  %v9989_v4 = vand.u32 4294901760, %v9988_v56  ;;  %v22621_v62 = vpack.c.bf16 %v7944_v21, %v7937_v1  ;;  %v7965_v49 = vand.u32 4294901760, %v7964_v42  ;;  %v7972_v17 = vand.u32 4294901760, %v7971_v11 }
 0x686   :  { %v7978_v36 = vsub.f32 %v27571_v10, %v7977_v31  ;;  %v7985_v34 = vsub.f32 %v27576_v27, %v7984_v32  ;;  %v7998_v12 = vand.u32 4294901760, %v27607_v57  ;;  %v22625_v20 = vpack.c.bf16 %v7958_v37, %v7951_v3 }
 0x687   :  { %22596 = vmatpush3.bf16.msra.mxu0 %v27425_v2  ;;  %v27627_v63 = vsub.f32 %v27462_v25, %v7857_v14  ;;  %v22629_v44 = vpack.c.bf16 %v7972_v17, %v7965_v49  ;;  %v7992_v37 = vsub.f32 %v27602_v47, %v7991_v33  ;;  %v27641_v14 = vsub.f32 %v27482_v55, %v7860_v41 }
 0x688   :  { %23172 = vmatpush3.bf16.msra.mxu1 %v27425_v2  ;;  %22598 = vmatprep.subr.bf16.mxu0 %v27438_v45  ;;  %v7979_v56 = vand.u32 4294901760, %v7978_v36  ;;  %v7986_v1 = vand.u32 4294901760, %v7985_v34  ;;  %v27646_v17 = vsub.f32 %v27484_v7, %v7863_v8 }
 0x689   :  { %23174 = vmatprep.subr.bf16.mxu1 %v27438_v45  ;;  %v7993_v3 = vand.u32 4294901760, %v7992_v37  ;;  %v8019_v41 = vand.u32 4294901760, %v27641_v14  ;;  %v22657_v37 = vpack.c.bf16 %v27528_v16, %v27523_v40 }
 0x68a   :  { %v22633_v49 = vpack.c.bf16 %v7986_v1, %v7979_v56  ;;  %v8026_v7 = vand.u32 4294901760, %v27646_v17  ;;  %v22649_v56 = vpack.c.bf16 %v27465_v61, %v27448_v24  ;;  %v22653_v1 = vpack.c.bf16 %v27498_v52, %v27493_v22 }
 0x68b   :  { %22600 = vmatpush3.bf16.msra.mxu0 %v27438_v45  ;;  %v8020_v11 = vsub.f32 %v27641_v14, %v8019_v41  ;;  %v29217_v24 = vand.u32 4294901760, %v27532_v39  ;;  %v29218_v61 = vand.u32 4294901760, %v27523_v40  ;;  %v29220_v22 = vand.u32 4294901760, %v27537_v35 }
 0x68c   :  { %23176 = vmatpush3.bf16.msra.mxu1 %v27438_v45  ;;  %22602 = vmatprep.subr.bf16.mxu0 %v27456_v28  ;;  %v22729_v40 = vpack.c.bf16 %v7984_v32, %v7977_v31  ;;  %v27804_v31 = vld [vmem:[#allocation8 + $0x118] sm:$0xff] }
 0x68d   :  { %23178 = vmatprep.subr.bf16.mxu1 %v27456_v28  ;;  %v8021_v34 = vand.u32 4294901760, %v8020_v11 }
 0x68f   :  { %22604 = vmatpush3.bf16.msra.mxu0 %v27456_v28 }
 0x690   :  { %23180 = vmatpush3.bf16.msra.mxu1 %v27456_v28  ;;  %22606 = vmatprep.subr.bf16.mxu0 %v27480_v54 }
 0x691   :  { %23182 = vmatprep.subr.bf16.mxu1 %v27480_v54 }
 0x693   :  { %22608 = vmatpush3.bf16.msra.mxu0 %v27480_v54 }
 0x694   :  { %23184 = vmatpush3.bf16.msra.mxu1 %v27480_v54  ;;  %22610 = vmatprep.subr.bf16.mxu0 %v27508_v48 }
 0x695   :  { %23186 = vmatprep.subr.bf16.mxu1 %v27508_v48 }
 0x697   :  { %22612 = vmatpush3.bf16.msra.mxu0 %v27508_v48 }
 0x698   :  { %23188 = vmatpush3.bf16.msra.mxu1 %v27508_v48  ;;  %22614 = vmatprep.subr.bf16.mxu0 %v27547_v53 }
 0x699   :  { %23190 = vmatprep.subr.bf16.mxu1 %v27547_v53 }
 0x69b   :  { %22616 = vmatpush3.bf16.msra.mxu0 %v27547_v53 }
 0x69c   :  { %23192 = vmatpush3.bf16.msra.mxu1 %v27547_v53  ;;  %22618 = vmatprep.subr.bf16.mxu0 %v22617_v59 }
 0x69d   :  { %23194 = vmatprep.subr.bf16.mxu1 %v22617_v59 }
 0x69e   :  { %18616 = vmatmul.mubr.f32.vlgmr.msra.gmra.mrb[6].mxu0 %v7912_v29  ;;  %v8027_v29 = vsub.f32 %v27646_v17, %v8026_v7 }
 0x69f   :  { %19246 = vmatmul.mubr.f32.vlgmr.msra.gmra.mrb[6].mxu1 %v9989_v4  ;;  %22620 = vmatpush3.bf16.msra.mxu0 %v22617_v59  ;;  %v27622_v4 = vsub.f32 %v27460_v15, %v7854_v43  ;;  %v7999_v15 = vsub.f32 %v27607_v57, %v7998_v12  ;;  %v8012_v43 = vand.u32 4294901760, %v27627_v63 }
 0x6a0   :  { %18650 = vmatprep.mubr.f32.mxu0 %v27356_v58  ;;  %23196 = vmatpush3.bf16.msra.mxu1 %v22617_v59 }
 0x6a1   :  { %19280 = vmatprep.mubr.f32.mxu1 %v27359_v13  ;;  %22622 = vmatprep.subr.bf16.mxu0 %v22621_v62  ;;  %v8005_v25 = vand.u32 4294901760, %v27622_v4  ;;  %v8013_v55 = vsub.f32 %v27627_v63, %v8012_v43 }
 0x6a2   :  { %23198 = vmatprep.subr.bf16.mxu1 %v22621_v62 }
 0x6a3   :  { %22624 = vmatpush3.bf16.msra.mxu0 %v22621_v62  ;;  %v8006_v59 = vsub.f32 %v27622_v4, %v8005_v25  ;;  %v8014_v42 = vand.u32 4294901760, %v8013_v55  ;;  %v27839_v55 = vld [vmem:[#allocation8 + $0x138] sm:$0xff] }
 0x6a4   :  { %23200 = vmatpush3.bf16.msra.mxu1 %v22621_v62  ;;  %22626 = vmatprep.subr.bf16.mxu0 %v22625_v20  ;;  %v8000_v62 = vand.u32 4294901760, %v7999_v15  ;;  %v22661_v15 = vpack.c.bf16 %v27540_v23, %v27537_v35  ;;  %v27788_v35 = vld [vmem:[#allocation8 + $0x108] sm:$0xff] }
 0x6a5   :  { %23202 = vmatprep.subr.bf16.mxu1 %v22625_v20  ;;  %v8007_v21 = vand.u32 4294901760, %v8006_v59  ;;  %v22677_v59 = vpack.c.bf16 %v27646_v17, %v27641_v14  ;;  %v27837_v17 = vld [vmem:[#allocation8 + $0x130] sm:$0xff] }
 0x6a6   :  { %v22637_v8 = vpack.c.bf16 %v8000_v62, %v7993_v3  ;;  %v22669_v3 = vpack.c.bf16 %v27607_v57, %v27602_v47  ;;  %v22673_v62 = vpack.c.bf16 %v27627_v63, %v27622_v4  ;;  %v8524_v47 = vand.u32 4294901760, %v27788_v35  ;;  %v27817_v4 = vld [vmem:[#allocation8 + $0x128] sm:$0xff] }
 0x6a7   :  { %22628 = vmatpush3.bf16.msra.mxu0 %v22625_v20  ;;  %v22641_v36 = vpack.c.bf16 %v8014_v42, %v8007_v21  ;;  %v8542_v21 = vand.u32 4294901760, %v27839_v55 }
 0x6a8   :  { %23204 = vmatpush3.bf16.msra.mxu1 %v22625_v20  ;;  %22630 = vmatprep.subr.bf16.mxu0 %v22629_v44  ;;  %v8028_v20 = vand.u32 4294901760, %v8027_v29 }
 0x6a9   :  { %23206 = vmatprep.subr.bf16.mxu1 %v22629_v44 }
 0x6ab   :  { %22632 = vmatpush3.bf16.msra.mxu0 %v22629_v44 }
 0x6ac   :  { %23208 = vmatpush3.bf16.msra.mxu1 %v22629_v44  ;;  %22634 = vmatprep.subr.bf16.mxu0 %v22633_v49  ;;  %v22645_v44 = vpack.c.bf16 %v8028_v20, %v8021_v34  ;;  %v27869_v34 = vld [vmem:[#allocation8 + $0x158] sm:$0xff] }
 0x6ad   :  { %23210 = vmatprep.subr.bf16.mxu1 %v22633_v49  ;;  %v8502_v20 = vld [vmem:[#allocation2 + $0xa] sm:$0xff] }
 0x6af   :  { %22636 = vmatpush3.bf16.msra.mxu0 %v22633_v49 }
 0x6b0   :  { %23212 = vmatpush3.bf16.msra.mxu1 %v22633_v49  ;;  %22638 = vmatprep.subr.bf16.mxu0 %v22637_v8  ;;  %v22665_v49 = vpack.c.bf16 %v27576_v27, %v27571_v10  ;;  %v27802_v27 = vld [vmem:[#allocation8 + $0x110] sm:$0xff] }
 0x6b1   :  { %23214 = vmatprep.subr.bf16.mxu1 %v22637_v8  ;;  %v8527_v57 = vand.u32 4294901760, %v27802_v27 }
 0x6b3   :  { %22640 = vmatpush3.bf16.msra.mxu0 %v22637_v8 }
 0x6b4   :  { %23216 = vmatpush3.bf16.msra.mxu1 %v22637_v8  ;;  %22642 = vmatprep.subr.bf16.mxu0 %v22641_v36  ;;  %v8539_v8 = vand.u32 4294901760, %v27837_v17 }
 0x6b5   :  { %23218 = vmatprep.subr.bf16.mxu1 %v22641_v36 }
 0x6b6   :  { %v27862_v42 = vpack.c.bf16 %v8542_v21, %v8539_v8 }
 0x6b7   :  { %22644 = vmatpush3.bf16.msra.mxu0 %v22641_v36 }
 0x6b8   :  { %23220 = vmatpush3.bf16.msra.mxu1 %v22641_v36  ;;  %22646 = vmatprep.subr.bf16.mxu0 %v22645_v44  ;;  %v27867_v36 = vld [vmem:[#allocation8 + $0x150] sm:$0xff] }
 0x6b9   :  { %23222 = vmatprep.subr.bf16.mxu1 %v22645_v44 }
 0x6bb   :  { %22648 = vmatpush3.bf16.msra.mxu0 %v22645_v44 }
 0x6bc   :  { %23224 = vmatpush3.bf16.msra.mxu1 %v22645_v44  ;;  %22650 = vmatprep.subr.bf16.mxu0 %v22649_v56 }
 0x6bd   :  { %23226 = vmatprep.subr.bf16.mxu1 %v22649_v56 }
 0x6be   :  { %18651 = vmatmul.mubr.f32.vlgmr.msra.gmra.mrb[6].mxu0 %v27468_v9 }
 0x6bf   :  { %19281 = vmatmul.mubr.f32.vlgmr.msra.gmra.mrb[6].mxu1 %v27488_v30  ;;  %22652 = vmatpush3.bf16.msra.mxu0 %v22649_v56 }
 0x6c0   :  { %18685 = vmatprep.mubr.f32.mxu0 %v27367_v46  ;;  %23228 = vmatpush3.bf16.msra.mxu1 %v22649_v56  ;;  %v22713_v46 = vpack.c.bf16 %v7928_v0, %v7921_v50  ;;  %v29219_v50 = vand.u32 4294901760, %v27528_v16  ;;  %v22733_v16 = vpack.c.bf16 %v7998_v12, %v7991_v33  ;;  %v8530_v33 = vand.u32 4294901760, %v27804_v31  ;;  %v27815_v12 = vld [vmem:[#allocation8 + $0x120] sm:$0xff] }
 0x6c1   :  { %19315 = vmatprep.mubr.f32.mxu1 %v27371_v18  ;;  %22654 = vmatprep.subr.bf16.mxu0 %v22653_v1  ;;  %v29215_v18 = vand.u32 4294901760, %v27498_v52  ;;  %v29221_v52 = vand.u32 4294901760, %v27540_v23 }
 0x6c2   :  { %23230 = vmatprep.subr.bf16.mxu1 %v22653_v1  ;;  %v22721_v0 = vpack.c.bf16 %v29219_v50, %v29218_v61  ;;  %v27835_v14 = vpack.c.bf16 %v8530_v33, %v8527_v57  ;;  %v27908_v61 = vld [vmem:[#allocation8 + $0x178] sm:$0xff] }
 0x6c3   :  { %22656 = vmatpush3.bf16.msra.mxu0 %v22653_v1 }
 0x6c4   :  { %23232 = vmatpush3.bf16.msra.mxu1 %v22653_v1  ;;  %22658 = vmatprep.subr.bf16.mxu0 %v22657_v37  ;;  %v8551_v1 = vand.u32 4294901760, %v27867_v36 }
 0x6c5   :  { %23234 = vmatprep.subr.bf16.mxu1 %v22657_v37 }
 0x6c7   :  { %22660 = vmatpush3.bf16.msra.mxu0 %v22657_v37 }
 0x6c8   :  { %23236 = vmatpush3.bf16.msra.mxu1 %v22657_v37  ;;  %22662 = vmatprep.subr.bf16.mxu0 %v22661_v15  ;;  %v8554_v37 = vand.u32 4294901760, %v27869_v34 }
 0x6c9   :  { %23238 = vmatprep.subr.bf16.mxu1 %v22661_v15 }
 0x6cb   :  { %22664 = vmatpush3.bf16.msra.mxu0 %v22661_v15 }
 0x6cc   :  { %23240 = vmatpush3.bf16.msra.mxu1 %v22661_v15  ;;  %22666 = vmatprep.subr.bf16.mxu0 %v22665_v49  ;;  %v27884_v15 = vld [vmem:[#allocation8 + $0x160] sm:$0xff] }
 0x6cd   :  { %23242 = vmatprep.subr.bf16.mxu1 %v22665_v49 }
 0x6cf   :  { %22668 = vmatpush3.bf16.msra.mxu0 %v22665_v49 }
 0x6d0   :  { %23244 = vmatpush3.bf16.msra.mxu1 %v22665_v49  ;;  %22670 = vmatprep.subr.bf16.mxu0 %v22669_v3  ;;  %v27886_v49 = vld [vmem:[#allocation8 + $0x168] sm:$0xff] }
 0x6d1   :  { %23246 = vmatprep.subr.bf16.mxu1 %v22669_v3 }
 0x6d3   :  { %22672 = vmatpush3.bf16.msra.mxu0 %v22669_v3 }
 0x6d4   :  { %23248 = vmatpush3.bf16.msra.mxu1 %v22669_v3  ;;  %22674 = vmatprep.subr.bf16.mxu0 %v22673_v62  ;;  %v27889_v3 = vsub.f32 %v27788_v35, %v8524_v47 }
 0x6d5   :  { %23250 = vmatprep.subr.bf16.mxu1 %v22673_v62 }
 0x6d6   :  { %v8631_v50 = vand.u32 4294901760, %v27889_v3 }
 0x6d7   :  { %22676 = vmatpush3.bf16.msra.mxu0 %v22673_v62 }
 0x6d8   :  { %23252 = vmatpush3.bf16.msra.mxu1 %v22673_v62  ;;  %22678 = vmatprep.subr.bf16.mxu0 %v22677_v59  ;;  %v27892_v62 = vand.u32 4294901760, %v8502_v20 }
 0x6d9   :  { %23254 = vmatprep.subr.bf16.mxu1 %v22677_v59 }
 0x6db   :  { %22680 = vmatpush3.bf16.msra.mxu0 %v22677_v59 }
 0x6dc   :  { %23256 = vmatpush3.bf16.msra.mxu1 %v22677_v59  ;;  %22682 = vmatprep.subr.bf16.mxu0 %v27386_v60  ;;  %v10579_v59 = vld [vmem:[#allocation2 + $0x22] sm:$0xff] }
 0x6dd   :  { %23258 = vmatprep.subr.bf16.mxu1 %v27386_v60 }
 0x6de   :  { %18686 = vmatmul.mubr.f32.vlgmr.msra.gmra.mrb[6].mxu0 %v27501_v5 }
 0x6df   :  { %19316 = vmatmul.mubr.f32.vlgmr.msra.gmra.mrb[6].mxu1 %v27532_v39  ;;  %22684 = vmatpush3.bf16.msra.mxu0 %v27386_v60  ;;  %v22737_v39 = vpack.c.bf16 %v8012_v43, %v8005_v25  ;;  %v8533_v25 = vand.u32 4294901760, %v27815_v12  ;;  %v8536_v43 = vand.u32 4294901760, %v27817_v4 }
 0x6e0   :  { %18720 = vmatprep.mubr.f32.mxu0 %v7900_v38  ;;  %23260 = vmatpush3.bf16.msra.mxu1 %v27386_v60  ;;  %v22717_v38 = vpack.c.bf16 %v29215_v18, %v7935_v6  ;;  %v22741_v6 = vpack.c.bf16 %v8026_v7, %v8019_v41  ;;  %v8560_v18 = vand.u32 4294901760, %v27886_v49 }
 0x6e1   :  { %19350 = vmatprep.mubr.f32.mxu1 %v9977_v19  ;;  %22686 = vmatprep.subr.bf16.mxu0 %v27411_v26  ;;  %v29216_v19 = vand.u32 4294901760, %v27501_v5  ;;  %v22725_v5 = vpack.c.bf16 %v29221_v52, %v29220_v22  ;;  %v27849_v7 = vpack.c.bf16 %v8536_v43, %v8533_v25  ;;  %v27917_v22 = vsub.f32 %v27802_v27, %v8527_v57 }
 0x6e2   :  { %23262 = vmatprep.subr.bf16.mxu1 %v27411_v26  ;;  %v27922_v52 = vsub.f32 %v27804_v31, %v8530_v33  ;;  %v27961_v27 = vsub.f32 %v27837_v17, %v8539_v8  ;;  %v27964_v31 = vsub.f32 %v27839_v55, %v8542_v21 }
 0x6e3   :  { %22688 = vmatpush3.bf16.msra.mxu0 %v27411_v26 }
 0x6e4   :  { %23264 = vmatpush3.bf16.msra.mxu1 %v27411_v26  ;;  %22690 = vmatprep.subr.bf16.mxu0 %v27425_v2  ;;  %v29133_v55 = vand.u32 4294901760, %v27961_v27 }
 0x6e5   :  { %23266 = vmatprep.subr.bf16.mxu1 %v27425_v2 }
 0x6e7   :  { %22692 = vmatpush3.bf16.msra.mxu0 %v27425_v2 }
 0x6e8   :  { %23268 = vmatpush3.bf16.msra.mxu1 %v27425_v2  ;;  %22694 = vmatprep.subr.bf16.mxu0 %v27438_v45 }
 0x6e9   :  { %23270 = vmatprep.subr.bf16.mxu1 %v27438_v45 }
 0x6eb   :  { %22696 = vmatpush3.bf16.msra.mxu0 %v27438_v45 }
 0x6ec   :  { %23272 = vmatpush3.bf16.msra.mxu1 %v27438_v45  ;;  %22698 = vmatprep.subr.bf16.mxu0 %v27456_v28 }
 0x6ed   :  { %23274 = vmatprep.subr.bf16.mxu1 %v27456_v28 }
 0x6ef   :  { %22700 = vmatpush3.bf16.msra.mxu0 %v27456_v28 }
 0x6f0   :  { %23276 = vmatpush3.bf16.msra.mxu1 %v27456_v28  ;;  %22702 = vmatprep.subr.bf16.mxu0 %v27480_v54 }
 0x6f1   :  { %23278 = vmatprep.subr.bf16.mxu1 %v27480_v54 }
 0x6f3   :  { %22704 = vmatpush3.bf16.msra.mxu0 %v27480_v54 }
 0x6f4   :  { %23280 = vmatpush3.bf16.msra.mxu1 %v27480_v54  ;;  %22706 = vmatprep.subr.bf16.mxu0 %v27508_v48 }
 0x6f5   :  { %23282 = vmatprep.subr.bf16.mxu1 %v27508_v48 }
 0x6f7   :  { %22708 = vmatpush3.bf16.msra.mxu0 %v27508_v48 }
 0x6f8   :  { %23284 = vmatpush3.bf16.msra.mxu1 %v27508_v48  ;;  %22710 = vmatprep.subr.bf16.mxu0 %v27547_v53 }
 0x6f9   :  { %23286 = vmatprep.subr.bf16.mxu1 %v27547_v53 }
 0x6fb   :  { %22712 = vmatpush3.bf16.msra.mxu0 %v27547_v53 }
 0x6fc   :  { %23288 = vmatpush3.bf16.msra.mxu1 %v27547_v53  ;;  %22714 = vmatprep.subr.bf16.mxu0 %v22713_v46 }
 0x6fd   :  { %23290 = vmatprep.subr.bf16.mxu1 %v22713_v46 }
 0x6fe   :  { %18721 = vmatmul.mubr.f32.vlgmr.msra.gmra.mrb[6].mxu0 %v29216_v19  ;;  %v27904_v19 = vpack.c.bf16 %v8554_v37, %v8551_v1 }
 0x6ff   :  { %19351 = vmatmul.mubr.f32.vlgmr.msra.gmra.mrb[6].mxu1 %v29217_v24  ;;  %22716 = vmatpush3.bf16.msra.mxu0 %v22713_v46  ;;  %v27906_v24 = vld [vmem:[#allocation8 + $0x170] sm:$0xff] }
 0x700   :  { %18755 = vmatprep.mubr.f32.mxu0 %v27356_v58  ;;  %23292 = vmatpush3.bf16.msra.mxu1 %v22713_v46  ;;  %v8557_v46 = vand.u32 4294901760, %v27884_v15 }
 0x701   :  { %19385 = vmatprep.mubr.f32.mxu1 %v27359_v13  ;;  %22718 = vmatprep.subr.bf16.mxu0 %v22717_v38 }
 0x702   :  { %23294 = vmatprep.subr.bf16.mxu1 %v22717_v38 }
 0x703   :  { %22720 = vmatpush3.bf16.msra.mxu0 %v22717_v38 }
 0x704   :  { %23296 = vmatpush3.bf16.msra.mxu1 %v22717_v38  ;;  %22722 = vmatprep.subr.bf16.mxu0 %v22721_v0 }
 0x705   :  { %23298 = vmatprep.subr.bf16.mxu1 %v22721_v0 }
 0x707   :  { %22724 = vmatpush3.bf16.msra.mxu0 %v22721_v0 }
 0x708   :  { %23300 = vmatpush3.bf16.msra.mxu1 %v22721_v0  ;;  %22726 = vmatprep.subr.bf16.mxu0 %v22725_v5  ;;  %v27912_v0 = vand.u32 4294901760, %v10579_v59 }
 0x709   :  { %23302 = vmatprep.subr.bf16.mxu1 %v22725_v5 }
 0x70a   :  { %v27956_v35 = vsub.f32 %v10579_v59, %v27912_v0 }
 0x70b   :  { %22728 = vmatpush3.bf16.msra.mxu0 %v22725_v5 }
 0x70c   :  { %23304 = vmatpush3.bf16.msra.mxu1 %v22725_v5  ;;  %22730 = vmatprep.subr.bf16.mxu0 %v22729_v40  ;;  %v27925_v5 = vsub.f32 %v8502_v20, %v27892_v62 }
 0x70d   :  { %23306 = vmatprep.subr.bf16.mxu1 %v22729_v40 }
 0x70e   :  { %v29136_v33 = vand.u32 4294901760, %v27925_v5 }
 0x70f   :  { %22732 = vmatpush3.bf16.msra.mxu0 %v22729_v40 }
 0x710   :  { %23308 = vmatpush3.bf16.msra.mxu1 %v22729_v40  ;;  %22734 = vmatprep.subr.bf16.mxu0 %v22733_v16  ;;  %v27932_v40 = vpack.c.bf16 %v8560_v18, %v8557_v46 }
 0x711   :  { %23310 = vmatprep.subr.bf16.mxu1 %v22733_v16 }
 0x713   :  { %22736 = vmatpush3.bf16.msra.mxu0 %v22733_v16 }
 0x714   :  { %23312 = vmatpush3.bf16.msra.mxu1 %v22733_v16  ;;  %22738 = vmatprep.subr.bf16.mxu0 %v22737_v39  ;;  %v8563_v16 = vand.u32 4294901760, %v27906_v24 }
 0x715   :  { %23314 = vmatprep.subr.bf16.mxu1 %v22737_v39 }
 0x717   :  { %22740 = vmatpush3.bf16.msra.mxu0 %v22737_v39 }
 0x718   :  { %23316 = vmatpush3.bf16.msra.mxu1 %v22737_v39  ;;  %22742 = vmatprep.subr.bf16.mxu0 %v22741_v6  ;;  %v8566_v39 = vand.u32 4294901760, %v27908_v61 }
 0x719   :  { %23318 = vmatprep.subr.bf16.mxu1 %v22741_v6 }
 0x71a   :  { %v27971_v57 = vpack.c.bf16 %v8566_v39, %v8563_v16 }
 0x71b   :  { %22744 = vmatpush3.bf16.msra.mxu0 %v22741_v6 }
 0x71c   :  { %23320 = vmatpush3.bf16.msra.mxu1 %v22741_v6  ;;  %22746 = vmatprep.subr.bf16.mxu0 %v27386_v60 }
 0x71d   :  { %23322 = vmatprep.subr.bf16.mxu1 %v27386_v60 }
 0x71e   :  { %18756 = vmatmul.mubr.f32.vlgmr.msra.gmra.mrb[6].mxu0 %v27468_v9 }
 0x71f   :  { %19386 = vmatmul.mubr.f32.vlgmr.msra.gmra.mrb[6].mxu1 %v27488_v30  ;;  %22748 = vmatpush3.bf16.msra.mxu0 %v27386_v60 }
 0x720   :  { %18790 = vmatprep.mubr.f32.mxu0 %v27356_v58  ;;  %23324 = vmatpush3.bf16.msra.mxu1 %v27386_v60  ;;  %v8501_v58 = vld [vmem:[#allocation2 + $0x2] sm:$0xff] }
 0x721   :  { %19420 = vmatprep.mubr.f32.mxu1 %v27359_v13  ;;  %22750 = vmatprep.subr.bf16.mxu0 %v27411_v26  ;;  %v10578_v13 = vld [vmem:[#allocation2 + $0x1a] sm:$0xff]  ;;  %v27780_v60 = vand.u32 4294901760, %v8501_v58 }
 0x722   :  { %23326 = vmatprep.subr.bf16.mxu1 %v27411_v26 }
 0x723   :  { %22752 = vmatpush3.bf16.msra.mxu0 %v27411_v26 }
 0x724   :  { %23328 = vmatpush3.bf16.msra.mxu1 %v27411_v26  ;;  %22754 = vmatprep.subr.bf16.mxu0 %v27425_v2  ;;  %v27783_v26 = vand.u32 4294901760, %v10578_v13 }
 0x725   :  { %23330 = vmatprep.subr.bf16.mxu1 %v27425_v2 }
 0x726   :  { %v27795_v23 = vsub.f32 %v10578_v13, %v27783_v26  ;;  %v27947_v13 = vsub.f32 %v27815_v12, %v8533_v25  ;;  %v29135_v25 = vand.u32 4294901760, %v27956_v35 }
 0x727   :  { %22756 = vmatpush3.bf16.msra.mxu0 %v27425_v2 }
 0x728   :  { %23332 = vmatpush3.bf16.msra.mxu1 %v27425_v2  ;;  %22758 = vmatprep.subr.bf16.mxu0 %v27438_v45  ;;  %v8504_v2 = vld [vmem:[#allocation8 + $0x100] sm:$0xff]  ;;  %v10663_v32 = vand.u32 4294901760, %v27795_v23 }
 0x729   :  { %23334 = vmatprep.subr.bf16.mxu1 %v27438_v45 }
 0x72b   :  { %22760 = vmatpush3.bf16.msra.mxu0 %v27438_v45 }
 0x72c   :  { %23336 = vmatpush3.bf16.msra.mxu1 %v27438_v45  ;;  %22762 = vmatprep.subr.bf16.mxu0 %v27456_v28  ;;  %v27791_v45 = vsub.f32 %v8501_v58, %v27780_v60  ;;  %v8632_v58 = vsub.f32 %v27889_v3, %v8631_v50 }
 0x72d   :  { %23338 = vmatprep.subr.bf16.mxu1 %v27456_v28 }
 0x72e   :  { %v8603_v10 = vand.u32 4294901760, %v27791_v45 }
 0x72f   :  { %22764 = vmatpush3.bf16.msra.mxu0 %v27456_v28 }
 0x730   :  { %23340 = vmatpush3.bf16.msra.mxu1 %v27456_v28  ;;  %22766 = vmatprep.subr.bf16.mxu0 %v27480_v54  ;;  %v8521_v28 = vand.u32 4294901760, %v8504_v2  ;;  %v8604_v63 = vsub.f32 %v27791_v45, %v8603_v10 }
 0x731   :  { %23342 = vmatprep.subr.bf16.mxu1 %v27480_v54 }
 0x732   :  { %v27872_v44 = vsub.f32 %v8504_v2, %v8521_v28  ;;  %v27952_v2 = vsub.f32 %v27817_v4, %v8536_v43  ;;  %v8633_v4 = vand.u32 4294901760, %v8632_v58 }
 0x733   :  { %22768 = vmatpush3.bf16.msra.mxu0 %v27480_v54 }
 0x734   :  { %23344 = vmatpush3.bf16.msra.mxu1 %v27480_v54  ;;  %22770 = vmatprep.subr.bf16.mxu0 %v27508_v48  ;;  %v27810_v54 = vpack.c.bf16 %v8524_v47, %v8521_v28  ;;  %v8624_v38 = vand.u32 4294901760, %v27872_v44  ;;  %v8638_v28 = vand.u32 4294901760, %v27917_v22  ;;  %v29137_v47 = vand.u32 4294901760, %v27922_v52 }
 0x735   :  { %23346 = vmatprep.subr.bf16.mxu1 %v27508_v48 }
 0x736   :  { %v8625_v6 = vsub.f32 %v27872_v44, %v8624_v38  ;;  %v8639_v43 = vsub.f32 %v27917_v22, %v8638_v28  ;;  %v8646_v17 = vsub.f32 %v27922_v52, %v29137_v47 }
 0x737   :  { %22772 = vmatpush3.bf16.msra.mxu0 %v27508_v48 }
 0x738   :  { %23348 = vmatpush3.bf16.msra.mxu1 %v27508_v48  ;;  %22774 = vmatprep.subr.bf16.mxu0 %v27547_v53  ;;  %v10664_v48 = vsub.f32 %v27795_v23, %v10663_v32  ;;  %v8626_v12 = vand.u32 4294901760, %v8625_v6 }
 0x739   :  { %23350 = vmatprep.subr.bf16.mxu1 %v27547_v53 }
 0x73a   :  { %v10665_v41 = vand.u32 4294901760, %v10664_v48  ;;  %v29131_v48 = vand.u32 4294901760, %v27952_v2  ;;  %v22809_v20 = vpack.c.bf16 %v8633_v4, %v8626_v12 }
 0x73b   :  { %22776 = vmatpush3.bf16.msra.mxu0 %v27547_v53 }
 0x73c   :  { %23352 = vmatpush3.bf16.msra.mxu1 %v27547_v53  ;;  %22778 = vmatprep.subr.bf16.mxu0 %v27810_v54  ;;  %v8605_v53 = vand.u32 4294901760, %v8604_v63  ;;  %v29134_v63 = vand.u32 4294901760, %v27947_v13  ;;  %v8660_v6 = vsub.f32 %v27952_v2, %v29131_v48  ;;  %v28026_v48 = vsub.f32 %v27867_v36, %v8551_v1 }
 0x73d   :  { %23354 = vmatprep.subr.bf16.mxu1 %v27810_v54 }
 0x73e   :  { %18791 = vmatmul.mubr.f32.vlgmr.msra.gmra.mrb[6].mxu0 %v27468_v9  ;;  %v27854_v9 = vld [vmem:[#allocation8 + $0x140] sm:$0xff]  ;;  %v8653_v59 = vsub.f32 %v27947_v13, %v29134_v63  ;;  %v8694_v1 = vand.u32 4294901760, %v28026_v48 }
 0x73f   :  { %19421 = vmatmul.mubr.f32.vlgmr.msra.gmra.mrb[6].mxu1 %v27488_v30  ;;  %22780 = vmatpush3.bf16.msra.mxu0 %v27810_v54  ;;  %v27856_v30 = vld [vmem:[#allocation8 + $0x148] sm:$0xff]  ;;  %v8545_v11 = vand.u32 4294901760, %v27854_v9 }
 0x740   :  { %18825 = vmatprep.mubr.f32.mxu0 %v8605_v53  ;;  %23356 = vmatpush3.bf16.msra.mxu1 %v27810_v54  ;;  %v8548_v29 = vand.u32 4294901760, %v27856_v30  ;;  %v29132_v53 = vand.u32 4294901760, %v27964_v31 }
 0x741   :  { %19455 = vmatprep.mubr.f32.mxu1 %v10665_v41  ;;  %22782 = vmatprep.subr.bf16.mxu0 %v27835_v14  ;;  %v8614_v41 = vsub.f32 %v27925_v5, %v29136_v33  ;;  %v27995_v8 = vsub.f32 %v27854_v9, %v8545_v11  ;;  %v10674_v9 = vsub.f32 %v27956_v35, %v29135_v25 }
 0x742   :  { %23358 = vmatprep.subr.bf16.mxu1 %v27835_v14  ;;  %v27880_v56 = vpack.c.bf16 %v8548_v29, %v8545_v11  ;;  %v28000_v21 = vsub.f32 %v27856_v30, %v8548_v29  ;;  %v8640_v30 = vand.u32 4294901760, %v8639_v43  ;;  %v8647_v11 = vand.u32 4294901760, %v8646_v17 }
 0x743   :  { %22784 = vmatpush3.bf16.msra.mxu0 %v27835_v14  ;;  %v8667_v29 = vsub.f32 %v27961_v27, %v29133_v55  ;;  %v8674_v58 = vsub.f32 %v27964_v31, %v29132_v53  ;;  %v8680_v12 = vand.u32 4294901760, %v27995_v8  ;;  %v28031_v43 = vsub.f32 %v27869_v34, %v8554_v37 }
 0x744   :  { %23360 = vmatpush3.bf16.msra.mxu1 %v27835_v14  ;;  %22786 = vmatprep.subr.bf16.mxu0 %v27849_v7  ;;  %v8687_v4 = vand.u32 4294901760, %v28000_v21  ;;  %v8615_v17 = vand.u32 4294901760, %v8614_v41  ;;  %v8654_v53 = vand.u32 4294901760, %v8653_v59  ;;  %v8661_v55 = vand.u32 4294901760, %v8660_v6 }
 0x745   :  { %23362 = vmatprep.subr.bf16.mxu1 %v27849_v7  ;;  %v10675_v63 = vand.u32 4294901760, %v10674_v9  ;;  %v22813_v25 = vpack.c.bf16 %v8647_v11, %v8640_v30  ;;  %v8668_v33 = vand.u32 4294901760, %v8667_v29  ;;  %v8675_v47 = vand.u32 4294901760, %v8674_v58 }
 0x746   :  { %v8681_v36 = vsub.f32 %v27995_v8, %v8680_v12  ;;  %v8688_v34 = vsub.f32 %v28000_v21, %v8687_v4  ;;  %v8701_v37 = vand.u32 4294901760, %v28031_v43  ;;  %v22817_v41 = vpack.c.bf16 %v8661_v55, %v8654_v53 }
 0x747   :  { %22788 = vmatpush3.bf16.msra.mxu0 %v27849_v7  ;;  %v28051_v59 = vsub.f32 %v27886_v49, %v8560_v18  ;;  %v22821_v6 = vpack.c.bf16 %v8675_v47, %v8668_v33  ;;  %v8695_v55 = vsub.f32 %v28026_v48, %v8694_v1  ;;  %v28065_v18 = vsub.f32 %v27906_v24, %v8563_v16 }
 0x748   :  { %23364 = vmatpush3.bf16.msra.mxu1 %v27849_v7  ;;  %22790 = vmatprep.subr.bf16.mxu0 %v27862_v42  ;;  %v8682_v9 = vand.u32 4294901760, %v8681_v36  ;;  %v8689_v30 = vand.u32 4294901760, %v8688_v34  ;;  %v28070_v47 = vsub.f32 %v27908_v61, %v8566_v39 }
 0x749   :  { %23366 = vmatprep.subr.bf16.mxu1 %v27862_v42  ;;  %v8696_v53 = vand.u32 4294901760, %v8695_v55  ;;  %v8722_v16 = vand.u32 4294901760, %v28065_v18  ;;  %v22849_v55 = vpack.c.bf16 %v27952_v2, %v27947_v13 }
 0x74a   :  { %v22825_v33 = vpack.c.bf16 %v8689_v30, %v8682_v9  ;;  %v8729_v61 = vand.u32 4294901760, %v28070_v47  ;;  %v22841_v9 = vpack.c.bf16 %v27889_v3, %v27872_v44  ;;  %v22845_v30 = vpack.c.bf16 %v27922_v52, %v27917_v22 }
 0x74b   :  { %22792 = vmatpush3.bf16.msra.mxu0 %v27862_v42  ;;  %v8723_v58 = vsub.f32 %v28065_v18, %v8722_v16  ;;  %v29224_v44 = vand.u32 4294901760, %v27956_v35  ;;  %v29225_v3 = vand.u32 4294901760, %v27947_v13  ;;  %v29227_v22 = vand.u32 4294901760, %v27961_v27 }
 0x74c   :  { %23368 = vmatpush3.bf16.msra.mxu1 %v27862_v42  ;;  %22794 = vmatprep.subr.bf16.mxu0 %v27880_v56  ;;  %v22921_v13 = vpack.c.bf16 %v8687_v4, %v8680_v12  ;;  %v28250_v12 = vld [vmem:[#allocation9 + $0x30] sm:$0xff]  ;;  %v28252_v4 = vld [vmem:[#allocation9 + $0x38] sm:$0xff] }
 0x74d   :  { %23370 = vmatprep.subr.bf16.mxu1 %v27880_v56  ;;  %v8724_v34 = vand.u32 4294901760, %v8723_v58 }
 0x74f   :  { %22796 = vmatpush3.bf16.msra.mxu0 %v27880_v56 }
 0x750   :  { %23372 = vmatpush3.bf16.msra.mxu1 %v27880_v56  ;;  %22798 = vmatprep.subr.bf16.mxu0 %v27904_v19 }
 0x751   :  { %23374 = vmatprep.subr.bf16.mxu1 %v27904_v19 }
 0x753   :  { %22800 = vmatpush3.bf16.msra.mxu0 %v27904_v19 }
 0x754   :  { %23376 = vmatpush3.bf16.msra.mxu1 %v27904_v19  ;;  %22802 = vmatprep.subr.bf16.mxu0 %v27932_v40 }
 0x755   :  { %23378 = vmatprep.subr.bf16.mxu1 %v27932_v40 }
 0x757   :  { %22804 = vmatpush3.bf16.msra.mxu0 %v27932_v40 }
 0x758   :  { %23380 = vmatpush3.bf16.msra.mxu1 %v27932_v40  ;;  %22806 = vmatprep.subr.bf16.mxu0 %v27971_v57 }
 0x759   :  { %23382 = vmatprep.subr.bf16.mxu1 %v27971_v57 }
 0x75b   :  { %22808 = vmatpush3.bf16.msra.mxu0 %v27971_v57 }
 0x75c   :  { %23384 = vmatpush3.bf16.msra.mxu1 %v27971_v57  ;;  %22810 = vmatprep.subr.bf16.mxu0 %v22809_v20 }
 0x75d   :  { %23386 = vmatprep.subr.bf16.mxu1 %v22809_v20 }
 0x75e   :  { %18826 = vmatmul.mubr.f32.vlgmr.msra.gmra.mrb[6].mxu0 %v8615_v17  ;;  %v8730_v17 = vsub.f32 %v28070_v47, %v8729_v61 }
 0x75f   :  { %19456 = vmatmul.mubr.f32.vlgmr.msra.gmra.mrb[6].mxu1 %v10675_v63  ;;  %22812 = vmatpush3.bf16.msra.mxu0 %v22809_v20  ;;  %v28046_v63 = vsub.f32 %v27884_v15, %v8557_v46  ;;  %v8702_v15 = vsub.f32 %v28031_v43, %v8701_v37  ;;  %v8715_v46 = vand.u32 4294901760, %v28051_v59 }
 0x760   :  { %18860 = vmatprep.mubr.f32.mxu0 %v27780_v60  ;;  %23388 = vmatpush3.bf16.msra.mxu1 %v22809_v20 }
 0x761   :  { %19490 = vmatprep.mubr.f32.mxu1 %v27783_v26  ;;  %22814 = vmatprep.subr.bf16.mxu0 %v22813_v25  ;;  %v8708_v49 = vand.u32 4294901760, %v28046_v63  ;;  %v8716_v24 = vsub.f32 %v28051_v59, %v8715_v46 }
 0x762   :  { %23390 = vmatprep.subr.bf16.mxu1 %v22813_v25 }
 0x763   :  { %22816 = vmatpush3.bf16.msra.mxu0 %v22813_v25  ;;  %v8709_v20 = vsub.f32 %v28046_v63, %v8708_v49  ;;  %v8717_v29 = vand.u32 4294901760, %v8716_v24 }
 0x764   :  { %23392 = vmatpush3.bf16.msra.mxu1 %v22813_v25  ;;  %22818 = vmatprep.subr.bf16.mxu0 %v22817_v41  ;;  %v8703_v25 = vand.u32 4294901760, %v8702_v15  ;;  %v22853_v15 = vpack.c.bf16 %v27964_v31, %v27961_v27 }
 0x765   :  { %23394 = vmatprep.subr.bf16.mxu1 %v22817_v41  ;;  %v8710_v11 = vand.u32 4294901760, %v8709_v20  ;;  %v22869_v20 = vpack.c.bf16 %v28070_v47, %v28065_v18  ;;  %v11279_v18 = vld [vmem:[#allocation9 + $0x58] sm:$0xff] }
 0x766   :  { %v22829_v39 = vpack.c.bf16 %v8703_v25, %v8696_v53  ;;  %v22861_v53 = vpack.c.bf16 %v28031_v43, %v28026_v48  ;;  %v22865_v25 = vpack.c.bf16 %v28051_v59, %v28046_v63  ;;  %v28236_v48 = vld [vmem:[#allocation9 + $0x28] sm:$0xff]  ;;  %v11303_v43 = vand.u32 4294901760, %v28250_v12 }
 0x767   :  { %22820 = vmatpush3.bf16.msra.mxu0 %v22817_v41  ;;  %v22833_v36 = vpack.c.bf16 %v8717_v29, %v8710_v11  ;;  %v11318_v24 = vand.u32 4294901760, %v11279_v18 }
 0x768   :  { %23396 = vmatpush3.bf16.msra.mxu1 %v22817_v41  ;;  %22822 = vmatprep.subr.bf16.mxu0 %v22821_v6  ;;  %v8731_v41 = vand.u32 4294901760, %v8730_v17 }
 0x769   :  { %23398 = vmatprep.subr.bf16.mxu1 %v22821_v6 }
 0x76b   :  { %22824 = vmatpush3.bf16.msra.mxu0 %v22821_v6 }
 0x76c   :  { %23400 = vmatpush3.bf16.msra.mxu1 %v22821_v6  ;;  %22826 = vmatprep.subr.bf16.mxu0 %v22825_v33  ;;  %v22837_v6 = vpack.c.bf16 %v8731_v41, %v8724_v34  ;;  %v11282_v34 = vld [vmem:[#allocation9 + $0x70] sm:$0xff]  ;;  %v11283_v41 = vld [vmem:[#allocation9 + $0x78] sm:$0xff] }
 0x76d   :  { %23402 = vmatprep.subr.bf16.mxu1 %v22825_v33 }
 0x76f   :  { %22828 = vmatpush3.bf16.msra.mxu0 %v22825_v33 }
 0x770   :  { %23404 = vmatpush3.bf16.msra.mxu1 %v22825_v33  ;;  %22830 = vmatprep.subr.bf16.mxu0 %v22829_v39  ;;  %v22857_v33 = vpack.c.bf16 %v28000_v21, %v27995_v8  ;;  %v11300_v21 = vand.u32 4294901760, %v28236_v48 }
 0x771   :  { %23406 = vmatprep.subr.bf16.mxu1 %v22829_v39 }
 0x773   :  { %22832 = vmatpush3.bf16.msra.mxu0 %v22829_v39 }
 0x774   :  { %23408 = vmatpush3.bf16.msra.mxu1 %v22829_v39  ;;  %22834 = vmatprep.subr.bf16.mxu0 %v22833_v36  ;;  %v11281_v39 = vld [vmem:[#allocation9 + $0x68] sm:$0xff] }
 0x775   :  { %23410 = vmatprep.subr.bf16.mxu1 %v22833_v36  ;;  %v11324_v29 = vand.u32 4294901760, %v11281_v39 }
 0x777   :  { %22836 = vmatpush3.bf16.msra.mxu0 %v22833_v36 }
 0x778   :  { %23412 = vmatpush3.bf16.msra.mxu1 %v22833_v36  ;;  %22838 = vmatprep.subr.bf16.mxu0 %v22837_v6 }
 0x779   :  { %23414 = vmatprep.subr.bf16.mxu1 %v22837_v6 }
 0x77b   :  { %22840 = vmatpush3.bf16.msra.mxu0 %v22837_v6 }
 0x77c   :  { %23416 = vmatpush3.bf16.msra.mxu1 %v22837_v6  ;;  %22842 = vmatprep.subr.bf16.mxu0 %v22841_v9  ;;  %v11327_v6 = vand.u32 4294901760, %v11282_v34 }
 0x77d   :  { %23418 = vmatprep.subr.bf16.mxu1 %v22841_v9 }
 0x77e   :  { %18861 = vmatmul.mubr.f32.vlgmr.msra.gmra.mrb[6].mxu0 %v27892_v62 }
 0x77f   :  { %19491 = vmatmul.mubr.f32.vlgmr.msra.gmra.mrb[6].mxu1 %v27912_v0  ;;  %22844 = vmatpush3.bf16.msra.mxu0 %v22841_v9 }
 0x780   :  { %18895 = vmatprep.mubr.f32.mxu0 %v27791_v45  ;;  %23420 = vmatpush3.bf16.msra.mxu1 %v22841_v9  ;;  %v22905_v45 = vpack.c.bf16 %v8631_v50, %v8624_v38  ;;  %v29226_v38 = vand.u32 4294901760, %v27952_v2  ;;  %v22925_v2 = vpack.c.bf16 %v8701_v37, %v8694_v1  ;;  %v11306_v1 = vand.u32 4294901760, %v28252_v4 }
 0x781   :  { %19525 = vmatprep.mubr.f32.mxu1 %v27795_v23  ;;  %22846 = vmatprep.subr.bf16.mxu0 %v22845_v30  ;;  %v29222_v23 = vand.u32 4294901760, %v27922_v52  ;;  %v29228_v52 = vand.u32 4294901760, %v27964_v31  ;;  %v28234_v31 = vld [vmem:[#allocation9 + $0x20] sm:$0xff]  ;;  %v11330_v9 = vand.u32 4294901760, %v11283_v41 }
 0x782   :  { %23422 = vmatprep.subr.bf16.mxu1 %v22845_v30  ;;  %v22913_v50 = vpack.c.bf16 %v29226_v38, %v29225_v3  ;;  %v11297_v8 = vand.u32 4294901760, %v28234_v31  ;;  %v28279_v37 = vpack.c.bf16 %v11306_v1, %v11303_v43 }
 0x783   :  { %22848 = vmatpush3.bf16.msra.mxu0 %v22845_v30 }
 0x784   :  { %23424 = vmatpush3.bf16.msra.mxu1 %v22845_v30  ;;  %22850 = vmatprep.subr.bf16.mxu0 %v22849_v55 }
 0x785   :  { %23426 = vmatprep.subr.bf16.mxu1 %v22849_v55 }
 0x787   :  { %22852 = vmatpush3.bf16.msra.mxu0 %v22849_v55 }
 0x788   :  { %23428 = vmatpush3.bf16.msra.mxu1 %v22849_v55  ;;  %22854 = vmatprep.subr.bf16.mxu0 %v22853_v15 }
 0x789   :  { %23430 = vmatprep.subr.bf16.mxu1 %v22853_v15 }
 0x78b   :  { %22856 = vmatpush3.bf16.msra.mxu0 %v22853_v15 }
 0x78c   :  { %23432 = vmatpush3.bf16.msra.mxu1 %v22853_v15  ;;  %22858 = vmatprep.subr.bf16.mxu0 %v22857_v33  ;;  %v28324_v15 = vpack.c.bf16 %v11330_v9, %v11327_v6 }
 0x78d   :  { %23434 = vmatprep.subr.bf16.mxu1 %v22857_v33 }
 0x78f   :  { %22860 = vmatpush3.bf16.msra.mxu0 %v22857_v33 }
 0x790   :  { %23436 = vmatpush3.bf16.msra.mxu1 %v22857_v33  ;;  %22862 = vmatprep.subr.bf16.mxu0 %v22861_v53 }
 0x791   :  { %23438 = vmatprep.subr.bf16.mxu1 %v22861_v53 }
 0x793   :  { %22864 = vmatpush3.bf16.msra.mxu0 %v22861_v53 }
 0x794   :  { %23440 = vmatpush3.bf16.msra.mxu1 %v22861_v53  ;;  %22866 = vmatprep.subr.bf16.mxu0 %v22865_v25 }
 0x795   :  { %23442 = vmatprep.subr.bf16.mxu1 %v22865_v25 }
 0x797   :  { %22868 = vmatpush3.bf16.msra.mxu0 %v22865_v25 }
 0x798   :  { %23444 = vmatpush3.bf16.msra.mxu1 %v22865_v25  ;;  %22870 = vmatprep.subr.bf16.mxu0 %v22869_v20 }
 0x799   :  { %23446 = vmatprep.subr.bf16.mxu1 %v22869_v20 }
 0x79b   :  { %22872 = vmatpush3.bf16.msra.mxu0 %v22869_v20 }
 0x79c   :  { %23448 = vmatpush3.bf16.msra.mxu1 %v22869_v20  ;;  %22874 = vmatprep.subr.bf16.mxu0 %v27810_v54 }
 0x79d   :  { %23450 = vmatprep.subr.bf16.mxu1 %v27810_v54 }
 0x79e   :  { %18896 = vmatmul.mubr.f32.vlgmr.msra.gmra.mrb[6].mxu0 %v27925_v5 }
 0x79f   :  { %19526 = vmatmul.mubr.f32.vlgmr.msra.gmra.mrb[6].mxu1 %v27956_v35  ;;  %22876 = vmatpush3.bf16.msra.mxu0 %v27810_v54  ;;  %v22929_v35 = vpack.c.bf16 %v8715_v46, %v8708_v49  ;;  %v11278_v46 = vld [vmem:[#allocation9 + $0x50] sm:$0xff] }
 0x7a0   :  { %18930 = vmatprep.mubr.f32.mxu0 %v8603_v10  ;;  %23452 = vmatpush3.bf16.msra.mxu1 %v27810_v54  ;;  %v22909_v10 = vpack.c.bf16 %v29222_v23, %v8638_v28  ;;  %v22933_v28 = vpack.c.bf16 %v8729_v61, %v8722_v16  ;;  %v11315_v47 = vand.u32 4294901760, %v11278_v46  ;;  %v11280_v61 = vld [vmem:[#allocation9 + $0x60] sm:$0xff] }
 0x7a1   :  { %19560 = vmatprep.mubr.f32.mxu1 %v10663_v32  ;;  %22878 = vmatprep.subr.bf16.mxu0 %v27835_v14  ;;  %v29223_v32 = vand.u32 4294901760, %v27925_v5  ;;  %v22917_v5 = vpack.c.bf16 %v29228_v52, %v29227_v22  ;;  %v11321_v11 = vand.u32 4294901760, %v11280_v61  ;;  %v28354_v22 = vsub.f32 %v11281_v39, %v11324_v29 }
 0x7a2   :  { %23454 = vmatprep.subr.bf16.mxu1 %v27835_v14  ;;  %v28300_v16 = vpack.c.bf16 %v11318_v24, %v11315_v47  ;;  %v28340_v23 = vsub.f32 %v11278_v46, %v11315_v47 }
 0x7a3   :  { %22880 = vmatpush3.bf16.msra.mxu0 %v27835_v14  ;;  %v28306_v58 = vpack.c.bf16 %v11324_v29, %v11321_v11 }
 0x7a4   :  { %23456 = vmatpush3.bf16.msra.mxu1 %v27835_v14  ;;  %22882 = vmatprep.subr.bf16.mxu0 %v27849_v7 }
 0x7a5   :  { %23458 = vmatprep.subr.bf16.mxu1 %v27849_v7 }
 0x7a7   :  { %22884 = vmatpush3.bf16.msra.mxu0 %v27849_v7 }
 0x7a8   :  { %23460 = vmatpush3.bf16.msra.mxu1 %v27849_v7  ;;  %22886 = vmatprep.subr.bf16.mxu0 %v27862_v42 }
 0x7a9   :  { %23462 = vmatprep.subr.bf16.mxu1 %v27862_v42 }
 0x7ab   :  { %22888 = vmatpush3.bf16.msra.mxu0 %v27862_v42 }
 0x7ac   :  { %23464 = vmatpush3.bf16.msra.mxu1 %v27862_v42  ;;  %22890 = vmatprep.subr.bf16.mxu0 %v27880_v56 }
 0x7ad   :  { %23466 = vmatprep.subr.bf16.mxu1 %v27880_v56 }
 0x7af   :  { %22892 = vmatpush3.bf16.msra.mxu0 %v27880_v56 }
 0x7b0   :  { %23468 = vmatpush3.bf16.msra.mxu1 %v27880_v56  ;;  %22894 = vmatprep.subr.bf16.mxu0 %v27904_v19 }
 0x7b1   :  { %23470 = vmatprep.subr.bf16.mxu1 %v27904_v19 }
 0x7b3   :  { %22896 = vmatpush3.bf16.msra.mxu0 %v27904_v19 }
 0x7b4   :  { %23472 = vmatpush3.bf16.msra.mxu1 %v27904_v19  ;;  %22898 = vmatprep.subr.bf16.mxu0 %v27932_v40 }
 0x7b5   :  { %23474 = vmatprep.subr.bf16.mxu1 %v27932_v40 }
 0x7b7   :  { %22900 = vmatpush3.bf16.msra.mxu0 %v27932_v40 }
 0x7b8   :  { %23476 = vmatpush3.bf16.msra.mxu1 %v27932_v40  ;;  %22902 = vmatprep.subr.bf16.mxu0 %v27971_v57 }
 0x7b9   :  { %23478 = vmatprep.subr.bf16.mxu1 %v27971_v57 }
 0x7bb   :  { %22904 = vmatpush3.bf16.msra.mxu0 %v27971_v57 }
 0x7bc   :  { %23480 = vmatpush3.bf16.msra.mxu1 %v27971_v57  ;;  %22906 = vmatprep.subr.bf16.mxu0 %v22905_v45 }
 0x7bd   :  { %23482 = vmatprep.subr.bf16.mxu1 %v22905_v45 }
 0x7be   :  { %18931 = vmatmul.mubr.f32.vlgmr.msra.gmra.mrb[6].mxu0 %v29223_v32  ;;  %v29143_v32 = vand.u32 4294901760, %v28340_v23 }
 0x7bf   :  { %19561 = vmatmul.mubr.f32.vlgmr.msra.gmra.mrb[6].mxu1 %v29224_v44  ;;  %22908 = vmatpush3.bf16.msra.mxu0 %v22905_v45 }
 0x7c0   :  { %18965 = vmatprep.mubr.f32.mxu0 %v27780_v60  ;;  %23484 = vmatpush3.bf16.msra.mxu1 %v22905_v45  ;;  %v11459_v3 = vsub.f32 %v28340_v23, %v29143_v32 }
 0x7c1   :  { %19595 = vmatprep.mubr.f32.mxu1 %v27783_v26  ;;  %22910 = vmatprep.subr.bf16.mxu0 %v22909_v10 }
 0x7c2   :  { %23486 = vmatprep.subr.bf16.mxu1 %v22909_v10  ;;  %v11460_v52 = vand.u32 4294901760, %v11459_v3 }
 0x7c3   :  { %22912 = vmatpush3.bf16.msra.mxu0 %v22909_v10 }
 0x7c4   :  { %23488 = vmatpush3.bf16.msra.mxu1 %v22909_v10  ;;  %22914 = vmatprep.subr.bf16.mxu0 %v22913_v50  ;;  %v28342_v10 = vsub.f32 %v11279_v18, %v11318_v24 }
 0x7c5   :  { %23490 = vmatprep.subr.bf16.mxu1 %v22913_v50 }
 0x7c6   :  { %v29142_v44 = vand.u32 4294901760, %v28342_v10 }
 0x7c7   :  { %22916 = vmatpush3.bf16.msra.mxu0 %v22913_v50 }
 0x7c8   :  { %23492 = vmatpush3.bf16.msra.mxu1 %v22913_v50  ;;  %22918 = vmatprep.subr.bf16.mxu0 %v22917_v5  ;;  %v11466_v38 = vsub.f32 %v28342_v10, %v29142_v44  ;;  %v28352_v50 = vsub.f32 %v11280_v61, %v11321_v11 }
 0x7c9   :  { %23494 = vmatprep.subr.bf16.mxu1 %v22917_v5 }
 0x7cb   :  { %22920 = vmatpush3.bf16.msra.mxu0 %v22917_v5 }
 0x7cc   :  { %23496 = vmatpush3.bf16.msra.mxu1 %v22917_v5  ;;  %22922 = vmatprep.subr.bf16.mxu0 %v22921_v13  ;;  %v11467_v5 = vand.u32 4294901760, %v11466_v38  ;;  %v28413_v38 = vsub.f32 %v28234_v31, %v11297_v8 }
 0x7cd   :  { %23498 = vmatprep.subr.bf16.mxu1 %v22921_v13 }
 0x7cf   :  { %22924 = vmatpush3.bf16.msra.mxu0 %v22921_v13 }
 0x7d0   :  { %23500 = vmatpush3.bf16.msra.mxu1 %v22921_v13  ;;  %22926 = vmatprep.subr.bf16.mxu0 %v22925_v2  ;;  %v29141_v13 = vand.u32 4294901760, %v28352_v50 }
 0x7d1   :  { %23502 = vmatprep.subr.bf16.mxu1 %v22925_v2 }
 0x7d3   :  { %22928 = vmatpush3.bf16.msra.mxu0 %v22925_v2 }
 0x7d4   :  { %23504 = vmatpush3.bf16.msra.mxu1 %v22925_v2  ;;  %22930 = vmatprep.subr.bf16.mxu0 %v22929_v35  ;;  %v29140_v2 = vand.u32 4294901760, %v28354_v22 }
 0x7d5   :  { %23506 = vmatprep.subr.bf16.mxu1 %v22929_v35 }
 0x7d7   :  { %22932 = vmatpush3.bf16.msra.mxu0 %v22929_v35 }
 0x7d8   :  { %23508 = vmatpush3.bf16.msra.mxu1 %v22929_v35  ;;  %22934 = vmatprep.subr.bf16.mxu0 %v22933_v28  ;;  %v28358_v35 = vpack.c.bf16 %v11467_v5, %v11460_v52  ;;  %v28418_v52 = vsub.f32 %v28236_v48, %v11300_v21 }
 0x7d9   :  { %23510 = vmatprep.subr.bf16.mxu1 %v22933_v28 }
 0x7da   :  { %v29145_v5 = vand.u32 4294901760, %v28418_v52 }
 0x7db   :  { %22936 = vmatpush3.bf16.msra.mxu0 %v22933_v28 }
 0x7dc   :  { %23512 = vmatpush3.bf16.msra.mxu1 %v22933_v28  ;;  %22938 = vmatprep.subr.bf16.mxu0 %v27810_v54  ;;  %v11473_v28 = vsub.f32 %v28352_v50, %v29141_v13 }
 0x7dd   :  { %23514 = vmatprep.subr.bf16.mxu1 %v27810_v54 }
 0x7de   :  { %18966 = vmatmul.mubr.f32.vlgmr.msra.gmra.mrb[6].mxu0 %v27892_v62 }
 0x7df   :  { %19596 = vmatmul.mubr.f32.vlgmr.msra.gmra.mrb[6].mxu1 %v27912_v0  ;;  %22940 = vmatpush3.bf16.msra.mxu0 %v27810_v54 }
 0x7e0   :  { %19000 = vmatprep.mubr.f32.mxu0 %v27780_v60  ;;  %23516 = vmatpush3.bf16.msra.mxu1 %v27810_v54  ;;  %v28208_v60 = vld [vmem:[#allocation9] sm:$0xff] }
 0x7e1   :  { %19630 = vmatprep.mubr.f32.mxu1 %v27783_v26  ;;  %22942 = vmatprep.subr.bf16.mxu0 %v27835_v14  ;;  %v28210_v26 = vld [vmem:[#allocation9 + $0x8] sm:$0xff]  ;;  %v11285_v54 = vand.u32 4294901760, %v28208_v60 }
 0x7e2   :  { %23518 = vmatprep.subr.bf16.mxu1 %v27835_v14 }
 0x7e3   :  { %22944 = vmatpush3.bf16.msra.mxu0 %v27835_v14  ;;  %v28311_v17 = vsub.f32 %v28208_v60, %v11285_v54  ;;  %v11480_v60 = vsub.f32 %v28354_v22, %v29140_v2  ;;  %v11424_v2 = vsub.f32 %v28418_v52, %v29145_v5 }
 0x7e4   :  { %23520 = vmatpush3.bf16.msra.mxu1 %v27835_v14  ;;  %22946 = vmatprep.subr.bf16.mxu0 %v27849_v7  ;;  %v11288_v14 = vand.u32 4294901760, %v28210_v26 }
 0x7e5   :  { %23522 = vmatprep.subr.bf16.mxu1 %v27849_v7  ;;  %v29150_v30 = vand.u32 4294901760, %v28311_v17  ;;  %v11481_v46 = vand.u32 4294901760, %v11480_v60 }
 0x7e6   :  { %v28316_v36 = vsub.f32 %v28210_v26, %v11288_v14  ;;  %v28366_v26 = vsub.f32 %v11282_v34, %v11327_v6  ;;  %v28388_v6 = vpack.c.bf16 %v28342_v10, %v28340_v23 }
 0x7e7   :  { %22948 = vmatpush3.bf16.msra.mxu0 %v27849_v7  ;;  %v11389_v33 = vsub.f32 %v28311_v17, %v29150_v30 }
 0x7e8   :  { %23524 = vmatpush3.bf16.msra.mxu1 %v27849_v7  ;;  %22950 = vmatprep.subr.bf16.mxu0 %v27862_v42  ;;  %v28218_v7 = vld [vmem:[#allocation9 + $0x10] sm:$0xff]  ;;  %v29149_v55 = vand.u32 4294901760, %v28316_v36  ;;  %v29139_v18 = vand.u32 4294901760, %v28366_v26 }
 0x7e9   :  { %23526 = vmatprep.subr.bf16.mxu1 %v27862_v42  ;;  %v11390_v25 = vand.u32 4294901760, %v11389_v33 }
 0x7ea   :  { %v11396_v53 = vsub.f32 %v28316_v36, %v29149_v55  ;;  %v11487_v61 = vsub.f32 %v28366_v26, %v29139_v18  ;;  %v11425_v55 = vand.u32 4294901760, %v11424_v2 }
 0x7eb   :  { %22952 = vmatpush3.bf16.msra.mxu0 %v27862_v42 }
 0x7ec   :  { %23528 = vmatpush3.bf16.msra.mxu1 %v27862_v42  ;;  %22954 = vmatprep.subr.bf16.mxu0 %v27880_v56  ;;  %v28220_v42 = vld [vmem:[#allocation9 + $0x18] sm:$0xff]  ;;  %v11397_v20 = vand.u32 4294901760, %v11396_v53  ;;  %v11488_v11 = vand.u32 4294901760, %v11487_v61  ;;  %v28454_v61 = vsub.f32 %v28252_v4, %v11306_v1 }
 0x7ed   :  { %23530 = vmatprep.subr.bf16.mxu1 %v27880_v56  ;;  %v11294_v27 = vand.u32 4294901760, %v28220_v42 }
 0x7ee   :  { %v28336_v45 = vpack.c.bf16 %v11397_v20, %v11390_v25 }
 0x7ef   :  { %22956 = vmatpush3.bf16.msra.mxu0 %v27880_v56  ;;  %v28406_v25 = vsub.f32 %v28220_v42, %v11294_v27 }
 0x7f0   :  { %23532 = vmatpush3.bf16.msra.mxu1 %v27880_v56  ;;  %22958 = vmatprep.subr.bf16.mxu0 %v27904_v19  ;;  %v28229_v56 = vpack.c.bf16 %v11288_v14, %v11285_v54  ;;  %v28368_v54 = vsub.f32 %v11283_v41, %v11330_v9  ;;  %v11474_v14 = vand.u32 4294901760, %v11473_v28  ;;  %v28384_v41 = vpack.c.bf16 %v28316_v36, %v28311_v17 }
 0x7f1   :  { %23534 = vmatprep.subr.bf16.mxu1 %v27904_v19  ;;  %v28392_v9 = vpack.c.bf16 %v28354_v22, %v28352_v50  ;;  %v29146_v3 = vand.u32 4294901760, %v28406_v25 }
 0x7f2   :  { %v29138_v47 = vand.u32 4294901760, %v28368_v54  ;;  %v28372_v24 = vpack.c.bf16 %v11481_v46, %v11474_v14  ;;  %v28396_v33 = vpack.c.bf16 %v28368_v54, %v28366_v26  ;;  %v28449_v46 = vsub.f32 %v28250_v12, %v11303_v43 }
 0x7f3   :  { %22960 = vmatpush3.bf16.msra.mxu0 %v27904_v19 }
 0x7f4   :  { %23536 = vmatpush3.bf16.msra.mxu1 %v27904_v19  ;;  %22962 = vmatprep.subr.bf16.mxu0 %v27932_v40  ;;  %v11291_v19 = vand.u32 4294901760, %v28218_v7  ;;  %v11494_v39 = vsub.f32 %v28368_v54, %v29138_v47 }
 0x7f5   :  { %23538 = vmatprep.subr.bf16.mxu1 %v27932_v40 }
 0x7f6   :  { %v11495_v29 = vand.u32 4294901760, %v11494_v39  ;;  %v28401_v53 = vsub.f32 %v28218_v7, %v11291_v19 }
 0x7f7   :  { %22964 = vmatpush3.bf16.msra.mxu0 %v27932_v40 }
 0x7f8   :  { %23540 = vmatpush3.bf16.msra.mxu1 %v27932_v40  ;;  %22966 = vmatprep.subr.bf16.mxu0 %v27971_v57  ;;  %v28245_v40 = vpack.c.bf16 %v11294_v27, %v11291_v19  ;;  %v28380_v34 = vpack.c.bf16 %v11495_v29, %v11488_v11  ;;  %v29147_v20 = vand.u32 4294901760, %v28401_v53  ;;  %v11410_v19 = vsub.f32 %v28406_v25, %v29146_v3 }
 0x7f9   :  { %23542 = vmatprep.subr.bf16.mxu1 %v27971_v57 }
 0x7fa   :  { %v11403_v42 = vsub.f32 %v28401_v53, %v29147_v20  ;;  %v11411_v12 = vand.u32 4294901760, %v11410_v19  ;;  %v29153_v19 = vand.u32 4294901760, %v28454_v61 }
 0x7fb   :  { %22968 = vmatpush3.bf16.msra.mxu0 %v27971_v57 }
 0x7fc   :  { %23544 = vmatpush3.bf16.msra.mxu1 %v27971_v57  ;;  %23546 = vmatprep.subr.bf16.mxu0 %v28229_v56  ;;  %v28263_v57 = vpack.c.bf16 %v11300_v21, %v11297_v8  ;;  %v29144_v21 = vand.u32 4294901760, %v28413_v38  ;;  %v11404_v18 = vand.u32 4294901760, %v11403_v42  ;;  %v29152_v42 = vand.u32 4294901760, %v28449_v46 }
 0x7fd   :  { %23738 = vmatprep.subr.bf16.mxu1 %v28229_v56 }
 0x7fe   :  { %19001 = vmatmul.mubr.f32.vlgmr.msra.gmra.mrb[6].mxu0 %v27892_v62  ;;  %v28268_v62 = vld [vmem:[#allocation9 + $0x40] sm:$0xff]  ;;  %v11417_v1 = vsub.f32 %v28413_v38, %v29144_v21  ;;  %v28502_v20 = vpack.c.bf16 %v11411_v12, %v11404_v18  ;;  %v11438_v18 = vsub.f32 %v28454_v61, %v29153_v19 }
 0x7ff   :  { %19631 = vmatmul.mubr.f32.vlgmr.msra.gmra.mrb[6].mxu1 %v27912_v0  ;;  %23548 = vmatpush3.bf16.msra.mxu0 %v28229_v56  ;;  %v28270_v0 = vld [vmem:[#allocation9 + $0x48] sm:$0xff]  ;;  %v11309_v63 = vand.u32 4294901760, %v28268_v62 }
 0x800   :  { %23740 = vmatpush3.bf16.msra.mxu1 %v28229_v56  ;;  %23550 = vmatprep.subr.bf16.mxu0 %v28245_v40  ;;  %v11312_v59 = vand.u32 4294901760, %v28270_v0 }
 0x801   :  { %23742 = vmatprep.subr.bf16.mxu1 %v28245_v40  ;;  %v28491_v21 = vsub.f32 %v28268_v62, %v11309_v63 }
 0x802   :  { %v28291_v49 = vpack.c.bf16 %v11312_v59, %v11309_v63  ;;  %v11431_v63 = vsub.f32 %v28449_v46, %v29152_v42  ;;  %v11439_v42 = vand.u32 4294901760, %v11438_v18  ;;  %v29232_v18 = vand.u32 4294901760, %v28406_v25 }
 0x803   :  { %23552 = vmatpush3.bf16.msra.mxu0 %v28245_v40  ;;  %v11444_v2 = vand.u32 4294901760, %v28491_v21 }
 0x804   :  { %23744 = vmatpush3.bf16.msra.mxu1 %v28245_v40  ;;  %23554 = vmatprep.subr.bf16.mxu0 %v28263_v57 }
 0x805   :  { %23746 = vmatprep.subr.bf16.mxu1 %v28263_v57  ;;  %v11445_v19 = vsub.f32 %v28491_v21, %v11444_v2 }
 0x807   :  { %23556 = vmatpush3.bf16.msra.mxu0 %v28263_v57 }
 0x808   :  { %23748 = vmatpush3.bf16.msra.mxu1 %v28263_v57  ;;  %23558 = vmatprep.subr.bf16.mxu0 %v28279_v37 }
 0x809   :  { %23750 = vmatprep.subr.bf16.mxu1 %v28279_v37 }
 0x80b   :  { %23560 = vmatpush3.bf16.msra.mxu0 %v28279_v37 }
 0x80c   :  { %23752 = vmatpush3.bf16.msra.mxu1 %v28279_v37  ;;  %23562 = vmatprep.subr.bf16.mxu0 %v28291_v49 }
 0x80d   :  { %23754 = vmatprep.subr.bf16.mxu1 %v28291_v49 }
 0x80f   :  { %23564 = vmatpush3.bf16.msra.mxu0 %v28291_v49 }
 0x810   :  { %23756 = vmatpush3.bf16.msra.mxu1 %v28291_v49  ;;  %23566 = vmatprep.subr.bf16.mxu0 %v28300_v16 }
 0x811   :  { %23758 = vmatprep.subr.bf16.mxu1 %v28300_v16 }
 0x813   :  { %23568 = vmatpush3.bf16.msra.mxu0 %v28300_v16 }
 0x814   :  { %23760 = vmatpush3.bf16.msra.mxu1 %v28300_v16  ;;  %23570 = vmatprep.subr.bf16.mxu0 %v28306_v58 }
 0x815   :  { %23762 = vmatprep.subr.bf16.mxu1 %v28306_v58 }
 0x817   :  { %23572 = vmatpush3.bf16.msra.mxu0 %v28306_v58 }
 0x818   :  { %23764 = vmatpush3.bf16.msra.mxu1 %v28306_v58  ;;  %23574 = vmatprep.subr.bf16.mxu0 %v28324_v15 }
 0x819   :  { %23766 = vmatprep.subr.bf16.mxu1 %v28324_v15 }
 0x81b   :  { %23576 = vmatpush3.bf16.msra.mxu0 %v28324_v15 }
 0x81c   :  { %23768 = vmatpush3.bf16.msra.mxu1 %v28324_v15  ;;  %23578 = vmatprep.subr.bf16.mxu0 %v28336_v45 }
 0x81d   :  { %23770 = vmatprep.subr.bf16.mxu1 %v28336_v45 }
 0x8d1   :  { %v28420_v7 = vpop.f32.mrb[6].mxu0 }
 0x8d2   :  { %v28429_v27 = vand.u32 4294901760, %v28420_v7  ;;  %v11977_v31 = vmul.f32 %v28420_v7, %v28420_v7  ;;  %v28433_v8 = vpop.f32.mrb[6].mxu1  ;;  %v28435_v48 = vpop.f32.mrb[7].mxu0 }
 0x8d3   :  { %v28440_v28 = vand.u32 4294901760, %v28435_v48  ;;  %v11976_v60 = vmul.f32 %v28435_v48, %v28435_v48  ;;  %v28444_v14 = vpop.f32.mrb[7].mxu1 }
 0x8d4   :  { %v28458_v39 = vsub.f32 %v28420_v7, %v28429_v27  ;;  %v28460_v11 = vand.u32 4294901760, %v11977_v31 }
 0x8d5   :  { %v28464_v29 = vsub.f32 %v28435_v48, %v28440_v28  ;;  %v28466_v47 = vand.u32 4294901760, %v11976_v60 }
 0x8d6   :  { %v28469_v43 = vsub.f32 %v11977_v31, %v28460_v11  ;;  %v29148_v4 = vand.u32 4294901760, %v28458_v39 }
 0x8d7   :  { %v28479_v13 = vsub.f32 %v11976_v60, %v28466_v47  ;;  %v11367_v44 = vand.u32 4294901760, %v28464_v29  ;;  %v28496_v60 = vsub.f32 %v28270_v0, %v11312_v59 }
 0x8d8   :  { %v11378_v31 = vsub.f32 %v28458_v39, %v29148_v4  ;;  %v29151_v32 = vand.u32 4294901760, %v28469_v43  ;;  %v11418_v4 = vand.u32 4294901760, %v11417_v1 }
 0x8d9   :  { %v11368_v5 = vsub.f32 %v28464_v29, %v11367_v44  ;;  %v12061_v3 = vand.u32 4294901760, %v28479_v13 }
 0x8da   :  { %v12072_v0 = vsub.f32 %v28469_v43, %v29151_v32  ;;  %v11379_v59 = vand.u32 4294901760, %v11378_v31  ;;  %v28520_v32 = vpack.c.bf16 %v11425_v55, %v11418_v4  ;;  %v11432_v31 = vand.u32 4294901760, %v11431_v63 }
 0x8db   :  { %v11369_v30 = vand.u32 4294901760, %v11368_v5  ;;  %v12062_v62 = vsub.f32 %v28479_v13, %v12061_v3  ;;  %v11451_v5 = vand.u32 4294901760, %v28496_v60  ;;  %v11446_v4 = vand.u32 4294901760, %v11445_v19 }
 0x8dc   :  { %v12073_v1 = vand.u32 4294901760, %v12072_v0  ;;  %v28534_v55 = vpack.c.bf16 %v11439_v42, %v11432_v31  ;;  %v28564_v42 = vpack.c.bf16 %v28406_v25, %v28401_v53  ;;  %v28574_v19 = vpack.c.bf16 %v28418_v52, %v28413_v38 }
 0x8dd   :  { %19665 = vmatprep.mubr.f32.mxu0 %v11369_v30  ;;  %v12063_v12 = vand.u32 4294901760, %v12062_v62  ;;  %v11452_v30 = vsub.f32 %v28496_v60, %v11451_v5  ;;  %v28584_v63 = vpack.c.bf16 %v28454_v61, %v28449_v46 }
 0x8de   :  { %19666 = vmatmul.mubr.f32.vlgmr.msra.gmra.mrb[8].mxu0 %v11379_v59  ;;  %v28592_v59 = vpack.c.bf16 %v28496_v60, %v28491_v21  ;;  %v29241_v21 = vand.u32 4294901760, %v28352_v50  ;;  %v29242_v60 = vand.u32 4294901760, %v28354_v22  ;;  %v13362_v50 = vmul.f32 %v28444_v14, %v28444_v14 }
 0x8df   :  { %23580 = vmatpush3.bf16.msra.mxu0 %v28336_v45  ;;  %19700 = vmatprep.mubr.f32.mxu0 %v28440_v28  ;;  %v11453_v62 = vand.u32 4294901760, %v11452_v30  ;;  %v28761_v22 = vand.u32 4294901760, %v28444_v14 }
 0x8e0   :  { %19875 = vmatprep.mubr.f32.mxu1 %v12063_v12  ;;  %23582 = vmatprep.subr.bf16.mxu0 %v28502_v20 }
 0x8e1   :  { %19876 = vmatmul.mubr.f32.vlgmr.msra.gmra.mrb[8].mxu1 %v12073_v1  ;;  %v28540_v0 = vpack.c.bf16 %v11453_v62, %v11446_v4  ;;  %v29236_v1 = vand.u32 4294901760, %v28469_v43 }
 0x8e2   :  { %23772 = vmatpush3.bf16.msra.mxu1 %v28336_v45  ;;  %19910 = vmatprep.mubr.f32.mxu1 %v28466_v47 }
 0x8e3   :  { %23584 = vmatpush3.bf16.msra.mxu0 %v28502_v20  ;;  %23774 = vmatprep.subr.bf16.mxu1 %v28502_v20 }
 0x8e4   :  { %23586 = vmatprep.subr.bf16.mxu0 %v28520_v32 }
 0x8e6   :  { %23776 = vmatpush3.bf16.msra.mxu1 %v28502_v20 }
 0x8e7   :  { %23588 = vmatpush3.bf16.msra.mxu0 %v28520_v32  ;;  %23778 = vmatprep.subr.bf16.mxu1 %v28520_v32 }
 0x8e8   :  { %23590 = vmatprep.subr.bf16.mxu0 %v28534_v55 }
 0x8ea   :  { %23780 = vmatpush3.bf16.msra.mxu1 %v28520_v32 }
 0x8eb   :  { %23592 = vmatpush3.bf16.msra.mxu0 %v28534_v55  ;;  %23782 = vmatprep.subr.bf16.mxu1 %v28534_v55 }
 0x8ec   :  { %23594 = vmatprep.subr.bf16.mxu0 %v28540_v0 }
 0x8ee   :  { %23784 = vmatpush3.bf16.msra.mxu1 %v28534_v55 }
 0x8ef   :  { %23596 = vmatpush3.bf16.msra.mxu0 %v28540_v0  ;;  %23786 = vmatprep.subr.bf16.mxu1 %v28540_v0 }
 0x8f0   :  { %23598 = vmatprep.subr.bf16.mxu0 %v28358_v35 }
 0x8f2   :  { %23788 = vmatpush3.bf16.msra.mxu1 %v28540_v0 }
 0x8f3   :  { %23600 = vmatpush3.bf16.msra.mxu0 %v28358_v35  ;;  %23790 = vmatprep.subr.bf16.mxu1 %v28358_v35 }
 0x8f4   :  { %23602 = vmatprep.subr.bf16.mxu0 %v28372_v24 }
 0x8f6   :  { %23792 = vmatpush3.bf16.msra.mxu1 %v28358_v35 }
 0x8f7   :  { %23604 = vmatpush3.bf16.msra.mxu0 %v28372_v24  ;;  %23794 = vmatprep.subr.bf16.mxu1 %v28372_v24 }
 0x8f8   :  { %23606 = vmatprep.subr.bf16.mxu0 %v28380_v34 }
 0x8fa   :  { %23796 = vmatpush3.bf16.msra.mxu1 %v28372_v24 }
 0x8fb   :  { %23608 = vmatpush3.bf16.msra.mxu0 %v28380_v34  ;;  %23798 = vmatprep.subr.bf16.mxu1 %v28380_v34 }
 0x8fc   :  { %23610 = vmatprep.subr.bf16.mxu0 %v28384_v41 }
 0x8fe   :  { %23800 = vmatpush3.bf16.msra.mxu1 %v28380_v34  ;;  %19701 = vmatmul.mubr.f32.vlgmr.msra.gmra.mrb[8].mxu0 %v28429_v27 }
 0x8ff   :  { %23612 = vmatpush3.bf16.msra.mxu0 %v28384_v41  ;;  %19735 = vmatprep.mubr.f32.mxu0 %v28464_v29  ;;  %v29231_v29 = vand.u32 4294901760, %v28401_v53  ;;  %v29235_v53 = vand.u32 4294901760, %v28418_v52 }
 0x900   :  { %23802 = vmatprep.subr.bf16.mxu1 %v28384_v41  ;;  %23614 = vmatprep.subr.bf16.mxu0 %v28564_v42 }
 0x901   :  { %19911 = vmatmul.mubr.f32.vlgmr.msra.gmra.mrb[8].mxu1 %v28460_v11  ;;  %v28662_v12 = vpack.c.bf16 %v29232_v18, %v29231_v29 }
 0x902   :  { %23804 = vmatpush3.bf16.msra.mxu1 %v28384_v41  ;;  %19945 = vmatprep.mubr.f32.mxu1 %v28479_v13  ;;  %v29230_v13 = vand.u32 4294901760, %v28316_v36  ;;  %v29234_v36 = vand.u32 4294901760, %v28413_v38  ;;  %v29238_v38 = vand.u32 4294901760, %v28454_v61  ;;  %v29240_v61 = vand.u32 4294901760, %v28342_v10 }
 0x903   :  { %23616 = vmatpush3.bf16.msra.mxu0 %v28564_v42  ;;  %23806 = vmatprep.subr.bf16.mxu1 %v28564_v42  ;;  %v29244_v10 = vand.u32 4294901760, %v28368_v54  ;;  %v28771_v54 = vsub.f32 %v28444_v14, %v28761_v22 }
 0x904   :  { %23618 = vmatprep.subr.bf16.mxu0 %v28574_v19  ;;  %v28675_v25 = vpack.c.bf16 %v29235_v53, %v29234_v36 }
 0x906   :  { %23808 = vmatpush3.bf16.msra.mxu1 %v28564_v42 }
 0x907   :  { %23620 = vmatpush3.bf16.msra.mxu0 %v28574_v19  ;;  %23810 = vmatprep.subr.bf16.mxu1 %v28574_v19 }
 0x908   :  { %23622 = vmatprep.subr.bf16.mxu0 %v28584_v63 }
 0x90a   :  { %23812 = vmatpush3.bf16.msra.mxu1 %v28574_v19 }
 0x90b   :  { %23624 = vmatpush3.bf16.msra.mxu0 %v28584_v63  ;;  %23814 = vmatprep.subr.bf16.mxu1 %v28584_v63 }
 0x90c   :  { %23626 = vmatprep.subr.bf16.mxu0 %v28592_v59 }
 0x90e   :  { %23816 = vmatpush3.bf16.msra.mxu1 %v28584_v63 }
 0x90f   :  { %23628 = vmatpush3.bf16.msra.mxu0 %v28592_v59  ;;  %23818 = vmatprep.subr.bf16.mxu1 %v28592_v59 }
 0x910   :  { %23630 = vmatprep.subr.bf16.mxu0 %v28388_v6 }
 0x912   :  { %23820 = vmatpush3.bf16.msra.mxu1 %v28592_v59 }
 0x913   :  { %23632 = vmatpush3.bf16.msra.mxu0 %v28388_v6  ;;  %23822 = vmatprep.subr.bf16.mxu1 %v28388_v6 }
 0x914   :  { %23634 = vmatprep.subr.bf16.mxu0 %v28392_v9 }
 0x916   :  { %23824 = vmatpush3.bf16.msra.mxu1 %v28388_v6 }
 0x917   :  { %23636 = vmatpush3.bf16.msra.mxu0 %v28392_v9  ;;  %23826 = vmatprep.subr.bf16.mxu1 %v28392_v9 }
 0x918   :  { %23638 = vmatprep.subr.bf16.mxu0 %v28396_v33 }
 0x91a   :  { %23828 = vmatpush3.bf16.msra.mxu1 %v28392_v9 }
 0x91b   :  { %23640 = vmatpush3.bf16.msra.mxu0 %v28396_v33  ;;  %23830 = vmatprep.subr.bf16.mxu1 %v28396_v33 }
 0x91c   :  { %23642 = vmatprep.subr.bf16.mxu0 %v28229_v56 }
 0x91e   :  { %23832 = vmatpush3.bf16.msra.mxu1 %v28396_v33  ;;  %19736 = vmatmul.mubr.f32.vlgmr.msra.gmra.mrb[8].mxu0 %v28458_v39 }
 0x91f   :  { %23644 = vmatpush3.bf16.msra.mxu0 %v28229_v56  ;;  %19770 = vmatprep.mubr.f32.mxu0 %v11367_v44  ;;  %v29229_v44 = vand.u32 4294901760, %v28311_v17  ;;  %v29233_v17 = vand.u32 4294901760, %v28458_v39  ;;  %v29237_v39 = vand.u32 4294901760, %v28449_v46  ;;  %v29239_v46 = vand.u32 4294901760, %v28340_v23 }
 0x920   :  { %23834 = vmatprep.subr.bf16.mxu1 %v28229_v56  ;;  %23646 = vmatprep.subr.bf16.mxu0 %v28245_v40  ;;  %v29243_v23 = vand.u32 4294901760, %v28366_v26  ;;  %v28766_v26 = vand.u32 4294901760, %v13362_v50 }
 0x921   :  { %19946 = vmatmul.mubr.f32.vlgmr.msra.gmra.mrb[8].mxu1 %v28469_v43  ;;  %v28688_v52 = vpack.c.bf16 %v29238_v38, %v29237_v39  ;;  %v28698_v43 = vpack.c.bf16 %v11451_v5, %v11444_v2  ;;  %v28708_v31 = vpack.c.bf16 %v29240_v61, %v29239_v46  ;;  %v28718_v2 = vpack.c.bf16 %v29242_v60, %v29241_v21 }
 0x922   :  { %23836 = vmatpush3.bf16.msra.mxu1 %v28229_v56  ;;  %19980 = vmatprep.mubr.f32.mxu1 %v12061_v3  ;;  %v28652_v3 = vpack.c.bf16 %v29230_v13, %v29229_v44  ;;  %v28728_v5 = vpack.c.bf16 %v29244_v10, %v29243_v23 }
 0x923   :  { %23648 = vmatpush3.bf16.msra.mxu0 %v28245_v40  ;;  %23838 = vmatprep.subr.bf16.mxu1 %v28245_v40 }
 0x924   :  { %23650 = vmatprep.subr.bf16.mxu0 %v28263_v57 }
 0x926   :  { %23840 = vmatpush3.bf16.msra.mxu1 %v28245_v40 }
 0x927   :  { %23652 = vmatpush3.bf16.msra.mxu0 %v28263_v57  ;;  %23842 = vmatprep.subr.bf16.mxu1 %v28263_v57 }
 0x928   :  { %23654 = vmatprep.subr.bf16.mxu0 %v28279_v37 }
 0x92a   :  { %23844 = vmatpush3.bf16.msra.mxu1 %v28263_v57 }
 0x92b   :  { %23656 = vmatpush3.bf16.msra.mxu0 %v28279_v37  ;;  %23846 = vmatprep.subr.bf16.mxu1 %v28279_v37 }
 0x92c   :  { %23658 = vmatprep.subr.bf16.mxu0 %v28291_v49 }
 0x92e   :  { %23848 = vmatpush3.bf16.msra.mxu1 %v28279_v37 }
 0x92f   :  { %23660 = vmatpush3.bf16.msra.mxu0 %v28291_v49  ;;  %23850 = vmatprep.subr.bf16.mxu1 %v28291_v49 }
 0x930   :  { %23662 = vmatprep.subr.bf16.mxu0 %v28300_v16 }
 0x932   :  { %23852 = vmatpush3.bf16.msra.mxu1 %v28291_v49 }
 0x933   :  { %23664 = vmatpush3.bf16.msra.mxu0 %v28300_v16  ;;  %23854 = vmatprep.subr.bf16.mxu1 %v28300_v16 }
 0x934   :  { %23666 = vmatprep.subr.bf16.mxu0 %v28306_v58 }
 0x936   :  { %23856 = vmatpush3.bf16.msra.mxu1 %v28300_v16 }
 0x937   :  { %23668 = vmatpush3.bf16.msra.mxu0 %v28306_v58  ;;  %23858 = vmatprep.subr.bf16.mxu1 %v28306_v58 }
 0x938   :  { %23670 = vmatprep.subr.bf16.mxu0 %v28324_v15 }
 0x93a   :  { %23860 = vmatpush3.bf16.msra.mxu1 %v28306_v58 }
 0x93b   :  { %23672 = vmatpush3.bf16.msra.mxu0 %v28324_v15  ;;  %23862 = vmatprep.subr.bf16.mxu1 %v28324_v15 }
 0x93c   :  { %23674 = vmatprep.subr.bf16.mxu0 %v28652_v3 }
 0x93e   :  { %23864 = vmatpush3.bf16.msra.mxu1 %v28324_v15  ;;  %19771 = vmatmul.mubr.f32.vlgmr.msra.gmra.mrb[8].mxu0 %v29233_v17 }
 0x93f   :  { %23676 = vmatpush3.bf16.msra.mxu0 %v28652_v3  ;;  %19805 = vmatprep.mubr.f32.mxu0 %v28440_v28 }
 0x940   :  { %23866 = vmatprep.subr.bf16.mxu1 %v28652_v3  ;;  %23678 = vmatprep.subr.bf16.mxu0 %v28662_v12 }
 0x941   :  { %19981 = vmatmul.mubr.f32.vlgmr.msra.gmra.mrb[8].mxu1 %v29236_v1 }
 0x942   :  { %23868 = vmatpush3.bf16.msra.mxu1 %v28652_v3  ;;  %20015 = vmatprep.mubr.f32.mxu1 %v28466_v47 }
 0x943   :  { %23680 = vmatpush3.bf16.msra.mxu0 %v28662_v12  ;;  %23870 = vmatprep.subr.bf16.mxu1 %v28662_v12 }
 0x944   :  { %23682 = vmatprep.subr.bf16.mxu0 %v28675_v25 }
 0x946   :  { %23872 = vmatpush3.bf16.msra.mxu1 %v28662_v12 }
 0x947   :  { %23684 = vmatpush3.bf16.msra.mxu0 %v28675_v25  ;;  %23874 = vmatprep.subr.bf16.mxu1 %v28675_v25 }
 0x948   :  { %23686 = vmatprep.subr.bf16.mxu0 %v28688_v52 }
 0x94a   :  { %23876 = vmatpush3.bf16.msra.mxu1 %v28675_v25 }
 0x94b   :  { %23688 = vmatpush3.bf16.msra.mxu0 %v28688_v52  ;;  %23878 = vmatprep.subr.bf16.mxu1 %v28688_v52 }
 0x94c   :  { %23690 = vmatprep.subr.bf16.mxu0 %v28698_v43 }
 0x94e   :  { %23880 = vmatpush3.bf16.msra.mxu1 %v28688_v52 }
 0x94f   :  { %23692 = vmatpush3.bf16.msra.mxu0 %v28698_v43  ;;  %23882 = vmatprep.subr.bf16.mxu1 %v28698_v43 }
 0x950   :  { %23694 = vmatprep.subr.bf16.mxu0 %v28708_v31 }
 0x952   :  { %23884 = vmatpush3.bf16.msra.mxu1 %v28698_v43 }
 0x953   :  { %23696 = vmatpush3.bf16.msra.mxu0 %v28708_v31  ;;  %23886 = vmatprep.subr.bf16.mxu1 %v28708_v31 }
 0x954   :  { %23698 = vmatprep.subr.bf16.mxu0 %v28718_v2 }
 0x956   :  { %23888 = vmatpush3.bf16.msra.mxu1 %v28708_v31 }
 0x957   :  { %23700 = vmatpush3.bf16.msra.mxu0 %v28718_v2  ;;  %23890 = vmatprep.subr.bf16.mxu1 %v28718_v2 }
 0x958   :  { %23702 = vmatprep.subr.bf16.mxu0 %v28728_v5 }
 0x95a   :  { %23892 = vmatpush3.bf16.msra.mxu1 %v28718_v2 }
 0x95b   :  { %23704 = vmatpush3.bf16.msra.mxu0 %v28728_v5  ;;  %23894 = vmatprep.subr.bf16.mxu1 %v28728_v5 }
 0x95c   :  { %23706 = vmatprep.subr.bf16.mxu0 %v28229_v56 }
 0x95e   :  { %23896 = vmatpush3.bf16.msra.mxu1 %v28728_v5  ;;  %19806 = vmatmul.mubr.f32.vlgmr.msra.gmra.mrb[8].mxu0 %v28429_v27 }
 0x95f   :  { %23708 = vmatpush3.bf16.msra.mxu0 %v28229_v56  ;;  %19840 = vmatprep.mubr.f32.mxu0 %v28440_v28  ;;  %v12753_v28 = vand.u32 4294901760, %v28771_v54 }
 0x960   :  { %23898 = vmatprep.subr.bf16.mxu1 %v28229_v56  ;;  %23710 = vmatprep.subr.bf16.mxu0 %v28245_v40 }
 0x961   :  { %20016 = vmatmul.mubr.f32.vlgmr.msra.gmra.mrb[8].mxu1 %v28460_v11  ;;  %v12754_v4 = vsub.f32 %v28771_v54, %v12753_v28 }
 0x962   :  { %23900 = vmatpush3.bf16.msra.mxu1 %v28229_v56  ;;  %20050 = vmatprep.mubr.f32.mxu1 %v28466_v47  ;;  %v28777_v47 = vsub.f32 %v13362_v50, %v28766_v26 }
 0x963   :  { %23712 = vmatpush3.bf16.msra.mxu0 %v28245_v40  ;;  %23902 = vmatprep.subr.bf16.mxu1 %v28245_v40  ;;  %v12755_v44 = vand.u32 4294901760, %v12754_v4 }
 0x964   :  { %23714 = vmatprep.subr.bf16.mxu0 %v28263_v57  ;;  %v13447_v30 = vand.u32 4294901760, %v28777_v47 }
 0x966   :  { %23904 = vmatpush3.bf16.msra.mxu1 %v28245_v40  ;;  %v13448_v62 = vsub.f32 %v28777_v47, %v13447_v30 }
 0x967   :  { %23716 = vmatpush3.bf16.msra.mxu0 %v28263_v57  ;;  %23906 = vmatprep.subr.bf16.mxu1 %v28263_v57 }
 0x968   :  { %23718 = vmatprep.subr.bf16.mxu0 %v28279_v37  ;;  %v13449_v13 = vand.u32 4294901760, %v13448_v62 }
 0x96a   :  { %23908 = vmatpush3.bf16.msra.mxu1 %v28263_v57 }
 0x96b   :  { %23720 = vmatpush3.bf16.msra.mxu0 %v28279_v37  ;;  %23910 = vmatprep.subr.bf16.mxu1 %v28279_v37 }
 0x96c   :  { %23722 = vmatprep.subr.bf16.mxu0 %v28291_v49 }
 0x96e   :  { %23912 = vmatpush3.bf16.msra.mxu1 %v28279_v37 }
 0x96f   :  { %23724 = vmatpush3.bf16.msra.mxu0 %v28291_v49  ;;  %23914 = vmatprep.subr.bf16.mxu1 %v28291_v49 }
 0x970   :  { %23726 = vmatprep.subr.bf16.mxu0 %v28300_v16 }
 0x972   :  { %23916 = vmatpush3.bf16.msra.mxu1 %v28291_v49 }
 0x973   :  { %23728 = vmatpush3.bf16.msra.mxu0 %v28300_v16  ;;  %23918 = vmatprep.subr.bf16.mxu1 %v28300_v16 }
 0x974   :  { %23730 = vmatprep.subr.bf16.mxu0 %v28306_v58 }
 0x976   :  { %23920 = vmatpush3.bf16.msra.mxu1 %v28300_v16 }
 0x977   :  { %23732 = vmatpush3.bf16.msra.mxu0 %v28306_v58  ;;  %23922 = vmatprep.subr.bf16.mxu1 %v28306_v58 }
 0x978   :  { %23734 = vmatprep.subr.bf16.mxu0 %v28324_v15 }
 0x97a   :  { %23924 = vmatpush3.bf16.msra.mxu1 %v28306_v58 }
 0x97b   :  { %23736 = vmatpush3.bf16.msra.mxu0 %v28324_v15  ;;  %23926 = vmatprep.subr.bf16.mxu1 %v28324_v15 }
 0x97c   :  { %23930 = vmatprep.subr.bf16.mxu0 %v28229_v56 }
 0x97e   :  { %23928 = vmatpush3.bf16.msra.mxu1 %v28324_v15  ;;  %19841 = vmatmul.mubr.f32.vlgmr.msra.gmra.mrb[8].mxu0 %v28429_v27  ;;  %v13363_v27 = vmul.f32 %v28433_v8, %v28433_v8 }
 0x97f   :  { %23932 = vmatpush3.bf16.msra.mxu0 %v28229_v56  ;;  %20085 = vmatprep.mubr.f32.mxu0 %v12755_v44  ;;  %v11267_v44 = vld [vmem:[%s29070_s7] sm:$0x1] }
 0x980   :  { %24122 = vmatprep.subr.bf16.mxu1 %v28229_v56  ;;  %23934 = vmatprep.subr.bf16.mxu0 %v28245_v40  ;;  %v28820_v29 = vand.u32 4294901760, %v13363_v27 }
 0x981   :  { %20051 = vmatmul.mubr.f32.vlgmr.msra.gmra.mrb[8].mxu1 %v28460_v11  ;;  %v28816_v11 = vand.u32 4294901760, %v28433_v8 }
 0x982   :  { %24124 = vmatpush3.bf16.msra.mxu1 %v28229_v56  ;;  %20295 = vmatprep.mubr.f32.mxu1 %v13449_v13  ;;  %v28831_v17 = vsub.f32 %v13363_v27, %v28820_v29 }
 0x983   :  { %23936 = vmatpush3.bf16.msra.mxu0 %v28245_v40  ;;  %24126 = vmatprep.subr.bf16.mxu1 %v28245_v40  ;;  %v28826_v18 = vsub.f32 %v28433_v8, %v28816_v11 }
 0x984   :  { %23938 = vmatprep.subr.bf16.mxu0 %v28263_v57  ;;  %v13457_v53 = vand.u32 4294901760, %v28831_v17 }
 0x985   :  { %v12763_v36 = vand.u32 4294901760, %v28826_v18 }
 0x986   :  { %24128 = vmatpush3.bf16.msra.mxu1 %v28245_v40  ;;  %v13458_v39 = vsub.f32 %v28831_v17, %v13457_v53 }
 0x987   :  { %23940 = vmatpush3.bf16.msra.mxu0 %v28263_v57  ;;  %24130 = vmatprep.subr.bf16.mxu1 %v28263_v57  ;;  %v12764_v1 = vsub.f32 %v28826_v18, %v12763_v36 }
 0x988   :  { %23942 = vmatprep.subr.bf16.mxu0 %v28279_v37  ;;  %v13459_v46 = vand.u32 4294901760, %v13458_v39 }
 0x989   :  { %v12765_v38 = vand.u32 4294901760, %v12764_v1 }
 0x98a   :  { %24132 = vmatpush3.bf16.msra.mxu1 %v28263_v57 }
 0x98b   :  { %23944 = vmatpush3.bf16.msra.mxu0 %v28279_v37  ;;  %24134 = vmatprep.subr.bf16.mxu1 %v28279_v37 }
 0x98c   :  { %23946 = vmatprep.subr.bf16.mxu0 %v28291_v49 }
 0x98e   :  { %24136 = vmatpush3.bf16.msra.mxu1 %v28279_v37 }
 0x98f   :  { %23948 = vmatpush3.bf16.msra.mxu0 %v28291_v49  ;;  %24138 = vmatprep.subr.bf16.mxu1 %v28291_v49 }
 0x990   :  { %23950 = vmatprep.subr.bf16.mxu0 %v28300_v16 }
 0x992   :  { %24140 = vmatpush3.bf16.msra.mxu1 %v28291_v49 }
 0x993   :  { %23952 = vmatpush3.bf16.msra.mxu0 %v28300_v16  ;;  %24142 = vmatprep.subr.bf16.mxu1 %v28300_v16 }
 0x994   :  { %23954 = vmatprep.subr.bf16.mxu0 %v28306_v58 }
 0x996   :  { %24144 = vmatpush3.bf16.msra.mxu1 %v28300_v16 }
 0x997   :  { %23956 = vmatpush3.bf16.msra.mxu0 %v28306_v58  ;;  %24146 = vmatprep.subr.bf16.mxu1 %v28306_v58 }
 0x998   :  { %23958 = vmatprep.subr.bf16.mxu0 %v28324_v15 }
 0x99a   :  { %24148 = vmatpush3.bf16.msra.mxu1 %v28306_v58 }
 0x99b   :  { %23960 = vmatpush3.bf16.msra.mxu0 %v28324_v15  ;;  %24150 = vmatprep.subr.bf16.mxu1 %v28324_v15 }
 0x99c   :  { %23962 = vmatprep.subr.bf16.mxu0 %v28336_v45 }
 0x99e   :  { %24152 = vmatpush3.bf16.msra.mxu1 %v28324_v15  ;;  %20086 = vmatmul.mubr.f32.vlgmr.msra.gmra.mrb[10].mxu0 %v12765_v38 }
 0x99f   :  { %23964 = vmatpush3.bf16.msra.mxu0 %v28336_v45  ;;  %20120 = vmatprep.mubr.f32.mxu0 %v28761_v22 }
 0x9a0   :  { %24154 = vmatprep.subr.bf16.mxu1 %v28336_v45  ;;  %23966 = vmatprep.subr.bf16.mxu0 %v28502_v20 }
 0x9a1   :  { %20296 = vmatmul.mubr.f32.vlgmr.msra.gmra.mrb[10].mxu1 %v13459_v46 }
 0x9a2   :  { %24156 = vmatpush3.bf16.msra.mxu1 %v28336_v45  ;;  %20330 = vmatprep.mubr.f32.mxu1 %v28766_v26 }
 0x9a3   :  { %23968 = vmatpush3.bf16.msra.mxu0 %v28502_v20  ;;  %24158 = vmatprep.subr.bf16.mxu1 %v28502_v20 }
 0x9a4   :  { %23970 = vmatprep.subr.bf16.mxu0 %v28520_v32 }
 0x9a6   :  { %24160 = vmatpush3.bf16.msra.mxu1 %v28502_v20 }
 0x9a7   :  { %23972 = vmatpush3.bf16.msra.mxu0 %v28520_v32  ;;  %24162 = vmatprep.subr.bf16.mxu1 %v28520_v32 }
 0x9a8   :  { %23974 = vmatprep.subr.bf16.mxu0 %v28534_v55 }
 0x9aa   :  { %24164 = vmatpush3.bf16.msra.mxu1 %v28520_v32 }
 0x9ab   :  { %23976 = vmatpush3.bf16.msra.mxu0 %v28534_v55  ;;  %24166 = vmatprep.subr.bf16.mxu1 %v28534_v55 }
 0x9ac   :  { %23978 = vmatprep.subr.bf16.mxu0 %v28540_v0 }
 0x9ae   :  { %24168 = vmatpush3.bf16.msra.mxu1 %v28534_v55 }
 0x9af   :  { %23980 = vmatpush3.bf16.msra.mxu0 %v28540_v0  ;;  %24170 = vmatprep.subr.bf16.mxu1 %v28540_v0 }
 0x9b0   :  { %23982 = vmatprep.subr.bf16.mxu0 %v28358_v35 }
 0x9b2   :  { %24172 = vmatpush3.bf16.msra.mxu1 %v28540_v0 }
 0x9b3   :  { %23984 = vmatpush3.bf16.msra.mxu0 %v28358_v35  ;;  %24174 = vmatprep.subr.bf16.mxu1 %v28358_v35 }
 0x9b4   :  { %23986 = vmatprep.subr.bf16.mxu0 %v28372_v24 }
 0x9b6   :  { %24176 = vmatpush3.bf16.msra.mxu1 %v28358_v35 }
 0x9b7   :  { %23988 = vmatpush3.bf16.msra.mxu0 %v28372_v24  ;;  %24178 = vmatprep.subr.bf16.mxu1 %v28372_v24 }
 0x9b8   :  { %23990 = vmatprep.subr.bf16.mxu0 %v28380_v34 }
 0x9ba   :  { %24180 = vmatpush3.bf16.msra.mxu1 %v28372_v24 }
 0x9bb   :  { %23992 = vmatpush3.bf16.msra.mxu0 %v28380_v34  ;;  %24182 = vmatprep.subr.bf16.mxu1 %v28380_v34 }
 0x9bc   :  { %23994 = vmatprep.subr.bf16.mxu0 %v28384_v41 }
 0x9be   :  { %24184 = vmatpush3.bf16.msra.mxu1 %v28380_v34  ;;  %20121 = vmatmul.mubr.f32.vlgmr.msra.gmra.mrb[10].mxu0 %v28816_v11 }
 0x9bf   :  { %23996 = vmatpush3.bf16.msra.mxu0 %v28384_v41  ;;  %20155 = vmatprep.mubr.f32.mxu0 %v28771_v54 }
 0x9c0   :  { %24186 = vmatprep.subr.bf16.mxu1 %v28384_v41  ;;  %23998 = vmatprep.subr.bf16.mxu0 %v28564_v42 }
 0x9c1   :  { %20331 = vmatmul.mubr.f32.vlgmr.msra.gmra.mrb[10].mxu1 %v28820_v29 }
 0x9c2   :  { %24188 = vmatpush3.bf16.msra.mxu1 %v28384_v41  ;;  %20365 = vmatprep.mubr.f32.mxu1 %v28777_v47 }
 0x9c3   :  { %24000 = vmatpush3.bf16.msra.mxu0 %v28564_v42  ;;  %24190 = vmatprep.subr.bf16.mxu1 %v28564_v42 }
 0x9c4   :  { %24002 = vmatprep.subr.bf16.mxu0 %v28574_v19 }
 0x9c6   :  { %24192 = vmatpush3.bf16.msra.mxu1 %v28564_v42 }
 0x9c7   :  { %24004 = vmatpush3.bf16.msra.mxu0 %v28574_v19  ;;  %24194 = vmatprep.subr.bf16.mxu1 %v28574_v19 }
 0x9c8   :  { %24006 = vmatprep.subr.bf16.mxu0 %v28584_v63 }
 0x9ca   :  { %24196 = vmatpush3.bf16.msra.mxu1 %v28574_v19 }
 0x9cb   :  { %24008 = vmatpush3.bf16.msra.mxu0 %v28584_v63  ;;  %24198 = vmatprep.subr.bf16.mxu1 %v28584_v63 }
 0x9cc   :  { %24010 = vmatprep.subr.bf16.mxu0 %v28592_v59 }
 0x9ce   :  { %24200 = vmatpush3.bf16.msra.mxu1 %v28584_v63 }
 0x9cf   :  { %24012 = vmatpush3.bf16.msra.mxu0 %v28592_v59  ;;  %24202 = vmatprep.subr.bf16.mxu1 %v28592_v59 }
 0x9d0   :  { %24014 = vmatprep.subr.bf16.mxu0 %v28388_v6 }
 0x9d2   :  { %24204 = vmatpush3.bf16.msra.mxu1 %v28592_v59 }
 0x9d3   :  { %24016 = vmatpush3.bf16.msra.mxu0 %v28388_v6  ;;  %24206 = vmatprep.subr.bf16.mxu1 %v28388_v6 }
 0x9d4   :  { %24018 = vmatprep.subr.bf16.mxu0 %v28392_v9 }
 0x9d6   :  { %24208 = vmatpush3.bf16.msra.mxu1 %v28388_v6 }
 0x9d7   :  { %24020 = vmatpush3.bf16.msra.mxu0 %v28392_v9  ;;  %24210 = vmatprep.subr.bf16.mxu1 %v28392_v9 }
 0x9d8   :  { %24022 = vmatprep.subr.bf16.mxu0 %v28396_v33 }
 0x9da   :  { %24212 = vmatpush3.bf16.msra.mxu1 %v28392_v9 }
 0x9db   :  { %24024 = vmatpush3.bf16.msra.mxu0 %v28396_v33  ;;  %24214 = vmatprep.subr.bf16.mxu1 %v28396_v33 }
 0x9dc   :  { %24026 = vmatprep.subr.bf16.mxu0 %v28229_v56 }
 0x9de   :  { %24216 = vmatpush3.bf16.msra.mxu1 %v28396_v33  ;;  %20156 = vmatmul.mubr.f32.vlgmr.msra.gmra.mrb[10].mxu0 %v28826_v18 }
 0x9df   :  { %24028 = vmatpush3.bf16.msra.mxu0 %v28229_v56  ;;  %20190 = vmatprep.mubr.f32.mxu0 %v12753_v28 }
 0x9e0   :  { %24218 = vmatprep.subr.bf16.mxu1 %v28229_v56  ;;  %24030 = vmatprep.subr.bf16.mxu0 %v28245_v40 }
 0x9e1   :  { %20366 = vmatmul.mubr.f32.vlgmr.msra.gmra.mrb[10].mxu1 %v28831_v17 }
 0x9e2   :  { %24220 = vmatpush3.bf16.msra.mxu1 %v28229_v56  ;;  %20400 = vmatprep.mubr.f32.mxu1 %v13447_v30  ;;  %v11266_v30 = vld [vmem:[%s29069_s6] sm:$0x1]  ;;  %s24666_s6 = smov [#allocation11]  }
 0x9e3   :  { %24032 = vmatpush3.bf16.msra.mxu0 %v28245_v40  ;;  %24222 = vmatprep.subr.bf16.mxu1 %v28245_v40  ;;  %s14099_s15 = sshll.u32 %s24666_s6, 4  ;;  %s14100_s15 = int_to_ptr.vmem [resolvable:$true] %s14099_s15 }
 0x9e4   :  { %24034 = vmatprep.subr.bf16.mxu0 %v28263_v57  ;;  %s24629_s7 = scalar_lea.vmem %s14100_s15, 512  ;;  %p24634_p5 = scmp.lt.s32.totalorder %s14100_s15, %s14100_s15 }
 0x9e5   :  { %p24630_p4 = scmp.ne.s32.totalorder %s14100_s15, %s24629_s7  ;;  %p24635_p6 = scmp.lt.s32.totalorder %s24629_s7, %s24629_s7 }
 0x9e6   :  { %24224 = vmatpush3.bf16.msra.mxu1 %v28245_v40 }
 0x9e7   :  { %24036 = vmatpush3.bf16.msra.mxu0 %v28263_v57  ;;  %24226 = vmatprep.subr.bf16.mxu1 %v28263_v57  ;;  %p24636_p7 = por %p24635_p6, %p24634_p5 }
 0x9e8   :  { %24038 = vmatprep.subr.bf16.mxu0 %v28279_v37 }
 0x9e9   :  { %p24637_p8 = pnand %p24636_p7, %p24630_p4 }
 0x9ea   :  { %24228 = vmatpush3.bf16.msra.mxu1 %v28263_v57 }
 0x9eb   :  { %24040 = vmatpush3.bf16.msra.mxu0 %v28279_v37  ;;  %24230 = vmatprep.subr.bf16.mxu1 %v28279_v37 }
 0x9ec   :  { %24042 = vmatprep.subr.bf16.mxu0 %v28291_v49 }
 0x9ee   :  { %24232 = vmatpush3.bf16.msra.mxu1 %v28279_v37 }
 0x9ef   :  { %24044 = vmatpush3.bf16.msra.mxu0 %v28291_v49  ;;  %24234 = vmatprep.subr.bf16.mxu1 %v28291_v49 }
 0x9f0   :  { %24046 = vmatprep.subr.bf16.mxu0 %v28300_v16 }
 0x9f2   :  { %24236 = vmatpush3.bf16.msra.mxu1 %v28291_v49 }
 0x9f3   :  { %24048 = vmatpush3.bf16.msra.mxu0 %v28300_v16  ;;  %24238 = vmatprep.subr.bf16.mxu1 %v28300_v16 }
 0x9f4   :  { %24050 = vmatprep.subr.bf16.mxu0 %v28306_v58 }
 0x9f6   :  { %24240 = vmatpush3.bf16.msra.mxu1 %v28300_v16 }
 0x9f7   :  { %24052 = vmatpush3.bf16.msra.mxu0 %v28306_v58  ;;  %24242 = vmatprep.subr.bf16.mxu1 %v28306_v58 }
 0x9f8   :  { %24054 = vmatprep.subr.bf16.mxu0 %v28324_v15 }
 0x9fa   :  { %24244 = vmatpush3.bf16.msra.mxu1 %v28306_v58 }
 0x9fb   :  { %24056 = vmatpush3.bf16.msra.mxu0 %v28324_v15  ;;  %24246 = vmatprep.subr.bf16.mxu1 %v28324_v15 }
 0x9fc   :  { %24058 = vmatprep.subr.bf16.mxu0 %v28652_v3 }
 0x9fe   :  { %24248 = vmatpush3.bf16.msra.mxu1 %v28324_v15  ;;  %20191 = vmatmul.mubr.f32.vlgmr.msra.gmra.mrb[10].mxu0 %v12763_v36 }
 0x9ff   :  { %24060 = vmatpush3.bf16.msra.mxu0 %v28652_v3  ;;  %20225 = vmatprep.mubr.f32.mxu0 %v28761_v22 }
 0xa00   :  { %24250 = vmatprep.subr.bf16.mxu1 %v28652_v3  ;;  %24062 = vmatprep.subr.bf16.mxu0 %v28662_v12 }
 0xa01   :  { %20401 = vmatmul.mubr.f32.vlgmr.msra.gmra.mrb[10].mxu1 %v13457_v53 }
 0xa02   :  { %24252 = vmatpush3.bf16.msra.mxu1 %v28652_v3  ;;  %20435 = vmatprep.mubr.f32.mxu1 %v28766_v26 }
 0xa03   :  { %24064 = vmatpush3.bf16.msra.mxu0 %v28662_v12  ;;  %24254 = vmatprep.subr.bf16.mxu1 %v28662_v12 }
 0xa04   :  { %24066 = vmatprep.subr.bf16.mxu0 %v28675_v25 }
 0xa06   :  { %24256 = vmatpush3.bf16.msra.mxu1 %v28662_v12 }
 0xa07   :  { %24068 = vmatpush3.bf16.msra.mxu0 %v28675_v25  ;;  %24258 = vmatprep.subr.bf16.mxu1 %v28675_v25 }
 0xa08   :  { %24070 = vmatprep.subr.bf16.mxu0 %v28688_v52 }
 0xa0a   :  { %24260 = vmatpush3.bf16.msra.mxu1 %v28675_v25 }
 0xa0b   :  { %24072 = vmatpush3.bf16.msra.mxu0 %v28688_v52  ;;  %24262 = vmatprep.subr.bf16.mxu1 %v28688_v52 }
 0xa0c   :  { %24074 = vmatprep.subr.bf16.mxu0 %v28698_v43 }
 0xa0e   :  { %24264 = vmatpush3.bf16.msra.mxu1 %v28688_v52 }
 0xa0f   :  { %24076 = vmatpush3.bf16.msra.mxu0 %v28698_v43  ;;  %24266 = vmatprep.subr.bf16.mxu1 %v28698_v43 }
 0xa10   :  { %24078 = vmatprep.subr.bf16.mxu0 %v28708_v31 }
 0xa12   :  { %24268 = vmatpush3.bf16.msra.mxu1 %v28698_v43 }
 0xa13   :  { %24080 = vmatpush3.bf16.msra.mxu0 %v28708_v31  ;;  %24270 = vmatprep.subr.bf16.mxu1 %v28708_v31 }
 0xa14   :  { %24082 = vmatprep.subr.bf16.mxu0 %v28718_v2 }
 0xa16   :  { %24272 = vmatpush3.bf16.msra.mxu1 %v28708_v31 }
 0xa17   :  { %24084 = vmatpush3.bf16.msra.mxu0 %v28718_v2  ;;  %24274 = vmatprep.subr.bf16.mxu1 %v28718_v2 }
 0xa18   :  { %24086 = vmatprep.subr.bf16.mxu0 %v28728_v5 }
 0xa1a   :  { %24276 = vmatpush3.bf16.msra.mxu1 %v28718_v2 }
 0xa1b   :  { %24088 = vmatpush3.bf16.msra.mxu0 %v28728_v5  ;;  %24278 = vmatprep.subr.bf16.mxu1 %v28728_v5 }
 0xa1c   :  { %24090 = vmatprep.subr.bf16.mxu0 %v28229_v56 }
 0xa1e   :  { %24280 = vmatpush3.bf16.msra.mxu1 %v28728_v5  ;;  %20226 = vmatmul.mubr.f32.vlgmr.msra.gmra.mrb[10].mxu0 %v28816_v11 }
 0xa1f   :  { %24092 = vmatpush3.bf16.msra.mxu0 %v28229_v56  ;;  %20260 = vmatprep.mubr.f32.mxu0 %v28761_v22 }
 0xa20   :  { %24282 = vmatprep.subr.bf16.mxu1 %v28229_v56  ;;  %24094 = vmatprep.subr.bf16.mxu0 %v28245_v40 }
 0xa21   :  { %20436 = vmatmul.mubr.f32.vlgmr.msra.gmra.mrb[10].mxu1 %v28820_v29 }
 0xa22   :  { %24284 = vmatpush3.bf16.msra.mxu1 %v28229_v56  ;;  %20470 = vmatprep.mubr.f32.mxu1 %v28766_v26 }
 0xa23   :  { %24096 = vmatpush3.bf16.msra.mxu0 %v28245_v40  ;;  %24286 = vmatprep.subr.bf16.mxu1 %v28245_v40 }
 0xa24   :  { %24098 = vmatprep.subr.bf16.mxu0 %v28263_v57 }
 0xa26   :  { %24288 = vmatpush3.bf16.msra.mxu1 %v28245_v40 }
 0xa27   :  { %24100 = vmatpush3.bf16.msra.mxu0 %v28263_v57  ;;  %24290 = vmatprep.subr.bf16.mxu1 %v28263_v57 }
 0xa28   :  { %24102 = vmatprep.subr.bf16.mxu0 %v28279_v37 }
 0xa2a   :  { %24292 = vmatpush3.bf16.msra.mxu1 %v28263_v57 }
 0xa2b   :  { %24104 = vmatpush3.bf16.msra.mxu0 %v28279_v37  ;;  %24294 = vmatprep.subr.bf16.mxu1 %v28279_v37 }
 0xa2c   :  { %24106 = vmatprep.subr.bf16.mxu0 %v28291_v49 }
 0xa2e   :  { %24296 = vmatpush3.bf16.msra.mxu1 %v28279_v37 }
 0xa2f   :  { %24108 = vmatpush3.bf16.msra.mxu0 %v28291_v49  ;;  %24298 = vmatprep.subr.bf16.mxu1 %v28291_v49 }
 0xa30   :  { %24110 = vmatprep.subr.bf16.mxu0 %v28300_v16 }
 0xa32   :  { %24300 = vmatpush3.bf16.msra.mxu1 %v28291_v49 }
 0xa33   :  { %24112 = vmatpush3.bf16.msra.mxu0 %v28300_v16  ;;  %24302 = vmatprep.subr.bf16.mxu1 %v28300_v16 }
 0xa34   :  { %24114 = vmatprep.subr.bf16.mxu0 %v28306_v58 }
 0xa36   :  { %24304 = vmatpush3.bf16.msra.mxu1 %v28300_v16 }
 0xa37   :  { %24116 = vmatpush3.bf16.msra.mxu0 %v28306_v58  ;;  %24306 = vmatprep.subr.bf16.mxu1 %v28306_v58 }
 0xa38   :  { %24118 = vmatprep.subr.bf16.mxu0 %v28324_v15 }
 0xa3a   :  { %24308 = vmatpush3.bf16.msra.mxu1 %v28306_v58 }
 0xa3b   :  { %24120 = vmatpush3.bf16.msra.mxu0 %v28324_v15  ;;  %24310 = vmatprep.subr.bf16.mxu1 %v28324_v15 }
 0xa3e   :  { %24312 = vmatpush3.bf16.msra.mxu1 %v28324_v15  ;;  %20261 = vmatmul.mubr.f32.vlgmr.msra.gmra.mrb[10].mxu0 %v28816_v11 }
 0xa41   :  { %20471 = vmatmul.mubr.f32.vlgmr.msra.gmra.mrb[10].mxu1 %v28820_v29 }
 0xa51   :  { %v19842_v56 = vpop.f32.mrb[8].mxu0 }
 0xa52   :  { %v11958_v40 = vpop.f32.mrb[9].mxu0 }
 0xa53   :  { %v11968_v57 = vadd.f32 %v19842_v56, %v11958_v40 }
 0xa54   :  { %v20052_v37 = vpop.f32.mrb[8].mxu1 }
 0xa55   :  { %v12652_v49 = vpop.f32.mrb[9].mxu1  ;;  %v11969_v45 = vrot.slane %v11968_v57, 4 }
 0xa56   :  { %v12662_v16 = vadd.f32 %v20052_v37, %v12652_v49 }
 0xa57   :  { %v11970_v35 = vadd.f32 %v11969_v45, %v11968_v57 }
 0xa58   :  { %v12663_v32 = vrot.slane %v12662_v16, 4 }
 0xa59   :  { %v11971_v41 = vrot.slane %v11970_v35, 2 }
 0xa5a   :  { %v12664_v24 = vadd.f32 %v12663_v32, %v12662_v16 }
 0xa5b   :  { %v11972_v0 = vadd.f32 %v11971_v41, %v11970_v35 }
 0xa5c   :  { %v12665_v20 = vrot.slane %v12664_v24, 2 }
 0xa5d   :  { %v11973_v12 = vrot.slane %v11972_v0, 1 }
 0xa5e   :  { %v12666_v59 = vadd.f32 %v12665_v20, %v12664_v24 }
 0xa5f   :  { %v11974_v21 = vadd.f32 %v11973_v12, %v11972_v0 }
 0xa60   :  { %v12667_v61 = vrot.slane %v12666_v59, 1 }
 0xa62   :  { %v12668_v10 = vadd.f32 %v12667_v61, %v12666_v59 }
 0xb11   :  { %v20262_v58 = vpop.f32.mrb[10].mxu0 }
 0xb12   :  { %v13344_v34 = vpop.f32.mrb[11].mxu0 }
 0xb13   :  { %v13354_v6 = vadd.f32 %v20262_v58, %v13344_v34 }
 0xb14   :  { %v20472_v9 = vpop.f32.mrb[10].mxu1 }
 0xb15   :  { %v13355_v15 = vrot.slane %v13354_v6, 4  ;;  %v14038_v33 = vpop.f32.mrb[11].mxu1 }
 0xb16   :  { %v14048_v55 = vadd.f32 %v20472_v9, %v14038_v33 }
 0xb17   :  { %v13356_v42 = vadd.f32 %v13355_v15, %v13354_v6 }
 0xb18   :  { %v14049_v19 = vrot.slane %v14048_v55, 4 }
 0xb19   :  { %v13357_v63 = vrot.slane %v13356_v42, 2 }
 0xb1a   :  { %v14050_v3 = vadd.f32 %v14049_v19, %v14048_v55 }
 0xb1b   :  { %v13358_v25 = vadd.f32 %v13357_v63, %v13356_v42 }
 0xb1c   :  { %v14051_v52 = vrot.slane %v14050_v3, 2 }
 0xb1d   :  { %v13359_v43 = vrot.slane %v13358_v25, 1 }
 0xb1e   :  { %v14052_v31 = vadd.f32 %v14051_v52, %v14050_v3 }
 0xb1f   :  { %v13360_v60 = vadd.f32 %v13359_v43, %v13358_v25 }
 0xb20   :  { %v14053_v2 = vrot.slane %v14052_v31, 1 }
 0xb21   :  { %v13361_v23 = vadd.f32 %v13360_v60, %v11974_v21 }
 0xb22   :  { %v14054_v5 = vadd.f32 %v14053_v2, %v14052_v31 }
 0xb23   :  { %v14056_v50 = vmul.f32 0.001953125, %v13361_v23 }
 0xb24   :  { %v14055_v22 = vadd.f32 %v14054_v5, %v12668_v10 }
 0xb25   :  { %v14058_v26 = vmul.f32 %v14056_v50, %v14056_v50 }
 0xb26   :  { %v14057_v54 = vmul.f32 0.001953125, %v14055_v22 }
 0xb28   :  { %v14059_v47 = vsub.f32 %v14057_v54, %v14058_v26 }
 0xb2a   :  { %v14060_v28 = vadd.f32 1e-05, %v14059_v47 }
 0xb2c   :  { %24539 = vrsqrt.f32 %v14060_v28 }
 0xb36   :  { %v24540_v4 = vpop.eup %24539 }
 0xb37   :  { %v14062_v62 = vmul.f32 %v24540_v4, %v11266_v30 }
 0xb39   :  { %v14063_v13 = vmul.f32 %v14062_v62, %v14056_v50  ;;  %v14069_v27 = vrot.slane %v14062_v62, %v27143_v51 }
 0xb3b   :  { %v14064_v11 = vsub.f32 %v11267_v44, %v14063_v13  ;;  %v14071_v29 = vmul.f32 %v14069_v27, %v28435_v48  ;;  %v14072_v18 = vmul.f32 %v28420_v7, %v14069_v27  ;;  %v14081_v17 = vmul.f32 %v14069_v27, %v28444_v14 }
 0xb3c   :  { %v14082_v36 = vmul.f32 %v28433_v8, %v14069_v27 }
 0xb3d   :  { %v14077_v53 = vrot.slane %v14064_v11, %v27143_v51 }
 0xb3f   :  { %v14079_v1 = vadd.f32 %v14077_v53, %v14071_v29  ;;  %v14080_v39 = vadd.f32 %v14077_v53, %v14072_v18  ;;  %v14083_v38 = vadd.f32 %v14081_v17, %v14077_v53  ;;  %v14084_v46 = vadd.f32 %v14082_v36, %v14077_v53 }
 0xb41   :  { %v14085_v56 = vmax.f32 %v14079_v1, 0.0  ;;  %v14086_v40 = vmax.f32 %v14080_v39, 0.0  ;;  %v14089_v57 = vmax.f32 %v14083_v38, 0.0  ;;  %v14090_v37 = vmax.f32 %v14084_v46, 0.0 }
 0xb43   :  { %14087 = vst [vmem:[#allocation11] sm:$0xff] %v14085_v56  ;;  %14088 = vst [vmem:[#allocation11 + $0x8] sm:$0xff] %v14086_v40 }
 0xb44   :  { %14092 = vst [vmem:[#allocation11 + $0x10] sm:$0xff] %v14089_v57  ;;  %14093 = vst [vmem:[#allocation11 + $0x18] sm:$0xff] %v14090_v37 }
 0xb45   :  { %24640 = shalt.err (!%p24637_p8)
}
 0xb46   :  { %s24641_s20 = scalar_lea.hbm %s29071_s8, 512 }
 0xb47   :  { %p24642_p9 = scmp.ne.s32.totalorder %s29071_s8, %s24641_s20  ;;  %p24645_p10 = scmp.lt.u32.totalorder %s24641_s20, %s29071_s8 }
 0xb49   :  { %p24647_p11 = pnand %p24645_p10, %p24642_p9 }
 0xb4b   :  { %24650 = shalt.err (!%p24647_p11)
}
 0xb4c   :  { %14105 = dma.vmem_to_hbm [thread:$0]  %s14100_s15, 512, %s29071_s8, [#allocation5], %s24661_s17, %s24661_s17, %s24662_s18  }
 0xb4d   :  { %24657 = dma.done.wait [#allocation5], 512  }
 0xb4e   :  { %24658 = vsyncadd [#allocation5], 4294966784 }
 0xb4f   :  { %14109 = vsyncpa [#allocation4], 1 }
 0xb50   :  { %14110 = vsyncpa [#allocation7], 1 }
 0xb51   :  { %14111 = vsyncpa [#allocation10], 1 }
 0xb52   :  { %14112 = vsyncpa [#allocation5], 1 }

</bundles_post_ra>
